<compile_context>
chip_gen: v7x
topology: tpu7x:2x2x1
jax: 0.10.0
libtpu: 0.0.40
codegen_flags: <defaults>
</compile_context>

<pallas_src>
import functools

import jax
import jax.numpy as jnp
import numpy as np
from jax import lax
from jax.experimental import pallas as pl
from jax.experimental.pallas import tpu as pltpu

fop_names = ("none", "skip_connect", "avg_pool_3x3", "max_pool_3x3", "conv_3x3")
NUM_OPS = len(fop_names)
NEG_BIG = 1e30

# bf16 operands for the conv matmul (f32 accumulate).  Set to jnp.float32 if
# bit-exact f32 conv is required.
MATMUL_DTYPE = jnp.bfloat16


def _build_banded_conv(kern_hwio, W, groups):
    """(3,3,C_in,C_out) filter -> (3, (W+2)*G*C_in, W*G*C_out) banded matrices.

    Lane layout is (w, g, c) where g indexes the lane-packed images.  Along w
    the matrix is banded over the 3 kw taps; it is block-diagonal over g.
        conv[h, :] = sum_dy  xp_packed[h + dy, :] @ B[dy]
    TODO(synk): for very large C the banded form does ~(W+2)/3 x redundant
    MACs and B grows as O(W^2*C^2); tile W or switch to an im2col K=9C form.
    """
    _, _, C_in, C_out = kern_hwio.shape
    w_in = jnp.arange(W + 2)[:, None]                # (W+2, 1)
    w_out = jnp.arange(W)[None, :]                   # (1, W)
    dxs = w_in - w_out                               # (W+2, W)
    valid = (dxs >= 0) & (dxs <= 2)
    taps = kern_hwio[:, jnp.clip(dxs, 0, 2)]         # (3, W+2, W, C_in, C_out)
    taps = jnp.where(valid[None, :, :, None, None], taps, 0.0)
    taps = jnp.transpose(taps, (0, 1, 3, 2, 4))      # (3, W+2, C_in, W, C_out)
    eye = jnp.eye(groups, dtype=taps.dtype)
    full = taps[:, :, None, :, :, None, :] * eye[None, None, :, None, None, :, None]
    return full.reshape(3, (W + 2) * groups * C_in, W * groups * C_out)


def _choose_batching(N, H, W, C):
    """Pick (NB_L lane-packed images, NB_M row-batched images) per grid step."""
    # Lane packing: make the packed lane width W*NB_L*C a multiple of 128
    # (dense vst) while keeping the banded weights small and dividing N.
    NB_L = 1
    if (W * C) % 128 != 0:
        for l in range(2, 9):
            if N % l == 0 and (W * C * l) % 128 == 0 and W * C * l <= 256:
                NB_L = l
                break
    # Row batching: fold NB_M images into the matmul M dimension, targeting
    # ~256 rows, capped at 8 (code size) and keeping the grid >= 2 so both
    # v7x TensorCores get work.
    rem = N // NB_L
    cap = min(8, max(1, 256 // (H + 2)))
    if rem >= 2:
        cap = min(cap, rem // 2)
    cap = max(1, cap)
    NB_M = 1
    for d in range(cap, 0, -1):
        if rem % d == 0:
            NB_M = d
            break
    return NB_L, NB_M


def mixed_op_kernel(w_ref, xp_ref, border_ref, inv_ref, b_ref, o_ref,
                    xn_ref, c0_ref, c1_ref, c2_ref, *, H, W, CL, NB_M):
    """NB_M images per grid step; lane axis packs (w, lane-image, channel) = CL.

    w_ref      : (2,)                     f32  SMEM  (w_skip, w_max)
    xp_ref     : (NB_M*(H+2), (W+2)*CL)   f32  VMEM  zero-padded packed input
    border_ref : (NB_M*(H+2), (W+2)*CL)   f32  VMEM  0 interior / -1e30 pad ring
    inv_ref    : (H, W*CL)                f32  VMEM  w_avg / valid-count plane
    b_ref      : (3, (W+2)*CL, W*CL)      bf16 VMEM  banded conv weights (*w_conv)
    o_ref      : (NB_M*H, W*CL)                VMEM  packed output
    xn_ref     : scratch, border-biased input for max-pool taps
    c{0,1,2}   : scratch, banded-conv row results per kh tap
    """
    WCL = W * CL
    HP = H + 2

    # ---- sweep 1: conv_3x3 as three banded matmuls over the whole slab ------
    # M = NB_M*(H+2) rows feeds the MXU; per-image dy-shifted row windows are
    # sliced out below.
    xp_mm = xp_ref[...].astype(b_ref.dtype)
    c0_ref[...] = jnp.dot(xp_mm, b_ref[0], preferred_element_type=jnp.float32)
    c1_ref[...] = jnp.dot(xp_mm, b_ref[1], preferred_element_type=jnp.float32)
    c2_ref[...] = jnp.dot(xp_mm, b_ref[2], preferred_element_type=jnp.float32)

    # Single -inf border bias, added once; every max-pool tap is a plain slice.
    xn_ref[...] = xp_ref[...] + border_ref[...]

    w_skip = w_ref[0]
    w_max = w_ref[1]
    inv = inv_ref[...]

    # ---- sweep 2: pooling + finalize, one image (H rows) at a time ----------
    # (bounds the number of live full planes / vreg pressure)
    for m in range(NB_M):
        base = m * HP
        conv = (c0_ref[base:base + H, :]
                + c1_ref[base + 1:base + 1 + H, :]
                + c2_ref[base + 2:base + 2 + H, :])
        # center tap == skip_connect input (fully interior, border bias = 0)
        center = xp_ref[base + 1:base + 1 + H, CL:CL + WCL]
        psum = center
        pmax = center
        for dy in range(3):
            for dx in range(3):
                if dy == 1 and dx == 1:
                    continue
                rs, cs = base + dy, dx * CL
                psum = psum + xp_ref[rs:rs + H, cs:cs + WCL]   # zero pad harmless
                pmax = jnp.maximum(pmax, xn_ref[rs:rs + H, cs:cs + WCL])
        # w_conv / w_avg already folded in; 'none' contributes 0.
        o_ref[m * H:(m + 1) * H, :] = (conv
                                       + w_skip * center
                                       + inv * psum
                                       + w_max * pmax).astype(o_ref.dtype)


@functools.partial(jax.jit, static_argnames=("single_buffer", "out_dtype"))
def _mixed_op_impl(x_nchw, weights, conv_w, single_buffer=True,
                   out_dtype=jnp.float32):
    N, C_in, H, W = x_nchw.shape
    C_out = conv_w.shape[-1]
    assert C_in == C_out, "skip_connect requires C_in == C_out (stride=1 case)"
    C = C_in

    NB_L, NB_M = _choose_batching(N, H, W, C)
    G = N // (NB_L * NB_M)
    CL = NB_L * C
    HP = H + 2
    M_rows = NB_M * HP
    PWL = (W + 2) * CL
    WCL = W * CL

    weights = weights.astype(jnp.float32)

    # NCHW -> grouped NHWC -> zero pad=1 -> lane-pack (w, lane-image, c):
    #   xp_packed: (G, NB_M*(H+2), (W+2)*CL)
    # NB_M images stacked along rows (matmul M), NB_L images packed on lanes.
    x = x_nchw.astype(jnp.float32).reshape(G, NB_M, NB_L, C, H, W)
    x = jnp.transpose(x, (0, 1, 4, 5, 2, 3))                 # (G,NB_M,H,W,NB_L,C)
    xp = jnp.pad(x, ((0, 0), (0, 0), (1, 1), (1, 1), (0, 0), (0, 0)))
    xp_packed = xp.reshape(G, M_rows, PWL)
    # TODO(synk): build the 1-pixel halo inside the kernel (memory_space=pl.ANY
    # + make_async_copy into a zero-initialised VMEM scratch) so this padded /
    # transposed copy never round-trips HBM; also strip-mine H with a 1-row
    # halo for realistic (large H, W*C) DARTS shapes.

    # -inf border-bias plane (0 interior, -1e30 on the pad ring), added to the
    # input once in-kernel so every max-pool tap is a plain slice.
    row_in = jnp.arange(M_rows) % HP
    col_w = jnp.arange(PWL) // CL
    pad_mask = (((row_in == 0) | (row_in == H + 1))[:, None]
                | ((col_w == 0) | (col_w == W + 1))[None, :])
    border = jnp.where(pad_mask, -NEG_BIG, 0.0).astype(jnp.float32)

    # avg_pool_3x3, count_include_pad=False:  w_avg / count, broadcast over CL.
    cnt_h = jnp.full((H,), 3.0, jnp.float32).at[0].set(2.0).at[H - 1].set(2.0)
    cnt_w = jnp.full((W,), 3.0, jnp.float32).at[0].set(2.0).at[W - 1].set(2.0)
    inv_cnt = jnp.repeat(weights[2] / (cnt_h[:, None] * cnt_w[None, :]),
                         CL, axis=1)                          # (H, W*CL)

    # conv_3x3 weights with w_conv folded in, block-diagonal over lane images.
    B = _build_banded_conv(conv_w.astype(jnp.float32) * weights[4], W, NB_L)
    B = B.astype(MATMUL_DTYPE)

    w2 = jnp.stack([weights[1], weights[3]])                  # (w_skip, w_max)

    # VMEM budget from actual tile sizes (v7x has only 64 MiB; cap at 48 MiB).
    nbuf = 1 if single_buffer else 2
    out_isz = jnp.dtype(out_dtype).itemsize
    mm_isz = jnp.dtype(MATMUL_DTYPE).itemsize
    est = (2 * M_rows * PWL * 4                      # xp, double-buffered
           + 2 * NB_M * H * WCL * out_isz            # out, double-buffered
           + nbuf * (M_rows * PWL * 4                # border
                     + H * WCL * 4                   # inv_cnt
                     + 3 * PWL * WCL * mm_isz)       # banded conv weights
           + M_rows * PWL * 4                        # xn scratch
           + 3 * M_rows * WCL * 4)                   # conv scratch
    vmem_limit = int(min(48 << 20, max(8 << 20, 2 * est + (2 << 20))))

    # Grid-invariant inputs: constant index maps -> nothing to pipeline, so a
    # single buffer halves their VMEM footprint.
    const_kw = dict(pipeline_mode=pl.Buffered(1)) if single_buffer else {}

    out_packed = pl.pallas_call(
        functools.partial(mixed_op_kernel, H=H, W=W, CL=CL, NB_M=NB_M),
        out_shape=jax.ShapeDtypeStruct((G, NB_M * H, WCL), out_dtype),
        grid=(G,),
        in_specs=[
            pl.BlockSpec(memory_space=pltpu.SMEM),                         # w2
            pl.BlockSpec((None, M_rows, PWL), lambda g: (g, 0, 0)),        # xp
            pl.BlockSpec((M_rows, PWL), lambda g: (0, 0), **const_kw),     # border
            pl.BlockSpec((H, WCL), lambda g: (0, 0), **const_kw),          # inv
            pl.BlockSpec((3, PWL, WCL), lambda g: (0, 0, 0), **const_kw),  # B
        ],
        out_specs=pl.BlockSpec((None, NB_M * H, WCL), lambda g: (g, 0, 0)),
        scratch_shapes=[
            pltpu.VMEM((M_rows, PWL), jnp.float32),   # xn: border-biased input
            pltpu.VMEM((M_rows, WCL), jnp.float32),   # conv rows, kh = 0
            pltpu.VMEM((M_rows, WCL), jnp.float32),   # conv rows, kh = 1
            pltpu.VMEM((M_rows, WCL), jnp.float32),   # conv rows, kh = 2
        ],
        compiler_params=pltpu.CompilerParams(
            dimension_semantics=("parallel",),
            vmem_limit_bytes=vmem_limit),
    )(w2, xp_packed, border, inv_cnt, B)

    # Un-pack: rows -> (NB_M, H), lanes -> (W, NB_L, C), back to NCHW.
    out = out_packed.reshape(G, NB_M, H, W, NB_L, C_out)
    out = jnp.transpose(out, (0, 1, 4, 5, 2, 3))              # (G,NB_M,NB_L,C,H,W)
    return out.reshape(N, C_out, H, W)


_SINGLE_BUFFER_OK = None


def mixed_op(x_nchw, weights, conv_w, out_dtype=jnp.float32):
    """x_nchw: (N, C, H, W) like the PyTorch module; returns (N, C_out, H, W).

    Pass out_dtype=jnp.bfloat16 to halve output store/HBM traffic (v5e) if the
    consumer accepts it; default f32 for parity with the reference.
    """
    global _SINGLE_BUFFER_OK
    if _SINGLE_BUFFER_OK is None:
        try:
            out = _mixed_op_impl(x_nchw, weights, conv_w,
                                 single_buffer=True, out_dtype=out_dtype)
            _SINGLE_BUFFER_OK = True
            return out
        except Exception:  # older Pallas without pipeline_mode / Buffered(1)
            _SINGLE_BUFFER_OK = False
    return _mixed_op_impl(x_nchw, weights, conv_w,
                          single_buffer=_SINGLE_BUFFER_OK, out_dtype=out_dtype)


def mixed_op_reference(x_nchw, weights, conv_w):
    """Pure-JAX reference of the same op mixture (for verification)."""
    x = jnp.transpose(x_nchw, (0, 2, 3, 1)).astype(jnp.float32)
    win, strd = (1, 3, 3, 1), (1, 1, 1, 1)
    skip = x
    ssum = lax.reduce_window(x, 0.0, lax.add, win, strd, "SAME")
    cnt = lax.reduce_window(jnp.ones_like(x), 0.0, lax.add, win, strd, "SAME")
    avg = ssum / cnt
    mx = lax.reduce_window(x, -jnp.inf, lax.max, win, strd, "SAME")
    conv = lax.conv_general_dilated(
        x, conv_w, (1, 1), "SAME",
        dimension_numbers=("NHWC", "HWIO", "NHWC"))
    out = (weights[1] * skip + weights[2] * avg + weights[3] * mx
           + weights[4] * conv)  # weights[0] * zeros == 0
    return jnp.transpose(out, (0, 3, 1, 2))


if __name__ == "__main__":
    # Small shapes consistent with the module: C_in=C_out=4, 16x16 images.
    # N=16 so the batching levers are exercised: 2 images lane-packed
    # (lane width 64 -> 128), 4 images row-batched per grid step, grid=2.
    N, C_in, C_out, H, W = 16, 4, 4, 16, 16

    key = jax.random.PRNGKey(0)
    k_x, k_w, k_a = jax.random.split(key, 3)

    x = jax.random.normal(k_x, (N, C_in, H, W), dtype=jnp.float32)
    conv_w = 0.1 * jax.random.normal(k_w, (3, 3, C_in, C_out), dtype=jnp.float32)
    # Architecture weights (one per candidate op), like softmax(alpha) in DARTS.
    weights = jax.nn.softmax(jax.random.normal(k_a, (NUM_OPS,), dtype=jnp.float32))

    out = jax.block_until_ready(mixed_op(x, weights, conv_w))
    ref = jax.block_until_ready(mixed_op_reference(x, weights, conv_w))

    # Tolerance loosened because the conv matmul operands are bf16 (f32 accum).
    np.testing.assert_allclose(np.asarray(out), np.asarray(ref),
                               rtol=2e-2, atol=2e-2)

    print("KERNEL_OK")
</pallas_src>

<mosaic_0001>
module attributes {stable_mosaic.version = 11 : i64} {
  func.func @mixed_op_kernel(%arg0: i32, %arg1: memref<2xf32, #tpu.memory_space<smem>>, %arg2: memref<1x72x144xf32, #tpu.memory_space<vmem>>, %arg3: memref<72x144xf32, #tpu.memory_space<vmem>>, %arg4: memref<16x128xf32, #tpu.memory_space<vmem>>, %arg5: memref<3x144x128xbf16, #tpu.memory_space<vmem>>, %arg6: memref<1x64x128xf32, #tpu.memory_space<vmem>>, %arg7: memref<72x144xf32, #tpu.memory_space<vmem>>, %arg8: memref<72x128xf32, #tpu.memory_space<vmem>>, %arg9: memref<72x128xf32, #tpu.memory_space<vmem>>, %arg10: memref<72x128xf32, #tpu.memory_space<vmem>>) attributes {dimension_semantics = [#tpu.dimension_semantics<parallel>], iteration_bounds = array<i64: 2>, scalar_prefetch = 0 : i64, scratch_operands = 4 : i64, tpu.core_type = #tpu.core_type<tc>, window_params = [{transform_indices = @transform_0, window_bounds = array<i64: 2>}, {transform_indices = @transform_1, window_bounds = array<i64: 1, 72, 144>}, {pipeline_mode = #tpu.pipeline_mode<synchronous>, transform_indices = @transform_2, window_bounds = array<i64: 72, 144>}, {pipeline_mode = #tpu.pipeline_mode<synchronous>, transform_indices = @transform_3, window_bounds = array<i64: 16, 128>}, {pipeline_mode = #tpu.pipeline_mode<synchronous>, transform_indices = @transform_4, window_bounds = array<i64: 3, 144, 128>}, {transform_indices = @transform_5, window_bounds = array<i64: 1, 64, 128>}]} {
    %c0 = arith.constant 0 : index
    %c0_0 = arith.constant 0 : index
    %c0_1 = arith.constant 0 : index
    %0 = vector.load %arg2[%c0, %c0_0, %c0_1] : memref<1x72x144xf32, #tpu.memory_space<vmem>>, vector<1x72x144xf32>
    %1 = vector.shape_cast %0 : vector<1x72x144xf32> to vector<72x144xf32>
    %2 = arith.truncf %1 : vector<72x144xf32> to vector<72x144xbf16>
    %c0_2 = arith.constant 0 : index
    %c0_3 = arith.constant 0 : index
    %c0_4 = arith.constant 0 : index
    %3 = vector.load %arg5[%c0_2, %c0_3, %c0_4] : memref<3x144x128xbf16, #tpu.memory_space<vmem>>, vector<1x144x128xbf16>
    %4 = vector.shape_cast %3 : vector<1x144x128xbf16> to vector<144x128xbf16>
    %cst = arith.constant dense<0.000000e+00> : vector<72x128xf32>
    %5 = tpu.matmul %2, %4, %cst {dimension_numbers = #tpu.dot_dimension_numbers<[1], [0], [0], [1], [0, 0, 1, 1], [], []>} : vector<72x144xbf16>, vector<144x128xbf16>, vector<72x128xf32> -> vector<72x128xf32>
    %c0_5 = arith.constant 0 : index
    %c0_6 = arith.constant 0 : index
    %6 = vector.load %arg8[%c0_5, %c0_6] : memref<72x128xf32, #tpu.memory_space<vmem>>, vector<72x128xf32>
    tpu.vector_store %arg8[%c0_5, %c0_6], %5 {strides = array<i32>} : memref<72x128xf32, #tpu.memory_space<vmem>>, vector<72x128xf32>,
    %c1 = arith.constant 1 : index
    %c0_7 = arith.constant 0 : index
    %c0_8 = arith.constant 0 : index
    %7 = vector.load %arg5[%c1, %c0_7, %c0_8] : memref<3x144x128xbf16, #tpu.memory_space<vmem>>, vector<1x144x128xbf16>
    %8 = vector.shape_cast %7 : vector<1x144x128xbf16> to vector<144x128xbf16>
    %cst_9 = arith.constant dense<0.000000e+00> : vector<72x128xf32>
    %9 = tpu.matmul %2, %8, %cst_9 {dimension_numbers = #tpu.dot_dimension_numbers<[1], [0], [0], [1], [0, 0, 1, 1], [], []>} : vector<72x144xbf16>, vector<144x128xbf16>, vector<72x128xf32> -> vector<72x128xf32>
    %c0_10 = arith.constant 0 : index
    %c0_11 = arith.constant 0 : index
    %10 = vector.load %arg9[%c0_10, %c0_11] : memref<72x128xf32, #tpu.memory_space<vmem>>, vector<72x128xf32>
    tpu.vector_store %arg9[%c0_10, %c0_11], %9 {strides = array<i32>} : memref<72x128xf32, #tpu.memory_space<vmem>>, vector<72x128xf32>,
    %c2 = arith.constant 2 : index
    %c0_12 = arith.constant 0 : index
    %c0_13 = arith.constant 0 : index
    %11 = vector.load %arg5[%c2, %c0_12, %c0_13] : memref<3x144x128xbf16, #tpu.memory_space<vmem>>, vector<1x144x128xbf16>
    %12 = vector.shape_cast %11 : vector<1x144x128xbf16> to vector<144x128xbf16>
    %cst_14 = arith.constant dense<0.000000e+00> : vector<72x128xf32>
    %13 = tpu.matmul %2, %12, %cst_14 {dimension_numbers = #tpu.dot_dimension_numbers<[1], [0], [0], [1], [0, 0, 1, 1], [], []>} : vector<72x144xbf16>, vector<144x128xbf16>, vector<72x128xf32> -> vector<72x128xf32>
    %c0_15 = arith.constant 0 : index
    %c0_16 = arith.constant 0 : index
    %14 = vector.load %arg10[%c0_15, %c0_16] : memref<72x128xf32, #tpu.memory_space<vmem>>, vector<72x128xf32>
    tpu.vector_store %arg10[%c0_15, %c0_16], %13 {strides = array<i32>} : memref<72x128xf32, #tpu.memory_space<vmem>>, vector<72x128xf32>,
    %c0_17 = arith.constant 0 : index
    %c0_18 = arith.constant 0 : index
    %c0_19 = arith.constant 0 : index
    %15 = vector.load %arg2[%c0_17, %c0_18, %c0_19] : memref<1x72x144xf32, #tpu.memory_space<vmem>>, vector<1x72x144xf32>
    %16 = vector.shape_cast %15 : vector<1x72x144xf32> to vector<72x144xf32>
    %c0_20 = arith.constant 0 : index
    %c0_21 = arith.constant 0 : index
    %17 = vector.load %arg3[%c0_20, %c0_21] : memref<72x144xf32, #tpu.memory_space<vmem>>, vector<72x144xf32>
    %18 = arith.addf %16, %17 : vector<72x144xf32>
    %c0_22 = arith.constant 0 : index
    %c0_23 = arith.constant 0 : index
    %19 = vector.load %arg7[%c0_22, %c0_23] : memref<72x144xf32, #tpu.memory_space<vmem>>, vector<72x144xf32>
    tpu.vector_store %arg7[%c0_22, %c0_23], %18 {strides = array<i32>} : memref<72x144xf32, #tpu.memory_space<vmem>>, vector<72x144xf32>,
    %c0_24 = arith.constant 0 : index
    %20 = memref.load %arg1[%c0_24] : memref<2xf32, #tpu.memory_space<smem>>
    %c1_25 = arith.constant 1 : index
    %21 = memref.load %arg1[%c1_25] : memref<2xf32, #tpu.memory_space<smem>>
    %c0_26 = arith.constant 0 : index
    %c0_27 = arith.constant 0 : index
    %22 = vector.load %arg4[%c0_26, %c0_27] : memref<16x128xf32, #tpu.memory_space<vmem>>, vector<16x128xf32>
    %c0_28 = arith.constant 0 : index
    %c0_29 = arith.constant 0 : index
    %23 = vector.load %arg8[%c0_28, %c0_29] : memref<72x128xf32, #tpu.memory_space<vmem>>, vector<16x128xf32>
    %c1_30 = arith.constant 1 : index
    %c0_31 = arith.constant 0 : index
    %24 = vector.load %arg9[%c1_30, %c0_31] : memref<72x128xf32, #tpu.memory_space<vmem>>, vector<16x128xf32>
    %25 = arith.addf %23, %24 : vector<16x128xf32>
    %c2_32 = arith.constant 2 : index
    %c0_33 = arith.constant 0 : index
    %26 = vector.load %arg10[%c2_32, %c0_33] : memref<72x128xf32, #tpu.memory_space<vmem>>, vector<16x128xf32>
    %27 = arith.addf %25, %26 : vector<16x128xf32>
    %c0_34 = arith.constant 0 : index
    %c1_35 = arith.constant 1 : index
    %c8 = arith.constant 8 : index
    %28 = vector.load %arg2[%c0_34, %c1_35, %c8] : memref<1x72x144xf32, #tpu.memory_space<vmem>>, vector<1x16x128xf32>
    %29 = vector.shape_cast %28 : vector<1x16x128xf32> to vector<16x128xf32>
    %c0_36 = arith.constant 0 : index
    %c0_37 = arith.constant 0 : index
    %c0_38 = arith.constant 0 : index
    %30 = vector.load %arg2[%c0_36, %c0_37, %c0_38] : memref<1x72x144xf32, #tpu.memory_space<vmem>>, vector<1x16x128xf32>
    %31 = vector.shape_cast %30 : vector<1x16x128xf32> to vector<16x128xf32>
    %32 = arith.addf %29, %31 : vector<16x128xf32>
    %c0_39 = arith.constant 0 : index
    %c0_40 = arith.constant 0 : index
    %33 = vector.load %arg7[%c0_39, %c0_40] : memref<72x144xf32, #tpu.memory_space<vmem>>, vector<16x128xf32>
    %34 = arith.maximumf %29, %33 : vector<16x128xf32>
    %c0_41 = arith.constant 0 : index
    %c0_42 = arith.constant 0 : index
    %c8_43 = arith.constant 8 : index
    %35 = vector.load %arg2[%c0_41, %c0_42, %c8_43] : memref<1x72x144xf32, #tpu.memory_space<vmem>>, vector<1x16x128xf32>
    %36 = vector.shape_cast %35 : vector<1x16x128xf32> to vector<16x128xf32>
    %37 = arith.addf %32, %36 : vector<16x128xf32>
    %c0_44 = arith.constant 0 : index
    %c8_45 = arith.constant 8 : index
    %38 = vector.load %arg7[%c0_44, %c8_45] : memref<72x144xf32, #tpu.memory_space<vmem>>, vector<16x128xf32>
    %39 = arith.maximumf %34, %38 : vector<16x128xf32>
    %c0_46 = arith.constant 0 : index
    %c0_47 = arith.constant 0 : index
    %c16 = arith.constant 16 : index
    %40 = vector.load %arg2[%c0_46, %c0_47, %c16] : memref<1x72x144xf32, #tpu.memory_space<vmem>>, vector<1x16x128xf32>
    %41 = vector.shape_cast %40 : vector<1x16x128xf32> to vector<16x128xf32>
    %42 = arith.addf %37, %41 : vector<16x128xf32>
    %c0_48 = arith.constant 0 : index
    %c16_49 = arith.constant 16 : index
    %43 = vector.load %arg7[%c0_48, %c16_49] : memref<72x144xf32, #tpu.memory_space<vmem>>, vector<16x128xf32>
    %44 = arith.maximumf %39, %43 : vector<16x128xf32>
    %c0_50 = arith.constant 0 : index
    %c1_51 = arith.constant 1 : index
    %c0_52 = arith.constant 0 : index
    %45 = vector.load %arg2[%c0_50, %c1_51, %c0_52] : memref<1x72x144xf32, #tpu.memory_space<vmem>>, vector<1x16x128xf32>
    %46 = vector.shape_cast %45 : vector<1x16x128xf32> to vector<16x128xf32>
    %47 = arith.addf %42, %46 : vector<16x128xf32>
    %c1_53 = arith.constant 1 : index
    %c0_54 = arith.constant 0 : index
    %48 = vector.load %arg7[%c1_53, %c0_54] : memref<72x144xf32, #tpu.memory_space<vmem>>, vector<16x128xf32>
    %49 = arith.maximumf %44, %48 : vector<16x128xf32>
    %c0_55 = arith.constant 0 : index
    %c1_56 = arith.constant 1 : index
    %c16_57 = arith.constant 16 : index
    %50 = vector.load %arg2[%c0_55, %c1_56, %c16_57] : memref<1x72x144xf32, #tpu.memory_space<vmem>>, vector<1x16x128xf32>
    %51 = vector.shape_cast %50 : vector<1x16x128xf32> to vector<16x128xf32>
    %52 = arith.addf %47, %51 : vector<16x128xf32>
    %c1_58 = arith.constant 1 : index
    %c16_59 = arith.constant 16 : index
    %53 = vector.load %arg7[%c1_58, %c16_59] : memref<72x144xf32, #tpu.memory_space<vmem>>, vector<16x128xf32>
    %54 = arith.maximumf %49, %53 : vector<16x128xf32>
    %c0_60 = arith.constant 0 : index
    %c2_61 = arith.constant 2 : index
    %c0_62 = arith.constant 0 : index
    %55 = vector.load %arg2[%c0_60, %c2_61, %c0_62] : memref<1x72x144xf32, #tpu.memory_space<vmem>>, vector<1x16x128xf32>
    %56 = vector.shape_cast %55 : vector<1x16x128xf32> to vector<16x128xf32>
    %57 = arith.addf %52, %56 : vector<16x128xf32>
    %c2_63 = arith.constant 2 : index
    %c0_64 = arith.constant 0 : index
    %58 = vector.load %arg7[%c2_63, %c0_64] : memref<72x144xf32, #tpu.memory_space<vmem>>, vector<16x128xf32>
    %59 = arith.maximumf %54, %58 : vector<16x128xf32>
    %c0_65 = arith.constant 0 : index
    %c2_66 = arith.constant 2 : index
    %c8_67 = arith.constant 8 : index
    %60 = vector.load %arg2[%c0_65, %c2_66, %c8_67] : memref<1x72x144xf32, #tpu.memory_space<vmem>>, vector<1x16x128xf32>
    %61 = vector.shape_cast %60 : vector<1x16x128xf32> to vector<16x128xf32>
    %62 = arith.addf %57, %61 : vector<16x128xf32>
    %c2_68 = arith.constant 2 : index
    %c8_69 = arith.constant 8 : index
    %63 = vector.load %arg7[%c2_68, %c8_69] : memref<72x144xf32, #tpu.memory_space<vmem>>, vector<16x128xf32>
    %64 = arith.maximumf %59, %63 : vector<16x128xf32>
    %c0_70 = arith.constant 0 : index
    %c2_71 = arith.constant 2 : index
    %c16_72 = arith.constant 16 : index
    %65 = vector.load %arg2[%c0_70, %c2_71, %c16_72] : memref<1x72x144xf32, #tpu.memory_space<vmem>>, vector<1x16x128xf32>
    %66 = vector.shape_cast %65 : vector<1x16x128xf32> to vector<16x128xf32>
    %67 = arith.addf %62, %66 : vector<16x128xf32>
    %c2_73 = arith.constant 2 : index
    %c16_74 = arith.constant 16 : index
    %68 = vector.load %arg7[%c2_73, %c16_74] : memref<72x144xf32, #tpu.memory_space<vmem>>, vector<16x128xf32>
    %69 = arith.maximumf %64, %68 : vector<16x128xf32>
    %70 = vector.broadcast %20 : f32 to vector<16x128xf32>
    %71 = arith.mulf %70, %29 : vector<16x128xf32>
    %72 = arith.addf %27, %71 : vector<16x128xf32>
    %73 = arith.mulf %22, %67 : vector<16x128xf32>
    %74 = arith.addf %72, %73 : vector<16x128xf32>
    %75 = vector.broadcast %21 : f32 to vector<16x128xf32>
    %76 = arith.mulf %75, %69 : vector<16x128xf32>
    %77 = arith.addf %74, %76 : vector<16x128xf32>
    %c0_75 = arith.constant 0 : index
    %c0_76 = arith.constant 0 : index
    %c0_77 = arith.constant 0 : index
    %78 = vector.load %arg6[%c0_75, %c0_76, %c0_77] : memref<1x64x128xf32, #tpu.memory_space<vmem>>, vector<1x16x128xf32>
    %79 = vector.shape_cast %78 : vector<1x16x128xf32> to vector<16x128xf32>
    %80 = vector.shape_cast %77 : vector<16x128xf32> to vector<1x16x128xf32>
    tpu.vector_store %arg6[%c0_75, %c0_76, %c0_77], %80 {strides = array<i32>} : memref<1x64x128xf32, #tpu.memory_space<vmem>>, vector<1x16x128xf32>,
    %c18 = arith.constant 18 : index
    %c0_78 = arith.constant 0 : index
    %81 = vector.load %arg8[%c18, %c0_78] : memref<72x128xf32, #tpu.memory_space<vmem>>, vector<16x128xf32>
    %c19 = arith.constant 19 : index
    %c0_79 = arith.constant 0 : index
    %82 = vector.load %arg9[%c19, %c0_79] : memref<72x128xf32, #tpu.memory_space<vmem>>, vector<16x128xf32>
    %83 = arith.addf %81, %82 : vector<16x128xf32>
    %c20 = arith.constant 20 : index
    %c0_80 = arith.constant 0 : index
    %84 = vector.load %arg10[%c20, %c0_80] : memref<72x128xf32, #tpu.memory_space<vmem>>, vector<16x128xf32>
    %85 = arith.addf %83, %84 : vector<16x128xf32>
    %c0_81 = arith.constant 0 : index
    %c19_82 = arith.constant 19 : index
    %c8_83 = arith.constant 8 : index
    %86 = vector.load %arg2[%c0_81, %c19_82, %c8_83] : memref<1x72x144xf32, #tpu.memory_space<vmem>>, vector<1x16x128xf32>
    %87 = vector.shape_cast %86 : vector<1x16x128xf32> to vector<16x128xf32>
    %c0_84 = arith.constant 0 : index
    %c18_85 = arith.constant 18 : index
    %c0_86 = arith.constant 0 : index
    %88 = vector.load %arg2[%c0_84, %c18_85, %c0_86] : memref<1x72x144xf32, #tpu.memory_space<vmem>>, vector<1x16x128xf32>
    %89 = vector.shape_cast %88 : vector<1x16x128xf32> to vector<16x128xf32>
    %90 = arith.addf %87, %89 : vector<16x128xf32>
    %c18_87 = arith.constant 18 : index
    %c0_88 = arith.constant 0 : index
    %91 = vector.load %arg7[%c18_87, %c0_88] : memref<72x144xf32, #tpu.memory_space<vmem>>, vector<16x128xf32>
    %92 = arith.maximumf %87, %91 : vector<16x128xf32>
    %c0_89 = arith.constant 0 : index
    %c18_90 = arith.constant 18 : index
    %c8_91 = arith.constant 8 : index
    %93 = vector.load %arg2[%c0_89, %c18_90, %c8_91] : memref<1x72x144xf32, #tpu.memory_space<vmem>>, vector<1x16x128xf32>
    %94 = vector.shape_cast %93 : vector<1x16x128xf32> to vector<16x128xf32>
    %95 = arith.addf %90, %94 : vector<16x128xf32>
    %c18_92 = arith.constant 18 : index
    %c8_93 = arith.constant 8 : index
    %96 = vector.load %arg7[%c18_92, %c8_93] : memref<72x144xf32, #tpu.memory_space<vmem>>, vector<16x128xf32>
    %97 = arith.maximumf %92, %96 : vector<16x128xf32>
    %c0_94 = arith.constant 0 : index
    %c18_95 = arith.constant 18 : index
    %c16_96 = arith.constant 16 : index
    %98 = vector.load %arg2[%c0_94, %c18_95, %c16_96] : memref<1x72x144xf32, #tpu.memory_space<vmem>>, vector<1x16x128xf32>
    %99 = vector.shape_cast %98 : vector<1x16x128xf32> to vector<16x128xf32>
    %100 = arith.addf %95, %99 : vector<16x128xf32>
    %c18_97 = arith.constant 18 : index
    %c16_98 = arith.constant 16 : index
    %101 = vector.load %arg7[%c18_97, %c16_98] : memref<72x144xf32, #tpu.memory_space<vmem>>, vector<16x128xf32>
    %102 = arith.maximumf %97, %101 : vector<16x128xf32>
    %c0_99 = arith.constant 0 : index
    %c19_100 = arith.constant 19 : index
    %c0_101 = arith.constant 0 : index
    %103 = vector.load %arg2[%c0_99, %c19_100, %c0_101] : memref<1x72x144xf32, #tpu.memory_space<vmem>>, vector<1x16x128xf32>
    %104 = vector.shape_cast %103 : vector<1x16x128xf32> to vector<16x128xf32>
    %105 = arith.addf %100, %104 : vector<16x128xf32>
    %c19_102 = arith.constant 19 : index
    %c0_103 = arith.constant 0 : index
    %106 = vector.load %arg7[%c19_102, %c0_103] : memref<72x144xf32, #tpu.memory_space<vmem>>, vector<16x128xf32>
    %107 = arith.maximumf %102, %106 : vector<16x128xf32>
    %c0_104 = arith.constant 0 : index
    %c19_105 = arith.constant 19 : index
    %c16_106 = arith.constant 16 : index
    %108 = vector.load %arg2[%c0_104, %c19_105, %c16_106] : memref<1x72x144xf32, #tpu.memory_space<vmem>>, vector<1x16x128xf32>
    %109 = vector.shape_cast %108 : vector<1x16x128xf32> to vector<16x128xf32>
    %110 = arith.addf %105, %109 : vector<16x128xf32>
    %c19_107 = arith.constant 19 : index
    %c16_108 = arith.constant 16 : index
    %111 = vector.load %arg7[%c19_107, %c16_108] : memref<72x144xf32, #tpu.memory_space<vmem>>, vector<16x128xf32>
    %112 = arith.maximumf %107, %111 : vector<16x128xf32>
    %c0_109 = arith.constant 0 : index
    %c20_110 = arith.constant 20 : index
    %c0_111 = arith.constant 0 : index
    %113 = vector.load %arg2[%c0_109, %c20_110, %c0_111] : memref<1x72x144xf32, #tpu.memory_space<vmem>>, vector<1x16x128xf32>
    %114 = vector.shape_cast %113 : vector<1x16x128xf32> to vector<16x128xf32>
    %115 = arith.addf %110, %114 : vector<16x128xf32>
    %c20_112 = arith.constant 20 : index
    %c0_113 = arith.constant 0 : index
    %116 = vector.load %arg7[%c20_112, %c0_113] : memref<72x144xf32, #tpu.memory_space<vmem>>, vector<16x128xf32>
    %117 = arith.maximumf %112, %116 : vector<16x128xf32>
    %c0_114 = arith.constant 0 : index
    %c20_115 = arith.constant 20 : index
    %c8_116 = arith.constant 8 : index
    %118 = vector.load %arg2[%c0_114, %c20_115, %c8_116] : memref<1x72x144xf32, #tpu.memory_space<vmem>>, vector<1x16x128xf32>
    %119 = vector.shape_cast %118 : vector<1x16x128xf32> to vector<16x128xf32>
    %120 = arith.addf %115, %119 : vector<16x128xf32>
    %c20_117 = arith.constant 20 : index
    %c8_118 = arith.constant 8 : index
    %121 = vector.load %arg7[%c20_117, %c8_118] : memref<72x144xf32, #tpu.memory_space<vmem>>, vector<16x128xf32>
    %122 = arith.maximumf %117, %121 : vector<16x128xf32>
    %c0_119 = arith.constant 0 : index
    %c20_120 = arith.constant 20 : index
    %c16_121 = arith.constant 16 : index
    %123 = vector.load %arg2[%c0_119, %c20_120, %c16_121] : memref<1x72x144xf32, #tpu.memory_space<vmem>>, vector<1x16x128xf32>
    %124 = vector.shape_cast %123 : vector<1x16x128xf32> to vector<16x128xf32>
    %125 = arith.addf %120, %124 : vector<16x128xf32>
    %c20_122 = arith.constant 20 : index
    %c16_123 = arith.constant 16 : index
    %126 = vector.load %arg7[%c20_122, %c16_123] : memref<72x144xf32, #tpu.memory_space<vmem>>, vector<16x128xf32>
    %127 = arith.maximumf %122, %126 : vector<16x128xf32>
    %128 = vector.broadcast %20 : f32 to vector<16x128xf32>
    %129 = arith.mulf %128, %87 : vector<16x128xf32>
    %130 = arith.addf %85, %129 : vector<16x128xf32>
    %131 = arith.mulf %22, %125 : vector<16x128xf32>
    %132 = arith.addf %130, %131 : vector<16x128xf32>
    %133 = vector.broadcast %21 : f32 to vector<16x128xf32>
    %134 = arith.mulf %133, %127 : vector<16x128xf32>
    %135 = arith.addf %132, %134 : vector<16x128xf32>
    %c0_124 = arith.constant 0 : index
    %c16_125 = arith.constant 16 : index
    %c0_126 = arith.constant 0 : index
    %136 = vector.load %arg6[%c0_124, %c16_125, %c0_126] : memref<1x64x128xf32, #tpu.memory_space<vmem>>, vector<1x16x128xf32>
    %137 = vector.shape_cast %136 : vector<1x16x128xf32> to vector<16x128xf32>
    %138 = vector.shape_cast %135 : vector<16x128xf32> to vector<1x16x128xf32>
    tpu.vector_store %arg6[%c0_124, %c16_125, %c0_126], %138 {strides = array<i32>} : memref<1x64x128xf32, #tpu.memory_space<vmem>>, vector<1x16x128xf32>,
    %c36 = arith.constant 36 : index
    %c0_127 = arith.constant 0 : index
    %139 = vector.load %arg8[%c36, %c0_127] : memref<72x128xf32, #tpu.memory_space<vmem>>, vector<16x128xf32>
    %c37 = arith.constant 37 : index
    %c0_128 = arith.constant 0 : index
    %140 = vector.load %arg9[%c37, %c0_128] : memref<72x128xf32, #tpu.memory_space<vmem>>, vector<16x128xf32>
    %141 = arith.addf %139, %140 : vector<16x128xf32>
    %c38 = arith.constant 38 : index
    %c0_129 = arith.constant 0 : index
    %142 = vector.load %arg10[%c38, %c0_129] : memref<72x128xf32, #tpu.memory_space<vmem>>, vector<16x128xf32>
    %143 = arith.addf %141, %142 : vector<16x128xf32>
    %c0_130 = arith.constant 0 : index
    %c37_131 = arith.constant 37 : index
    %c8_132 = arith.constant 8 : index
    %144 = vector.load %arg2[%c0_130, %c37_131, %c8_132] : memref<1x72x144xf32, #tpu.memory_space<vmem>>, vector<1x16x128xf32>
    %145 = vector.shape_cast %144 : vector<1x16x128xf32> to vector<16x128xf32>
    %c0_133 = arith.constant 0 : index
    %c36_134 = arith.constant 36 : index
    %c0_135 = arith.constant 0 : index
    %146 = vector.load %arg2[%c0_133, %c36_134, %c0_135] : memref<1x72x144xf32, #tpu.memory_space<vmem>>, vector<1x16x128xf32>
    %147 = vector.shape_cast %146 : vector<1x16x128xf32> to vector<16x128xf32>
    %148 = arith.addf %145, %147 : vector<16x128xf32>
    %c36_136 = arith.constant 36 : index
    %c0_137 = arith.constant 0 : index
    %149 = vector.load %arg7[%c36_136, %c0_137] : memref<72x144xf32, #tpu.memory_space<vmem>>, vector<16x128xf32>
    %150 = arith.maximumf %145, %149 : vector<16x128xf32>
    %c0_138 = arith.constant 0 : index
    %c36_139 = arith.constant 36 : index
    %c8_140 = arith.constant 8 : index
    %151 = vector.load %arg2[%c0_138, %c36_139, %c8_140] : memref<1x72x144xf32, #tpu.memory_space<vmem>>, vector<1x16x128xf32>
    %152 = vector.shape_cast %151 : vector<1x16x128xf32> to vector<16x128xf32>
    %153 = arith.addf %148, %152 : vector<16x128xf32>
    %c36_141 = arith.constant 36 : index
    %c8_142 = arith.constant 8 : index
    %154 = vector.load %arg7[%c36_141, %c8_142] : memref<72x144xf32, #tpu.memory_space<vmem>>, vector<16x128xf32>
    %155 = arith.maximumf %150, %154 : vector<16x128xf32>
    %c0_143 = arith.constant 0 : index
    %c36_144 = arith.constant 36 : index
    %c16_145 = arith.constant 16 : index
    %156 = vector.load %arg2[%c0_143, %c36_144, %c16_145] : memref<1x72x144xf32, #tpu.memory_space<vmem>>, vector<1x16x128xf32>
    %157 = vector.shape_cast %156 : vector<1x16x128xf32> to vector<16x128xf32>
    %158 = arith.addf %153, %157 : vector<16x128xf32>
    %c36_146 = arith.constant 36 : index
    %c16_147 = arith.constant 16 : index
    %159 = vector.load %arg7[%c36_146, %c16_147] : memref<72x144xf32, #tpu.memory_space<vmem>>, vector<16x128xf32>
    %160 = arith.maximumf %155, %159 : vector<16x128xf32>
    %c0_148 = arith.constant 0 : index
    %c37_149 = arith.constant 37 : index
    %c0_150 = arith.constant 0 : index
    %161 = vector.load %arg2[%c0_148, %c37_149, %c0_150] : memref<1x72x144xf32, #tpu.memory_space<vmem>>, vector<1x16x128xf32>
    %162 = vector.shape_cast %161 : vector<1x16x128xf32> to vector<16x128xf32>
    %163 = arith.addf %158, %162 : vector<16x128xf32>
    %c37_151 = arith.constant 37 : index
    %c0_152 = arith.constant 0 : index
    %164 = vector.load %arg7[%c37_151, %c0_152] : memref<72x144xf32, #tpu.memory_space<vmem>>, vector<16x128xf32>
    %165 = arith.maximumf %160, %164 : vector<16x128xf32>
    %c0_153 = arith.constant 0 : index
    %c37_154 = arith.constant 37 : index
    %c16_155 = arith.constant 16 : index
    %166 = vector.load %arg2[%c0_153, %c37_154, %c16_155] : memref<1x72x144xf32, #tpu.memory_space<vmem>>, vector<1x16x128xf32>
    %167 = vector.shape_cast %166 : vector<1x16x128xf32> to vector<16x128xf32>
    %168 = arith.addf %163, %167 : vector<16x128xf32>
    %c37_156 = arith.constant 37 : index
    %c16_157 = arith.constant 16 : index
    %169 = vector.load %arg7[%c37_156, %c16_157] : memref<72x144xf32, #tpu.memory_space<vmem>>, vector<16x128xf32>
    %170 = arith.maximumf %165, %169 : vector<16x128xf32>
    %c0_158 = arith.constant 0 : index
    %c38_159 = arith.constant 38 : index
    %c0_160 = arith.constant 0 : index
    %171 = vector.load %arg2[%c0_158, %c38_159, %c0_160] : memref<1x72x144xf32, #tpu.memory_space<vmem>>, vector<1x16x128xf32>
    %172 = vector.shape_cast %171 : vector<1x16x128xf32> to vector<16x128xf32>
    %173 = arith.addf %168, %172 : vector<16x128xf32>
    %c38_161 = arith.constant 38 : index
    %c0_162 = arith.constant 0 : index
    %174 = vector.load %arg7[%c38_161, %c0_162] : memref<72x144xf32, #tpu.memory_space<vmem>>, vector<16x128xf32>
    %175 = arith.maximumf %170, %174 : vector<16x128xf32>
    %c0_163 = arith.constant 0 : index
    %c38_164 = arith.constant 38 : index
    %c8_165 = arith.constant 8 : index
    %176 = vector.load %arg2[%c0_163, %c38_164, %c8_165] : memref<1x72x144xf32, #tpu.memory_space<vmem>>, vector<1x16x128xf32>
    %177 = vector.shape_cast %176 : vector<1x16x128xf32> to vector<16x128xf32>
    %178 = arith.addf %173, %177 : vector<16x128xf32>
    %c38_166 = arith.constant 38 : index
    %c8_167 = arith.constant 8 : index
    %179 = vector.load %arg7[%c38_166, %c8_167] : memref<72x144xf32, #tpu.memory_space<vmem>>, vector<16x128xf32>
    %180 = arith.maximumf %175, %179 : vector<16x128xf32>
    %c0_168 = arith.constant 0 : index
    %c38_169 = arith.constant 38 : index
    %c16_170 = arith.constant 16 : index
    %181 = vector.load %arg2[%c0_168, %c38_169, %c16_170] : memref<1x72x144xf32, #tpu.memory_space<vmem>>, vector<1x16x128xf32>
    %182 = vector.shape_cast %181 : vector<1x16x128xf32> to vector<16x128xf32>
    %183 = arith.addf %178, %182 : vector<16x128xf32>
    %c38_171 = arith.constant 38 : index
    %c16_172 = arith.constant 16 : index
    %184 = vector.load %arg7[%c38_171, %c16_172] : memref<72x144xf32, #tpu.memory_space<vmem>>, vector<16x128xf32>
    %185 = arith.maximumf %180, %184 : vector<16x128xf32>
    %186 = vector.broadcast %20 : f32 to vector<16x128xf32>
    %187 = arith.mulf %186, %145 : vector<16x128xf32>
    %188 = arith.addf %143, %187 : vector<16x128xf32>
    %189 = arith.mulf %22, %183 : vector<16x128xf32>
    %190 = arith.addf %188, %189 : vector<16x128xf32>
    %191 = vector.broadcast %21 : f32 to vector<16x128xf32>
    %192 = arith.mulf %191, %185 : vector<16x128xf32>
    %193 = arith.addf %190, %192 : vector<16x128xf32>
    %c0_173 = arith.constant 0 : index
    %c32 = arith.constant 32 : index
    %c0_174 = arith.constant 0 : index
    %194 = vector.load %arg6[%c0_173, %c32, %c0_174] : memref<1x64x128xf32, #tpu.memory_space<vmem>>, vector<1x16x128xf32>
    %195 = vector.shape_cast %194 : vector<1x16x128xf32> to vector<16x128xf32>
    %196 = vector.shape_cast %193 : vector<16x128xf32> to vector<1x16x128xf32>
    tpu.vector_store %arg6[%c0_173, %c32, %c0_174], %196 {strides = array<i32>} : memref<1x64x128xf32, #tpu.memory_space<vmem>>, vector<1x16x128xf32>,
    %c54 = arith.constant 54 : index
    %c0_175 = arith.constant 0 : index
    %197 = vector.load %arg8[%c54, %c0_175] : memref<72x128xf32, #tpu.memory_space<vmem>>, vector<16x128xf32>
    %c55 = arith.constant 55 : index
    %c0_176 = arith.constant 0 : index
    %198 = vector.load %arg9[%c55, %c0_176] : memref<72x128xf32, #tpu.memory_space<vmem>>, vector<16x128xf32>
    %199 = arith.addf %197, %198 : vector<16x128xf32>
    %c56 = arith.constant 56 : index
    %c0_177 = arith.constant 0 : index
    %200 = vector.load %arg10[%c56, %c0_177] : memref<72x128xf32, #tpu.memory_space<vmem>>, vector<16x128xf32>
    %201 = arith.addf %199, %200 : vector<16x128xf32>
    %c0_178 = arith.constant 0 : index
    %c55_179 = arith.constant 55 : index
    %c8_180 = arith.constant 8 : index
    %202 = vector.load %arg2[%c0_178, %c55_179, %c8_180] : memref<1x72x144xf32, #tpu.memory_space<vmem>>, vector<1x16x128xf32>
    %203 = vector.shape_cast %202 : vector<1x16x128xf32> to vector<16x128xf32>
    %c0_181 = arith.constant 0 : index
    %c54_182 = arith.constant 54 : index
    %c0_183 = arith.constant 0 : index
    %204 = vector.load %arg2[%c0_181, %c54_182, %c0_183] : memref<1x72x144xf32, #tpu.memory_space<vmem>>, vector<1x16x128xf32>
    %205 = vector.shape_cast %204 : vector<1x16x128xf32> to vector<16x128xf32>
    %206 = arith.addf %203, %205 : vector<16x128xf32>
    %c54_184 = arith.constant 54 : index
    %c0_185 = arith.constant 0 : index
    %207 = vector.load %arg7[%c54_184, %c0_185] : memref<72x144xf32, #tpu.memory_space<vmem>>, vector<16x128xf32>
    %208 = arith.maximumf %203, %207 : vector<16x128xf32>
    %c0_186 = arith.constant 0 : index
    %c54_187 = arith.constant 54 : index
    %c8_188 = arith.constant 8 : index
    %209 = vector.load %arg2[%c0_186, %c54_187, %c8_188] : memref<1x72x144xf32, #tpu.memory_space<vmem>>, vector<1x16x128xf32>
    %210 = vector.shape_cast %209 : vector<1x16x128xf32> to vector<16x128xf32>
    %211 = arith.addf %206, %210 : vector<16x128xf32>
    %c54_189 = arith.constant 54 : index
    %c8_190 = arith.constant 8 : index
    %212 = vector.load %arg7[%c54_189, %c8_190] : memref<72x144xf32, #tpu.memory_space<vmem>>, vector<16x128xf32>
    %213 = arith.maximumf %208, %212 : vector<16x128xf32>
    %c0_191 = arith.constant 0 : index
    %c54_192 = arith.constant 54 : index
    %c16_193 = arith.constant 16 : index
    %214 = vector.load %arg2[%c0_191, %c54_192, %c16_193] : memref<1x72x144xf32, #tpu.memory_space<vmem>>, vector<1x16x128xf32>
    %215 = vector.shape_cast %214 : vector<1x16x128xf32> to vector<16x128xf32>
    %216 = arith.addf %211, %215 : vector<16x128xf32>
    %c54_194 = arith.constant 54 : index
    %c16_195 = arith.constant 16 : index
    %217 = vector.load %arg7[%c54_194, %c16_195] : memref<72x144xf32, #tpu.memory_space<vmem>>, vector<16x128xf32>
    %218 = arith.maximumf %213, %217 : vector<16x128xf32>
    %c0_196 = arith.constant 0 : index
    %c55_197 = arith.constant 55 : index
    %c0_198 = arith.constant 0 : index
    %219 = vector.load %arg2[%c0_196, %c55_197, %c0_198] : memref<1x72x144xf32, #tpu.memory_space<vmem>>, vector<1x16x128xf32>
    %220 = vector.shape_cast %219 : vector<1x16x128xf32> to vector<16x128xf32>
    %221 = arith.addf %216, %220 : vector<16x128xf32>
    %c55_199 = arith.constant 55 : index
    %c0_200 = arith.constant 0 : index
    %222 = vector.load %arg7[%c55_199, %c0_200] : memref<72x144xf32, #tpu.memory_space<vmem>>, vector<16x128xf32>
    %223 = arith.maximumf %218, %222 : vector<16x128xf32>
    %c0_201 = arith.constant 0 : index
    %c55_202 = arith.constant 55 : index
    %c16_203 = arith.constant 16 : index
    %224 = vector.load %arg2[%c0_201, %c55_202, %c16_203] : memref<1x72x144xf32, #tpu.memory_space<vmem>>, vector<1x16x128xf32>
    %225 = vector.shape_cast %224 : vector<1x16x128xf32> to vector<16x128xf32>
    %226 = arith.addf %221, %225 : vector<16x128xf32>
    %c55_204 = arith.constant 55 : index
    %c16_205 = arith.constant 16 : index
    %227 = vector.load %arg7[%c55_204, %c16_205] : memref<72x144xf32, #tpu.memory_space<vmem>>, vector<16x128xf32>
    %228 = arith.maximumf %223, %227 : vector<16x128xf32>
    %c0_206 = arith.constant 0 : index
    %c56_207 = arith.constant 56 : index
    %c0_208 = arith.constant 0 : index
    %229 = vector.load %arg2[%c0_206, %c56_207, %c0_208] : memref<1x72x144xf32, #tpu.memory_space<vmem>>, vector<1x16x128xf32>
    %230 = vector.shape_cast %229 : vector<1x16x128xf32> to vector<16x128xf32>
    %231 = arith.addf %226, %230 : vector<16x128xf32>
    %c56_209 = arith.constant 56 : index
    %c0_210 = arith.constant 0 : index
    %232 = vector.load %arg7[%c56_209, %c0_210] : memref<72x144xf32, #tpu.memory_space<vmem>>, vector<16x128xf32>
    %233 = arith.maximumf %228, %232 : vector<16x128xf32>
    %c0_211 = arith.constant 0 : index
    %c56_212 = arith.constant 56 : index
    %c8_213 = arith.constant 8 : index
    %234 = vector.load %arg2[%c0_211, %c56_212, %c8_213] : memref<1x72x144xf32, #tpu.memory_space<vmem>>, vector<1x16x128xf32>
    %235 = vector.shape_cast %234 : vector<1x16x128xf32> to vector<16x128xf32>
    %236 = arith.addf %231, %235 : vector<16x128xf32>
    %c56_214 = arith.constant 56 : index
    %c8_215 = arith.constant 8 : index
    %237 = vector.load %arg7[%c56_214, %c8_215] : memref<72x144xf32, #tpu.memory_space<vmem>>, vector<16x128xf32>
    %238 = arith.maximumf %233, %237 : vector<16x128xf32>
    %c0_216 = arith.constant 0 : index
    %c56_217 = arith.constant 56 : index
    %c16_218 = arith.constant 16 : index
    %239 = vector.load %arg2[%c0_216, %c56_217, %c16_218] : memref<1x72x144xf32, #tpu.memory_space<vmem>>, vector<1x16x128xf32>
    %240 = vector.shape_cast %239 : vector<1x16x128xf32> to vector<16x128xf32>
    %241 = arith.addf %236, %240 : vector<16x128xf32>
    %c56_219 = arith.constant 56 : index
    %c16_220 = arith.constant 16 : index
    %242 = vector.load %arg7[%c56_219, %c16_220] : memref<72x144xf32, #tpu.memory_space<vmem>>, vector<16x128xf32>
    %243 = arith.maximumf %238, %242 : vector<16x128xf32>
    %244 = vector.broadcast %20 : f32 to vector<16x128xf32>
    %245 = arith.mulf %244, %203 : vector<16x128xf32>
    %246 = arith.addf %201, %245 : vector<16x128xf32>
    %247 = arith.mulf %22, %241 : vector<16x128xf32>
    %248 = arith.addf %246, %247 : vector<16x128xf32>
    %249 = vector.broadcast %21 : f32 to vector<16x128xf32>
    %250 = arith.mulf %249, %243 : vector<16x128xf32>
    %251 = arith.addf %248, %250 : vector<16x128xf32>
    %c0_221 = arith.constant 0 : index
    %c48 = arith.constant 48 : index
    %c0_222 = arith.constant 0 : index
    %252 = vector.load %arg6[%c0_221, %c48, %c0_222] : memref<1x64x128xf32, #tpu.memory_space<vmem>>, vector<1x16x128xf32>
    %253 = vector.shape_cast %252 : vector<1x16x128xf32> to vector<16x128xf32>
    %254 = vector.shape_cast %251 : vector<16x128xf32> to vector<1x16x128xf32>
    tpu.vector_store %arg6[%c0_221, %c48, %c0_222], %254 {strides = array<i32>} : memref<1x64x128xf32, #tpu.memory_space<vmem>>, vector<1x16x128xf32>,
    return
  }
  func.func @transform_0(%arg0: i32) -> i32 {
    %c0_i32 = arith.constant 0 : i32
    %c0_i32_0 = arith.constant 0 : i32
    return %c0_i32 : i32
  }
  func.func @transform_1(%arg0: i32) -> (i32, i32, i32) {
    %c0_i32 = arith.constant 0 : i32
    %c0_i32_0 = arith.constant 0 : i32
    %c0_i32_1 = arith.constant 0 : i32
    return %arg0, %c0_i32, %c0_i32_0 : i32, i32, i32
  }
  func.func @transform_2(%arg0: i32) -> (i32, i32) {
    %c0_i32 = arith.constant 0 : i32
    %c0_i32_0 = arith.constant 0 : i32
    %c0_i32_1 = arith.constant 0 : i32
    return %c0_i32, %c0_i32_0 : i32, i32
  }
  func.func @transform_3(%arg0: i32) -> (i32, i32) {
    %c0_i32 = arith.constant 0 : i32
    %c0_i32_0 = arith.constant 0 : i32
    %c0_i32_1 = arith.constant 0 : i32
    return %c0_i32, %c0_i32_0 : i32, i32
  }
  func.func @transform_4(%arg0: i32) -> (i32, i32, i32) {
    %c0_i32 = arith.constant 0 : i32
    %c0_i32_0 = arith.constant 0 : i32
    %c0_i32_1 = arith.constant 0 : i32
    %c0_i32_2 = arith.constant 0 : i32
    return %c0_i32, %c0_i32_0, %c0_i32_1 : i32, i32, i32
  }
  func.func @transform_5(%arg0: i32) -> (i32, i32, i32) {
    %c0_i32 = arith.constant 0 : i32
    %c0_i32_0 = arith.constant 0 : i32
    %c0_i32_1 = arith.constant 0 : i32
    return %arg0, %c0_i32, %c0_i32_0 : i32, i32, i32
  }
}

module attributes {stable_mosaic.version = 11 : i64} {
  func.func @mixed_op_kernel(%arg0: i32, %arg1: memref<2xf32, #tpu.memory_space<smem>>, %arg2: memref<1x72x144xf32, #tpu.memory_space<vmem>>, %arg3: memref<72x144xf32, #tpu.memory_space<vmem>>, %arg4: memref<16x128xf32, #tpu.memory_space<vmem>>, %arg5: memref<3x144x128xbf16, #tpu.memory_space<vmem>>, %arg6: memref<1x64x128xf32, #tpu.memory_space<vmem>>, %arg7: memref<72x144xf32, #tpu.memory_space<vmem>>, %arg8: memref<72x128xf32, #tpu.memory_space<vmem>>, %arg9: memref<72x128xf32, #tpu.memory_space<vmem>>, %arg10: memref<72x128xf32, #tpu.memory_space<vmem>>) attributes {dimension_semantics = [#tpu.dimension_semantics<parallel>], iteration_bounds = array<i64: 2>, scalar_prefetch = 0 : i64, scratch_operands = 4 : i64, tpu.core_type = #tpu.core_type<tc>, window_params = [{transform_indices = @transform_0, window_bounds = array<i64: 2>}, {transform_indices = @transform_1, window_bounds = array<i64: 1, 72, 144>}, {pipeline_mode = #tpu.pipeline_mode<synchronous>, transform_indices = @transform_2, window_bounds = array<i64: 72, 144>}, {pipeline_mode = #tpu.pipeline_mode<synchronous>, transform_indices = @transform_3, window_bounds = array<i64: 16, 128>}, {pipeline_mode = #tpu.pipeline_mode<synchronous>, transform_indices = @transform_4, window_bounds = array<i64: 3, 144, 128>}, {transform_indices = @transform_5, window_bounds = array<i64: 1, 64, 128>}]} {
    %c0 = arith.constant 0 : index
    %c0_0 = arith.constant 0 : index
    %c0_1 = arith.constant 0 : index
    %0 = vector.load %arg2[%c0, %c0_0, %c0_1] : memref<1x72x144xf32, #tpu.memory_space<vmem>>, vector<1x72x144xf32>
    %1 = vector.shape_cast %0 : vector<1x72x144xf32> to vector<72x144xf32>
    %2 = arith.truncf %1 : vector<72x144xf32> to vector<72x144xbf16>
    %c0_2 = arith.constant 0 : index
    %c0_3 = arith.constant 0 : index
    %c0_4 = arith.constant 0 : index
    %3 = vector.load %arg5[%c0_2, %c0_3, %c0_4] : memref<3x144x128xbf16, #tpu.memory_space<vmem>>, vector<1x144x128xbf16>
    %4 = vector.shape_cast %3 : vector<1x144x128xbf16> to vector<144x128xbf16>
    %cst = arith.constant dense<0.000000e+00> : vector<72x128xf32>
    %5 = tpu.matmul %2, %4, %cst {dimension_numbers = #tpu.dot_dimension_numbers<[1], [0], [0], [1], [0, 0, 1, 1], [], []>} : vector<72x144xbf16>, vector<144x128xbf16>, vector<72x128xf32> -> vector<72x128xf32>
    %c0_5 = arith.constant 0 : index
    %c0_6 = arith.constant 0 : index
    %6 = vector.load %arg8[%c0_5, %c0_6] : memref<72x128xf32, #tpu.memory_space<vmem>>, vector<72x128xf32>
    tpu.vector_store %arg8[%c0_5, %c0_6], %5 {strides = array<i32>} : memref<72x128xf32, #tpu.memory_space<vmem>>, vector<72x128xf32>,
    %c1 = arith.constant 1 : index
    %c0_7 = arith.constant 0 : index
    %c0_8 = arith.constant 0 : index
    %7 = vector.load %arg5[%c1, %c0_7, %c0_8] : memref<3x144x128xbf16, #tpu.memory_space<vmem>>, vector<1x144x128xbf16>
    %8 = vector.shape_cast %7 : vector<1x144x128xbf16> to vector<144x128xbf16>
    %cst_9 = arith.constant dense<0.000000e+00> : vector<72x128xf32>
    %9 = tpu.matmul %2, %8, %cst_9 {dimension_numbers = #tpu.dot_dimension_numbers<[1], [0], [0], [1], [0, 0, 1, 1], [], []>} : vector<72x144xbf16>, vector<144x128xbf16>, vector<72x128xf32> -> vector<72x128xf32>
    %c0_10 = arith.constant 0 : index
    %c0_11 = arith.constant 0 : index
    %10 = vector.load %arg9[%c0_10, %c0_11] : memref<72x128xf32, #tpu.memory_space<vmem>>, vector<72x128xf32>
    tpu.vector_store %arg9[%c0_10, %c0_11], %9 {strides = array<i32>} : memref<72x128xf32, #tpu.memory_space<vmem>>, vector<72x128xf32>,
    %c2 = arith.constant 2 : index
    %c0_12 = arith.constant 0 : index
    %c0_13 = arith.constant 0 : index
    %11 = vector.load %arg5[%c2, %c0_12, %c0_13] : memref<3x144x128xbf16, #tpu.memory_space<vmem>>, vector<1x144x128xbf16>
    %12 = vector.shape_cast %11 : vector<1x144x128xbf16> to vector<144x128xbf16>
    %cst_14 = arith.constant dense<0.000000e+00> : vector<72x128xf32>
    %13 = tpu.matmul %2, %12, %cst_14 {dimension_numbers = #tpu.dot_dimension_numbers<[1], [0], [0], [1], [0, 0, 1, 1], [], []>} : vector<72x144xbf16>, vector<144x128xbf16>, vector<72x128xf32> -> vector<72x128xf32>
    %c0_15 = arith.constant 0 : index
    %c0_16 = arith.constant 0 : index
    %14 = vector.load %arg10[%c0_15, %c0_16] : memref<72x128xf32, #tpu.memory_space<vmem>>, vector<72x128xf32>
    tpu.vector_store %arg10[%c0_15, %c0_16], %13 {strides = array<i32>} : memref<72x128xf32, #tpu.memory_space<vmem>>, vector<72x128xf32>,
    %c0_17 = arith.constant 0 : index
    %c0_18 = arith.constant 0 : index
    %c0_19 = arith.constant 0 : index
    %15 = vector.load %arg2[%c0_17, %c0_18, %c0_19] : memref<1x72x144xf32, #tpu.memory_space<vmem>>, vector<1x72x144xf32>
    %16 = vector.shape_cast %15 : vector<1x72x144xf32> to vector<72x144xf32>
    %c0_20 = arith.constant 0 : index
    %c0_21 = arith.constant 0 : index
    %17 = vector.load %arg3[%c0_20, %c0_21] : memref<72x144xf32, #tpu.memory_space<vmem>>, vector<72x144xf32>
    %18 = arith.addf %16, %17 : vector<72x144xf32>
    %c0_22 = arith.constant 0 : index
    %c0_23 = arith.constant 0 : index
    %19 = vector.load %arg7[%c0_22, %c0_23] : memref<72x144xf32, #tpu.memory_space<vmem>>, vector<72x144xf32>
    tpu.vector_store %arg7[%c0_22, %c0_23], %18 {strides = array<i32>} : memref<72x144xf32, #tpu.memory_space<vmem>>, vector<72x144xf32>,
    %c0_24 = arith.constant 0 : index
    %20 = memref.load %arg1[%c0_24] : memref<2xf32, #tpu.memory_space<smem>>
    %c1_25 = arith.constant 1 : index
    %21 = memref.load %arg1[%c1_25] : memref<2xf32, #tpu.memory_space<smem>>
    %c0_26 = arith.constant 0 : index
    %c0_27 = arith.constant 0 : index
    %22 = vector.load %arg4[%c0_26, %c0_27] : memref<16x128xf32, #tpu.memory_space<vmem>>, vector<16x128xf32>
    %c0_28 = arith.constant 0 : index
    %c0_29 = arith.constant 0 : index
    %23 = vector.load %arg8[%c0_28, %c0_29] : memref<72x128xf32, #tpu.memory_space<vmem>>, vector<16x128xf32>
    %c1_30 = arith.constant 1 : index
    %c0_31 = arith.constant 0 : index
    %24 = vector.load %arg9[%c1_30, %c0_31] : memref<72x128xf32, #tpu.memory_space<vmem>>, vector<16x128xf32>
    %25 = arith.addf %23, %24 : vector<16x128xf32>
    %c2_32 = arith.constant 2 : index
    %c0_33 = arith.constant 0 : index
    %26 = vector.load %arg10[%c2_32, %c0_33] : memref<72x128xf32, #tpu.memory_space<vmem>>, vector<16x128xf32>
    %27 = arith.addf %25, %26 : vector<16x128xf32>
    %c0_34 = arith.constant 0 : index
    %c1_35 = arith.constant 1 : index
    %c8 = arith.constant 8 : index
    %28 = vector.load %arg2[%c0_34, %c1_35, %c8] : memref<1x72x144xf32, #tpu.memory_space<vmem>>, vector<1x16x128xf32>
    %29 = vector.shape_cast %28 : vector<1x16x128xf32> to vector<16x128xf32>
    %c0_36 = arith.constant 0 : index
    %c0_37 = arith.constant 0 : index
    %c0_38 = arith.constant 0 : index
    %30 = vector.load %arg2[%c0_36, %c0_37, %c0_38] : memref<1x72x144xf32, #tpu.memory_space<vmem>>, vector<1x16x128xf32>
    %31 = vector.shape_cast %30 : vector<1x16x128xf32> to vector<16x128xf32>
    %32 = arith.addf %29, %31 : vector<16x128xf32>
    %c0_39 = arith.constant 0 : index
    %c0_40 = arith.constant 0 : index
    %33 = vector.load %arg7[%c0_39, %c0_40] : memref<72x144xf32, #tpu.memory_space<vmem>>, vector<16x128xf32>
    %34 = arith.maximumf %29, %33 : vector<16x128xf32>
    %c0_41 = arith.constant 0 : index
    %c0_42 = arith.constant 0 : index
    %c8_43 = arith.constant 8 : index
    %35 = vector.load %arg2[%c0_41, %c0_42, %c8_43] : memref<1x72x144xf32, #tpu.memory_space<vmem>>, vector<1x16x128xf32>
    %36 = vector.shape_cast %35 : vector<1x16x128xf32> to vector<16x128xf32>
    %37 = arith.addf %32, %36 : vector<16x128xf32>
    %c0_44 = arith.constant 0 : index
    %c8_45 = arith.constant 8 : index
    %38 = vector.load %arg7[%c0_44, %c8_45] : memref<72x144xf32, #tpu.memory_space<vmem>>, vector<16x128xf32>
    %39 = arith.maximumf %34, %38 : vector<16x128xf32>
    %c0_46 = arith.constant 0 : index
    %c0_47 = arith.constant 0 : index
    %c16 = arith.constant 16 : index
    %40 = vector.load %arg2[%c0_46, %c0_47, %c16] : memref<1x72x144xf32, #tpu.memory_space<vmem>>, vector<1x16x128xf32>
    %41 = vector.shape_cast %40 : vector<1x16x128xf32> to vector<16x128xf32>
    %42 = arith.addf %37, %41 : vector<16x128xf32>
    %c0_48 = arith.constant 0 : index
    %c16_49 = arith.constant 16 : index
    %43 = vector.load %arg7[%c0_48, %c16_49] : memref<72x144xf32, #tpu.memory_space<vmem>>, vector<16x128xf32>
    %44 = arith.maximumf %39, %43 : vector<16x128xf32>
    %c0_50 = arith.constant 0 : index
    %c1_51 = arith.constant 1 : index
    %c0_52 = arith.constant 0 : index
    %45 = vector.load %arg2[%c0_50, %c1_51, %c0_52] : memref<1x72x144xf32, #tpu.memory_space<vmem>>, vector<1x16x128xf32>
    %46 = vector.shape_cast %45 : vector<1x16x128xf32> to vector<16x128xf32>
    %47 = arith.addf %42, %46 : vector<16x128xf32>
    %c1_53 = arith.constant 1 : index
    %c0_54 = arith.constant 0 : index
    %48 = vector.load %arg7[%c1_53, %c0_54] : memref<72x144xf32, #tpu.memory_space<vmem>>, vector<16x128xf32>
    %49 = arith.maximumf %44, %48 : vector<16x128xf32>
    %c0_55 = arith.constant 0 : index
    %c1_56 = arith.constant 1 : index
    %c16_57 = arith.constant 16 : index
    %50 = vector.load %arg2[%c0_55, %c1_56, %c16_57] : memref<1x72x144xf32, #tpu.memory_space<vmem>>, vector<1x16x128xf32>
    %51 = vector.shape_cast %50 : vector<1x16x128xf32> to vector<16x128xf32>
    %52 = arith.addf %47, %51 : vector<16x128xf32>
    %c1_58 = arith.constant 1 : index
    %c16_59 = arith.constant 16 : index
    %53 = vector.load %arg7[%c1_58, %c16_59] : memref<72x144xf32, #tpu.memory_space<vmem>>, vector<16x128xf32>
    %54 = arith.maximumf %49, %53 : vector<16x128xf32>
    %c0_60 = arith.constant 0 : index
    %c2_61 = arith.constant 2 : index
    %c0_62 = arith.constant 0 : index
    %55 = vector.load %arg2[%c0_60, %c2_61, %c0_62] : memref<1x72x144xf32, #tpu.memory_space<vmem>>, vector<1x16x128xf32>
    %56 = vector.shape_cast %55 : vector<1x16x128xf32> to vector<16x128xf32>
    %57 = arith.addf %52, %56 : vector<16x128xf32>
    %c2_63 = arith.constant 2 : index
    %c0_64 = arith.constant 0 : index
    %58 = vector.load %arg7[%c2_63, %c0_64] : memref<72x144xf32, #tpu.memory_space<vmem>>, vector<16x128xf32>
    %59 = arith.maximumf %54, %58 : vector<16x128xf32>
    %c0_65 = arith.constant 0 : index
    %c2_66 = arith.constant 2 : index
    %c8_67 = arith.constant 8 : index
    %60 = vector.load %arg2[%c0_65, %c2_66, %c8_67] : memref<1x72x144xf32, #tpu.memory_space<vmem>>, vector<1x16x128xf32>
    %61 = vector.shape_cast %60 : vector<1x16x128xf32> to vector<16x128xf32>
    %62 = arith.addf %57, %61 : vector<16x128xf32>
    %c2_68 = arith.constant 2 : index
    %c8_69 = arith.constant 8 : index
    %63 = vector.load %arg7[%c2_68, %c8_69] : memref<72x144xf32, #tpu.memory_space<vmem>>, vector<16x128xf32>
    %64 = arith.maximumf %59, %63 : vector<16x128xf32>
    %c0_70 = arith.constant 0 : index
    %c2_71 = arith.constant 2 : index
    %c16_72 = arith.constant 16 : index
    %65 = vector.load %arg2[%c0_70, %c2_71, %c16_72] : memref<1x72x144xf32, #tpu.memory_space<vmem>>, vector<1x16x128xf32>
    %66 = vector.shape_cast %65 : vector<1x16x128xf32> to vector<16x128xf32>
    %67 = arith.addf %62, %66 : vector<16x128xf32>
    %c2_73 = arith.constant 2 : index
    %c16_74 = arith.constant 16 : index
    %68 = vector.load %arg7[%c2_73, %c16_74] : memref<72x144xf32, #tpu.memory_space<vmem>>, vector<16x128xf32>
    %69 = arith.maximumf %64, %68 : vector<16x128xf32>
    %70 = vector.broadcast %20 : f32 to vector<16x128xf32>
    %71 = arith.mulf %70, %29 : vector<16x128xf32>
    %72 = arith.addf %27, %71 : vector<16x128xf32>
    %73 = arith.mulf %22, %67 : vector<16x128xf32>
    %74 = arith.addf %72, %73 : vector<16x128xf32>
    %75 = vector.broadcast %21 : f32 to vector<16x128xf32>
    %76 = arith.mulf %75, %69 : vector<16x128xf32>
    %77 = arith.addf %74, %76 : vector<16x128xf32>
    %c0_75 = arith.constant 0 : index
    %c0_76 = arith.constant 0 : index
    %c0_77 = arith.constant 0 : index
    %78 = vector.load %arg6[%c0_75, %c0_76, %c0_77] : memref<1x64x128xf32, #tpu.memory_space<vmem>>, vector<1x16x128xf32>
    %79 = vector.shape_cast %78 : vector<1x16x128xf32> to vector<16x128xf32>
    %80 = vector.shape_cast %77 : vector<16x128xf32> to vector<1x16x128xf32>
    tpu.vector_store %arg6[%c0_75, %c0_76, %c0_77], %80 {strides = array<i32>} : memref<1x64x128xf32, #tpu.memory_space<vmem>>, vector<1x16x128xf32>,
    %c18 = arith.constant 18 : index
    %c0_78 = arith.constant 0 : index
    %81 = vector.load %arg8[%c18, %c0_78] : memref<72x128xf32, #tpu.memory_space<vmem>>, vector<16x128xf32>
    %c19 = arith.constant 19 : index
    %c0_79 = arith.constant 0 : index
    %82 = vector.load %arg9[%c19, %c0_79] : memref<72x128xf32, #tpu.memory_space<vmem>>, vector<16x128xf32>
    %83 = arith.addf %81, %82 : vector<16x128xf32>
    %c20 = arith.constant 20 : index
    %c0_80 = arith.constant 0 : index
    %84 = vector.load %arg10[%c20, %c0_80] : memref<72x128xf32, #tpu.memory_space<vmem>>, vector<16x128xf32>
    %85 = arith.addf %83, %84 : vector<16x128xf32>
    %c0_81 = arith.constant 0 : index
    %c19_82 = arith.constant 19 : index
    %c8_83 = arith.constant 8 : index
    %86 = vector.load %arg2[%c0_81, %c19_82, %c8_83] : memref<1x72x144xf32, #tpu.memory_space<vmem>>, vector<1x16x128xf32>
    %87 = vector.shape_cast %86 : vector<1x16x128xf32> to vector<16x128xf32>
    %c0_84 = arith.constant 0 : index
    %c18_85 = arith.constant 18 : index
    %c0_86 = arith.constant 0 : index
    %88 = vector.load %arg2[%c0_84, %c18_85, %c0_86] : memref<1x72x144xf32, #tpu.memory_space<vmem>>, vector<1x16x128xf32>
    %89 = vector.shape_cast %88 : vector<1x16x128xf32> to vector<16x128xf32>
    %90 = arith.addf %87, %89 : vector<16x128xf32>
    %c18_87 = arith.constant 18 : index
    %c0_88 = arith.constant 0 : index
    %91 = vector.load %arg7[%c18_87, %c0_88] : memref<72x144xf32, #tpu.memory_space<vmem>>, vector<16x128xf32>
    %92 = arith.maximumf %87, %91 : vector<16x128xf32>
    %c0_89 = arith.constant 0 : index
    %c18_90 = arith.constant 18 : index
    %c8_91 = arith.constant 8 : index
    %93 = vector.load %arg2[%c0_89, %c18_90, %c8_91] : memref<1x72x144xf32, #tpu.memory_space<vmem>>, vector<1x16x128xf32>
    %94 = vector.shape_cast %93 : vector<1x16x128xf32> to vector<16x128xf32>
    %95 = arith.addf %90, %94 : vector<16x128xf32>
    %c18_92 = arith.constant 18 : index
    %c8_93 = arith.constant 8 : index
    %96 = vector.load %arg7[%c18_92, %c8_93] : memref<72x144xf32, #tpu.memory_space<vmem>>, vector<16x128xf32>
    %97 = arith.maximumf %92, %96 : vector<16x128xf32>
    %c0_94 = arith.constant 0 : index
    %c18_95 = arith.constant 18 : index
    %c16_96 = arith.constant 16 : index
    %98 = vector.load %arg2[%c0_94, %c18_95, %c16_96] : memref<1x72x144xf32, #tpu.memory_space<vmem>>, vector<1x16x128xf32>
    %99 = vector.shape_cast %98 : vector<1x16x128xf32> to vector<16x128xf32>
    %100 = arith.addf %95, %99 : vector<16x128xf32>
    %c18_97 = arith.constant 18 : index
    %c16_98 = arith.constant 16 : index
    %101 = vector.load %arg7[%c18_97, %c16_98] : memref<72x144xf32, #tpu.memory_space<vmem>>, vector<16x128xf32>
    %102 = arith.maximumf %97, %101 : vector<16x128xf32>
    %c0_99 = arith.constant 0 : index
    %c19_100 = arith.constant 19 : index
    %c0_101 = arith.constant 0 : index
    %103 = vector.load %arg2[%c0_99, %c19_100, %c0_101] : memref<1x72x144xf32, #tpu.memory_space<vmem>>, vector<1x16x128xf32>
    %104 = vector.shape_cast %103 : vector<1x16x128xf32> to vector<16x128xf32>
    %105 = arith.addf %100, %104 : vector<16x128xf32>
    %c19_102 = arith.constant 19 : index
    %c0_103 = arith.constant 0 : index
    %106 = vector.load %arg7[%c19_102, %c0_103] : memref<72x144xf32, #tpu.memory_space<vmem>>, vector<16x128xf32>
    %107 = arith.maximumf %102, %106 : vector<16x128xf32>
    %c0_104 = arith.constant 0 : index
    %c19_105 = arith.constant 19 : index
    %c16_106 = arith.constant 16 : index
    %108 = vector.load %arg2[%c0_104, %c19_105, %c16_106] : memref<1x72x144xf32, #tpu.memory_space<vmem>>, vector<1x16x128xf32>
    %109 = vector.shape_cast %108 : vector<1x16x128xf32> to vector<16x128xf32>
    %110 = arith.addf %105, %109 : vector<16x128xf32>
    %c19_107 = arith.constant 19 : index
    %c16_108 = arith.constant 16 : index
    %111 = vector.load %arg7[%c19_107, %c16_108] : memref<72x144xf32, #tpu.memory_space<vmem>>, vector<16x128xf32>
    %112 = arith.maximumf %107, %111 : vector<16x128xf32>
    %c0_109 = arith.constant 0 : index
    %c20_110 = arith.constant 20 : index
    %c0_111 = arith.constant 0 : index
    %113 = vector.load %arg2[%c0_109, %c20_110, %c0_111] : memref<1x72x144xf32, #tpu.memory_space<vmem>>, vector<1x16x128xf32>
    %114 = vector.shape_cast %113 : vector<1x16x128xf32> to vector<16x128xf32>
    %115 = arith.addf %110, %114 : vector<16x128xf32>
    %c20_112 = arith.constant 20 : index
    %c0_113 = arith.constant 0 : index
    %116 = vector.load %arg7[%c20_112, %c0_113] : memref<72x144xf32, #tpu.memory_space<vmem>>, vector<16x128xf32>
    %117 = arith.maximumf %112, %116 : vector<16x128xf32>
    %c0_114 = arith.constant 0 : index
    %c20_115 = arith.constant 20 : index
    %c8_116 = arith.constant 8 : index
    %118 = vector.load %arg2[%c0_114, %c20_115, %c8_116] : memref<1x72x144xf32, #tpu.memory_space<vmem>>, vector<1x16x128xf32>
    %119 = vector.shape_cast %118 : vector<1x16x128xf32> to vector<16x128xf32>
    %120 = arith.addf %115, %119 : vector<16x128xf32>
    %c20_117 = arith.constant 20 : index
    %c8_118 = arith.constant 8 : index
    %121 = vector.load %arg7[%c20_117, %c8_118] : memref<72x144xf32, #tpu.memory_space<vmem>>, vector<16x128xf32>
    %122 = arith.maximumf %117, %121 : vector<16x128xf32>
    %c0_119 = arith.constant 0 : index
    %c20_120 = arith.constant 20 : index
    %c16_121 = arith.constant 16 : index
    %123 = vector.load %arg2[%c0_119, %c20_120, %c16_121] : memref<1x72x144xf32, #tpu.memory_space<vmem>>, vector<1x16x128xf32>
    %124 = vector.shape_cast %123 : vector<1x16x128xf32> to vector<16x128xf32>
    %125 = arith.addf %120, %124 : vector<16x128xf32>
    %c20_122 = arith.constant 20 : index
    %c16_123 = arith.constant 16 : index
    %126 = vector.load %arg7[%c20_122, %c16_123] : memref<72x144xf32, #tpu.memory_space<vmem>>, vector<16x128xf32>
    %127 = arith.maximumf %122, %126 : vector<16x128xf32>
    %128 = vector.broadcast %20 : f32 to vector<16x128xf32>
    %129 = arith.mulf %128, %87 : vector<16x128xf32>
    %130 = arith.addf %85, %129 : vector<16x128xf32>
    %131 = arith.mulf %22, %125 : vector<16x128xf32>
    %132 = arith.addf %130, %131 : vector<16x128xf32>
    %133 = vector.broadcast %21 : f32 to vector<16x128xf32>
    %134 = arith.mulf %133, %127 : vector<16x128xf32>
    %135 = arith.addf %132, %134 : vector<16x128xf32>
    %c0_124 = arith.constant 0 : index
    %c16_125 = arith.constant 16 : index
    %c0_126 = arith.constant 0 : index
    %136 = vector.load %arg6[%c0_124, %c16_125, %c0_126] : memref<1x64x128xf32, #tpu.memory_space<vmem>>, vector<1x16x128xf32>
    %137 = vector.shape_cast %136 : vector<1x16x128xf32> to vector<16x128xf32>
    %138 = vector.shape_cast %135 : vector<16x128xf32> to vector<1x16x128xf32>
    tpu.vector_store %arg6[%c0_124, %c16_125, %c0_126], %138 {strides = array<i32>} : memref<1x64x128xf32, #tpu.memory_space<vmem>>, vector<1x16x128xf32>,
    %c36 = arith.constant 36 : index
    %c0_127 = arith.constant 0 : index
    %139 = vector.load %arg8[%c36, %c0_127] : memref<72x128xf32, #tpu.memory_space<vmem>>, vector<16x128xf32>
    %c37 = arith.constant 37 : index
    %c0_128 = arith.constant 0 : index
    %140 = vector.load %arg9[%c37, %c0_128] : memref<72x128xf32, #tpu.memory_space<vmem>>, vector<16x128xf32>
    %141 = arith.addf %139, %140 : vector<16x128xf32>
    %c38 = arith.constant 38 : index
    %c0_129 = arith.constant 0 : index
    %142 = vector.load %arg10[%c38, %c0_129] : memref<72x128xf32, #tpu.memory_space<vmem>>, vector<16x128xf32>
    %143 = arith.addf %141, %142 : vector<16x128xf32>
    %c0_130 = arith.constant 0 : index
    %c37_131 = arith.constant 37 : index
    %c8_132 = arith.constant 8 : index
    %144 = vector.load %arg2[%c0_130, %c37_131, %c8_132] : memref<1x72x144xf32, #tpu.memory_space<vmem>>, vector<1x16x128xf32>
    %145 = vector.shape_cast %144 : vector<1x16x128xf32> to vector<16x128xf32>
    %c0_133 = arith.constant 0 : index
    %c36_134 = arith.constant 36 : index
    %c0_135 = arith.constant 0 : index
    %146 = vector.load %arg2[%c0_133, %c36_134, %c0_135] : memref<1x72x144xf32, #tpu.memory_space<vmem>>, vector<1x16x128xf32>
    %147 = vector.shape_cast %146 : vector<1x16x128xf32> to vector<16x128xf32>
    %148 = arith.addf %145, %147 : vector<16x128xf32>
    %c36_136 = arith.constant 36 : index
    %c0_137 = arith.constant 0 : index
    %149 = vector.load %arg7[%c36_136, %c0_137] : memref<72x144xf32, #tpu.memory_space<vmem>>, vector<16x128xf32>
    %150 = arith.maximumf %145, %149 : vector<16x128xf32>
    %c0_138 = arith.constant 0 : index
    %c36_139 = arith.constant 36 : index
    %c8_140 = arith.constant 8 : index
    %151 = vector.load %arg2[%c0_138, %c36_139, %c8_140] : memref<1x72x144xf32, #tpu.memory_space<vmem>>, vector<1x16x128xf32>
    %152 = vector.shape_cast %151 : vector<1x16x128xf32> to vector<16x128xf32>
    %153 = arith.addf %148, %152 : vector<16x128xf32>
    %c36_141 = arith.constant 36 : index
    %c8_142 = arith.constant 8 : index
    %154 = vector.load %arg7[%c36_141, %c8_142] : memref<72x144xf32, #tpu.memory_space<vmem>>, vector<16x128xf32>
    %155 = arith.maximumf %150, %154 : vector<16x128xf32>
    %c0_143 = arith.constant 0 : index
    %c36_144 = arith.constant 36 : index
    %c16_145 = arith.constant 16 : index
    %156 = vector.load %arg2[%c0_143, %c36_144, %c16_145] : memref<1x72x144xf32, #tpu.memory_space<vmem>>, vector<1x16x128xf32>
    %157 = vector.shape_cast %156 : vector<1x16x128xf32> to vector<16x128xf32>
    %158 = arith.addf %153, %157 : vector<16x128xf32>
    %c36_146 = arith.constant 36 : index
    %c16_147 = arith.constant 16 : index
    %159 = vector.load %arg7[%c36_146, %c16_147] : memref<72x144xf32, #tpu.memory_space<vmem>>, vector<16x128xf32>
    %160 = arith.maximumf %155, %159 : vector<16x128xf32>
    %c0_148 = arith.constant 0 : index
    %c37_149 = arith.constant 37 : index
    %c0_150 = arith.constant 0 : index
    %161 = vector.load %arg2[%c0_148, %c37_149, %c0_150] : memref<1x72x144xf32, #tpu.memory_space<vmem>>, vector<1x16x128xf32>
    %162 = vector.shape_cast %161 : vector<1x16x128xf32> to vector<16x128xf32>
    %163 = arith.addf %158, %162 : vector<16x128xf32>
    %c37_151 = arith.constant 37 : index
    %c0_152 = arith.constant 0 : index
    %164 = vector.load %arg7[%c37_151, %c0_152] : memref<72x144xf32, #tpu.memory_space<vmem>>, vector<16x128xf32>
    %165 = arith.maximumf %160, %164 : vector<16x128xf32>
    %c0_153 = arith.constant 0 : index
    %c37_154 = arith.constant 37 : index
    %c16_155 = arith.constant 16 : index
    %166 = vector.load %arg2[%c0_153, %c37_154, %c16_155] : memref<1x72x144xf32, #tpu.memory_space<vmem>>, vector<1x16x128xf32>
    %167 = vector.shape_cast %166 : vector<1x16x128xf32> to vector<16x128xf32>
    %168 = arith.addf %163, %167 : vector<16x128xf32>
    %c37_156 = arith.constant 37 : index
    %c16_157 = arith.constant 16 : index
    %169 = vector.load %arg7[%c37_156, %c16_157] : memref<72x144xf32, #tpu.memory_space<vmem>>, vector<16x128xf32>
    %170 = arith.maximumf %165, %169 : vector<16x128xf32>
    %c0_158 = arith.constant 0 : index
    %c38_159 = arith.constant 38 : index
    %c0_160 = arith.constant 0 : index
    %171 = vector.load %arg2[%c0_158, %c38_159, %c0_160] : memref<1x72x144xf32, #tpu.memory_space<vmem>>, vector<1x16x128xf32>
    %172 = vector.shape_cast %171 : vector<1x16x128xf32> to vector<16x128xf32>
    %173 = arith.addf %168, %172 : vector<16x128xf32>
    %c38_161 = arith.constant 38 : index
    %c0_162 = arith.constant 0 : index
    %174 = vector.load %arg7[%c38_161, %c0_162] : memref<72x144xf32, #tpu.memory_space<vmem>>, vector<16x128xf32>
    %175 = arith.maximumf %170, %174 : vector<16x128xf32>
    %c0_163 = arith.constant 0 : index
    %c38_164 = arith.constant 38 : index
    %c8_165 = arith.constant 8 : index
    %176 = vector.load %arg2[%c0_163, %c38_164, %c8_165] : memref<1x72x144xf32, #tpu.memory_space<vmem>>, vector<1x16x128xf32>
    %177 = vector.shape_cast %176 : vector<1x16x128xf32> to vector<16x128xf32>
    %178 = arith.addf %173, %177 : vector<16x128xf32>
    %c38_166 = arith.constant 38 : index
    %c8_167 = arith.constant 8 : index
    %179 = vector.load %arg7[%c38_166, %c8_167] : memref<72x144xf32, #tpu.memory_space<vmem>>, vector<16x128xf32>
    %180 = arith.maximumf %175, %179 : vector<16x128xf32>
    %c0_168 = arith.constant 0 : index
    %c38_169 = arith.constant 38 : index
    %c16_170 = arith.constant 16 : index
    %181 = vector.load %arg2[%c0_168, %c38_169, %c16_170] : memref<1x72x144xf32, #tpu.memory_space<vmem>>, vector<1x16x128xf32>
    %182 = vector.shape_cast %181 : vector<1x16x128xf32> to vector<16x128xf32>
    %183 = arith.addf %178, %182 : vector<16x128xf32>
    %c38_171 = arith.constant 38 : index
    %c16_172 = arith.constant 16 : index
    %184 = vector.load %arg7[%c38_171, %c16_172] : memref<72x144xf32, #tpu.memory_space<vmem>>, vector<16x128xf32>
    %185 = arith.maximumf %180, %184 : vector<16x128xf32>
    %186 = vector.broadcast %20 : f32 to vector<16x128xf32>
    %187 = arith.mulf %186, %145 : vector<16x128xf32>
    %188 = arith.addf %143, %187 : vector<16x128xf32>
    %189 = arith.mulf %22, %183 : vector<16x128xf32>
    %190 = arith.addf %188, %189 : vector<16x128xf32>
    %191 = vector.broadcast %21 : f32 to vector<16x128xf32>
    %192 = arith.mulf %191, %185 : vector<16x128xf32>
    %193 = arith.addf %190, %192 : vector<16x128xf32>
    %c0_173 = arith.constant 0 : index
    %c32 = arith.constant 32 : index
    %c0_174 = arith.constant 0 : index
    %194 = vector.load %arg6[%c0_173, %c32, %c0_174] : memref<1x64x128xf32, #tpu.memory_space<vmem>>, vector<1x16x128xf32>
    %195 = vector.shape_cast %194 : vector<1x16x128xf32> to vector<16x128xf32>
    %196 = vector.shape_cast %193 : vector<16x128xf32> to vector<1x16x128xf32>
    tpu.vector_store %arg6[%c0_173, %c32, %c0_174], %196 {strides = array<i32>} : memref<1x64x128xf32, #tpu.memory_space<vmem>>, vector<1x16x128xf32>,
    %c54 = arith.constant 54 : index
    %c0_175 = arith.constant 0 : index
    %197 = vector.load %arg8[%c54, %c0_175] : memref<72x128xf32, #tpu.memory_space<vmem>>, vector<16x128xf32>
    %c55 = arith.constant 55 : index
    %c0_176 = arith.constant 0 : index
    %198 = vector.load %arg9[%c55, %c0_176] : memref<72x128xf32, #tpu.memory_space<vmem>>, vector<16x128xf32>
    %199 = arith.addf %197, %198 : vector<16x128xf32>
    %c56 = arith.constant 56 : index
    %c0_177 = arith.constant 0 : index
    %200 = vector.load %arg10[%c56, %c0_177] : memref<72x128xf32, #tpu.memory_space<vmem>>, vector<16x128xf32>
    %201 = arith.addf %199, %200 : vector<16x128xf32>
    %c0_178 = arith.constant 0 : index
    %c55_179 = arith.constant 55 : index
    %c8_180 = arith.constant 8 : index
    %202 = vector.load %arg2[%c0_178, %c55_179, %c8_180] : memref<1x72x144xf32, #tpu.memory_space<vmem>>, vector<1x16x128xf32>
    %203 = vector.shape_cast %202 : vector<1x16x128xf32> to vector<16x128xf32>
    %c0_181 = arith.constant 0 : index
    %c54_182 = arith.constant 54 : index
    %c0_183 = arith.constant 0 : index
    %204 = vector.load %arg2[%c0_181, %c54_182, %c0_183] : memref<1x72x144xf32, #tpu.memory_space<vmem>>, vector<1x16x128xf32>
    %205 = vector.shape_cast %204 : vector<1x16x128xf32> to vector<16x128xf32>
    %206 = arith.addf %203, %205 : vector<16x128xf32>
    %c54_184 = arith.constant 54 : index
    %c0_185 = arith.constant 0 : index
    %207 = vector.load %arg7[%c54_184, %c0_185] : memref<72x144xf32, #tpu.memory_space<vmem>>, vector<16x128xf32>
    %208 = arith.maximumf %203, %207 : vector<16x128xf32>
    %c0_186 = arith.constant 0 : index
    %c54_187 = arith.constant 54 : index
    %c8_188 = arith.constant 8 : index
    %209 = vector.load %arg2[%c0_186, %c54_187, %c8_188] : memref<1x72x144xf32, #tpu.memory_space<vmem>>, vector<1x16x128xf32>
    %210 = vector.shape_cast %209 : vector<1x16x128xf32> to vector<16x128xf32>
    %211 = arith.addf %206, %210 : vector<16x128xf32>
    %c54_189 = arith.constant 54 : index
    %c8_190 = arith.constant 8 : index
    %212 = vector.load %arg7[%c54_189, %c8_190] : memref<72x144xf32, #tpu.memory_space<vmem>>, vector<16x128xf32>
    %213 = arith.maximumf %208, %212 : vector<16x128xf32>
    %c0_191 = arith.constant 0 : index
    %c54_192 = arith.constant 54 : index
    %c16_193 = arith.constant 16 : index
    %214 = vector.load %arg2[%c0_191, %c54_192, %c16_193] : memref<1x72x144xf32, #tpu.memory_space<vmem>>, vector<1x16x128xf32>
    %215 = vector.shape_cast %214 : vector<1x16x128xf32> to vector<16x128xf32>
    %216 = arith.addf %211, %215 : vector<16x128xf32>
    %c54_194 = arith.constant 54 : index
    %c16_195 = arith.constant 16 : index
    %217 = vector.load %arg7[%c54_194, %c16_195] : memref<72x144xf32, #tpu.memory_space<vmem>>, vector<16x128xf32>
    %218 = arith.maximumf %213, %217 : vector<16x128xf32>
    %c0_196 = arith.constant 0 : index
    %c55_197 = arith.constant 55 : index
    %c0_198 = arith.constant 0 : index
    %219 = vector.load %arg2[%c0_196, %c55_197, %c0_198] : memref<1x72x144xf32, #tpu.memory_space<vmem>>, vector<1x16x128xf32>
    %220 = vector.shape_cast %219 : vector<1x16x128xf32> to vector<16x128xf32>
    %221 = arith.addf %216, %220 : vector<16x128xf32>
    %c55_199 = arith.constant 55 : index
    %c0_200 = arith.constant 0 : index
    %222 = vector.load %arg7[%c55_199, %c0_200] : memref<72x144xf32, #tpu.memory_space<vmem>>, vector<16x128xf32>
    %223 = arith.maximumf %218, %222 : vector<16x128xf32>
    %c0_201 = arith.constant 0 : index
    %c55_202 = arith.constant 55 : index
    %c16_203 = arith.constant 16 : index
    %224 = vector.load %arg2[%c0_201, %c55_202, %c16_203] : memref<1x72x144xf32, #tpu.memory_space<vmem>>, vector<1x16x128xf32>
    %225 = vector.shape_cast %224 : vector<1x16x128xf32> to vector<16x128xf32>
    %226 = arith.addf %221, %225 : vector<16x128xf32>
    %c55_204 = arith.constant 55 : index
    %c16_205 = arith.constant 16 : index
    %227 = vector.load %arg7[%c55_204, %c16_205] : memref<72x144xf32, #tpu.memory_space<vmem>>, vector<16x128xf32>
    %228 = arith.maximumf %223, %227 : vector<16x128xf32>
    %c0_206 = arith.constant 0 : index
    %c56_207 = arith.constant 56 : index
    %c0_208 = arith.constant 0 : index
    %229 = vector.load %arg2[%c0_206, %c56_207, %c0_208] : memref<1x72x144xf32, #tpu.memory_space<vmem>>, vector<1x16x128xf32>
    %230 = vector.shape_cast %229 : vector<1x16x128xf32> to vector<16x128xf32>
    %231 = arith.addf %226, %230 : vector<16x128xf32>
    %c56_209 = arith.constant 56 : index
    %c0_210 = arith.constant 0 : index
    %232 = vector.load %arg7[%c56_209, %c0_210] : memref<72x144xf32, #tpu.memory_space<vmem>>, vector<16x128xf32>
    %233 = arith.maximumf %228, %232 : vector<16x128xf32>
    %c0_211 = arith.constant 0 : index
    %c56_212 = arith.constant 56 : index
    %c8_213 = arith.constant 8 : index
    %234 = vector.load %arg2[%c0_211, %c56_212, %c8_213] : memref<1x72x144xf32, #tpu.memory_space<vmem>>, vector<1x16x128xf32>
    %235 = vector.shape_cast %234 : vector<1x16x128xf32> to vector<16x128xf32>
    %236 = arith.addf %231, %235 : vector<16x128xf32>
    %c56_214 = arith.constant 56 : index
    %c8_215 = arith.constant 8 : index
    %237 = vector.load %arg7[%c56_214, %c8_215] : memref<72x144xf32, #tpu.memory_space<vmem>>, vector<16x128xf32>
    %238 = arith.maximumf %233, %237 : vector<16x128xf32>
    %c0_216 = arith.constant 0 : index
    %c56_217 = arith.constant 56 : index
    %c16_218 = arith.constant 16 : index
    %239 = vector.load %arg2[%c0_216, %c56_217, %c16_218] : memref<1x72x144xf32, #tpu.memory_space<vmem>>, vector<1x16x128xf32>
    %240 = vector.shape_cast %239 : vector<1x16x128xf32> to vector<16x128xf32>
    %241 = arith.addf %236, %240 : vector<16x128xf32>
    %c56_219 = arith.constant 56 : index
    %c16_220 = arith.constant 16 : index
    %242 = vector.load %arg7[%c56_219, %c16_220] : memref<72x144xf32, #tpu.memory_space<vmem>>, vector<16x128xf32>
    %243 = arith.maximumf %238, %242 : vector<16x128xf32>
    %244 = vector.broadcast %20 : f32 to vector<16x128xf32>
    %245 = arith.mulf %244, %203 : vector<16x128xf32>
    %246 = arith.addf %201, %245 : vector<16x128xf32>
    %247 = arith.mulf %22, %241 : vector<16x128xf32>
    %248 = arith.addf %246, %247 : vector<16x128xf32>
    %249 = vector.broadcast %21 : f32 to vector<16x128xf32>
    %250 = arith.mulf %249, %243 : vector<16x128xf32>
    %251 = arith.addf %248, %250 : vector<16x128xf32>
    %c0_221 = arith.constant 0 : index
    %c48 = arith.constant 48 : index
    %c0_222 = arith.constant 0 : index
    %252 = vector.load %arg6[%c0_221, %c48, %c0_222] : memref<1x64x128xf32, #tpu.memory_space<vmem>>, vector<1x16x128xf32>
    %253 = vector.shape_cast %252 : vector<1x16x128xf32> to vector<16x128xf32>
    %254 = vector.shape_cast %251 : vector<16x128xf32> to vector<1x16x128xf32>
    tpu.vector_store %arg6[%c0_221, %c48, %c0_222], %254 {strides = array<i32>} : memref<1x64x128xf32, #tpu.memory_space<vmem>>, vector<1x16x128xf32>,
    return
  }
  func.func @transform_0(%arg0: i32) -> i32 {
    %c0_i32 = arith.constant 0 : i32
    %c0_i32_0 = arith.constant 0 : i32
    return %c0_i32 : i32
  }
  func.func @transform_1(%arg0: i32) -> (i32, i32, i32) {
    %c0_i32 = arith.constant 0 : i32
    %c0_i32_0 = arith.constant 0 : i32
    %c0_i32_1 = arith.constant 0 : i32
    return %arg0, %c0_i32, %c0_i32_0 : i32, i32, i32
  }
  func.func @transform_2(%arg0: i32) -> (i32, i32) {
    %c0_i32 = arith.constant 0 : i32
    %c0_i32_0 = arith.constant 0 : i32
    %c0_i32_1 = arith.constant 0 : i32
    return %c0_i32, %c0_i32_0 : i32, i32
  }
  func.func @transform_3(%arg0: i32) -> (i32, i32) {
    %c0_i32 = arith.constant 0 : i32
    %c0_i32_0 = arith.constant 0 : i32
    %c0_i32_1 = arith.constant 0 : i32
    return %c0_i32, %c0_i32_0 : i32, i32
  }
  func.func @transform_4(%arg0: i32) -> (i32, i32, i32) {
    %c0_i32 = arith.constant 0 : i32
    %c0_i32_0 = arith.constant 0 : i32
    %c0_i32_1 = arith.constant 0 : i32
    %c0_i32_2 = arith.constant 0 : i32
    return %c0_i32, %c0_i32_0, %c0_i32_1 : i32, i32, i32
  }
  func.func @transform_5(%arg0: i32) -> (i32, i32, i32) {
    %c0_i32 = arith.constant 0 : i32
    %c0_i32_0 = arith.constant 0 : i32
    %c0_i32_1 = arith.constant 0 : i32
    return %arg0, %c0_i32, %c0_i32_0 : i32, i32, i32
  }
}

</mosaic_0001>

<bundles_post_ra>
// kernel: _mixed_op_impl.1
= control target key start
LH: loop header
LB: loop body
LE: loop exit
PB: predicated region body
PF: predicated region fallthrough
CT: control target
= control target key end

     0   :  { %10 = vsyncpa [#allocation7], 0  ;;  %s3139_s18 = smov 0   ;;  %s5385_s0 = inlined_call_operand.vmem [shape: f32[2], index: 0, kind: input, shape index: {}]   ;;  %s5386_s1 = inlined_call_operand.vmem [shape: f32[2,72,144], index: 1, kind: input, shape index: {}]   ;;  %s5387_s2 = inlined_call_operand.vmem [shape: f32[72,144], index: 2, kind: input, shape index: {}]   ;;  %s5388_s3 = inlined_call_operand.vmem [shape: f32[16,128], index: 3, kind: input, shape index: {}]   ;;  %s5389_s4 = inlined_call_operand.vmem [shape: bf16[3,144,128], index: 4, kind: input, shape index: {}]   ;;  %s5390_s5 = inlined_call_operand.vmem [shape: f32[2,64,128], index: 5, kind: output, shape index: {}]  }
   0x1 LB: > { %s3145_s19 = sadd.s32 4294967295, %s3103_s18   ;;  %p2913_p0 = scmp.ge.s32.totalorder %s3103_s18, 1  ;;  %s3103_s18 = sphi %s3139_s18, %s16_s18  }
   0x2   : > { %p157_p1 = scmp.lt.s32.totalorder %s3103_s18, 3  ;;  %s170_s22 = sshll.u32 %s5385_s0, 4  ;;  %s171_s22 = int_to_ptr.vmem [resolvable:$true] %s170_s22 }
   0x3   : > { %p3030_p3 = scmp.eq.s32.totalorder %s3145_s19, 0  ;;  %s3078_s24 = scalar_lea.vmem %s171_s22, 16 }
   0x4   : > { %p3152_p2 = pnand %p2913_p0, %p157_p1  ;;  %p3079_p6 = scmp.ne.s32.totalorder %s171_s22, %s3078_s24 }
   0x5   : > { %p3086_p10 = scmp.lt.s32.totalorder %s171_s22, %s171_s22  ;;  %p3087_p11 = scmp.lt.s32.totalorder %s3078_s24, %s3078_s24 }
   0x6   : > { %p3026_p4 = pneg %p3152_p2 }
   0x7   : > { %p3088_p12 = por %p3087_p11, %p3086_p10 }
   0x8   : > { %p3027_p5 = pnand %p3030_p3, %p3026_p4 }
   0xa   : > { %p3080_p7 = pneg %p3027_p5 }
   0xc   : > { %p3081_p8 = pnand %p3080_p7, %p3079_p6 }
   0xe   : > { %p3082_p9 = pneg %p3081_p8 }
  0x10   : > { %p3089_p13 = pnand %p3088_p12, %p3082_p9 }
  0x12   : > { %3092 = shalt.err (!%p3089_p13)
}
  0x13   : > { %s3105_s25 = smov [#allocation6]   ;;  %200 = sbr.rel (%p3152_p2) target bundleno = 1039 (0x40f), region = 40 }
  0x14   : > { %3029 = dma.vmem_to_smem (!%p3027_p5), %s171_s22, 16, %s3105_s25, [#allocation7]  }
  0x1a   : > { %3098 = dma.done.wait (%p3030_p3), [#allocation7], 16  }
  0x1b   : > { %3100 = vsyncadd (%p3030_p3), [#allocation7], 4294967280 }
  0x1c   : > { %206 = sfence }
  0x1d   : > { %v3044_v0 = vld [vmem:[%s5389_s4] sm:$0xff]   ;;  %v3106_v1 = vmov 0   ;;  %p229_p0 = scmp.lt.s32.totalorder %s3145_s19, 1  ;;  %v3045_v2 = vld [vmem:[%s5389_s4 + $0x8] sm:$0xff]   ;;  %v3046_v3 = vld [vmem:[%s5389_s4 + $0x10] sm:$0xff]   ;;  %vm340_vm0 = vcmask 130048  }
  0x1e   : > { %356 = vmatprep.subr.bf16.mxu0 %v3106_v1  ;;  %510 = vmatprep.subr.bf16.mxu1 %v3106_v1  ;;  %v763_v4 = vld [vmem:[%s5387_s2] sm:$0xff]  ;;  %v765_v5 = vld [vmem:[%s5387_s2 + $0x10] sm:$0xff]  ;;  %v3047_v13 = vld [vmem:[%s5389_s4 + $0x18] sm:$0xff]   ;;  %s3107_s21 = smov 8   ;;  %vm840_vm1 = vcmask 1040384   ;;  %s3108_s28 = smov 120  }
  0x1f   : > { %357 = vmatpush1.bf16.msra.mxu0 %v3044_v0  ;;  %s5653_s19 = smov (!%p229_p0, %s3145_s19), 1  ;;  %v764_v15 = vld [vmem:[%s5387_s2 + $0x8] sm:$0xff]  ;;  %v766_v20 = vld [vmem:[%s5387_s2 + $0x18] sm:$0xff]  ;;  %v3048_v23 = vld [vmem:[%s5389_s4 + $0x20] sm:$0xff]   ;;  %vm1073_vm2 = vcmask 1046528   ;;  %s817_s15 = sld [smem:[#allocation6]] }
  0x20   : > { %358 = vmatprep.subr.bf16.mxu0 %v3106_v1  ;;  %s3021_s30 = smul.u32 144, %s5653_s19  ;;  %v3053_v22 = vld [vmem:[%s5389_s4 + $0x48] sm:$0xff]   ;;  %v3055_v26 = vld [vmem:[%s5389_s4 + $0x50] sm:$0xff]   ;;  %v3057_v28 = vld [vmem:[%s5389_s4 + $0x58] sm:$0xff]   ;;  %s2999_s23 = sld [smem:[#allocation6 + $0x1]]  ;;  %vm930_vm3 = vcmask 982016  }
  0x21   : > { %511 = vmatpush1.bf16.msra.mxu1 %v3053_v22  ;;  %v3049_v27 = vld [vmem:[%s5389_s4 + $0x28] sm:$0xff]   ;;  %v3050_v30 = vld [vmem:[%s5389_s4 + $0x30] sm:$0xff]   ;;  %v767_v32 = vld [vmem:[%s5387_s2 + $0x20] sm:$0xff]  ;;  %vm1740_vm4 = vcmask 1044480   ;;  %s3002_s13 = sshll.u32 %s5653_s19, 6  ;;  %vm2253_vm5 = vcmask 1042432  }
  0x22   : > { %s3190_s12 = scalar_lea.vmem %s5386_s1, %s3021_s30  ;;  %512 = vmatprep.subr.bf16.mxu1 %v3106_v1  ;;  %v3059_v34 = vld [vmem:[%s5389_s4 + $0x60] sm:$0xff]   ;;  %v3051_v36 = vld [vmem:[%s5389_s4 + $0x38] sm:$0xff]   ;;  %v3061_v39 = vld [vmem:[%s5389_s4 + $0x68] sm:$0xff]   ;;  %s4225_s16 = scalar_lea.vmem %s5390_s5, %s3002_s13 }
  0x23   : > { %359 = vmatpush1.bf16.msra.mxu0 %v3045_v2  ;;  %v3197_v6 = vld [vmem:[%s3190_s12] sm:$0xff]  ;;  %v3200_v7 = vld [vmem:[%s3190_s12 + $0x10] sm:$0xff]  ;;  %v881_v8 = vld [vmem:[%s3190_s12 + $0x8] sm:$0xff] }
  0x24   : > { %360 = vmatprep.subr.bf16.mxu0 %v3106_v1  ;;  %v3204_v9 = vrot.slane %v3197_v6, 7  ;;  %v3207_v10 = vrot.slane %v3200_v7, 7  ;;  %v3210_v11 = vld [vmem:[%s3190_s12 + $0x18] sm:$0xff]  ;;  %v781_v12 = vadd.f32 %v3197_v6, %v763_v4  ;;  %v3217_v14 = vadd.f32 %v3200_v7, %v765_v5  ;;  %v244_v29 = vld [vmem:[%s3190_s12 + $0x20] sm:$0xff]  ;;  %v245_v42 = vld [vmem:[%s3190_s12 + $0x28] sm:$0xff] }
  0x25   : > { %v3223_v16 = vpack.c.bf16 %v3210_v11, %v881_v8  ;;  %v3229_v17 = vrot.slane %v881_v8, 7  ;;  %v782_v18 = vadd.f32 %v881_v8, %v764_v15  ;;  %v3233_v19 = vrot.slane %v3210_v11, 7  ;;  %513 = vmatpush1.bf16.msra.mxu1 %v3055_v26  ;;  %v3052_v41 = vld [vmem:[%s5389_s4 + $0x40] sm:$0xff]   ;;  %v3327_v43 = vld [vmem:[%s3190_s12 + $0x38] sm:$0xff]  ;;  %v3063_v46 = vld [vmem:[%s5389_s4 + $0x70] sm:$0xff]  }
  0x26   : > { %844 = vrot.lane.b32.xlu0 %v3204_v9, %s3107_s21  ;;  %848 = vrot.lane.b32.xlu1 %v3207_v10, %s3107_s21  ;;  %799 = vst [vmem:[#allocation2] sm:$0xff] %v781_v12  ;;  %v784_v21 = vadd.f32 %v3210_v11, %v766_v20  ;;  %v3263_v25 = vsel %vm840_vm1, %v3204_v9, %v3207_v10  ;;  %v3290_v31 = vrot.slane %v781_v12, 7  ;;  %v3297_v33 = vrot.slane %v3217_v14, 7  ;;  %v3350_v48 = vld [vmem:[%s5389_s4 + $0x90] sm:$0xff]   ;;  %v3371_v52 = vld [vmem:[%s5389_s4 + $0x98] sm:$0xff]  }
  0x27   : > { %361 = vmatpush1.bf16.msra.mxu0 %v3046_v3  ;;  %2930 = vmatprep.mubr.msk.bf16.mxu0 %vm340_vm0, %v3223_v16  ;;  %800 = vst.msk [vmem:[#allocation2 + $0x8] sm:$0xff] %vm340_vm0, %v782_v18  ;;  %v3258_v24 = vsel %vm840_vm1, %v3229_v17, %v3233_v19  ;;  %v785_v35 = vadd.f32 %v767_v32, %v244_v29  ;;  %v3366_v51 = vld [vmem:[%s3190_s12 + $0x30] sm:$0xff]  ;;  %v3065_v53 = vld [vmem:[%s5389_s4 + $0x78] sm:$0xff]   ;;  %v3378_v54 = vld [vmem:[%s3190_s12 + $0x48] sm:$0xff] }
  0x28   : > { %362 = vmatprep.subr.bf16.mxu0 %v3106_v1  ;;  %2962 = vmatprep.mubr.msk.bf16.mxu1 %vm340_vm0, %v3223_v16  ;;  %802 = vst.msk [vmem:[#allocation2 + $0x18] sm:$0xff] %vm340_vm0, %v784_v21  ;;  %v3313_v38 = vsel %vm840_vm1, %v3290_v31, %v3297_v33  ;;  %v3344_v47 = vpack.c.bf16 %v3200_v7, %v3197_v6  ;;  %5474 = vst [vmem:[#allocation9_spill] sm:$0xff] %v3366_v51  ;;  %v251_v55 = vld [vmem:[%s3190_s12 + $0x58] sm:$0xff]  ;;  %v3067_v56 = vld [vmem:[%s5389_s4 + $0x80] sm:$0xff]  }
  0x29   : > { %514 = vmatprep.subr.bf16.mxu1 %v3106_v1  ;;  %803 = vst [vmem:[#allocation2 + $0x20] sm:$0xff] %v785_v35  ;;  %v3353_v49 = vpack.c.bf16 %v3327_v43, %v245_v42  ;;  %v768_v57 = vld [vmem:[%s5387_s2 + $0x28] sm:$0xff]  ;;  %v3397_v58 = vpack.c.bf16 %v3366_v51, %v244_v29  ;;  %v3404_v60 = vld [vmem:[%s5389_s4 + $0xa0] sm:$0xff]   ;;  %v3407_v61 = vpack.c.bf16 %v251_v55, %v3378_v54  ;;  %v250_v2 = vld [vmem:[%s3190_s12 + $0x50] sm:$0xff] }
  0x2a   : > { %918 = vrot.lane.b32.xlu0 %v3204_v9, %s3108_s28  ;;  %920 = vrot.lane.b32.xlu1 %v3229_v17, %s3108_s28  ;;  %v786_v59 = vadd.f32 %v768_v57, %v245_v42  ;;  %v3415_v62 = vld [vmem:[%s3190_s12] sm:$0xfe]  ;;  %v3069_v63 = vld [vmem:[%s5389_s4 + $0x88] sm:$0xff]  }
  0x2b   : > { %363 = vmatpush1.bf16.msra.mxu0 %v3047_v13  ;;  %515 = vmatpush1.bf16.msra.mxu1 %v3057_v28  ;;  %v248_v0 = vld [vmem:[%s3190_s12 + $0x40] sm:$0xff]  ;;  %v3431_v3 = vld [vmem:[%s5389_s4 + $0xa8] sm:$0xff]   ;;  %v255_v5 = vld [vmem:[%s3190_s12 + $0x78] sm:$0xff] }
  0x2c   : > { %364 = vmatprep.subr.bf16.mxu0 %v3106_v1  ;;  %516 = vmatprep.subr.bf16.mxu1 %v3106_v1  ;;  %804 = vst.msk [vmem:[#allocation2 + $0x28] sm:$0xff] %vm340_vm0, %v786_v59  ;;  %v253_v4 = vld [vmem:[%s3190_s12 + $0x68] sm:$0xff]  ;;  %v3442_v8 = vld [vmem:[%s3190_s12 + $0x20] sm:$0x1]  ;;  %v3445_v12 = vpack.c.bf16 %v250_v2, %v248_v0  ;;  %v3452_v13 = vld [vmem:[%s5389_s4 + $0xb0] sm:$0xff]  }
  0x2d   : > { %v3439_v6 = vld [vmem:[#allocation2] sm:$0xfe]  ;;  %v3454_v15 = vpack.c.bf16 %v255_v5, %v253_v4  ;;  %v3478_v26 = vld [vmem:[%s5389_s4 + $0xb8] sm:$0xff]   ;;  %v3486_v28 = vld [vmem:[%s3190_s12 + $0x8] sm:$0xfe] }
  0x2e   : > { %924 = vrot.lane.b32.xlu1 %v3258_v24, %s3108_s28  ;;  %846 = vrot.lane.b32.xlu0 %v3263_v25, %s3107_s21  ;;  %v899_v37 = vld [vmem:[#allocation2 + $0x8] sm:$0xff]  ;;  %v771_v18 = vld [vmem:[%s5387_s2 + $0x40] sm:$0xff]  ;;  %v3541_v42 = vld [vmem:[%s5389_s4 + $0xd0] sm:$0xff]  }
  0x2f   : > { %365 = vmatpush1.bf16.msra.mxu0 %v3048_v23  ;;  %517 = vmatpush1.bf16.msra.mxu1 %v3059_v34  ;;  %v3319_v40 = vld [vmem:[#allocation2 + $0x18] sm:$0xff]  ;;  %v3333_v44 = vrot.slane %v899_v37, 7  ;;  %v789_v21 = vadd.f32 %v771_v18, %v248_v0  ;;  %v252_v22 = vld [vmem:[%s3190_s12 + $0x60] sm:$0xff]  ;;  %v254_v23 = vld [vmem:[%s3190_s12 + $0x70] sm:$0xff] }
  0x30   : > { %366 = vmatprep.subr.bf16.mxu0 %v3106_v1  ;;  %518 = vmatprep.subr.bf16.mxu1 %v3106_v1  ;;  %v3337_v45 = vrot.slane %v3319_v40, 7  ;;  %v3463_v20 = vld [vmem:[#allocation2 + $0x20] sm:$0x1]  ;;  %v3490_v29 = vpack.c.bf16 %v254_v23, %v252_v22  ;;  %v769_v34 = vld [vmem:[%s5387_s2 + $0x30] sm:$0xff]  ;;  %v3523_v37 = vld [vmem:[%s5389_s4 + $0xc8] sm:$0xff]   ;;  %v1144_v18 = vrot.slane %v3319_v40, 1 }
  0x31   : > { %807 = vst [vmem:[#allocation2 + $0x40] sm:$0xff] %v789_v21  ;;  %v3511_v35 = vadd.f32 %v769_v34, %v3366_v51  ;;  %v1094_v57 = vld [vmem:[#allocation2] sm:$0xfc]  ;;  %v1119_v5 = vld [vmem:[%s3190_s12 + $0x28] sm:$0x3] }
  0x32   : > { %928 = vrot.lane.b32.xlu1 %v3233_v19, %s3108_s28  ;;  %922 = vrot.lane.b32.xlu0 %v3263_v25, %s3108_s28  ;;  %v3362_v50 = vsel %vm840_vm1, %v3333_v44, %v3337_v45  ;;  %v772_v22 = vld [vmem:[%s5387_s2 + $0x48] sm:$0xff] }
  0x33   : > { %367 = vmatpush1.bf16.msra.mxu0 %v3049_v27  ;;  %519 = vmatpush1.bf16.msra.mxu1 %v3061_v39  ;;  %v257_v27 = vld [vmem:[%s3190_s12 + $0x88] sm:$0xff]  ;;  %5475 = vst [vmem:[#allocation10_spill] sm:$0xff] %v3511_v35 }
  0x34   : > { %368 = vmatprep.subr.bf16.mxu0 %v3106_v1  ;;  %520 = vmatprep.subr.bf16.mxu1 %v3106_v1  ;;  %v3499_v32 = vpack.c.bf16 %v257_v27, %v257_v27  ;;  %v3530_v39 = vld [vmem:[%s3190_s12 + $0x28] sm:$0x1]  ;;  %v790_v27 = vadd.f32 %v772_v22, %v3378_v54  ;;  %v1370_v22 = vrot.slane %v3511_v35, 7 }
  0x35   : > { %v1140_v21 = vld [vmem:[#allocation2 + $0x28] sm:$0x3] }
  0x36   : > { %926 = vrot.lane.b32.xlu0 %v3207_v10, %s3108_s28  ;;  %866 = vrot.lane.b32.xlu1 %v3290_v31, %s3107_s21  ;;  %808 = vst.msk [vmem:[#allocation2 + $0x48] sm:$0xff] %vm340_vm0, %v790_v27 }
  0x37   : > { %369 = vmatpush1.bf16.msra.mxu0 %v3050_v30  ;;  %521 = vmatpush1.bf16.msra.mxu1 %v3063_v46  ;;  %v3497_v30 = vld [vmem:[%s5389_s4 + $0xc0] sm:$0xff]   ;;  %v1038_v46 = vld [vmem:[#allocation2 + $0x8] sm:$0xfe] }
  0x38   : > { %370 = vmatprep.subr.bf16.mxu0 %v3106_v1  ;;  %522 = vmatprep.subr.bf16.mxu1 %v3106_v1 }
  0x3a   : > { %870 = vrot.lane.b32.xlu1 %v3297_v33, %s3107_s21  ;;  %868 = vrot.lane.b32.xlu0 %v3313_v38, %s3107_s21 }
  0x3b   : > { %371 = vmatpush1.bf16.msra.mxu0 %v3051_v36  ;;  %523 = vmatpush1.bf16.msra.mxu1 %v3065_v53  ;;  %v256_v36 = vld [vmem:[%s3190_s12 + $0x80] sm:$0xff]  ;;  %v1075_v53 = vrot.slane %v3200_v7, 1 }
  0x3c   : > { %372 = vmatprep.subr.bf16.mxu0 %v3106_v1  ;;  %524 = vmatprep.subr.bf16.mxu1 %v3106_v1 }
  0x3e   : > { %948 = vrot.lane.b32.xlu1 %v3333_v44, %s3108_s28  ;;  %946 = vrot.lane.b32.xlu0 %v3290_v31, %s3108_s28 }
  0x3f   : > { %373 = vmatpush1.bf16.msra.mxu0 %v3052_v41  ;;  %525 = vmatpush1.bf16.msra.mxu1 %v3067_v56  ;;  %v3534_v41 = vpack.c.bf16 %v256_v36, %v256_v36 }
  0x40   : > { %664 = vmatprep.subr.bf16.mxu0 %v3106_v1  ;;  %526 = vmatprep.subr.bf16.mxu1 %v3106_v1 }
  0x42   : > { %389 = vmatmul.mubr.bf16.vlgmr.msra.gmra.mrb[0].mxu0 %v3344_v47  ;;  %952 = vrot.lane.b32.xlu1 %v3362_v50, %s3108_s28 }
  0x43   : > { %665 = vmatpush1.bf16.msra.mxu0 %v3350_v48  ;;  %2931 = vmatprep.mubr.msk.bf16.mxu0 %vm340_vm0, %v3353_v49 }
  0x44   : > { %950 = vrot.lane.b32.xlu0 %v3313_v38, %s3108_s28  ;;  %666 = vmatprep.subr.bf16.mxu0 %v3106_v1 }
  0x45   : > { %527 = vmatpush1.bf16.msra.mxu1 %v3069_v63  ;;  %v1099_v63 = vrot.slane %v3217_v14, 1 }
  0x46   : > { %956 = vrot.lane.b32.xlu1 %v3337_v45, %s3108_s28  ;;  %3003 = vmatprep.subr.bf16.mxu1 %v3106_v1 }
  0x47   : > { %667 = vmatpush1.bf16.msra.mxu0 %v3371_v52 }
  0x48   : > { %954 = vrot.lane.b32.xlu0 %v3297_v33, %s3108_s28  ;;  %668 = vmatprep.subr.bf16.mxu0 %v3106_v1 }
  0x49   : > { %543 = vmatmul.mubr.bf16.vlgmr.msra.gmra.mrb[0].mxu1 %v3344_v47 }
  0x4a   : > { %397 = vmatmul.mubr.bf16.gmra.mrb[4].mxu0 %v3397_v58  ;;  %977 = vrot.lane.b32.xlu1 %v3200_v7, %s3107_s21 }
  0x4b   : > { %669 = vmatpush1.bf16.msra.mxu0 %v3404_v60  ;;  %2932 = vmatprep.mubr.msk.bf16.mxu0 %vm340_vm0, %v3407_v61 }
  0x4c   : > { %975 = vrot.lane.b32.xlu0 %v3415_v62, %s3107_s21  ;;  %670 = vmatprep.subr.bf16.mxu0 %v3106_v1 }
  0x4d   : > { %2963 = vmatprep.mubr.msk.bf16.mxu1 %vm340_vm0, %v3353_v49  ;;  %3012 = vmatpush1.bf16.msra.mxu1 %v3350_v48  ;;  %v1070_v48 = vld [vmem:[%s3190_s12 + $0x20] sm:$0x3] }
  0x4e   : > { %994 = vrot.lane.b32.xlu1 %v3439_v6, %s3107_s21  ;;  %3004 = vmatprep.subr.bf16.mxu1 %v3106_v1  ;;  %v3569_v55 = vrot.slane %v1070_v48, 1 }
  0x4f   : > { %671 = vmatpush1.bf16.msra.mxu0 %v3431_v3 }
  0x50   : > { %979 = vrot.lane.b32.xlu0 %v3442_v8, %s3107_s21  ;;  %672 = vmatprep.subr.bf16.mxu0 %v3106_v1  ;;  %5476 = vst [vmem:[#allocation11_spill] sm:$0xff] %v3569_v55  ;;  %v3582_v59 = vsel %vm1073_vm2, %v1075_v53, %v3569_v55 }
  0x51   : > { %551 = vmatmul.mubr.bf16.gmra.mrb[4].mxu1 %v3397_v58 }
  0x52   : > { %405 = vmatmul.mubr.bf16.gmra.mrb[8].mxu0 %v3445_v12  ;;  %998 = vrot.lane.b32.xlu1 %v3463_v20, %s3107_s21 }
  0x53   : > { %673 = vmatpush1.bf16.msra.mxu0 %v3452_v13  ;;  %2933 = vmatprep.mubr.msk.bf16.mxu0 %vm340_vm0, %v3454_v15 }
  0x54   : > { %996 = vrot.lane.b32.xlu0 %v3217_v14, %s3107_s21  ;;  %674 = vmatprep.subr.bf16.mxu0 %v3106_v1 }
  0x55   : > { %2964 = vmatprep.mubr.msk.bf16.mxu1 %vm340_vm0, %v3407_v61  ;;  %3013 = vmatpush1.bf16.msra.mxu1 %v3371_v52  ;;  %v1069_v52 = vld [vmem:[%s3190_s12] sm:$0xfc] }
  0x56   : > { %1013 = vrot.lane.b32.xlu1 %v3486_v28, %s3108_s28  ;;  %3005 = vmatprep.subr.bf16.mxu1 %v3106_v1  ;;  %v1074_v56 = vrot.slane %v1069_v52, 1 }
  0x57   : > { %675 = vmatpush1.bf16.msra.mxu0 %v3478_v26 }
  0x58   : > { %1011 = vrot.lane.b32.xlu0 %v3415_v62, %s3108_s28  ;;  %676 = vmatprep.subr.bf16.mxu0 %v3106_v1 }
  0x59   : > { %559 = vmatmul.mubr.bf16.gmra.mrb[8].mxu1 %v3445_v12 }
  0x5a   : > { %413 = vmatmul.mubr.bf16.gmra.mrb[12].mxu0 %v3490_v29  ;;  %1017 = vrot.lane.b32.xlu1 %v3210_v11, %s3108_s28 }
  0x5b   : > { %677 = vmatpush1.bf16.msra.mxu0 %v3497_v30  ;;  %2934 = vmatprep.mubr.msk.bf16.mxu0 %vm340_vm0, %v3499_v32 }
  0x5c   : > { %1015 = vrot.lane.b32.xlu0 %v3200_v7, %s3108_s28  ;;  %678 = vmatprep.subr.bf16.mxu0 %v3106_v1 }
  0x5d   : > { %3014 = vmatpush1.bf16.msra.mxu1 %v3404_v60  ;;  %2965 = vmatprep.mubr.msk.bf16.mxu1 %vm340_vm0, %v3454_v15  ;;  %v1098_v60 = vrot.slane %v1094_v57, 1  ;;  %v1338_v57 = vld [vmem:[%s3190_s12 + $0x20] sm:$0xfc] }
  0x5e   : > { %1021 = vrot.lane.b32.xlu1 %v3530_v39, %s3108_s28  ;;  %3006 = vmatprep.subr.bf16.mxu1 %v3106_v1 }
  0x5f   : > { %679 = vmatpush1.bf16.msra.mxu0 %v3523_v37  ;;  %v3597_v0 = vsel %vm1073_vm2, %v1098_v60, %v1099_v63 }
  0x60   : > { %1019 = vrot.lane.b32.xlu0 %v3442_v8, %s3108_s28  ;;  %680 = vmatprep.subr.bf16.mxu0 %v3106_v1  ;;  %5477 = vst [vmem:[#allocation12_spill] sm:$0xff] %v3597_v0 }
  0x61   : > { %3015 = vmatpush1.bf16.msra.mxu1 %v3431_v3 }
  0x62   : > { %421 = vmatmul.mubr.bf16.gmra.mrb[16].mxu0 %v3534_v41  ;;  %1044 = vrot.lane.b32.xlu1 %v1038_v46, %s3108_s28 }
  0x63   : > { %681 = vmatpush1.bf16.msra.mxu0 %v3541_v42  ;;  %2994 = vmatprep.mubr.msk.bf16.mxu0 %vm340_vm0, %v3223_v16  ;;  %v1039_v16 = vld [vmem:[#allocation2 + $0x28] sm:$0x1] }
  0x64   : > { %1042 = vrot.lane.b32.xlu0 %v3439_v6, %s3108_s28  ;;  %3007 = vmatprep.subr.bf16.mxu1 %v3106_v1  ;;  %v3629_v6 = vrot.slane %v1119_v5, 1  ;;  %v1363_v5 = vld [vmem:[#allocation2 + $0x20] sm:$0xfc] }
  0x65   : > { %567 = vmatmul.mubr.bf16.gmra.mrb[12].mxu1 %v3490_v29 }
  0x66   : > { %1048 = vrot.lane.b32.xlu1 %v3319_v40, %s3108_s28  ;;  %3016 = vmatpush1.bf16.msra.mxu1 %v3452_v13  ;;  %5480 = vst [vmem:[#allocation15_spill] sm:$0xff] %v3629_v6  ;;  %v1139_v13 = vld [vmem:[#allocation2 + $0x8] sm:$0xfc]  ;;  %v3666_v40 = vstv %s817_s15 }
  0x67   : > { %3008 = vmatprep.subr.bf16.mxu1 %v3106_v1  ;;  %2966 = vmatprep.mubr.msk.bf16.mxu1 %vm340_vm0, %v3499_v32  ;;  %5483 = vst [vmem:[#allocation18_spill] sm:$0xff] %v3666_v40  ;;  %v1215_v54 = vmul.f32 %v3666_v40, %v3415_v62  ;;  %v1217_v34 = vmul.f32 %v3666_v40, %v3200_v7 }
  0x68   : > { %1046 = vrot.lane.b32.xlu0 %v3217_v14, %s3108_s28  ;;  %v1118_v14 = vld [vmem:[%s3190_s12 + $0x8] sm:$0xfc]  ;;  %v1220_v46 = vmul.f32 %v3666_v40, %v3530_v39  ;;  %v1219_v48 = vmul.f32 %v3666_v40, %v3442_v8 }
  0x69   : > { %v1122_v4 = vrot.slane %v1118_v14, 1  ;;  %v1344_v14 = vrot.slane %v3366_v51, 7 }
  0x6a   : > { %697 = vmatmul.mubr.bf16.vlgmr.msra.gmra.mrb[20].mxu0 %v3344_v47  ;;  %1052 = vrot.lane.b32.xlu1 %v1039_v16, %s3108_s28  ;;  %v3585_v47 = vsel %vm1073_vm2, %v1074_v56, %v1075_v53  ;;  %v1235_v53 = vrot.slane %v1220_v46, 1  ;;  %v1233_v56 = vrot.slane %v1219_v48, 1  ;;  %v1395_v46 = vrot.slane %v3327_v43, 7 }
  0x6b   : > { %2995 = vmatprep.mubr.msk.bf16.mxu0 %vm340_vm0, %v3353_v49  ;;  %v1095_v49 = vld [vmem:[#allocation2 + $0x20] sm:$0x3]  ;;  %3017 = vmatpush1.bf16.msra.mxu1 %v3478_v26  ;;  %v3664_v26 = vrot.slane %v1140_v21, 1 }
  0x6c   : > { %1050 = vrot.lane.b32.xlu0 %v3463_v20, %s3108_s28  ;;  %3009 = vmatprep.subr.bf16.mxu1 %v3106_v1  ;;  %v3599_v2 = vrot.slane %v1095_v49, 1  ;;  %v3706_v49 = vrot.slane %v1338_v57, 7 }
  0x6d   : > { %575 = vmatmul.mubr.bf16.gmra.mrb[16].mxu1 %v3534_v41  ;;  %5482 = vst [vmem:[#allocation17_spill] sm:$0xff] %v3664_v26 }
  0x6e   : > { %1081 = vrot.lane.b32.xlu1 %v3582_v59, %s3107_s21  ;;  %5478 = vst [vmem:[#allocation13_spill] sm:$0xff] %v3599_v2  ;;  %v3614_v3 = vsel %vm1073_vm2, %v1099_v63, %v3599_v2  ;;  %2997 = vmatprep.mubr.msk.bf16.mxu1 %vm340_vm0, %v3454_v15  ;;  %v1143_v15 = vrot.slane %v1139_v13, 1  ;;  %5485 = vst [vmem:[#allocation20_spill] sm:$0xff] %v3706_v49 }
  0x6f   : > { %3018 = vmatpush1.bf16.msra.mxu1 %v3497_v30  ;;  %5479 = vst [vmem:[#allocation14_spill] sm:$0xff] %v3614_v3  ;;  %v1218_v30 = vmul.f32 %v3666_v40, %v3210_v11 }
  0x70   : > { %1079 = vrot.lane.b32.xlu0 %v3585_v47, %s3107_s21  ;;  %3010 = vmatprep.subr.bf16.mxu1 %v3106_v1  ;;  %v3662_v23 = vsel %vm1073_vm2, %v1143_v15, %v1144_v18 }
  0x71   : > { %5481 = vst [vmem:[#allocation16_spill] sm:$0xff] %v3662_v23 }
  0x72   : > { %705 = vmatmul.mubr.bf16.gmra.mrb[24].mxu0 %v3397_v58  ;;  %1103 = vrot.lane.b32.xlu1 %v3597_v0, %s3107_s21  ;;  %v1123_v58 = vrot.slane %v3210_v11, 1 }
  0x73   : > { %2996 = vmatprep.mubr.msk.bf16.mxu0 %vm340_vm0, %v3407_v61  ;;  %3019 = vmatpush1.bf16.msra.mxu1 %v3523_v37  ;;  %v1231_v37 = vrot.slane %v1218_v30, 1 }
  0x74   : > { %1083 = vrot.lane.b32.xlu0 %v3569_v55, %s3107_s21  ;;  %3011 = vmatprep.subr.bf16.mxu1 %v3106_v1  ;;  %v3627_v61 = vsel %vm1073_vm2, %v1122_v4, %v1123_v58  ;;  %v3639_v1 = vsel %vm1073_vm2, %v1123_v58, %v3629_v6  ;;  %v1339_v4 = vld [vmem:[%s3190_s12 + $0x40] sm:$0x3]  ;;  %v3714_v58 = vsel %vm840_vm1, %v3706_v49, %v1344_v14 }
  0x75   : > { %v1236_v60 = vsel %vm1073_vm2, %v1231_v37, %v1235_v53  ;;  %5486 = vst [vmem:[#allocation21_spill] sm:$0xff] %v3714_v58  ;;  %v1346_v13 = vrot.slane %v1339_v4, 7 }
  0x76   : > { %1107 = vrot.lane.b32.xlu1 %v3599_v2, %s3107_s21 }
  0x77   : > { %3020 = vmatpush1.bf16.msra.mxu1 %v3541_v42  ;;  %v1228_v42 = vrot.slane %v1217_v34, 1  ;;  %v3725_v21 = vsel %vm840_vm1, %v1344_v14, %v1346_v13 }
  0x78   : > { %1105 = vrot.lane.b32.xlu0 %v3614_v3, %s3107_s21  ;;  %5488 = vst [vmem:[#allocation23_spill] sm:$0xff] %v3725_v21 }
  0x79   : > { %v1234_v63 = vsel %vm1073_vm2, %v1228_v42, %v1233_v56 }
  0x7a   : > { %713 = vmatmul.mubr.bf16.gmra.mrb[28].mxu0 %v3445_v12  ;;  %1162 = vrot.lane.b32.xlu1 %v3627_v61, %s3108_s28  ;;  %v770_v12 = vld [vmem:[%s5387_s2 + $0x38] sm:$0xff] }
  0x7b   : > { %721 = vmatmul.mubr.bf16.vlgmr.msra.gmra.mrb[20].mxu1 %v3490_v29  ;;  %v788_v20 = vadd.f32 %v770_v12, %v3327_v43  ;;  %v1216_v29 = vmul.f32 %v3666_v40, %v3486_v28 }
  0x7c   : > { %1160 = vrot.lane.b32.xlu0 %v3585_v47, %s3108_s28  ;;  %2998 = vmatprep.mubr.msk.bf16.mxu1 %vm340_vm0, %v3499_v32  ;;  %v3681_v32 = vsel %vm1073_vm2, %v1144_v18, %v3664_v26  ;;  %v1365_v18 = vld [vmem:[#allocation2 + $0x40] sm:$0x3] }
  0x7d   : > { %806 = vst.msk [vmem:[#allocation2 + $0x38] sm:$0xff] %vm340_vm0, %v788_v20  ;;  %5484 = vst [vmem:[#allocation19_spill] sm:$0xff] %v3681_v32  ;;  %v1230_v36 = vrot.slane %v1216_v29, 1  ;;  %v3722_v20 = vrot.slane %v1363_v5, 7  ;;  %v1372_v27 = vrot.slane %v1365_v18, 7 }
  0x7e   : > { %1166 = vrot.lane.b32.xlu1 %v3639_v1, %s3108_s28 }
  0x7f   : > { %v1232_v52 = vsel %vm1073_vm2, %v1230_v36, %v1231_v37  ;;  %5487 = vst [vmem:[#allocation22_spill] sm:$0xff] %v3722_v20  ;;  %v3741_v34 = vsel %vm840_vm1, %v3722_v20, %v1370_v22  ;;  %v1389_v36 = vld [vmem:[%s3190_s12 + $0x28] sm:$0xfc] }
  0x80   : > { %1164 = vrot.lane.b32.xlu0 %v3582_v59, %s3108_s28  ;;  %5490 = vst [vmem:[#allocation25_spill] sm:$0xff] %v3741_v34 }
  0x82   : > { %1170 = vrot.lane.b32.xlu1 %v3629_v6, %s3108_s28 }
  0x83   : > { %729 = vmatmul.mubr.bf16.gmra.mrb[24].mxu1 %v3534_v41  ;;  %v1227_v41 = vrot.slane %v1215_v54, 1  ;;  %v3737_v54 = vsel %vm840_vm1, %v1370_v22, %v1372_v27 }
  0x84   : > { %1168 = vrot.lane.b32.xlu0 %v3569_v55, %s3108_s28  ;;  %5489 = vst [vmem:[#allocation24_spill] sm:$0xff] %v3737_v54 }
  0x85   : > { %v1229_v16 = vsel %vm1073_vm2, %v1227_v41, %v1228_v42  ;;  %v3750_v42 = vrot.slane %v1389_v36, 7 }
  0x86   : > { %1189 = vrot.lane.b32.xlu1 %v3662_v23, %s3108_s28 }
  0x87   : > { %5491 = vst [vmem:[#allocation26_spill] sm:$0xff] %v3750_v42  ;;  %v3762_v53 = vsel %vm840_vm1, %v3750_v42, %v1395_v46 }
  0x88   : > { %1187 = vrot.lane.b32.xlu0 %v3597_v0, %s3108_s28  ;;  %5492 = vst [vmem:[#allocation27_spill] sm:$0xff] %v3762_v53 }
  0x8a   : > { %1193 = vrot.lane.b32.xlu1 %v3681_v32, %s3108_s28 }
  0x8c   : > { %1191 = vrot.lane.b32.xlu0 %v3614_v3, %s3108_s28 }
  0x8e   : > { %1197 = vrot.lane.b32.xlu1 %v3664_v26, %s3108_s28 }
  0x90   : > { %1195 = vrot.lane.b32.xlu0 %v3599_v2, %s3108_s28 }
  0x92   : > { %1239 = vrot.lane.b32.xlu1 %v1232_v52, %s3108_s28 }
  0x94   : > { %1237 = vrot.lane.b32.xlu0 %v1229_v16, %s3108_s28  ;;  %v1390_v16 = vld [vmem:[%s3190_s12 + $0x48] sm:$0x3] }
  0x95   : > { %v1397_v56 = vrot.slane %v1390_v16, 7 }
  0x96   : > { %1243 = vrot.lane.b32.xlu1 %v1236_v60, %s3108_s28 }
  0x97   : > { %v3771_v43 = vsel %vm840_vm1, %v1395_v46, %v1397_v56 }
  0x98   : > { %1241 = vrot.lane.b32.xlu0 %v1234_v63, %s3108_s28  ;;  %v845_v12 = vpop.permute.xlu0 %844  ;;  %v3716_v15 = vpop.permute.xlu1 %848  ;;  %5493 = vst [vmem:[#allocation28_spill] sm:$0xff] %v3771_v43 }
  0x99   : > { %v853_v26 = vadd.f32 %v845_v12, %v3415_v62  ;;  %v857_v6 = vadd.f32 %v3716_v15, %v3442_v8 }
  0x9a   : > { %1350 = vrot.lane.b32.xlu1 %v3714_v58, %s3107_s21 }
  0x9b   : > { %v893_v55 = vadd.f32 %v853_v26, %v3204_v9  ;;  %v3837_v26 = vstv %s2999_s23 }
  0x9c   : > { %1348 = vrot.lane.b32.xlu0 %v3706_v49, %s3107_s21  ;;  %v3728_v29 = vpop.permute.xlu0 %918  ;;  %v3730_v30 = vpop.permute.xlu1 %920  ;;  %5500 = vst [vmem:[#allocation35_spill] sm:$0xff] %v3837_v26 }
  0x9e   : > { %1374 = vrot.lane.b32.xlu1 %v3722_v20, %s3107_s21  ;;  %v854_v20 = vadd.f32 %v845_v12, %v3486_v28  ;;  %v931_v12 = vsel %vm930_vm3, %v3728_v29, %v3730_v30 }
  0xa0   : > { %1352 = vrot.lane.b32.xlu0 %v3725_v21, %s3107_s21  ;;  %v3744_v37 = vpop.permute.xlu1 %924  ;;  %v847_v41 = vpop.permute.xlu0 %846 }
  0xa1   : > { %v855_v3 = vadd.f32 %v847_v41, %v3200_v7  ;;  %v856_v32 = vadd.f32 %v847_v41, %v3210_v11 }
  0xa2   : > { %1378 = vrot.lane.b32.xlu1 %v3737_v54, %s3107_s21 }
  0xa3   : > { %v896_v41 = vadd.f32 %v3258_v24, %v856_v32 }
  0xa4   : > { %1376 = vrot.lane.b32.xlu0 %v3741_v34, %s3107_s21  ;;  %v3753_v48 = vpop.permute.xlu1 %928  ;;  %v923_v52 = vpop.permute.xlu0 %922 }
  0xa5   : > { %v932_v9 = vsel %vm930_vm3, %v923_v52, %v3744_v37  ;;  %v943_v52 = vadd.f32 %v3744_v37, %v896_v41 }
  0xa6   : > { %1436 = vrot.lane.b32.xlu1 %v3750_v42, %s3108_s28 }
  0xa8   : > { %1434 = vrot.lane.b32.xlu0 %v3706_v49, %s3108_s28  ;;  %v927_v57 = vpop.permute.xlu0 %926  ;;  %v3764_v60 = vpop.permute.xlu1 %866 }
  0xa9   : > { %v876_v24 = vmax.f32 %v3486_v28, %v3764_v60 }
  0xaa   : > { %1440 = vrot.lane.b32.xlu1 %v3762_v53, %s3108_s28 }
  0xac   : > { %1438 = vrot.lane.b32.xlu0 %v3714_v58, %s3108_s28  ;;  %v3773_v63 = vpop.permute.xlu1 %870  ;;  %v3775_v14 = vpop.permute.xlu0 %868 }
  0xad   : > { %v880_v29 = vmax.f32 %v3530_v39, %v3773_v63 }
  0xae   : > { %1444 = vrot.lane.b32.xlu1 %v3771_v43, %s3108_s28 }
  0xb0   : > { %1442 = vrot.lane.b32.xlu0 %v3725_v21, %s3108_s28  ;;  %v3781_v4 = vpop.permute.xlu1 %948  ;;  %v3783_v5 = vpop.permute.xlu0 %946 }
  0xb4   : > { %v3785_v13 = vpop.permute.xlu1 %952 }
  0xb6   : > { %v3787_v18 = vpop.permute.xlu0 %950 }
  0xb8   : > { %v3789_v22 = vpop.permute.xlu1 %956 }
  0xba   : > { %v3791_v27 = vpop.permute.xlu0 %954 }
  0xbc   : > { %v3793_v36 = vpop.permute.xlu1 %977 }
  0xbd   : > { %v987_v37 = vadd.f32 %v3793_v36, %v943_v52 }
  0xbe   : > { %v976_v46 = vpop.permute.xlu0 %975 }
  0xc0   : > { %v3795_v16 = vpop.permute.xlu1 %994 }
  0xc2   : > { %v3797_v56 = vpop.permute.xlu0 %979 }
  0xc4   : > { %v3799_v21 = vpop.permute.xlu1 %998 }
  0xc5   : > { %5494 = vst [vmem:[#allocation29_spill] sm:$0xff] %v3799_v21  ;;  %v858_v21 = vadd.f32 %v3716_v15, %v3530_v39  ;;  %v875_v15 = vmax.f32 %v3415_v62, %v3764_v60  ;;  %v877_v62 = vmax.f32 %v3200_v7, %v3775_v14  ;;  %v958_v7 = vsel %vm930_vm3, %v3783_v5, %v3781_v4 }
  0xc6   : > { %v3801_v43 = vpop.permute.xlu0 %996 }
  0xc7   : > { %5495 = vst [vmem:[#allocation30_spill] sm:$0xff] %v3801_v43  ;;  %v898_v43 = vadd.f32 %v3233_v19, %v858_v21 }
  0xc8   : > { %v1014_v58 = vpop.permute.xlu1 %1013 }
  0xc9   : > { %v945_v32 = vadd.f32 %v3753_v48, %v898_v43 }
  0xca   : > { %v1012_v53 = vpop.permute.xlu0 %1011 }
  0xcc   : > { %v1018_v49 = vpop.permute.xlu1 %1017 }
  0xce   : > { %v1016_v42 = vpop.permute.xlu0 %1015  ;;  %v5501_v52 = vld [vmem:[#allocation30_spill] sm:$0xff] }
  0xcf   : > { %v1024_v60 = vsel %vm930_vm3, %v1016_v42, %v1018_v49  ;;  %v1035_v42 = vadd.f32 %v1018_v49, %v987_v37 }
  0xd0   : > { %v3803_v40 = vpop.permute.xlu1 %1021 }
  0xd2   : > { %v3805_v35 = vpop.permute.xlu0 %1019 }
  0xd4   : > { %v3807_v51 = vpop.permute.xlu1 %1044 }
  0xd6   : > { %v3809_v54 = vpop.permute.xlu0 %1042 }
  0xd8   : > { %v3811_v34 = vpop.permute.xlu1 %1048 }
  0xd9   : > { %5496 = vst [vmem:[#allocation31_spill] sm:$0xff] %v3811_v34 }
  0xda   : > { %v3813_v2 = vpop.permute.xlu0 %1046 }
  0xdb   : > { %5497 = vst [vmem:[#allocation32_spill] sm:$0xff] %v3813_v2  ;;  %v894_v2 = vadd.f32 %v3229_v17, %v854_v20  ;;  %v933_v17 = vsel %vm930_vm3, %v927_v57, %v3753_v48  ;;  %v897_v20 = vadd.f32 %v857_v6, %v3207_v10  ;;  %v913_v10 = vmax.f32 %v876_v24, %v3333_v44 }
  0xdc   : > { %v3819_v0 = vpop.permute.xlu1 %1052 }
  0xdd   : > { %5498 = vst [vmem:[#allocation33_spill] sm:$0xff] %v3819_v0  ;;  %v895_v0 = vadd.f32 %v855_v3, %v3263_v25  ;;  %v878_v25 = vmax.f32 %v3210_v11, %v3775_v14  ;;  %v940_v3 = vadd.f32 %v931_v12, %v893_v55  ;;  %v941_v19 = vadd.f32 %v3730_v30, %v894_v2 }
  0xde   : > { %v3821_v23 = vpop.permute.xlu0 %1050  ;;  %v944_v11 = vadd.f32 %v933_v17, %v897_v20  ;;  %v879_v55 = vmax.f32 %v3442_v8, %v3773_v63  ;;  %v1023_v30 = vsel %vm930_vm3, %v1012_v53, %v1014_v58  ;;  %v914_v8 = vmax.f32 %v877_v62, %v3313_v38 }
  0xdf   : > { %5499 = vst [vmem:[#allocation34_spill] sm:$0xff] %v3821_v23  ;;  %v942_v21 = vadd.f32 %v932_v9, %v895_v0  ;;  %v985_v2 = vadd.f32 %v976_v46, %v941_v19  ;;  %v912_v0 = vmax.f32 %v875_v15, %v3290_v31  ;;  %v915_v39 = vmax.f32 %v878_v25, %v3362_v50 }
  0xe0   : > { %v1082_v23 = vpop.permute.xlu1 %1081  ;;  %v984_v6 = vadd.f32 %v976_v46, %v940_v3  ;;  %v3870_v53 = vmax.f32 %v880_v29, %v3337_v45  ;;  %v959_v63 = vsel %vm930_vm3, %v3787_v18, %v3785_v13  ;;  %v968_v38 = vmax.f32 %v913_v10, %v3781_v4  ;;  %v5502_v10 = vld [vmem:[#allocation31_spill] sm:$0xff] }
  0xe1   : > { %v1033_v48 = vadd.f32 %v1014_v58, %v985_v2  ;;  %v986_v44 = vadd.f32 %v3793_v36, %v942_v21  ;;  %v3881_v58 = vmax.f32 %v879_v55, %v3297_v33  ;;  %v967_v45 = vmax.f32 %v912_v0, %v958_v7 }
  0xe2   : > { %v1080_v34 = vpop.permute.xlu0 %1079  ;;  %v1032_v31 = vadd.f32 %v1023_v30, %v984_v6  ;;  %v960_v36 = vsel %vm930_vm3, %v3791_v27, %v3789_v22  ;;  %v989_v12 = vadd.f32 %v3797_v56, %v945_v32  ;;  %v1025_v18 = vsel %vm930_vm3, %v3805_v35, %v3803_v40  ;;  %v5504_v6 = vld [vmem:[#allocation15_spill] sm:$0xff] }
  0xe3   : > { %v1089_v14 = vadd.f32 %v1080_v34, %v1033_v48  ;;  %v1034_v5 = vadd.f32 %v1024_v60, %v986_v44  ;;  %v1091_v41 = vadd.f32 %v1082_v23, %v1035_v42  ;;  %v970_v33 = vmax.f32 %v915_v39, %v3785_v13 }
  0xe4   : > { %v3855_v28 = vpop.permute.xlu1 %1103  ;;  %v1088_v46 = vadd.f32 %v1080_v34, %v1032_v31  ;;  %v969_v49 = vmax.f32 %v914_v8, %v959_v63  ;;  %v988_v9 = vadd.f32 %v3797_v56, %v944_v11  ;;  %v972_v34 = vmax.f32 %v3870_v53, %v3789_v22  ;;  %v5505_v8 = vld [vmem:[#allocation11_spill] sm:$0xff] }
  0xe5   : > { %v1090_v4 = vadd.f32 %v1082_v23, %v1034_v5  ;;  %v1037_v27 = vadd.f32 %v3803_v40, %v989_v12  ;;  %v1134_v24 = vadd.f32 %v3627_v61, %v1089_v14  ;;  %v971_v35 = vmax.f32 %v3881_v58, %v960_v36  ;;  %v5506_v14 = vld [vmem:[#allocation29_spill] sm:$0xff] }
  0xe6   : > { %v1084_v57 = vpop.permute.xlu0 %1083  ;;  %v1004_v3 = vmax.f32 %v968_v38, %v3795_v16  ;;  %v1036_v13 = vadd.f32 %v1025_v18, %v988_v9  ;;  %v1133_v19 = vadd.f32 %v1088_v46, %v3585_v47  ;;  %v1054_v23 = vsel %vm930_vm3, %v3809_v54, %v3807_v51  ;;  %v5507_v46 = vld [vmem:[#allocation33_spill] sm:$0xff]  ;;  %v5508_v36 = vld [vmem:[#allocation34_spill] sm:$0xff] }
  0xe7   : > { %v1093_v56 = vadd.f32 %v1084_v57, %v1037_v27  ;;  %v1136_v22 = vadd.f32 %v3639_v1, %v1091_v41  ;;  %v1003_v40 = vmax.f32 %v967_v45, %v3795_v16  ;;  %v1135_v29 = vadd.f32 %v1090_v4, %v3582_v59  ;;  %v5503_v1 = vld [vmem:[#allocation32_spill] sm:$0xff]  ;;  %v1411_v9 = vld [vmem:[#allocation2 + $0x28] sm:$0xfc] }
  0xe8   : > { %v3873_v43 = vpop.permute.xlu1 %1107  ;;  %v1092_v61 = vadd.f32 %v1084_v57, %v1036_v13  ;;  %v1005_v11 = vmax.f32 %v969_v49, %v5501_v52  ;;  %v1064_v47 = vmax.f32 %v1004_v3, %v3807_v51  ;;  %v1006_v54 = vmax.f32 %v970_v33, %v5501_v52  ;;  %v5509_v33 = vld [vmem:[#allocation16_spill] sm:$0xff] }
  0xe9   : > { %v1063_v30 = vmax.f32 %v1003_v40, %v1054_v23  ;;  %v1055_v16 = vsel %vm930_vm3, %v5503_v1, %v5502_v10  ;;  %v1138_v7 = vadd.f32 %v5504_v6, %v1093_v56  ;;  %v1008_v38 = vmax.f32 %v972_v34, %v5506_v14  ;;  %v5510_v27 = vld [vmem:[#allocation12_spill] sm:$0xff]  ;;  %v5511_v40 = vld [vmem:[#allocation19_spill] sm:$0xff] }
  0xea   : > { %v3875_v50 = vpop.permute.xlu0 %1105  ;;  %v1113_v0 = vmax.f32 %v1064_v47, %v3855_v28  ;;  %v1137_v53 = vadd.f32 %v1092_v61, %v5505_v8  ;;  %v1066_v31 = vmax.f32 %v1006_v54, %v5502_v10  ;;  %v1065_v45 = vmax.f32 %v1005_v11, %v1055_v16  ;;  %v5513_v10 = vld [vmem:[#allocation22_spill] sm:$0xff] }
  0xeb   : > { %v1112_v37 = vmax.f32 %v1063_v30, %v3855_v28  ;;  %v1056_v12 = vsel %vm930_vm3, %v5508_v36, %v5507_v46  ;;  %v1007_v4 = vmax.f32 %v971_v35, %v5506_v14  ;;  %v1068_v3 = vmax.f32 %v1008_v38, %v5507_v46 }
  0xec   : > { %v1163_v17 = vpop.permute.xlu1 %1162  ;;  %v1115_v18 = vmax.f32 %v1066_v31, %v3875_v50  ;;  %v1155_v49 = vmax.f32 %v1113_v0, %v5509_v33  ;;  %v5515_v0 = vld [vmem:[#allocation13_spill] sm:$0xff]  ;;  %v3986_v33 = vld [vmem:[%s3190_s12 + $0x20] sm:$0xf8] }
  0xed   : > { %v1182_v32 = vadd.f32 %v1163_v17, %v1134_v24  ;;  %v1154_v24 = vmax.f32 %v1112_v37, %v5510_v27  ;;  %v1067_v56 = vmax.f32 %v1007_v4, %v1056_v12  ;;  %v5516_v12 = vld [vmem:[#allocation25_spill] sm:$0xff] }
  0xee   : > { %v1161_v15 = vpop.permute.xlu0 %1160  ;;  %v1157_v61 = vmax.f32 %v1115_v18, %v5511_v40  ;;  %v4013_v40 = vld [vmem:[%s3190_s12 + $0x38] sm:$0xff] }
  0xef   : > { %v1172_v25 = vsel %vm930_vm3, %v1161_v15, %v1163_v17  ;;  %v1260_v39 = vrot.slane %v1182_v32, 1  ;;  %v1114_v17 = vmax.f32 %v1065_v45, %v3875_v50  ;;  %v1117_v50 = vmax.f32 %v1068_v3, %v3873_v43  ;;  %v1413_v45 = vld [vmem:[#allocation2 + $0x48] sm:$0x3] }
  0xf0   : > { %v1181_v20 = vadd.f32 %v1172_v25, %v1133_v19  ;;  %v1167_v21 = vpop.permute.xlu1 %1166  ;;  %v1420_v36 = vrot.slane %v1413_v45, 7  ;;  %v1632_v45 = vld [vmem:[%s3190_s12 + $0x28] sm:$0xf0] }
  0xf1   : > { %v1184_v55 = vadd.f32 %v1167_v21, %v1136_v22  ;;  %v3938_v22 = vrot.slane %v1411_v9, 7  ;;  %v5518_v9 = vld [vmem:[#allocation9_spill] sm:$0xff] }
  0xf2   : > { %v1165_v62 = vpop.permute.xlu0 %1164  ;;  %v1257_v51 = vrot.slane %v1181_v20, 1  ;;  %v1116_v20 = vmax.f32 %v1067_v56, %v3873_v43  ;;  %v5514_v43 = vld [vmem:[#allocation17_spill] sm:$0xff] }
  0xf3   : > { %v1173_v2 = vsel %vm930_vm3, %v1165_v62, %v1167_v21  ;;  %v1261_v59 = vrot.slane %v1184_v55, 1  ;;  %v1159_v1 = vmax.f32 %v1117_v50, %v5514_v43  ;;  %v1585_v43 = vld [vmem:[%s3190_s12 + $0x40] sm:$0xf] }
  0xf4   : > { %v1183_v57 = vadd.f32 %v1173_v2, %v1135_v29  ;;  %v1171_v60 = vpop.permute.xlu1 %1170  ;;  %v5512_v29 = vld [vmem:[#allocation14_spill] sm:$0xff] }
  0xf5   : > { %v1186_v63 = vadd.f32 %v1171_v60, %v1138_v7  ;;  %v1262_v42 = vsel %vm1073_vm2, %v1260_v39, %v1261_v59  ;;  %v1156_v62 = vmax.f32 %v1114_v17, %v5512_v29  ;;  %v1158_v39 = vmax.f32 %v1116_v20, %v5515_v0  ;;  %v1505_v17 = vld [vmem:[#allocation2 + $0x20] sm:$0xf8]  ;;  %v4035_v0 = vld [vmem:[%s3190_s12 + $0x30] sm:$0xff] }
  0xf6   : > { %v1258_v48 = vrot.slane %v1183_v57, 1  ;;  %v1169_v44 = vpop.permute.xlu0 %1168  ;;  %1269 = vrot.lane.b32.xlu1 %v1262_v42, %s3108_s28 }
  0xf7   : > { %v1174_v58 = vsel %vm930_vm3, %v1169_v44, %v1171_v60  ;;  %v1265_v41 = vrot.slane %v1186_v63, 1 }
  0xf8   : > { %v1185_v5 = vadd.f32 %v1174_v58, %v1137_v53  ;;  %v1259_v28 = vsel %vm1073_vm2, %v1257_v51, %v1258_v48  ;;  %v1190_v34 = vpop.permute.xlu1 %1189  ;;  %v3957_v53 = vld [vmem:[#allocation2 + $0x38] sm:$0xff] }
  0xf9   : > { %1267 = vrot.lane.b32.xlu0 %v1259_v28, %s3108_s28  ;;  %v1209_v13 = vmax.f32 %v1155_v49, %v1190_v34  ;;  %v1266_v23 = vsel %vm1073_vm2, %v1261_v59, %v1265_v41  ;;  %v1418_v14 = vrot.slane %v3957_v53, 7  ;;  %v5517_v41 = vld [vmem:[#allocation24_spill] sm:$0xff] }
  0xfa   : > { %v1263_v15 = vrot.slane %v1185_v5, 1  ;;  %v1188_v25 = vpop.permute.xlu0 %1187  ;;  %1273 = vrot.lane.b32.xlu1 %v1266_v23, %s3108_s28 }
  0xfb   : > { %v1199_v19 = vsel %vm930_vm3, %v1188_v25, %v1190_v34  ;;  %v1285_v11 = vmul.f32 %v3837_v26, %v1209_v13  ;;  %v3972_v46 = vsel %vm840_vm1, %v3938_v22, %v1418_v14  ;;  %v3979_v18 = vsel %vm840_vm1, %v1418_v14, %v1420_v36  ;;  %v3997_v34 = vld [vmem:[%s3190_s12 + $0x40] sm:$0x7]  ;;  %v5519_v13 = vld [vmem:[#allocation10_spill] sm:$0xff] }
  0xfc   : > { %v1208_v32 = vmax.f32 %v1154_v24, %v1199_v19  ;;  %v1264_v35 = vsel %vm1073_vm2, %v1258_v48, %v1263_v15  ;;  %v1194_v21 = vpop.permute.xlu1 %1193  ;;  %v1506_v24 = vld [vmem:[#allocation2 + $0x40] sm:$0x7]  ;;  %v4006_v19 = vld [vmem:[%s3190_s12 + $0x28] sm:$0xf8] }
  0xfd   : > { %1271 = vrot.lane.b32.xlu0 %v1264_v35, %s3108_s28  ;;  %v1211_v47 = vmax.f32 %v1157_v61, %v1194_v21  ;;  %v1299_v6 = vrot.slane %v1285_v11, 1  ;;  %v1553_v11 = vld [vmem:[#allocation2 + $0x28] sm:$0xf8] }
  0xfe   : > { %v1192_v52 = vpop.permute.xlu0 %1191  ;;  %v1284_v2 = vmul.f32 %v3837_v26, %v1208_v32  ;;  %1463 = vrot.lane.b32.xlu1 %v3938_v22, %s3108_s28 }
  0xff   : > { %v1200_v55 = vsel %vm930_vm3, %v1192_v52, %v1194_v21  ;;  %v1287_v30 = vmul.f32 %v3837_v26, %v1211_v47  ;;  %v4020_v21 = vld [vmem:[%s3190_s12 + $0x48] sm:$0x7] }
 0x100   : > { %v1210_v54 = vmax.f32 %v1156_v62, %v1200_v55  ;;  %v1198_v57 = vpop.permute.xlu1 %1197  ;;  %v1296_v48 = vrot.slane %v1284_v2, 1 }
 0x101   : > { %1461 = vrot.lane.b32.xlu0 %v5513_v10, %s3108_s28  ;;  %v1300_v7 = vrot.slane %v1287_v30, 1  ;;  %v1213_v37 = vmax.f32 %v1159_v1, %v1198_v57 }
 0x102   : > { %v1286_v16 = vmul.f32 %v3837_v26, %v1210_v54  ;;  %v1196_v59 = vpop.permute.xlu0 %1195 }
 0x103   : > { %v1201_v51 = vsel %vm930_vm3, %v1196_v59, %v1198_v57  ;;  %v1289_v44 = vmul.f32 %v3837_v26, %v1213_v37  ;;  %v1301_v31 = vsel %vm1073_vm2, %v1299_v6, %v1300_v7  ;;  %v1554_v57 = vld [vmem:[#allocation2 + $0x48] sm:$0x7]  ;;  %v4038_v59 = vrot.slane %v1585_v43, 1  ;;  %v5527_v43 = vld [vmem:[#allocation18_spill] sm:$0xff] }
 0x104   : > { %v1297_v60 = vrot.slane %v1286_v16, 1  ;;  %v1212_v8 = vmax.f32 %v1158_v39, %v1201_v51  ;;  %1308 = vrot.lane.b32.xlu1 %v1301_v31, %s3108_s28  ;;  %v1584_v16 = vld [vmem:[%s3190_s12 + $0x20] sm:$0xf0]  ;;  %v1589_v39 = vrot.slane %v4035_v0, 1  ;;  %v4057_v14 = vpop.permute.xlu1 %1239 }
 0x105   : > { %v1304_v42 = vrot.slane %v1289_v44, 1  ;;  %5520 = vst [vmem:[#allocation30_spill] sm:$0xff] %v4038_v59  ;;  %v1588_v6 = vrot.slane %v1584_v16, 1 }
 0x106   : > { %v1288_v63 = vmul.f32 %v3837_v26, %v1212_v8  ;;  %v1298_v58 = vsel %vm1073_vm2, %v1296_v48, %v1297_v60  ;;  %v4044_v48 = vsel %vm1073_vm2, %v1589_v39, %v4038_v59  ;;  %v1613_v8 = vrot.slane %v5519_v13, 1 }
 0x107   : > { %1306 = vrot.lane.b32.xlu0 %v1298_v58, %s3108_s28  ;;  %v1305_v5 = vsel %vm1073_vm2, %v1300_v7, %v1304_v42  ;;  %v1608_v7 = vld [vmem:[#allocation2 + $0x20] sm:$0xf0]  ;;  %v4048_v31 = vsel %vm1073_vm2, %v1588_v6, %v1589_v39  ;;  %v1609_v58 = vld [vmem:[#allocation2 + $0x40] sm:$0xf] }
 0x108   : > { %v1302_v38 = vrot.slane %v1288_v63, 1  ;;  %1312 = vrot.lane.b32.xlu1 %v1305_v5, %s3108_s28  ;;  %v4062_v5 = vpop.permute.xlu0 %1237 }
 0x10a   : > { %v1303_v28 = vsel %vm1073_vm2, %v1297_v60, %v1302_v38  ;;  %v1612_v60 = vrot.slane %v1608_v7, 1  ;;  %v4059_v38 = vrot.slane %v1609_v58, 1  ;;  %v1728_v7 = vmul.f32 %v3986_v33, %v5527_v43 }
 0x10b   : > { %1310 = vrot.lane.b32.xlu0 %v1303_v28, %s3108_s28 }
 0x10c   : > { %1467 = vrot.lane.b32.xlu1 %v3972_v46, %s3108_s28  ;;  %v4055_v42 = vsel %vm1073_vm2, %v1612_v60, %v1613_v8  ;;  %5522 = vst [vmem:[#allocation32_spill] sm:$0xff] %v4059_v38  ;;  %v1733_v60 = vmul.f32 %v4020_v21, %v5527_v43 }
 0x10d   : > { %5521 = vst [vmem:[#allocation31_spill] sm:$0xff] %v4055_v42 }
 0x10f   : > { %1465 = vrot.lane.b32.xlu0 %v5516_v12, %s3108_s28 }
 0x110   : > { %1471 = vrot.lane.b32.xlu1 %v3979_v18, %s3108_s28 }
 0x113   : > { %1469 = vrot.lane.b32.xlu0 %v5517_v41, %s3108_s28 }
 0x114   : > { %1492 = vrot.lane.b32.xlu1 %v5518_v9, %s3107_s21 }
 0x115   : > { %v3988_v49 = vpop.f32.mrb[0].mxu0 }
 0x116   : > { %v392_v4 = vpop.f32.mrb[1].mxu0 }
 0x117   : > { %1490 = vrot.lane.b32.xlu0 %v3986_v33, %s3107_s21  ;;  %v3994_v15 = vpop.f32.mrb[2].mxu0  ;;  %v1636_v4 = vrot.slane %v1632_v45, 1  ;;  %v1732_v45 = vmul.f32 %v3997_v34, %v5527_v43 }
 0x118   : > { %v395_v27 = vpop.f32.mrb[3].mxu0  ;;  %1509 = vrot.lane.b32.xlu1 %v1505_v17, %s3107_s21 }
 0x119   : > { %v4071_v27 = vsel %vm1073_vm2, %v1613_v8, %v4059_v38 }
 0x11a   : > { %5523 = vst [vmem:[#allocation15_spill] sm:$0xff] %v4071_v27 }
 0x11b   : > { %1494 = vrot.lane.b32.xlu0 %v3997_v34, %s3107_s21 }
 0x11c   : > { %1513 = vrot.lane.b32.xlu1 %v1506_v24, %s3107_s21  ;;  %v544_v32 = vpop.f32.mrb[0].mxu1 }
 0x11d   : > { %v398_v25 = vpop.f32.mrb[4].mxu0  ;;  %582 = vst [vmem:[#allocation4] sm:$0xff] %v544_v32  ;;  %v546_v50 = vpop.f32.mrb[1].mxu1 }
 0x11e   : > { %430 = vst [vmem:[#allocation3 + $0x10] sm:$0xff] %v398_v25  ;;  %v400_v3 = vpop.f32.mrb[5].mxu0  ;;  %v547_v20 = vpop.f32.mrb[2].mxu1  ;;  %v1633_v25 = vld [vmem:[%s3190_s12 + $0x48] sm:$0xf] }
 0x11f   : > { %1511 = vrot.lane.b32.xlu0 %v5519_v13, %s3107_s21  ;;  %v401_v23 = vpop.f32.mrb[6].mxu0  ;;  %583 = vst [vmem:[#allocation4 + $0x8] sm:$0xff] %v547_v20  ;;  %v549_v62 = vpop.f32.mrb[3].mxu1  ;;  %v1653_v20 = vld [vmem:[#allocation2 + $0x28] sm:$0xf0] }
 0x120   : > { %431 = vst [vmem:[#allocation3 + $0x18] sm:$0xff] %v401_v23  ;;  %v403_v56 = vpop.f32.mrb[7].mxu0  ;;  %1528 = vrot.lane.b32.xlu1 %v4006_v19, %s3108_s28  ;;  %v4076_v3 = vpop.permute.xlu1 %1243  ;;  %v1657_v62 = vrot.slane %v1653_v20, 1 }
 0x121   : > { %v4085_v56 = vrot.slane %v1633_v25, 1 }
 0x123   : > { %1526 = vrot.lane.b32.xlu0 %v3986_v33, %s3108_s28  ;;  %5524 = vst [vmem:[#allocation11_spill] sm:$0xff] %v4085_v56 }
 0x124   : > { %1532 = vrot.lane.b32.xlu1 %v4013_v40, %s3108_s28  ;;  %v552_v47 = vpop.f32.mrb[4].mxu1 }
 0x125   : > { %v406_v35 = vpop.f32.mrb[8].mxu0  ;;  %584 = vst [vmem:[#allocation4 + $0x10] sm:$0xff] %v552_v47  ;;  %v554_v2 = vpop.f32.mrb[5].mxu1 }
 0x126   : > { %432 = vst [vmem:[#allocation3 + $0x20] sm:$0xff] %v406_v35  ;;  %v408_v61 = vpop.f32.mrb[9].mxu0 }
 0x127   : > { %1530 = vrot.lane.b32.xlu0 %v5518_v9, %s3108_s28  ;;  %v409_v29 = vpop.f32.mrb[10].mxu0  ;;  %v4095_v61 = vpop.permute.xlu1 %1350 }
 0x128   : > { %433 = vst [vmem:[#allocation3 + $0x28] sm:$0xff] %v409_v29  ;;  %v411_v52 = vpop.f32.mrb[11].mxu0  ;;  %1536 = vrot.lane.b32.xlu1 %v4020_v21, %s3108_s28 }
 0x129   : > { %v1658_v52 = vrot.slane %v3957_v53, 1 }
 0x12b   : > { %1534 = vrot.lane.b32.xlu0 %v3997_v34, %s3108_s28  ;;  %v4104_v47 = vpop.permute.xlu1 %1374  ;;  %v4113_v2 = vsel %vm1073_vm2, %v1657_v62, %v1658_v52 }
 0x12c   : > { %1559 = vrot.lane.b32.xlu1 %v1553_v11, %s3108_s28  ;;  %v1654_v11 = vld [vmem:[#allocation2 + $0x48] sm:$0xf]  ;;  %5525 = vst [vmem:[#allocation29_spill] sm:$0xff] %v4113_v2 }
 0x12d   : > { %v414_v55 = vpop.f32.mrb[12].mxu0 }
 0x12e   : > { %434 = vst [vmem:[#allocation3 + $0x30] sm:$0xff] %v414_v55  ;;  %v416_v54 = vpop.f32.mrb[13].mxu0 }
 0x12f   : > { %1557 = vrot.lane.b32.xlu0 %v1505_v17, %s3108_s28  ;;  %v417_v30 = vpop.f32.mrb[14].mxu0  ;;  %v1637_v17 = vrot.slane %v4013_v40, 1  ;;  %v4115_v54 = vrot.slane %v1654_v11, 1  ;;  %v4133_v6 = vpop.permute.xlu1 %1378 }
 0x130   : > { %435 = vst [vmem:[#allocation3 + $0x38] sm:$0xff] %v417_v30  ;;  %v419_v1 = vpop.f32.mrb[15].mxu0  ;;  %1563 = vrot.lane.b32.xlu1 %v3957_v53, %s3108_s28  ;;  %v757_v53 = vld [vmem:[%s3190_s12 + $0x60] sm:$0xff] }
 0x131   : > { %v4083_v23 = vsel %vm1073_vm2, %v1636_v4, %v1637_v17  ;;  %v4093_v50 = vsel %vm1073_vm2, %v1637_v17, %v4085_v56  ;;  %5526 = vst [vmem:[#allocation33_spill] sm:$0xff] %v4115_v54  ;;  %v775_v30 = vld [vmem:[%s5387_s2 + $0x60] sm:$0xff]  ;;  %v1729_v1 = vmul.f32 %v4006_v19, %v5527_v43  ;;  %v4129_v16 = vsel %vm1073_vm2, %v1658_v52, %v4115_v54 }
 0x132   : > { %5528 = vst [vmem:[#allocation34_spill] sm:$0xff] %v4129_v16  ;;  %v793_v39 = vadd.f32 %v775_v30, %v757_v53  ;;  %v4181_v30 = vld [vmem:[%s3190_s12 + $0x58] sm:$0xff] }
 0x133   : > { %1561 = vrot.lane.b32.xlu0 %v5519_v13, %s3108_s28  ;;  %v4080_v13 = vpop.permute.xlu0 %1241  ;;  %v1744_v8 = vrot.slane %v1729_v1, 3  ;;  %5531 = vst [vmem:[#allocation19_spill] sm:$0xff] %v4181_v30  ;;  %v774_v1 = vld [vmem:[%s5387_s2 + $0x58] sm:$0xff] }
 0x134   : > { %1567 = vrot.lane.b32.xlu1 %v1554_v57, %s3108_s28  ;;  %v1731_v57 = vmul.f32 %v4013_v40, %v5527_v43  ;;  %811 = vst [vmem:[#allocation2 + $0x60] sm:$0xff] %v793_v39  ;;  %v792_v39 = vadd.f32 %v4181_v30, %v774_v1  ;;  %v1245_v1 = vsel %vm930_vm3, %v4062_v5, %v4057_v14  ;;  %v555_v30 = vpop.f32.mrb[6].mxu1 }
 0x135   : > { %v422_v37 = vpop.f32.mrb[16].mxu0  ;;  %v1246_v14 = vsel %vm930_vm3, %v4080_v13, %v4076_v3  ;;  %585 = vst [vmem:[#allocation4 + $0x18] sm:$0xff] %v555_v30  ;;  %v1388_v30 = vmax.f32 %v4020_v21, %v4133_v6 }
 0x136   : > { %436 = vst [vmem:[#allocation3 + $0x40] sm:$0xff] %v422_v37  ;;  %v424_v51 = vpop.f32.mrb[17].mxu0  ;;  %v1730_v37 = vmul.f32 %v4035_v0, %v5527_v43  ;;  %810 = vst.msk [vmem:[#allocation2 + $0x58] sm:$0xff] %vm340_vm0, %v792_v39 }
 0x137   : > { %1565 = vrot.lane.b32.xlu0 %v1506_v24, %s3108_s28  ;;  %v425_v44 = vpop.f32.mrb[18].mxu0  ;;  %v4097_v29 = vpop.permute.xlu0 %1348 }
 0x138   : > { %v426_v63 = vpop.f32.mrb[19].mxu0  ;;  %1595 = vrot.lane.b32.xlu1 %v4044_v48, %s3107_s21  ;;  %v1745_v44 = vrot.slane %v1731_v57, 3  ;;  %v1742_v58 = vrot.slane %v1730_v37, 3  ;;  %v758_v37 = vld [vmem:[%s3190_s12 + $0x68] sm:$0xff] }
 0x139   : > { %v1741_v63 = vrot.slane %v1728_v7, 3 }
 0x13a   : > { %v1746_v17 = vsel %vm1740_vm4, %v1744_v8, %v1745_v44 }
 0x13b   : > { %1593 = vrot.lane.b32.xlu0 %v4048_v31, %s3107_s21  ;;  %v4108_v55 = vpop.permute.xlu0 %1352 }
 0x13c   : > { %1617 = vrot.lane.b32.xlu1 %v4055_v42, %s3107_s21 }
 0x13d   : > { %v698_v28 = vpop.f32.mrb[20].mxu0 }
 0x13e   : > { %736 = vst [vmem:[#allocation5] sm:$0xff] %v698_v28  ;;  %v700_v36 = vpop.f32.mrb[21].mxu0  ;;  %v4149_v28 = vpop.permute.xlu1 %1436 }
 0x13f   : > { %1597 = vrot.lane.b32.xlu0 %v4038_v59, %s3107_s21  ;;  %v701_v9 = vpop.f32.mrb[22].mxu0  ;;  %v4139_v51 = vpop.permute.xlu0 %1376  ;;  %v4154_v36 = vld [vmem:[%s3190_s12 + $0x50] sm:$0xff] }
 0x140   : > { %737 = vst [vmem:[#allocation5 + $0x8] sm:$0xff] %v701_v9  ;;  %v703_v24 = vpop.f32.mrb[23].mxu0  ;;  %1621 = vrot.lane.b32.xlu1 %v4059_v38, %s3107_s21  ;;  %5529 = vst [vmem:[#allocation16_spill] sm:$0xff] %v4154_v36  ;;  %v773_v9 = vld [vmem:[%s5387_s2 + $0x50] sm:$0xff] }
 0x141   : > { %v1749_v24 = vrot.slane %v1733_v60, 3  ;;  %v4165_v25 = vadd.f32 %v4154_v36, %v773_v9  ;;  %v776_v60 = vld [vmem:[%s5387_s2 + $0x68] sm:$0xff]  ;;  %v1357_v36 = vadd.f32 %v4097_v29, %v3986_v33 }
 0x142   : > { %v4171_v62 = vpop.permute.xlu1 %1440 }
 0x143   : > { %1619 = vrot.lane.b32.xlu0 %v4071_v27, %s3107_s21  ;;  %v4159_v4 = vpop.permute.xlu0 %1434  ;;  %5530 = vst [vmem:[#allocation12_spill] sm:$0xff] %v4165_v25  ;;  %v1750_v20 = vsel %vm1740_vm4, %v1745_v44, %v1749_v24  ;;  %v794_v44 = vadd.f32 %v776_v60, %v758_v37  ;;  %v824_v24 = vld [vmem:[#allocation4 + $0x9] sm:$0xff]  ;;  %v1360_v25 = vadd.f32 %v4013_v40, %v4095_v61 }
 0x144   : > { %1676 = vrot.lane.b32.xlu1 %v4083_v23, %s3108_s28 }
 0x145   : > { %v706_v32 = vpop.f32.mrb[24].mxu0  ;;  %812 = vst.msk [vmem:[#allocation2 + $0x68] sm:$0xff] %vm340_vm0, %v794_v44  ;;  %v4214_v44 = vld [vmem:[%s5388_s3 + $0x8] sm:$0xff] }
 0x146   : > { %738 = vst [vmem:[#allocation5 + $0x10] sm:$0xff] %v706_v32  ;;  %v708_v35 = vpop.f32.mrb[25].mxu0  ;;  %v1743_v32 = vsel %vm1740_vm4, %v1741_v63, %v1742_v58  ;;  %v4178_v53 = vpop.permute.xlu1 %1444  ;;  %v823_v63 = vld [vmem:[#allocation4 + $0x1] sm:$0xff]  ;;  %5533 = vst [vmem:[#allocation22_spill] sm:$0xff] %v4214_v44 }
 0x147   : > { %1674 = vrot.lane.b32.xlu0 %v4048_v31, %s3108_s28  ;;  %v1747_v35 = vrot.slane %v1732_v45, 3  ;;  %v4174_v11 = vpop.permute.xlu0 %1438  ;;  %v825_v9 = vadd.f32 %v823_v63, %v3988_v49  ;;  %v709_v26 = vpop.f32.mrb[26].mxu0 }
 0x148   : > { %1680 = vrot.lane.b32.xlu1 %v4093_v50, %s3108_s28  ;;  %739 = vst [vmem:[#allocation5 + $0x18] sm:$0xff] %v709_v26 }
 0x149   : > { %v1748_v52 = vsel %vm1740_vm4, %v1742_v58, %v1747_v35 }
 0x14b   : > { %1678 = vrot.lane.b32.xlu0 %v4044_v48, %s3108_s28  ;;  %v4186_v57 = vpop.permute.xlu0 %1442 }
 0x14c   : > { %1684 = vrot.lane.b32.xlu1 %v4085_v56, %s3108_s28 }
 0x14d   : > { %v828_v37 = vld [vmem:[#allocation5 + $0xa] sm:$0xff] }
 0x14f   : > { %1682 = vrot.lane.b32.xlu0 %v4038_v59, %s3108_s28  ;;  %v711_v59 = vpop.f32.mrb[27].mxu0 }
 0x150   : > { %1703 = vrot.lane.b32.xlu1 %v4113_v2, %s3108_s28  ;;  %v5538_v2 = vld [vmem:[#allocation26_spill] sm:$0xff] }
 0x153   : > { %1701 = vrot.lane.b32.xlu0 %v4055_v42, %s3108_s28  ;;  %v1362_v42 = vadd.f32 %v4108_v55, %v4020_v21  ;;  %v5541_v21 = vld [vmem:[#allocation21_spill] sm:$0xff] }
 0x154   : > { %1707 = vrot.lane.b32.xlu1 %v4129_v16, %s3108_s28  ;;  %v1361_v16 = vadd.f32 %v4108_v55, %v3997_v34 }
 0x157   : > { %1705 = vrot.lane.b32.xlu0 %v4071_v27, %s3108_s28  ;;  %v1359_v27 = vadd.f32 %v4035_v0, %v4095_v61  ;;  %v1387_v61 = vmax.f32 %v3997_v34, %v4133_v6  ;;  %v1446_v34 = vsel %vm930_vm3, %v4159_v4, %v4149_v28  ;;  %v714_v6 = vpop.f32.mrb[28].mxu0  ;;  %v1433_v4 = vmax.f32 %v1388_v30, %v3979_v18 }
 0x158   : > { %1711 = vrot.lane.b32.xlu1 %v4115_v54, %s3108_s28  ;;  %v557_v54 = vpop.f32.mrb[7].mxu1  ;;  %740 = vst [vmem:[#allocation5 + $0x20] sm:$0xff] %v714_v6 }
 0x159   : > { %v1384_v54 = vmax.f32 %v4006_v19, %v4104_v47  ;;  %v560_v56 = vpop.f32.mrb[8].mxu1 }
 0x15a   : > { %586 = vst [vmem:[#allocation4 + $0x20] sm:$0xff] %v560_v56  ;;  %v562_v59 = vpop.f32.mrb[9].mxu1  ;;  %v1447_v56 = vsel %vm930_vm3, %v4174_v11, %v4171_v62 }
 0x15b   : > { %1709 = vrot.lane.b32.xlu0 %v4059_v38, %s3108_s28 }
 0x15c   : > { %1753 = vrot.lane.b32.xlu1 %v1746_v17, %s3108_s28  ;;  %v827_v17 = vld [vmem:[#allocation5 + $0x2] sm:$0xff] }
 0x15f   : > { %1751 = vrot.lane.b32.xlu0 %v1743_v32, %s3108_s28  ;;  %v4199_v32 = vld [vmem:[%s5388_s3] sm:$0xff] }
 0x160   : > { %1757 = vrot.lane.b32.xlu1 %v1750_v20, %s3108_s28  ;;  %5532 = vst [vmem:[#allocation14_spill] sm:$0xff] %v4199_v32  ;;  %v829_v20 = vadd.f32 %v827_v17, %v825_v9 }
 0x163   : > { %1755 = vrot.lane.b32.xlu0 %v1748_v52, %s3108_s28  ;;  %v826_v52 = vadd.f32 %v824_v24, %v3994_v15  ;;  %v1249_v15 = vadd.f32 %v1245_v1, %v829_v20 }
 0x168   : > { %v1270_v7 = vpop.permute.xlu1 %1269 }
 0x16b   : > { %v1268_v8 = vpop.permute.xlu0 %1267 }
 0x16c   : > { %v1274_v58 = vpop.permute.xlu1 %1273  ;;  %v1275_v35 = vsel %vm930_vm3, %v1268_v8, %v1270_v7  ;;  %v830_v8 = vadd.f32 %v828_v37, %v826_v52 }
 0x16d   : > { %v1279_v49 = vmul.f32 %v1275_v35, %v4199_v32  ;;  %v1358_v32 = vadd.f32 %v4097_v29, %v4006_v19  ;;  %v1383_v29 = vmax.f32 %v3986_v33, %v4104_v47  ;;  %v1385_v33 = vmax.f32 %v4035_v0, %v4139_v51 }
 0x16e   : > { %v1250_v24 = vadd.f32 %v1246_v14, %v830_v8  ;;  %v1386_v19 = vmax.f32 %v4013_v40, %v4139_v51  ;;  %v1407_v47 = vadd.f32 %v1359_v27, %v5541_v21  ;;  %v1429_v40 = vmax.f32 %v1384_v54, %v3938_v22 }
 0x16f   : > { %v1272_v45 = vpop.permute.xlu0 %1271  ;;  %v1281_v17 = vadd.f32 %v1279_v49, %v1249_v15  ;;  %v1428_v51 = vmax.f32 %v1383_v29, %v5513_v10  ;;  %v4314_v27 = vmax.f32 %v1387_v61, %v5517_v41  ;;  %v1430_v18 = vmax.f32 %v1385_v33, %v5516_v12 }
 0x170   : > { %v4206_v39 = vpop.permute.xlu1 %1463  ;;  %v1276_v7 = vsel %vm930_vm3, %v1272_v45, %v1274_v58  ;;  %v1457_v22 = vadd.f32 %v1447_v56, %v1407_v47  ;;  %v1431_v10 = vmax.f32 %v1386_v19, %v3972_v46 }
 0x171   : > { %v1280_v63 = vmul.f32 %v1276_v7, %v4214_v44 }
 0x173   : > { %v4209_v60 = vpop.permute.xlu0 %1461  ;;  %v1282_v3 = vadd.f32 %v1280_v63, %v1250_v24 }
 0x174   : > { %v1473_v29 = vsel %vm930_vm3, %v4209_v60, %v4206_v39 }
 0x175   : > { %v1482_v33 = vmax.f32 %v1428_v51, %v1473_v29 }
 0x176   : > { %v1309_v5 = vpop.permute.xlu1 %1308 }
 0x179   : > { %v1307_v9 = vpop.permute.xlu0 %1306 }
 0x17a   : > { %v1314_v58 = vsel %vm930_vm3, %v1307_v9, %v1309_v5  ;;  %v1313_v35 = vpop.permute.xlu1 %1312 }
 0x17b   : > { %v1318_v45 = vadd.f32 %v1314_v58, %v1281_v17 }
 0x17d   : > { %1320 = vst [vmem:[%s4225_s16] sm:$0xff] %v1318_v45  ;;  %v1311_v20 = vpop.permute.xlu0 %1310 }
 0x17e   : > { %v1315_v13 = vsel %vm930_vm3, %v1311_v20, %v1313_v35  ;;  %v4230_v1 = vpop.permute.xlu1 %1467 }
 0x17f   : > { %v1319_v52 = vadd.f32 %v1315_v13, %v1282_v3 }
 0x181   : > { %1321 = vst [vmem:[%s4225_s16 + $0x8] sm:$0xff] %v1319_v52  ;;  %v4233_v37 = vpop.permute.xlu0 %1465 }
 0x182   : > { %v4235_v49 = vpop.permute.xlu1 %1471  ;;  %v1474_v46 = vsel %vm930_vm3, %v4233_v37, %v4230_v1 }
 0x183   : > { %v1484_v47 = vmax.f32 %v1430_v18, %v1474_v46  ;;  %v1487_v6 = vmax.f32 %v1433_v4, %v4235_v49 }
 0x185   : > { %v4237_v7 = vpop.permute.xlu0 %1469 }
 0x186   : > { %v4239_v15 = vpop.permute.xlu1 %1492  ;;  %v1475_v37 = vsel %vm930_vm3, %v4237_v7, %v4235_v49 }
 0x187   : > { %v1501_v60 = vadd.f32 %v4239_v15, %v1457_v22  ;;  %v1486_v56 = vmax.f32 %v4314_v27, %v1475_v37 }
 0x189   : > { %v4241_v5 = vpop.permute.xlu0 %1490 }
 0x18a   : > { %v4243_v8 = vpop.permute.xlu1 %1509 }
 0x18d   : > { %v4245_v14 = vpop.permute.xlu0 %1494 }
 0x18e   : > { %v4247_v63 = vpop.permute.xlu1 %1513 }
 0x191   : > { %v4249_v9 = vpop.permute.xlu0 %1511 }
 0x192   : > { %v4251_v17 = vpop.permute.xlu1 %1528 }
 0x195   : > { %v1527_v58 = vpop.permute.xlu0 %1526 }
 0x196   : > { %v4253_v45 = vpop.permute.xlu1 %1532  ;;  %v1538_v41 = vsel %vm930_vm3, %v1527_v58, %v4251_v17 }
 0x199   : > { %v4255_v24 = vpop.permute.xlu0 %1530 }
 0x19a   : > { %v4257_v35 = vpop.permute.xlu1 %1536  ;;  %v1539_v12 = vsel %vm930_vm3, %v4255_v24, %v4253_v45 }
 0x19b   : > { %v1549_v24 = vadd.f32 %v1539_v12, %v1501_v60 }
 0x19d   : > { %v4259_v20 = vpop.permute.xlu0 %1534 }
 0x19e   : > { %v4261_v3 = vpop.permute.xlu1 %1559 }
 0x1a1   : > { %v4263_v13 = vpop.permute.xlu0 %1557 }
 0x1a2   : > { %v4265_v52 = vpop.permute.xlu1 %1563 }
 0x1a3   : > { %5534 = vst [vmem:[#allocation17_spill] sm:$0xff] %v4265_v52  ;;  %v5540_v52 = vld [vmem:[#allocation27_spill] sm:$0xff] }
 0x1a5   : > { %v4267_v44 = vpop.permute.xlu0 %1561 }
 0x1a6   : > { %5535 = vst [vmem:[#allocation13_spill] sm:$0xff] %v4267_v44  ;;  %v4271_v43 = vpop.permute.xlu1 %1567  ;;  %v5539_v44 = vld [vmem:[#allocation20_spill] sm:$0xff] }
 0x1a7   : > { %5536 = vst [vmem:[#allocation25_spill] sm:$0xff] %v4271_v43  ;;  %v1406_v43 = vadd.f32 %v5538_v2, %v1358_v32  ;;  %v1405_v55 = vadd.f32 %v1357_v36, %v5539_v44  ;;  %v1408_v2 = vadd.f32 %v5540_v52, %v1360_v25  ;;  %v5542_v25 = vld [vmem:[#allocation28_spill] sm:$0xff]  ;;  %v5543_v44 = vld [vmem:[#allocation23_spill] sm:$0xff]  ;;  %v716_v52 = vpop.f32.mrb[29].mxu0 }
 0x1a8   : > { %v1410_v32 = vadd.f32 %v5542_v25, %v1362_v42  ;;  %v1409_v0 = vadd.f32 %v1361_v16, %v5543_v44  ;;  %v1448_v42 = vsel %vm930_vm3, %v4186_v57, %v4178_v53 }
 0x1a9   : > { %v4277_v38 = vpop.permute.xlu0 %1565  ;;  %v1456_v36 = vadd.f32 %v4149_v28, %v1406_v43  ;;  %v1455_v28 = vadd.f32 %v1446_v34, %v1405_v55  ;;  %v1458_v11 = vadd.f32 %v4171_v62, %v1408_v2 }
 0x1aa   : > { %5537 = vst [vmem:[#allocation24_spill] sm:$0xff] %v4277_v38  ;;  %v1596_v38 = vpop.permute.xlu1 %1595  ;;  %v1460_v61 = vadd.f32 %v4178_v53, %v1410_v32  ;;  %v1459_v30 = vadd.f32 %v1448_v42, %v1409_v0  ;;  %v1483_v53 = vmax.f32 %v1429_v40, %v4206_v39  ;;  %v5544_v22 = vld [vmem:[#allocation17_spill] sm:$0xff] }
 0x1ab   : > { %v1500_v16 = vadd.f32 %v4241_v5, %v1456_v36  ;;  %v1502_v62 = vadd.f32 %v4239_v15, %v1458_v11  ;;  %v1499_v54 = vadd.f32 %v4241_v5, %v1455_v28  ;;  %v1540_v15 = vsel %vm930_vm3, %v4259_v20, %v4257_v35 }
 0x1ac   : > { %v1504_v19 = vadd.f32 %v4245_v14, %v1460_v61  ;;  %v1503_v39 = vadd.f32 %v4245_v14, %v1459_v30  ;;  %v1604_v25 = vadd.f32 %v1596_v38, %v1549_v24  ;;  %v1519_v20 = vmax.f32 %v1483_v53, %v4243_v8  ;;  %v5547_v61 = vld [vmem:[#allocation30_spill] sm:$0xff] }
 0x1ad   : > { %v1594_v26 = vpop.permute.xlu0 %1593  ;;  %v1548_v57 = vadd.f32 %v4251_v17, %v1500_v16  ;;  %v1547_v55 = vadd.f32 %v1538_v41, %v1499_v54  ;;  %v1550_v5 = vadd.f32 %v4253_v45, %v1502_v62  ;;  %v1485_v45 = vmax.f32 %v1431_v10, %v4230_v1  ;;  %v5546_v41 = vld [vmem:[#allocation11_spill] sm:$0xff] }
 0x1ae   : > { %v4316_v43 = vpop.permute.xlu1 %1617  ;;  %v1552_v7 = vadd.f32 %v4257_v35, %v1504_v19  ;;  %v1551_v0 = vadd.f32 %v1540_v15, %v1503_v39  ;;  %v1569_v1 = vsel %vm930_vm3, %v4263_v13, %v4261_v3  ;;  %v1579_v35 = vmax.f32 %v1519_v20, %v4261_v3  ;;  %v5548_v53 = vld [vmem:[#allocation25_spill] sm:$0xff]  ;;  %v5551_v39 = vld [vmem:[#allocation31_spill] sm:$0xff] }
 0x1af   : > { %v1603_v2 = vadd.f32 %v1594_v26, %v1548_v57  ;;  %v1605_v34 = vadd.f32 %v1596_v38, %v1550_v5  ;;  %v1602_v21 = vadd.f32 %v1594_v26, %v1547_v55  ;;  %v1518_v38 = vmax.f32 %v1482_v33, %v4243_v8  ;;  %v5550_v19 = vld [vmem:[#allocation29_spill] sm:$0xff] }
 0x1b0   : > { %v1521_v27 = vmax.f32 %v1485_v45, %v4249_v9  ;;  %v1649_v11 = vadd.f32 %v1604_v25, %v4044_v48  ;;  %v1627_v8 = vmax.f32 %v1579_v35, %v4316_v43  ;;  %v1520_v62 = vmax.f32 %v1484_v47, %v4249_v9  ;;  %v5554_v35 = vld [vmem:[#allocation15_spill] sm:$0xff] }
 0x1b1   : > { %v1598_v59 = vpop.permute.xlu0 %1597  ;;  %v1648_v32 = vadd.f32 %v4083_v23, %v1603_v2  ;;  %v1647_v52 = vadd.f32 %v1602_v21, %v4048_v31  ;;  %v1650_v40 = vadd.f32 %v4093_v50, %v1605_v34  ;;  %v1523_v23 = vmax.f32 %v1487_v6, %v4247_v63  ;;  %v5545_v31 = vld [vmem:[#allocation13_spill] sm:$0xff]  ;;  %v5549_v33 = vld [vmem:[#allocation24_spill] sm:$0xff] }
 0x1b2   : > { %v4340_v58 = vpop.permute.xlu1 %1621  ;;  %v1607_v26 = vadd.f32 %v1598_v59, %v1552_v7  ;;  %v1606_v51 = vadd.f32 %v1598_v59, %v1551_v0  ;;  %v1578_v16 = vmax.f32 %v1518_v38, %v1569_v1  ;;  %v1570_v50 = vsel %vm930_vm3, %v5545_v31, %v5544_v22 }
 0x1b3   : > { %v1581_v54 = vmax.f32 %v1521_v27, %v5544_v22  ;;  %v1580_v2 = vmax.f32 %v1520_v62, %v1570_v50  ;;  %v1571_v37 = vsel %vm930_vm3, %v5549_v33, %v5548_v53  ;;  %v1522_v45 = vmax.f32 %v1486_v56, %v4247_v63  ;;  %v5556_v22 = vld [vmem:[#allocation32_spill] sm:$0xff] }
 0x1b4   : > { %v1652_v29 = vadd.f32 %v5546_v41, %v1607_v26  ;;  %v1626_v48 = vmax.f32 %v1578_v16, %v4316_v43  ;;  %v1651_v30 = vadd.f32 %v1606_v51, %v5547_v61  ;;  %v1669_v43 = vmax.f32 %v1627_v8, %v5550_v19  ;;  %v1878_v19 = vld [vmem:[#allocation2 + $0x60] sm:$0xf] }
 0x1b5   : > { %v4344_v17 = vpop.permute.xlu0 %1619  ;;  %v1583_v47 = vmax.f32 %v1523_v23, %v5548_v53  ;;  %v1582_v0 = vmax.f32 %v1522_v45, %v1571_v37  ;;  %v1852_v53 = vld [vmem:[%s3190_s12 + $0x60] sm:$0xf] }
 0x1b6   : > { %v1677_v36 = vpop.permute.xlu1 %1676  ;;  %v1629_v24 = vmax.f32 %v1581_v54, %v4344_v17  ;;  %v1628_v7 = vmax.f32 %v1580_v2, %v4344_v17 }
 0x1b7   : > { %v1696_v14 = vadd.f32 %v1677_v36, %v1648_v32  ;;  %v1631_v63 = vmax.f32 %v1583_v47, %v4340_v58 }
 0x1b8   : > { %v1670_v51 = vmax.f32 %v1628_v7, %v5554_v35  ;;  %v5559_v7 = vld [vmem:[#allocation19_spill] sm:$0xff]  ;;  %v4513_v35 = vld [vmem:[%s3190_s12 + $0x60] sm:$0x1f] }
 0x1b9   : > { %v1675_v44 = vpop.permute.xlu0 %1674  ;;  %v1774_v18 = vrot.slane %v1696_v14, 3 }
 0x1ba   : > { %v1686_v49 = vsel %vm930_vm3, %v1675_v44, %v1677_v36  ;;  %v1681_v4 = vpop.permute.xlu1 %1680  ;;  %v1668_v36 = vmax.f32 %v1626_v48, %v5551_v39 }
 0x1bb   : > { %v1695_v28 = vadd.f32 %v1686_v49, %v1647_v52  ;;  %v1698_v13 = vadd.f32 %v1681_v4, %v1650_v40  ;;  %v5552_v49 = vld [vmem:[#allocation34_spill] sm:$0xff]  ;;  %v1630_v52 = vmax.f32 %v1582_v0, %v4340_v58  ;;  %v5553_v40 = vld [vmem:[#allocation35_spill] sm:$0xff] }
 0x1bc   : > { %v1671_v26 = vmax.f32 %v1629_v24, %v5552_v49 }
 0x1bd   : > { %v1679_v42 = vpop.permute.xlu0 %1678  ;;  %v1775_v3 = vrot.slane %v1698_v13, 3  ;;  %v1771_v46 = vrot.slane %v1695_v28, 3  ;;  %v1672_v31 = vmax.f32 %v1630_v52, %v5556_v22  ;;  %v2121_v22 = vld [vmem:[#allocation2 + $0x40] sm:$0xc0] }
 0x1be   : > { %v1687_v10 = vsel %vm930_vm3, %v1679_v42, %v1681_v4  ;;  %v1685_v57 = vpop.permute.xlu1 %1684  ;;  %v5555_v42 = vld [vmem:[#allocation33_spill] sm:$0xff] }
 0x1bf   : > { %v1697_v59 = vadd.f32 %v1687_v10, %v1649_v11  ;;  %v1700_v60 = vadd.f32 %v1685_v57, %v1652_v29  ;;  %v1776_v5 = vsel %vm1740_vm4, %v1774_v18, %v1775_v3  ;;  %v1673_v16 = vmax.f32 %v1631_v63, %v5555_v42  ;;  %v4477_v63 = vld [vmem:[#allocation2 + $0x58] sm:$0xff]  ;;  %v2067_v42 = vld [vmem:[#allocation2 + $0x68] sm:$0x1f] }
 0x1c0   : > { %1783 = vrot.lane.b32.xlu1 %v1776_v5, %s3108_s28  ;;  %v1931_v49 = vrot.slane %v4477_v63, 7 }
 0x1c1   : > { %v1772_v12 = vrot.slane %v1697_v59, 3  ;;  %v1683_v55 = vpop.permute.xlu0 %1682  ;;  %v1779_v15 = vrot.slane %v1700_v60, 3  ;;  %v1851_v59 = vld [vmem:[%s3190_s12 + $0x40] sm:$0xf0] }
 0x1c2   : > { %v1688_v9 = vsel %vm930_vm3, %v1683_v55, %v1685_v57  ;;  %v1704_v6 = vpop.permute.xlu1 %1703  ;;  %v4417_v61 = vrot.slane %v1851_v59, 7  ;;  %v5557_v60 = vld [vmem:[#allocation16_spill] sm:$0xff] }
 0x1c3   : > { %v1699_v34 = vadd.f32 %v1688_v9, %v1651_v30  ;;  %v1773_v21 = vsel %vm1740_vm4, %v1771_v46, %v1772_v12  ;;  %v1723_v32 = vmax.f32 %v1669_v43, %v1704_v6  ;;  %v1780_v20 = vsel %vm1740_vm4, %v1775_v3, %v1779_v15  ;;  %v1876_v9 = vld [vmem:[#allocation2 + $0x40] sm:$0xf0] }
 0x1c4   : > { %1781 = vrot.lane.b32.xlu0 %v1773_v21, %s3108_s28  ;;  %1787 = vrot.lane.b32.xlu1 %v1780_v20, %s3108_s28  ;;  %v1857_v55 = vrot.slane %v5557_v60, 7  ;;  %v1859_v43 = vrot.slane %v1852_v53, 7  ;;  %v4434_v24 = vrot.slane %v1876_v9, 7  ;;  %v5558_v15 = vld [vmem:[#allocation12_spill] sm:$0xff]  ;;  %v1885_v21 = vrot.slane %v1878_v19, 7  ;;  %v4604_v9 = vld [vmem:[%s3190_s12 + $0x70] sm:$0xff] }
 0x1c5   : > { %v1777_v25 = vrot.slane %v1699_v34, 3  ;;  %v1702_v44 = vpop.permute.xlu0 %1701  ;;  %v1798_v38 = vmul.f32 %v1723_v32, %v5553_v40  ;;  %v1883_v34 = vrot.slane %v5558_v15, 7  ;;  %v1903_v32 = vld [vmem:[%s3190_s12 + $0x68] sm:$0xf]  ;;  %v779_v53 = vld [vmem:[%s5387_s2 + $0x80] sm:$0xff]  ;;  %v777_v19 = vld [vmem:[%s5387_s2 + $0x70] sm:$0xff] }
 0x1c6   : > { %v1713_v1 = vsel %vm930_vm3, %v1702_v44, %v1704_v6  ;;  %v1708_v17 = vpop.permute.xlu1 %1707  ;;  %v4429_v37 = vsel %vm840_vm1, %v4417_v61, %v1857_v55  ;;  %v4440_v45 = vsel %vm840_vm1, %v1857_v55, %v1859_v43  ;;  %v1902_v6 = vld [vmem:[%s3190_s12 + $0x48] sm:$0xf0]  ;;  %v1910_v20 = vrot.slane %v1903_v32, 7 }
 0x1c7   : > { %v1722_v56 = vmax.f32 %v1668_v36, %v1713_v1  ;;  %v1778_v14 = vsel %vm1740_vm4, %v1772_v12, %v1777_v25  ;;  %v1725_v23 = vmax.f32 %v1671_v26, %v1708_v17  ;;  %v1812_v50 = vrot.slane %v1798_v38, 3  ;;  %v1924_v1 = vld [vmem:[#allocation2 + $0x48] sm:$0xf0]  ;;  %v1926_v26 = vld [vmem:[#allocation2 + $0x68] sm:$0xf] }
 0x1c8   : > { %1785 = vrot.lane.b32.xlu0 %v1778_v14, %s3108_s28  ;;  %v4445_v47 = vsel %vm840_vm1, %v1883_v34, %v1885_v21  ;;  %v4452_v39 = vsel %vm840_vm1, %v4434_v24, %v1883_v34  ;;  %v4456_v36 = vrot.slane %v1902_v6, 7  ;;  %v1908_v25 = vrot.slane %v5559_v7, 7  ;;  %v4506_v38 = vld [vmem:[%s3190_s12 + $0x40] sm:$0xe0]  ;;  %v2167_v32 = vld [vmem:[#allocation2 + $0x68] sm:$0x3f] }
 0x1c9   : > { %v1706_v4 = vpop.permute.xlu0 %1705  ;;  %v1797_v27 = vmul.f32 %v1722_v56, %v5553_v40  ;;  %v1800_v13 = vmul.f32 %v1725_v23, %v5553_v40  ;;  %v4481_v56 = vrot.slane %v1924_v1, 7  ;;  %v1933_v52 = vrot.slane %v1926_v26, 7  ;;  %v2018_v23 = vld [vmem:[#allocation2 + $0x40] sm:$0xe0]  ;;  %v1324_v26 = vld [vmem:[#allocation4 + $0x13] sm:$0xff] }
 0x1ca   : > { %v1714_v28 = vsel %vm930_vm3, %v1706_v4, %v1708_v17  ;;  %v1712_v58 = vpop.permute.xlu1 %1711  ;;  %v4466_v44 = vsel %vm840_vm1, %v4456_v36, %v1908_v25  ;;  %v4473_v0 = vsel %vm840_vm1, %v1908_v25, %v1910_v20  ;;  %v4520_v4 = vld [vmem:[%s3190_s12 + $0x48] sm:$0xe0]  ;;  %v2171_v21 = vrot.slane %v4477_v63, 1 }
 0x1cb   : > { %v1724_v11 = vmax.f32 %v1670_v51, %v1714_v28  ;;  %v1813_v8 = vrot.slane %v1800_v13, 3  ;;  %v1727_v18 = vmax.f32 %v1673_v16, %v1712_v58  ;;  %v1809_v41 = vrot.slane %v1797_v27, 3  ;;  %v2019_v51 = vld [vmem:[#allocation2 + $0x60] sm:$0x1f]  ;;  %v4531_v27 = vld [vmem:[%s3190_s12 + $0x68] sm:$0x1f] }
 0x1cc   : > { %v4490_v14 = vsel %vm840_vm1, %v4481_v56, %v1931_v49  ;;  %v4497_v17 = vsel %vm840_vm1, %v1931_v49, %v1933_v52  ;;  %v2066_v28 = vld [vmem:[#allocation2 + $0x48] sm:$0xe0]  ;;  %v2098_v13 = vld [vmem:[%s3190_s12 + $0x60] sm:$0x3f]  ;;  %v2102_v16 = vrot.slane %v5557_v60, 1  ;;  %v4626_v1 = vrot.slane %v2167_v32, 1 }
 0x1cd   : > { %v1799_v10 = vmul.f32 %v1724_v11, %v5553_v40  ;;  %v1710_v3 = vpop.permute.xlu0 %1709  ;;  %v1802_v54 = vmul.f32 %v1727_v18, %v5553_v40  ;;  %v1814_v57 = vsel %vm1740_vm4, %v1812_v50, %v1813_v8  ;;  %v2097_v11 = vld [vmem:[%s3190_s12 + $0x40] sm:$0xc0] }
 0x1ce   : > { %v1715_v29 = vsel %vm930_vm3, %v1710_v3, %v1712_v58  ;;  %1821 = vrot.lane.b32.xlu1 %v1814_v57, %s3108_s28  ;;  %v4546_v58 = vrot.slane %v2098_v13, 1  ;;  %v2122_v3 = vld [vmem:[#allocation2 + $0x60] sm:$0x3f]  ;;  %5572 = vst [vmem:[#allocation25_spill] sm:$0xff] %v4626_v1 }
 0x1cf   : > { %v1810_v62 = vrot.slane %v1799_v10, 3  ;;  %v1726_v48 = vmax.f32 %v1672_v31, %v1715_v29  ;;  %v1817_v30 = vrot.slane %v1802_v54, 3  ;;  %v2101_v31 = vrot.slane %v2097_v11, 1  ;;  %v1322_v49 = vld [vmem:[#allocation3 + $0x12] sm:$0xff] }
 0x1d0   : > { %5560 = vst [vmem:[#allocation9_spill] sm:$0xff] %v4546_v58  ;;  %v4553_v50 = vsel %vm1073_vm2, %v2102_v16, %v4546_v58  ;;  %v2126_v10 = vrot.slane %v5558_v15, 1  ;;  %v4568_v29 = vrot.slane %v2122_v3, 1  ;;  %v2150_v54 = vrot.slane %v5559_v7, 1 }
 0x1d1   : > { %v1801_v46 = vmul.f32 %v1726_v48, %v5553_v40  ;;  %v1811_v12 = vsel %vm1740_vm4, %v1809_v41, %v1810_v62  ;;  %v1818_v2 = vsel %vm1740_vm4, %v1813_v8, %v1817_v30  ;;  %5561 = vst [vmem:[#allocation10_spill] sm:$0xff] %v4553_v50  ;;  %v2125_v8 = vrot.slane %v2121_v22, 1  ;;  %v2145_v41 = vld [vmem:[%s3190_s12 + $0x48] sm:$0xc0]  ;;  %v2146_v48 = vld [vmem:[%s3190_s12 + $0x68] sm:$0x3f]  ;;  %v1752_v55 = vpop.permute.xlu0 %1751 }
 0x1d2   : > { %1819 = vrot.lane.b32.xlu0 %v1811_v12, %s3108_s28  ;;  %1825 = vrot.lane.b32.xlu1 %v1818_v2, %s3108_s28  ;;  %v4558_v18 = vsel %vm1073_vm2, %v2101_v31, %v2102_v16  ;;  %5564 = vst [vmem:[#allocation27_spill] sm:$0xff] %v4568_v29  ;;  %v4578_v57 = vsel %vm1073_vm2, %v2126_v10, %v4568_v29  ;;  %v1754_v12 = vpop.permute.xlu1 %1753  ;;  %v4596_v2 = vld [vmem:[%s3190_s12 + $0x80] sm:$0xff]  ;;  %v1323_v16 = vld [vmem:[#allocation3 + $0x1a] sm:$0xff]  ;;  %v1325_v22 = vld [vmem:[#allocation4 + $0x1b] sm:$0xff] }
 0x1d3   : > { %v1815_v5 = vrot.slane %v1801_v46, 3  ;;  %5562 = vst [vmem:[#allocation26_spill] sm:$0xff] %v4558_v18  ;;  %v4563_v59 = vsel %vm1073_vm2, %v2125_v8, %v2126_v10  ;;  %5565 = vst [vmem:[#allocation21_spill] sm:$0xff] %v4578_v57  ;;  %v4585_v46 = vrot.slane %v2146_v48, 1  ;;  %v4610_v43 = vadd.f32 %v779_v53, %v4596_v2 }
 0x1d4   : > { %5563 = vst [vmem:[#allocation20_spill] sm:$0xff] %v4563_v59  ;;  %5568 = vst [vmem:[#allocation17_spill] sm:$0xff] %v4596_v2  ;;  %v1326_v11 = vadd.f32 %v1324_v26, %v1322_v49  ;;  %v1327_v48 = vadd.f32 %v1325_v22, %v1323_v16  ;;  %v5575_v49 = vld [vmem:[#allocation14_spill] sm:$0xff]  ;;  %v563_v2 = vpop.f32.mrb[10].mxu1 }
 0x1d5   : > { %v1816_v33 = vsel %vm1740_vm4, %v1810_v62, %v1815_v5  ;;  %v2149_v62 = vrot.slane %v2145_v41, 1  ;;  %5566 = vst [vmem:[#allocation28_spill] sm:$0xff] %v4585_v46  ;;  %v4593_v5 = vsel %vm1073_vm2, %v2150_v54, %v4585_v46  ;;  %5569 = vst [vmem:[#allocation13_spill] sm:$0xff] %v4610_v43  ;;  %v1756_v25 = vpop.permute.xlu0 %1755 }
 0x1d6   : > { %1823 = vrot.lane.b32.xlu0 %v1816_v33, %s3108_s28  ;;  %1863 = vrot.lane.b32.xlu1 %v4429_v37, %s3107_s21  ;;  %5567 = vst [vmem:[#allocation23_spill] sm:$0xff] %v4593_v5  ;;  %v2166_v33 = vld [vmem:[#allocation2 + $0x48] sm:$0xc0]  ;;  %815 = vst [vmem:[#allocation2 + $0x80] sm:$0xff] %v4610_v43  ;;  %v1758_v6 = vpop.permute.xlu1 %1757 }
 0x1d7   : > { %v4583_v30 = vsel %vm1073_vm2, %v2149_v62, %v2150_v54  ;;  %v2170_v34 = vrot.slane %v2166_v33, 1  ;;  %v1760_v22 = vsel %vm930_vm3, %v1756_v25, %v1758_v6  ;;  %v780_v6 = vld [vmem:[%s5387_s2 + $0x88] sm:$0xff]  ;;  %587 = vst [vmem:[#allocation4 + $0x28] sm:$0xff] %v563_v2  ;;  %v717_v2 = vpop.f32.mrb[30].mxu0 }
 0x1d8   : > { %741 = vst [vmem:[#allocation5 + $0x28] sm:$0xff] %v717_v2 }
 0x1d9   : > { %v4624_v20 = vsel %vm1073_vm2, %v2170_v34, %v2171_v21 }
 0x1da   : > { %1861 = vrot.lane.b32.xlu0 %v4417_v61, %s3107_s21  ;;  %1887 = vrot.lane.b32.xlu1 %v4434_v24, %s3107_s21  ;;  %5571 = vst [vmem:[#allocation30_spill] sm:$0xff] %v4624_v20 }
 0x1de   : > { %1865 = vrot.lane.b32.xlu0 %v4440_v45, %s3107_s21  ;;  %1891 = vrot.lane.b32.xlu1 %v4445_v47, %s3107_s21 }
 0x1e2   : > { %1889 = vrot.lane.b32.xlu0 %v4452_v39, %s3107_s21  ;;  %1949 = vrot.lane.b32.xlu1 %v4456_v36, %s3108_s28 }
 0x1e6   : > { %1947 = vrot.lane.b32.xlu0 %v4417_v61, %s3108_s28  ;;  %1953 = vrot.lane.b32.xlu1 %v4466_v44, %s3108_s28 }
 0x1ea   : > { %1951 = vrot.lane.b32.xlu0 %v4429_v37, %s3108_s28  ;;  %1957 = vrot.lane.b32.xlu1 %v4473_v0, %s3108_s28 }
 0x1ee   : > { %1955 = vrot.lane.b32.xlu0 %v4440_v45, %s3108_s28  ;;  %1976 = vrot.lane.b32.xlu1 %v4481_v56, %s3108_s28 }
 0x1f2   : > { %1974 = vrot.lane.b32.xlu0 %v4434_v24, %s3108_s28  ;;  %1980 = vrot.lane.b32.xlu1 %v4490_v14, %s3108_s28 }
 0x1f6   : > { %1978 = vrot.lane.b32.xlu0 %v4452_v39, %s3108_s28  ;;  %1984 = vrot.lane.b32.xlu1 %v4497_v17, %s3108_s28 }
 0x1fa   : > { %1982 = vrot.lane.b32.xlu0 %v4445_v47, %s3108_s28  ;;  %2005 = vrot.lane.b32.xlu1 %v5557_v60, %s3107_s21 }
 0x1fe   : > { %2003 = vrot.lane.b32.xlu0 %v4506_v38, %s3107_s21  ;;  %2022 = vrot.lane.b32.xlu1 %v2018_v23, %s3107_s21 }
 0x202   : > { %2007 = vrot.lane.b32.xlu0 %v4513_v35, %s3107_s21  ;;  %2026 = vrot.lane.b32.xlu1 %v2019_v51, %s3107_s21 }
 0x206   : > { %2024 = vrot.lane.b32.xlu0 %v5558_v15, %s3107_s21  ;;  %2041 = vrot.lane.b32.xlu1 %v4520_v4, %s3108_s28 }
 0x20a   : > { %2039 = vrot.lane.b32.xlu0 %v4506_v38, %s3108_s28  ;;  %2045 = vrot.lane.b32.xlu1 %v5559_v7, %s3108_s28 }
 0x20e   : > { %2043 = vrot.lane.b32.xlu0 %v5557_v60, %s3108_s28  ;;  %2049 = vrot.lane.b32.xlu1 %v4531_v27, %s3108_s28 }
 0x212   : > { %2047 = vrot.lane.b32.xlu0 %v4513_v35, %s3108_s28  ;;  %2072 = vrot.lane.b32.xlu1 %v2066_v28, %s3108_s28  ;;  %v4636_v28 = vsel %vm1073_vm2, %v2171_v21, %v4626_v1 }
 0x213   : > { %5574 = vst [vmem:[#allocation24_spill] sm:$0xff] %v4636_v28 }
 0x216   : > { %2070 = vrot.lane.b32.xlu0 %v2018_v23, %s3108_s28  ;;  %2076 = vrot.lane.b32.xlu1 %v4477_v63, %s3108_s28  ;;  %v5573_v23 = vld [vmem:[#allocation18_spill] sm:$0xff] }
 0x217   : > { %v2244_v13 = vmul.f32 %v5559_v7, %v5573_v23  ;;  %v2241_v31 = vmul.f32 %v4506_v38, %v5573_v23  ;;  %v2243_v8 = vmul.f32 %v5557_v60, %v5573_v23  ;;  %v2246_v10 = vmul.f32 %v4531_v27, %v5573_v23 }
 0x218   : > { %v1759_v60 = vsel %vm930_vm3, %v1752_v55, %v1754_v12  ;;  %v2245_v32 = vmul.f32 %v4513_v35, %v5573_v23  ;;  %v778_v12 = vld [vmem:[%s5387_s2 + $0x78] sm:$0xff] }
 0x219   : > { %v2258_v62 = vrot.slane %v2244_v13, 5  ;;  %v2254_v34 = vrot.slane %v2241_v31, 5  ;;  %v2255_v21 = vrot.slane %v2243_v8, 5  ;;  %v4662_v13 = vld [vmem:[%s3190_s12 + $0x78] sm:$0xff] }
 0x21a   : > { %2074 = vrot.lane.b32.xlu0 %v5558_v15, %s3108_s28  ;;  %2080 = vrot.lane.b32.xlu1 %v2067_v42, %s3108_s28  ;;  %v4613_v15 = vadd.f32 %v4604_v9, %v777_v19  ;;  %v1328_v42 = vld [vmem:[#allocation5 + $0x14] sm:$0xff]  ;;  %v1329_v19 = vld [vmem:[#allocation5 + $0x1c] sm:$0xff]  ;;  %5576 = vst [vmem:[#allocation29_spill] sm:$0xff] %v4662_v13  ;;  %v796_v16 = vadd.f32 %v4662_v13, %v778_v12  ;;  %v2260_v8 = vrot.slane %v2245_v32, 5  ;;  %v565_v13 = vpop.f32.mrb[11].mxu1 }
 0x21b   : > { %v1330_v54 = vadd.f32 %v1328_v42, %v1326_v11  ;;  %v1331_v11 = vadd.f32 %v1329_v19, %v1327_v48  ;;  %v2256_v31 = vsel %vm2253_vm5, %v2254_v34, %v2255_v21 }
 0x21c   : > { %5570 = vst [vmem:[#allocation11_spill] sm:$0xff] %v4613_v15  ;;  %814 = vst.msk [vmem:[#allocation2 + $0x78] sm:$0xff] %vm340_vm0, %v796_v16  ;;  %v2261_v32 = vsel %vm2253_vm5, %v2255_v21, %v2260_v8 }
 0x21d   : > { %v1763_v55 = vadd.f32 %v1759_v60, %v1330_v54  ;;  %v1764_v25 = vadd.f32 %v1760_v22, %v1331_v11 }
 0x21e   : > { %2078 = vrot.lane.b32.xlu0 %v2019_v51, %s3108_s28  ;;  %2108 = vrot.lane.b32.xlu1 %v4553_v50, %s3107_s21  ;;  %v2242_v51 = vmul.f32 %v4520_v4, %v5573_v23 }
 0x220   : > { %v2257_v41 = vrot.slane %v2242_v51, 5  ;;  %v2262_v51 = vrot.slane %v2246_v10, 5  ;;  %v5577_v10 = vld [vmem:[#allocation22_spill] sm:$0xff] }
 0x222   : > { %2106 = vrot.lane.b32.xlu0 %v4558_v18, %s3107_s21  ;;  %2130 = vrot.lane.b32.xlu1 %v4563_v59, %s3107_s21  ;;  %v2263_v48 = vsel %vm2253_vm5, %v2258_v62, %v2262_v51 }
 0x226   : > { %2110 = vrot.lane.b32.xlu0 %v4546_v58, %s3107_s21  ;;  %2134 = vrot.lane.b32.xlu1 %v4568_v29, %s3107_s21 }
 0x22a   : > { %2132 = vrot.lane.b32.xlu0 %v4578_v57, %s3107_s21  ;;  %2189 = vrot.lane.b32.xlu1 %v4583_v30, %s3108_s28 }
 0x22e   : > { %2187 = vrot.lane.b32.xlu0 %v4558_v18, %s3108_s28  ;;  %2193 = vrot.lane.b32.xlu1 %v4593_v5, %s3108_s28 }
 0x232   : > { %2191 = vrot.lane.b32.xlu0 %v4553_v50, %s3108_s28  ;;  %2197 = vrot.lane.b32.xlu1 %v4585_v46, %s3108_s28  ;;  %v1784_v63 = vpop.permute.xlu1 %1783 }
 0x236   : > { %2195 = vrot.lane.b32.xlu0 %v4546_v58, %s3108_s28  ;;  %v1782_v52 = vpop.permute.xlu0 %1781  ;;  %2216 = vrot.lane.b32.xlu1 %v4624_v20, %s3108_s28  ;;  %v1788_v53 = vpop.permute.xlu1 %1787 }
 0x237   : > { %v1789_v3 = vsel %vm930_vm3, %v1782_v52, %v1784_v63  ;;  %v2259_v52 = vsel %vm2253_vm5, %v2257_v41, %v2258_v62 }
 0x238   : > { %v1793_v26 = vmul.f32 %v1789_v3, %v5575_v49 }
 0x23a   : > { %2214 = vrot.lane.b32.xlu0 %v4563_v59, %s3108_s28  ;;  %2220 = vrot.lane.b32.xlu1 %v4636_v28, %s3108_s28  ;;  %v1786_v33 = vpop.permute.xlu0 %1785 }
 0x23b   : > { %v1790_v63 = vsel %vm930_vm3, %v1786_v33, %v1788_v53  ;;  %v1795_v53 = vadd.f32 %v1793_v26, %v1763_v55  ;;  %v4678_v33 = vld [vmem:[%s3190_s12 + $0x88] sm:$0xff] }
 0x23c   : > { %v1794_v3 = vmul.f32 %v1790_v63, %v5577_v10  ;;  %5578 = vst [vmem:[#allocation31_spill] sm:$0xff] %v4678_v33  ;;  %v798_v34 = vadd.f32 %v780_v6, %v4678_v33 }
 0x23e   : > { %2218 = vrot.lane.b32.xlu0 %v4578_v57, %s3108_s28  ;;  %2224 = vrot.lane.b32.xlu1 %v4626_v1, %s3108_s28  ;;  %v1796_v26 = vadd.f32 %v1794_v3, %v1764_v25  ;;  %816 = vst.msk [vmem:[#allocation2 + $0x88] sm:$0xff] %vm340_vm0, %v798_v34  ;;  %v568_v57 = vpop.f32.mrb[12].mxu1 }
 0x23f   : > { %588 = vst [vmem:[#allocation4 + $0x30] sm:$0xff] %v568_v57  ;;  %v570_v40 = vpop.f32.mrb[13].mxu1 }
 0x240   : > { %v1822_v42 = vpop.permute.xlu1 %1821  ;;  %v571_v28 = vpop.f32.mrb[14].mxu1 }
 0x241   : > { %589 = vst [vmem:[#allocation4 + $0x38] sm:$0xff] %v571_v28  ;;  %v573_v59 = vpop.f32.mrb[15].mxu1 }
 0x242   : > { %2222 = vrot.lane.b32.xlu0 %v4568_v29, %s3108_s28  ;;  %2266 = vrot.lane.b32.xlu1 %v2259_v52, %s3108_s28  ;;  %v576_v58 = vpop.f32.mrb[16].mxu1 }
 0x243   : > { %590 = vst [vmem:[#allocation4 + $0x40] sm:$0xff] %v576_v58  ;;  %v578_v13 = vpop.f32.mrb[17].mxu1 }
 0x244   : > { %v1820_v41 = vpop.permute.xlu0 %1819  ;;  %v1826_v19 = vpop.permute.xlu1 %1825 }
 0x245   : > { %v1827_v54 = vsel %vm930_vm3, %v1820_v41, %v1822_v42  ;;  %v579_v57 = vpop.f32.mrb[18].mxu1 }
 0x246   : > { %v1831_v60 = vadd.f32 %v1827_v54, %v1795_v53  ;;  %2264 = vrot.lane.b32.xlu0 %v2256_v31, %s3108_s28  ;;  %2270 = vrot.lane.b32.xlu1 %v2263_v48, %s3108_s28  ;;  %v580_v13 = vpop.f32.mrb[19].mxu1 }
 0x247   : > { %v722_v18 = vpop.f32.mrb[20].mxu1 }
 0x248   : > { %1833 = vst [vmem:[%s4225_s16 + $0x10] sm:$0xff] %v1831_v60  ;;  %v1824_v49 = vpop.permute.xlu0 %1823  ;;  %v1864_v52 = vpop.permute.xlu1 %1863  ;;  %742 = vst [vmem:[#allocation5 + $0x30] sm:$0xff] %v722_v18 }
 0x249   : > { %v1828_v62 = vsel %vm930_vm3, %v1824_v49, %v1826_v19  ;;  %v1873_v28 = vadd.f32 %v1864_v52, %v5559_v7  ;;  %v2370_v7 = vrot.slane %v4604_v9, 7 }
 0x24a   : > { %v1832_v63 = vadd.f32 %v1828_v62, %v1796_v26  ;;  %2268 = vrot.lane.b32.xlu0 %v2261_v32, %s3108_s28 }
 0x24c   : > { %1834 = vst [vmem:[%s4225_s16 + $0x18] sm:$0xff] %v1832_v63  ;;  %v1862_v51 = vpop.permute.xlu0 %1861  ;;  %v4692_v12 = vpop.permute.xlu1 %1887 }
 0x24d   : > { %v1871_v46 = vadd.f32 %v1862_v51, %v4520_v4  ;;  %v1897_v2 = vmax.f32 %v4520_v4, %v4692_v12 }
 0x250   : > { %v4694_v55 = vpop.permute.xlu0 %1865  ;;  %v4696_v21 = vpop.permute.xlu1 %1891 }
 0x251   : > { %v1900_v59 = vmax.f32 %v4513_v35, %v4696_v21  ;;  %v1901_v58 = vmax.f32 %v4531_v27, %v4696_v21  ;;  %v1874_v21 = vadd.f32 %v4694_v55, %v4513_v35  ;;  %v1896_v35 = vmax.f32 %v4506_v38, %v4692_v12 }
 0x253   : > { %v1946_v18 = vmax.f32 %v1901_v58, %v4497_v17 }
 0x254   : > { %v4698_v11 = vpop.permute.xlu0 %1889  ;;  %v4700_v42 = vpop.permute.xlu1 %1949 }
 0x258   : > { %v4702_v16 = vpop.permute.xlu0 %1947  ;;  %v4704_v22 = vpop.permute.xlu1 %1953 }
 0x25c   : > { %v4706_v31 = vpop.permute.xlu0 %1951  ;;  %v4708_v8 = vpop.permute.xlu1 %1957 }
 0x260   : > { %v4710_v10 = vpop.permute.xlu0 %1955  ;;  %v4712_v3 = vpop.permute.xlu1 %1976 }
 0x264   : > { %v4714_v41 = vpop.permute.xlu0 %1974  ;;  %v4716_v53 = vpop.permute.xlu1 %1980 }
 0x268   : > { %v4718_v54 = vpop.permute.xlu0 %1978  ;;  %v4720_v48 = vpop.permute.xlu1 %1984 }
 0x26c   : > { %v1983_v6 = vpop.permute.xlu0 %1982  ;;  %v4722_v25 = vpop.permute.xlu1 %2005 }
 0x26d   : > { %v1988_v4 = vsel %vm930_vm3, %v1983_v6, %v4720_v48  ;;  %v3074_v6 = vld [vmem:[%s3190_s12 + $0x58] sm:$0xff] }
 0x270   : > { %v4724_v60 = vpop.permute.xlu0 %2003  ;;  %v4726_v19 = vpop.permute.xlu1 %2022 }
 0x274   : > { %v4728_v34 = vpop.permute.xlu0 %2007  ;;  %v4730_v32 = vpop.permute.xlu1 %2026 }
 0x278   : > { %v4732_v49 = vpop.permute.xlu0 %2024  ;;  %v4734_v26 = vpop.permute.xlu1 %2041 }
 0x279   : > { %5579 = vst [vmem:[#allocation34_spill] sm:$0xff] %v4732_v49  ;;  %v4759_v49 = vld [vmem:[%s3190_s12 + $0x50] sm:$0xff] }
 0x27a   : > { %v1872_v40 = vadd.f32 %v4759_v49, %v1864_v52  ;;  %v724_v52 = vpop.f32.mrb[21].mxu1 }
 0x27b   : > { %v1945_v52 = vmax.f32 %v1900_v59, %v4445_v47  ;;  %v2000_v47 = vmax.f32 %v1946_v18, %v4720_v48 }
 0x27c   : > { %v4736_v62 = vpop.permute.xlu0 %2039  ;;  %v4738_v63 = vpop.permute.xlu1 %2045 }
 0x27d   : > { %v1999_v17 = vmax.f32 %v1945_v52, %v1988_v4  ;;  %v2036_v48 = vmax.f32 %v2000_v47, %v4730_v32  ;;  %v2051_v59 = vsel %vm930_vm3, %v4736_v62, %v4734_v26 }
 0x280   : > { %v4740_v23 = vpop.permute.xlu0 %2043  ;;  %v4742_v33 = vpop.permute.xlu1 %2049 }
 0x284   : > { %v4744_v43 = vpop.permute.xlu0 %2047  ;;  %v4746_v29 = vpop.permute.xlu1 %2072 }
 0x285   : > { %5580 = vst [vmem:[#allocation15_spill] sm:$0xff] %v4746_v29 }
 0x288   : > { %v4748_v1 = vpop.permute.xlu0 %2070  ;;  %v4750_v15 = vpop.permute.xlu1 %2076 }
 0x289   : > { %5581 = vst [vmem:[#allocation33_spill] sm:$0xff] %v4748_v1  ;;  %5582 = vst [vmem:[#allocation32_spill] sm:$0xff] %v4750_v15  ;;  %v2364_v1 = vld [vmem:[%s3190_s12 + $0x60] sm:$0xc0]  ;;  %v1870_v15 = vadd.f32 %v1862_v51, %v4506_v38  ;;  %v1919_v51 = vadd.f32 %v4456_v36, %v1871_v46  ;;  %v1942_v46 = vmax.f32 %v1897_v2, %v4481_v56 }
 0x28a   : > { %v4772_v5 = vrot.slane %v2364_v1, 7  ;;  %v1921_v1 = vadd.f32 %v4466_v44, %v1873_v28  ;;  %v1959_v44 = vsel %vm930_vm3, %v4702_v16, %v4700_v42  ;;  %v1898_v38 = vmax.f32 %v4759_v49, %v4698_v11 }
 0x28b   : > { %v1918_v36 = vadd.f32 %v1870_v15, %v4417_v61  ;;  %v1922_v56 = vadd.f32 %v1874_v21, %v4440_v45  ;;  %v1986_v2 = vsel %vm930_vm3, %v4714_v41, %v4712_v3 }
 0x28c   : > { %v4752_v20 = vpop.permute.xlu0 %2074  ;;  %v4755_v50 = vpop.permute.xlu1 %2080  ;;  %v1971_v12 = vadd.f32 %v4704_v22, %v1921_v1 }
 0x28d   : > { %5583 = vst [vmem:[#allocation16_spill] sm:$0xff] %v4752_v20  ;;  %v719_v20 = vpop.f32.mrb[31].mxu0 }
 0x28e   : > { %v1875_v20 = vadd.f32 %v4694_v55, %v4531_v27  ;;  %v1969_v27 = vadd.f32 %v4700_v42, %v1919_v51  ;;  %v1899_v42 = vmax.f32 %v3074_v6, %v4698_v11  ;;  %v2096_v11 = vmax.f32 %v2036_v48, %v4755_v50 }
 0x290   : > { %v2079_v57 = vpop.permute.xlu0 %2078  ;;  %v4782_v13 = vpop.permute.xlu1 %2108  ;;  %v1923_v61 = vadd.f32 %v4473_v0, %v1875_v20  ;;  %v2013_v16 = vadd.f32 %v4724_v60, %v1969_v27 }
 0x291   : > { %v2084_v29 = vsel %vm930_vm3, %v2079_v57, %v4755_v50  ;;  %v1920_v57 = vadd.f32 %v1872_v40, %v4429_v37  ;;  %v1960_v37 = vsel %vm930_vm3, %v4706_v31, %v4704_v22  ;;  %v2035_v31 = vmax.f32 %v1999_v17, %v4730_v32 }
 0x292   : > { %v1968_v40 = vadd.f32 %v1959_v44, %v1918_v36  ;;  %v1973_v49 = vadd.f32 %v4708_v8, %v1923_v61  ;;  %v2015_v22 = vadd.f32 %v4722_v25, %v1971_v12  ;;  %v2061_v45 = vadd.f32 %v4734_v26, %v2013_v16 }
 0x293   : > { %v1970_v28 = vadd.f32 %v1960_v37, %v1920_v57  ;;  %v2095_v58 = vmax.f32 %v2035_v31, %v2084_v29  ;;  %v1961_v32 = vsel %vm930_vm3, %v4710_v10, %v4708_v8  ;;  %v2052_v26 = vsel %vm930_vm3, %v4740_v23, %v4738_v63 }
 0x294   : > { %v2107_v55 = vpop.permute.xlu0 %2106  ;;  %v4805_v15 = vpop.permute.xlu1 %2130  ;;  %v2012_v21 = vadd.f32 %v4724_v60, %v1968_v40  ;;  %v2063_v20 = vadd.f32 %v4738_v63, %v2015_v22  ;;  %v1941_v8 = vmax.f32 %v1896_v35, %v4434_v24  ;;  %v1944_v10 = vmax.f32 %v1899_v42, %v4490_v14  ;;  %v2365_v40 = vld [vmem:[%s3190_s12 + $0x80] sm:$0x3f] }
 0x295   : > { %v2116_v62 = vadd.f32 %v2107_v55, %v2061_v45  ;;  %v2014_v41 = vadd.f32 %v4722_v25, %v1970_v28  ;;  %v1972_v1 = vadd.f32 %v1961_v32, %v1922_v56  ;;  %v1943_v57 = vmax.f32 %v1898_v38, %v4452_v39  ;;  %v5584_v38 = vld [vmem:[#allocation23_spill] sm:$0xff]  ;;  %v5586_v56 = vld [vmem:[#allocation26_spill] sm:$0xff] }
 0x296   : > { %v2060_v4 = vadd.f32 %v2051_v59, %v2012_v21  ;;  %v2017_v18 = vadd.f32 %v4728_v34, %v1973_v49  ;;  %v2118_v23 = vadd.f32 %v4782_v13, %v2063_v20  ;;  %v1996_v63 = vmax.f32 %v1942_v46, %v4712_v3  ;;  %v5589_v28 = vld [vmem:[#allocation10_spill] sm:$0xff] }
 0x297   : > { %v1995_v52 = vmax.f32 %v1941_v8, %v1986_v2  ;;  %v2062_v27 = vadd.f32 %v2052_v26, %v2014_v41  ;;  %v1987_v14 = vsel %vm930_vm3, %v4718_v54, %v4716_v53  ;;  %v2053_v39 = vsel %vm930_vm3, %v4744_v43, %v4742_v33 }
 0x298   : > { %v2111_v0 = vpop.permute.xlu0 %2110  ;;  %v2135_v51 = vpop.permute.xlu1 %2134  ;;  %v2115_v36 = vadd.f32 %v2107_v55, %v2060_v4  ;;  %v2065_v25 = vadd.f32 %v4742_v33, %v2017_v18  ;;  %v2161_v35 = vadd.f32 %v4583_v30, %v2116_v62  ;;  %v1998_v44 = vmax.f32 %v1944_v10, %v4716_v53  ;;  %v5585_v33 = vld [vmem:[#allocation15_spill] sm:$0xff]  ;;  %v5591_v10 = vld [vmem:[#allocation32_spill] sm:$0xff] }
 0x299   : > { %v4830_v50 = vmax.f32 %v2095_v58, %v2135_v51  ;;  %v4832_v29 = vmax.f32 %v2096_v11, %v2135_v51  ;;  %v2032_v3 = vmax.f32 %v1996_v63, %v4726_v19  ;;  %v2016_v46 = vadd.f32 %v4728_v34, %v1972_v1  ;;  %v5587_v34 = vld [vmem:[#allocation34_spill] sm:$0xff]  ;;  %v5592_v4 = vld [vmem:[#allocation16_spill] sm:$0xff] }
 0x29a   : > { %v2117_v55 = vadd.f32 %v4782_v13, %v2062_v27  ;;  %v2120_v47 = vadd.f32 %v2111_v0, %v2065_v25  ;;  %v2163_v12 = vadd.f32 %v5584_v38, %v2118_v23  ;;  %v1997_v61 = vmax.f32 %v1943_v57, %v1987_v14  ;;  %v5588_v13 = vld [vmem:[#allocation33_spill] sm:$0xff] }
 0x29b   : > { %v2064_v43 = vadd.f32 %v2053_v39, %v2016_v46  ;;  %v2092_v30 = vmax.f32 %v2032_v3, %v5585_v33  ;;  %v2160_v53 = vadd.f32 %v2115_v36, %v5586_v56  ;;  %v2031_v42 = vmax.f32 %v1995_v52, %v4726_v19  ;;  %v5590_v19 = vld [vmem:[#allocation28_spill] sm:$0xff]  ;;  %v5593_v23 = vld [vmem:[#allocation9_spill] sm:$0xff]  ;;  %v5594_v39 = vld [vmem:[#allocation30_spill] sm:$0xff] }
 0x29c   : > { %v4837_v60 = vpop.permute.xlu0 %2132  ;;  %v2190_v24 = vpop.permute.xlu1 %2189  ;;  %v2034_v16 = vmax.f32 %v1998_v44, %v5587_v34  ;;  %v2082_v31 = vsel %vm930_vm3, %v5588_v13, %v5585_v33  ;;  %v2162_v49 = vadd.f32 %v2117_v55, %v5589_v28  ;;  %v2165_v21 = vadd.f32 %v5590_v19, %v2120_v47  ;;  %v5598_v13 = vld [vmem:[#allocation35_spill] sm:$0xff] }
 0x29d   : > { %v2209_v54 = vadd.f32 %v2190_v24, %v2161_v35  ;;  %v2140_v22 = vmax.f32 %v2092_v30, %v4805_v15  ;;  %v2119_v45 = vadd.f32 %v2111_v0, %v2064_v43  ;;  %v2033_v20 = vmax.f32 %v1997_v61, %v5587_v34  ;;  %v5596_v30 = vld [vmem:[#allocation24_spill] sm:$0xff] }
 0x29e   : > { %v2091_v51 = vmax.f32 %v2031_v42, %v2082_v31  ;;  %v2372_v8 = vrot.slane %v2365_v40, 7  ;;  %v2094_v41 = vmax.f32 %v2034_v16, %v5591_v10  ;;  %v2083_v0 = vsel %vm930_vm3, %v5592_v4, %v5591_v10  ;;  %v5599_v40 = vld [vmem:[#allocation21_spill] sm:$0xff] }
 0x29f   : > { %v2287_v58 = vrot.slane %v2209_v54, 5  ;;  %v2164_v63 = vadd.f32 %v2119_v45, %v5593_v23  ;;  %v2182_v35 = vmax.f32 %v2140_v22, %v5594_v39  ;;  %v2093_v44 = vmax.f32 %v2033_v20, %v2083_v0  ;;  %v5595_v54 = vld [vmem:[#allocation20_spill] sm:$0xff] }
 0x2a0   : > { %v2188_v37 = vpop.permute.xlu0 %2187  ;;  %v2194_v6 = vpop.permute.xlu1 %2193  ;;  %v2139_v18 = vmax.f32 %v2091_v51, %v4805_v15  ;;  %v2389_v15 = vld [vmem:[#allocation2 + $0x60] sm:$0xc0]  ;;  %v4893_v43 = vsel %vm840_vm1, %v2370_v7, %v2372_v8  ;;  %v4910_v22 = vsel %vm840_vm1, %v4772_v5, %v2370_v7 }
 0x2a1   : > { %v2199_v17 = vsel %vm930_vm3, %v2188_v37, %v2190_v24  ;;  %v2211_v48 = vadd.f32 %v2194_v6, %v2163_v12  ;;  %v2142_v24 = vmax.f32 %v2094_v41, %v4837_v60  ;;  %v2141_v38 = vmax.f32 %v2093_v44, %v4837_v60 }
 0x2a2   : > { %v2208_v59 = vadd.f32 %v2199_v17, %v2160_v53  ;;  %v2181_v17 = vmax.f32 %v2139_v18, %v5595_v54  ;;  %v4897_v53 = vrot.slane %v2389_v15, 7  ;;  %v2416_v15 = vld [vmem:[%s3190_s12 + $0x88] sm:$0x3f] }
 0x2a3   : > { %v2288_v32 = vrot.slane %v2211_v48, 5  ;;  %v2184_v56 = vmax.f32 %v2142_v24, %v5596_v30  ;;  %v2183_v28 = vmax.f32 %v2141_v38, %v5599_v40  ;;  %v2423_v54 = vrot.slane %v2416_v15, 7  ;;  %v2437_v38 = vld [vmem:[#allocation2 + $0x68] sm:$0xc0]  ;;  %v2439_v30 = vld [vmem:[#allocation2 + $0x88] sm:$0x3f] }
 0x2a4   : > { %v2192_v11 = vpop.permute.xlu0 %2191  ;;  %v2198_v62 = vpop.permute.xlu1 %2197  ;;  %v2284_v52 = vrot.slane %v2208_v59, 5  ;;  %v2531_v40 = vld [vmem:[#allocation2 + $0x60] sm:$0x80] }
 0x2a5   : > { %v2200_v2 = vsel %vm930_vm3, %v2192_v11, %v2194_v6  ;;  %v2213_v1 = vadd.f32 %v2198_v62, %v2165_v21  ;;  %v2289_v57 = vsel %vm2253_vm5, %v2287_v58, %v2288_v32  ;;  %v5597_v6 = vld [vmem:[#allocation11_spill] sm:$0xff]  ;;  %v5600_v11 = vld [vmem:[#allocation25_spill] sm:$0xff] }
 0x2a6   : > { %v2210_v26 = vadd.f32 %v2200_v2, %v2162_v49  ;;  %2296 = vrot.lane.b32.xlu1 %v2289_v57, %s3108_s28  ;;  %v2396_v42 = vrot.slane %v5597_v6, 7  ;;  %v2186_v58 = vmax.f32 %v4832_v29, %v5600_v11  ;;  %v2391_v2 = vld [vmem:[#allocation2 + $0x80] sm:$0x3f]  ;;  %v5607_v11 = vld [vmem:[#allocation17_spill] sm:$0xff] }
 0x2a7   : > { %v2292_v14 = vrot.slane %v2213_v1, 5  ;;  %v2398_v41 = vrot.slane %v2391_v2, 7  ;;  %v5047_v2 = vrot.slane %v5597_v6, 1 }
 0x2a8   : > { %v2285_v27 = vrot.slane %v2210_v26, 5  ;;  %v2196_v36 = vpop.permute.xlu0 %2195  ;;  %v2217_v46 = vpop.permute.xlu1 %2216 }
 0x2a9   : > { %v2201_v25 = vsel %vm930_vm3, %v2196_v36, %v2198_v62  ;;  %v2236_v37 = vmax.f32 %v2182_v35, %v2217_v46  ;;  %v4884_v47 = vsel %vm2253_vm5, %v2288_v32, %v2292_v14  ;;  %v4918_v32 = vsel %vm840_vm1, %v4897_v53, %v2396_v42  ;;  %v5601_v62 = vld [vmem:[#allocation27_spill] sm:$0xff]  ;;  %5608 = vst [vmem:[#allocation23_spill] sm:$0xff] %v5047_v2 }
 0x2aa   : > { %v2212_v3 = vadd.f32 %v2201_v25, %v2164_v63  ;;  %v2286_v55 = vsel %vm2253_vm5, %v2284_v52, %v2285_v27  ;;  %2374 = vrot.lane.b32.xlu1 %v4772_v5, %s3107_s21  ;;  %v2185_v8 = vmax.f32 %v4830_v50, %v5601_v62  ;;  %v4939_v52 = vsel %vm840_vm1, %v2396_v42, %v2398_v41  ;;  %v5615_v41 = vld [vmem:[#allocation18_spill] sm:$0xff] }
 0x2ab   : > { %2294 = vrot.lane.b32.xlu0 %v2286_v55, %s3108_s28  ;;  %v2311_v31 = vmul.f32 %v2236_v37, %v5598_v13  ;;  %v2446_v42 = vrot.slane %v2439_v30, 7  ;;  %v5133_v30 = vpop.f32.mrb[22].mxu1 }
 0x2ac   : > { %v2290_v12 = vrot.slane %v2212_v3, 5  ;;  %v2215_v61 = vpop.permute.xlu0 %2214  ;;  %v2221_v60 = vpop.permute.xlu1 %2220  ;;  %v5605_v3 = vld [vmem:[#allocation29_spill] sm:$0xff]  ;;  %5619 = vst [vmem:[#allocation16_spill] sm:$0xff] %v5133_v30 }
 0x2ad   : > { %v2226_v33 = vsel %vm930_vm3, %v2215_v61, %v2217_v46  ;;  %v2238_v48 = vmax.f32 %v2184_v56, %v2221_v60  ;;  %v2325_v51 = vrot.slane %v2311_v31, 5  ;;  %v2421_v46 = vrot.slane %v5605_v3, 7  ;;  %v5009_v31 = vld [vmem:[%s3190_s12 + $0x68] sm:$0x80] }
 0x2ae   : > { %v2235_v34 = vmax.f32 %v2181_v17, %v2226_v33  ;;  %v2291_v16 = vsel %vm2253_vm5, %v2285_v27, %v2290_v12  ;;  %2378 = vrot.lane.b32.xlu1 %v4893_v43, %s3107_s21  ;;  %v2415_v27 = vld [vmem:[%s3190_s12 + $0x68] sm:$0xc0]  ;;  %v2438_v12 = vld [vmem:[#allocation2 + $0x78] sm:$0xff]  ;;  %v4979_v61 = vrot.slane %v2437_v38, 7 }
 0x2af   : > { %2298 = vrot.lane.b32.xlu0 %v2291_v16, %s3108_s28  ;;  %v2313_v45 = vmul.f32 %v2238_v48, %v5598_v13  ;;  %v4953_v44 = vrot.slane %v2415_v27, 7  ;;  %v4975_v17 = vsel %vm840_vm1, %v2421_v46, %v2423_v54  ;;  %v2444_v33 = vrot.slane %v2438_v12, 7  ;;  %v5002_v16 = vld [vmem:[%s3190_s12 + $0x80] sm:$0x7f]  ;;  %v5020_v48 = vld [vmem:[%s3190_s12 + $0x88] sm:$0x7f] }
 0x2b0   : > { %v2219_v49 = vpop.permute.xlu0 %2218  ;;  %v2310_v19 = vmul.f32 %v2235_v34, %v5598_v13  ;;  %v2225_v20 = vpop.permute.xlu1 %2224  ;;  %v4992_v34 = vld [vmem:[%s3190_s12 + $0x60] sm:$0x80]  ;;  %v2740_v27 = vmul.f32 %v4604_v9, %v5615_v41 }
 0x2b1   : > { %v2227_v59 = vsel %vm930_vm3, %v2219_v49, %v2221_v60  ;;  %v2326_v26 = vrot.slane %v2313_v45, 5  ;;  %v2240_v7 = vmax.f32 %v2186_v58, %v2225_v20  ;;  %v4968_v37 = vsel %vm840_vm1, %v4953_v44, %v2421_v46  ;;  %v2579_v49 = vld [vmem:[#allocation2 + $0x68] sm:$0x80]  ;;  %v1841_v54 = vld [vmem:[#allocation5 + $0x26] sm:$0xff] }
 0x2b2   : > { %v2237_v21 = vmax.f32 %v2183_v28, %v2227_v59  ;;  %2402 = vrot.lane.b32.xlu1 %v4918_v32, %s3107_s21  ;;  %v2322_v57 = vrot.slane %v2310_v19, 5  ;;  %v4989_v56 = vsel %vm840_vm1, %v4979_v61, %v2444_v33  ;;  %v4999_v60 = vsel %vm840_vm1, %v2444_v33, %v2446_v42  ;;  %v2532_v28 = vld [vmem:[#allocation2 + $0x80] sm:$0x7f]  ;;  %v2580_v59 = vld [vmem:[#allocation2 + $0x88] sm:$0x7f] }
 0x2b3   : > { %2376 = vrot.lane.b32.xlu0 %v4910_v22, %s3107_s21  ;;  %v2315_v4 = vmul.f32 %v2240_v7, %v5598_v13  ;;  %v4931_v1 = vsel %vm2253_vm5, %v2325_v51, %v2326_v26  ;;  %v5038_v45 = vrot.slane %v4604_v9, 1  ;;  %v5044_v58 = vrot.slane %v5607_v11, 1  ;;  %v5609_v19 = vld [vmem:[#allocation13_spill] sm:$0xff] }
 0x2b4   : > { %v2312_v29 = vmul.f32 %v2237_v21, %v5598_v13  ;;  %v2223_v10 = vpop.permute.xlu0 %2222  ;;  %5602 = vst [vmem:[#allocation12_spill] sm:$0xff] %v4931_v1  ;;  %v2267_v36 = vpop.permute.xlu1 %2266  ;;  %v5050_v21 = vrot.slane %v5609_v19, 1  ;;  %v2742_v33 = vmul.f32 %v5002_v16, %v5615_v41 }
 0x2b5   : > { %v2228_v0 = vsel %vm930_vm3, %v2223_v10, %v2225_v20  ;;  %v2330_v63 = vrot.slane %v2315_v4, 5  ;;  %v5058_v20 = vsel %vm1073_vm2, %v5038_v45, %v5044_v58  ;;  %v2739_v4 = vmul.f32 %v5009_v31, %v5615_v41 }
 0x2b6   : > { %v2323_v18 = vrot.slane %v2312_v29, 5  ;;  %v2239_v23 = vmax.f32 %v2185_v8, %v2228_v0  ;;  %2460 = vrot.lane.b32.xlu1 %v4772_v5, %s3108_s28  ;;  %5610 = vst [vmem:[#allocation15_spill] sm:$0xff] %v5050_v21  ;;  %v5063_v51 = vsel %vm1073_vm2, %v5047_v2, %v5050_v21  ;;  %v2667_v8 = vld [vmem:[#allocation2 + $0x88] sm:$0xff]  ;;  %v5098_v29 = vrot.slane %v2438_v12, 1 }
 0x2b7   : > { %2400 = vrot.lane.b32.xlu0 %v4897_v53, %s3107_s21  ;;  %v4949_v39 = vsel %vm2253_vm5, %v2326_v26, %v2330_v63  ;;  %5611 = vst [vmem:[#allocation26_spill] sm:$0xff] %v5063_v51  ;;  %v5612_v26 = vld [vmem:[#allocation31_spill] sm:$0xff]  ;;  %v5102_v10 = vrot.slane %v2667_v8, 1  ;;  %v2741_v0 = vmul.f32 %v5605_v3, %v5615_v41 }
 0x2b8   : > { %v2314_v50 = vmul.f32 %v2239_v23, %v5598_v13  ;;  %v2265_v24 = vpop.permute.xlu0 %2264  ;;  %v4943_v14 = vsel %vm2253_vm5, %v2322_v57, %v2323_v18  ;;  %5604 = vst [vmem:[#allocation14_spill] sm:$0xff] %v4949_v39  ;;  %v5081_v7 = vrot.slane %v5612_v26, 1  ;;  %5613 = vst [vmem:[#allocation34_spill] sm:$0xff] %v5098_v29  ;;  %v1835_v57 = vld [vmem:[#allocation3 + $0x24] sm:$0xff]  ;;  %v5112_v23 = vpop.permute.xlu1 %2270  ;;  %v2756_v26 = vrot.slane %v2742_v33, 7 }
 0x2b9   : > { %5603 = vst [vmem:[#allocation19_spill] sm:$0xff] %v4943_v14  ;;  %v4946_v25 = vsel %vm930_vm3, %v2265_v24, %v2267_v36  ;;  %5614 = vst [vmem:[#allocation33_spill] sm:$0xff] %v5102_v10  ;;  %v5117_v63 = vsel %vm1073_vm2, %v5098_v29, %v5102_v10  ;;  %v2743_v36 = vmul.f32 %v5020_v48, %v5615_v41  ;;  %v2753_v24 = vrot.slane %v2739_v4, 7  ;;  %v3076_v39 = vld [vmem:[%s3190_s12 + $0x70] sm:$0xff] }
 0x2ba   : > { %v2328_v35 = vrot.slane %v2314_v50, 5  ;;  %2464 = vrot.lane.b32.xlu1 %v4910_v22, %s3108_s28  ;;  %5616 = vst [vmem:[#allocation10_spill] sm:$0xff] %v5112_v23  ;;  %5617 = vst [vmem:[#allocation28_spill] sm:$0xff] %v5117_v63  ;;  %v2738_v50 = vmul.f32 %v4992_v34, %v5615_v41 }
 0x2bb   : > { %2404 = vrot.lane.b32.xlu0 %v4939_v52, %s3107_s21 }
 0x2bc   : > { %v4959_v55 = vsel %vm2253_vm5, %v2323_v18, %v2328_v35  ;;  %v1837_v18 = vld [vmem:[#allocation4 + $0x25] sm:$0xff]  ;;  %v2754_v35 = vrot.slane %v2741_v0, 7  ;;  %v5127_v15 = vpop.permute.xlu0 %2268  ;;  %v2750_v38 = vrot.slane %v2738_v50, 7 }
 0x2bd   : > { %5606 = vst [vmem:[#allocation22_spill] sm:$0xff] %v4959_v55  ;;  %v1839_v46 = vadd.f32 %v1837_v18, %v1835_v57  ;;  %5618 = vst [vmem:[#allocation32_spill] sm:$0xff] %v5127_v15 }
 0x2be   : > { %2468 = vrot.lane.b32.xlu1 %v4893_v43, %s3108_s28  ;;  %v2755_v42 = vsel %vm840_vm1, %v2753_v24, %v2754_v35 }
 0x2bf   : > { %2462 = vrot.lane.b32.xlu0 %v4953_v44, %s3108_s28  ;;  %v1843_v11 = vadd.f32 %v1841_v54, %v1839_v46 }
 0x2c1   : > { %v2276_v50 = vadd.f32 %v4946_v25, %v1843_v11 }
 0x2c2   : > { %2487 = vrot.lane.b32.xlu1 %v4897_v53, %s3108_s28 }
 0x2c3   : > { %2466 = vrot.lane.b32.xlu0 %v4968_v37, %s3108_s28 }
 0x2c6   : > { %2491 = vrot.lane.b32.xlu1 %v4918_v32, %s3108_s28 }
 0x2c7   : > { %2470 = vrot.lane.b32.xlu0 %v4975_v17, %s3108_s28 }
 0x2ca   : > { %2495 = vrot.lane.b32.xlu1 %v4939_v52, %s3108_s28 }
 0x2cb   : > { %2489 = vrot.lane.b32.xlu0 %v4979_v61, %s3108_s28 }
 0x2ce   : > { %2516 = vrot.lane.b32.xlu1 %v4992_v34, %s3107_s21 }
 0x2cf   : > { %2493 = vrot.lane.b32.xlu0 %v4989_v56, %s3108_s28 }
 0x2d2   : > { %2520 = vrot.lane.b32.xlu1 %v5002_v16, %s3107_s21 }
 0x2d3   : > { %2497 = vrot.lane.b32.xlu0 %v4999_v60, %s3108_s28 }
 0x2d6   : > { %2554 = vrot.lane.b32.xlu1 %v5009_v31, %s3108_s28 }
 0x2d7   : > { %2518 = vrot.lane.b32.xlu0 %v4604_v9, %s3107_s21 }
 0x2da   : > { %2558 = vrot.lane.b32.xlu1 %v5605_v3, %s3108_s28 }
 0x2db   : > { %2552 = vrot.lane.b32.xlu0 %v4992_v34, %s3108_s28 }
 0x2de   : > { %2562 = vrot.lane.b32.xlu1 %v5020_v48, %s3108_s28 }
 0x2df   : > { %2556 = vrot.lane.b32.xlu0 %v4604_v9, %s3108_s28 }
 0x2e2   : > { %2537 = vrot.lane.b32.xlu1 %v5597_v6, %s3107_s21 }
 0x2e3   : > { %2560 = vrot.lane.b32.xlu0 %v5002_v16, %s3108_s28 }
 0x2e6   : > { %2583 = vrot.lane.b32.xlu1 %v2531_v40, %s3108_s28 }
 0x2e7   : > { %2535 = vrot.lane.b32.xlu0 %v2531_v40, %s3107_s21  ;;  %v2758_v40 = vrot.slane %v2743_v36, 7 }
 0x2e9   : > { %v2759_v4 = vsel %vm840_vm1, %v2754_v35, %v2758_v40 }
 0x2ea   : > { %2587 = vrot.lane.b32.xlu1 %v5597_v6, %s3108_s28  ;;  %v5076_v6 = vrot.slane %v5605_v3, 1 }
 0x2eb   : > { %2539 = vrot.lane.b32.xlu0 %v2532_v28, %s3107_s21 }
 0x2ec   : > { %v5090_v62 = vsel %vm1073_vm2, %v5076_v6, %v5081_v7 }
 0x2ee   : > { %2591 = vrot.lane.b32.xlu1 %v2532_v28, %s3108_s28  ;;  %v727_v28 = vpop.f32.mrb[23].mxu1 }
 0x2ef   : > { %2585 = vrot.lane.b32.xlu0 %v2579_v49, %s3108_s28 }
 0x2f2   : > { %2615 = vrot.lane.b32.xlu1 %v5038_v45, %s3107_s21 }
 0x2f3   : > { %2589 = vrot.lane.b32.xlu0 %v2438_v12, %s3108_s28  ;;  %v2751_v12 = vrot.slane %v2740_v27, 7  ;;  %v5148_v27 = vld [vmem:[%s5388_s3] sm:$0xff] }
 0x2f4   : > { %5621 = vst [vmem:[#allocation30_spill] sm:$0xff] %v5148_v27 }
 0x2f5   : > { %v2757_v24 = vsel %vm840_vm1, %v2751_v12, %v2756_v26 }
 0x2f6   : > { %2619 = vrot.lane.b32.xlu1 %v5044_v58, %s3107_s21 }
 0x2f7   : > { %2593 = vrot.lane.b32.xlu0 %v2580_v59, %s3108_s28  ;;  %v5136_v59 = vpop.f32.mrb[24].mxu1 }
 0x2f8   : > { %5620 = vst [vmem:[#allocation9_spill] sm:$0xff] %v5136_v59  ;;  %v732_v19 = vpop.f32.mrb[25].mxu1 }
 0x2f9   : > { %v733_v8 = vpop.f32.mrb[26].mxu1 }
 0x2fa   : > { %2637 = vrot.lane.b32.xlu1 %v5063_v51, %s3107_s21  ;;  %v734_v0 = vpop.f32.mrb[27].mxu1 }
 0x2fb   : > { %2617 = vrot.lane.b32.xlu0 %v5058_v20, %s3107_s21 }
 0x2fe   : > { %2684 = vrot.lane.b32.xlu1 %v5038_v45, %s3108_s28 }
 0x2ff   : > { %2635 = vrot.lane.b32.xlu0 %v5047_v2, %s3107_s21 }
 0x302   : > { %2688 = vrot.lane.b32.xlu1 %v5058_v20, %s3108_s28 }
 0x303   : > { %2639 = vrot.lane.b32.xlu0 %v5050_v21, %s3107_s21 }
 0x306   : > { %2692 = vrot.lane.b32.xlu1 %v5044_v58, %s3108_s28 }
 0x307   : > { %2686 = vrot.lane.b32.xlu0 %v5076_v6, %s3108_s28 }
 0x30a   : > { %2711 = vrot.lane.b32.xlu1 %v5047_v2, %s3108_s28 }
 0x30b   : > { %2690 = vrot.lane.b32.xlu0 %v5090_v62, %s3108_s28 }
 0x30e   : > { %2715 = vrot.lane.b32.xlu1 %v5063_v51, %s3108_s28 }
 0x30f   : > { %2694 = vrot.lane.b32.xlu0 %v5081_v7, %s3108_s28 }
 0x312   : > { %2719 = vrot.lane.b32.xlu1 %v5050_v21, %s3108_s28 }
 0x313   : > { %2713 = vrot.lane.b32.xlu0 %v5098_v29, %s3108_s28 }
 0x316   : > { %2300 = vrot.lane.b32.xlu1 %v4884_v47, %s3108_s28  ;;  %v2752_v47 = vsel %vm840_vm1, %v2750_v38, %v2751_v12 }
 0x317   : > { %2717 = vrot.lane.b32.xlu0 %v5117_v63, %s3108_s28 }
 0x318   : > { %v2297_v49 = vpop.permute.xlu1 %2296 }
 0x31a   : > { %2762 = vrot.lane.b32.xlu1 %v2755_v42, %s3108_s28 }
 0x31b   : > { %2721 = vrot.lane.b32.xlu0 %v5102_v10, %s3108_s28 }
 0x31c   : > { %v2375_v18 = vpop.permute.xlu1 %2374 }
 0x31d   : > { %v2295_v41 = vpop.permute.xlu0 %2294  ;;  %v2384_v40 = vadd.f32 %v2375_v18, %v5009_v31  ;;  %v2383_v28 = vadd.f32 %v2375_v18, %v4992_v34 }
 0x31e   : > { %v2302_v57 = vsel %vm930_vm3, %v2295_v41, %v2297_v49  ;;  %2766 = vrot.lane.b32.xlu1 %v2759_v4, %s3108_s28 }
 0x31f   : > { %v2306_v36 = vmul.f32 %v5148_v27, %v2302_v57  ;;  %2760 = vrot.lane.b32.xlu0 %v2752_v47, %s3108_s28  ;;  %v2432_v12 = vadd.f32 %v4953_v44, %v2384_v40  ;;  %v2431_v19 = vadd.f32 %v2383_v28, %v4772_v5 }
 0x320   : > { %v5158_v54 = vpop.permute.xlu1 %2378 }
 0x321   : > { %v5154_v35 = vpop.permute.xlu0 %2298  ;;  %v5156_v46 = vadd.f32 %v2306_v36, %v2276_v50  ;;  %v2388_v1 = vadd.f32 %v5158_v54, %v5020_v48  ;;  %v2387_v63 = vadd.f32 %v5158_v54, %v5002_v16 }
 0x322   : > { %5622 = vst [vmem:[#allocation20_spill] sm:$0xff] %v5154_v35 }
 0x323   : > { %5623 = vst [vmem:[#allocation24_spill] sm:$0xff] %v5156_v46  ;;  %2764 = vrot.lane.b32.xlu0 %v2757_v24, %s3108_s28 }
 0x324   : > { %v2403_v38 = vpop.permute.xlu1 %2402 }
 0x325   : > { %v5161_v25 = vpop.permute.xlu0 %2376  ;;  %v2412_v5 = vmax.f32 %v5605_v3, %v2403_v38 }
 0x326   : > { %v2386_v55 = vadd.f32 %v5161_v25, %v5605_v3  ;;  %v2385_v21 = vadd.f32 %v3076_v39, %v5161_v25 }
 0x328   : > { %v2461_v42 = vpop.permute.xlu1 %2460  ;;  %v2434_v13 = vadd.f32 %v4968_v37, %v2386_v55  ;;  %v2433_v2 = vadd.f32 %v2385_v21, %v4910_v22 }
 0x329   : > { %v2401_v33 = vpop.permute.xlu0 %2400 }
 0x32a   : > { %v2410_v18 = vmax.f32 %v5009_v31, %v2401_v33  ;;  %v2409_v50 = vmax.f32 %v4992_v34, %v2401_v33 }
 0x32c   : > { %v5165_v11 = vpop.permute.xlu1 %2464  ;;  %v5182_v24 = vmax.f32 %v2410_v18, %v4979_v61  ;;  %v5186_v40 = vmax.f32 %v2409_v50, %v4897_v53 }
 0x32d   : > { %v2405_v49 = vpop.permute.xlu0 %2404 }
 0x32e   : > { %v2414_v61 = vmax.f32 %v5020_v48, %v2405_v49  ;;  %v2436_v48 = vadd.f32 %v4975_v17, %v2388_v1 }
 0x330   : > { %v5172_v41 = vpop.permute.xlu1 %2468 }
 0x331   : > { %v2463_v47 = vpop.permute.xlu0 %2462 }
 0x332   : > { %v2472_v26 = vsel %vm930_vm3, %v2461_v42, %v2463_v47  ;;  %v5170_v8 = vadd.f32 %v2463_v47, %v2432_v12  ;;  %v2411_v42 = vmax.f32 %v4604_v9, %v2403_v38  ;;  %v5200_v9 = vmax.f32 %v2412_v5, %v4989_v56 }
 0x333   : > { %v5174_v4 = vadd.f32 %v2472_v26, %v2431_v19  ;;  %v2413_v38 = vmax.f32 %v5002_v16, %v2405_v49  ;;  %v5217_v56 = vmax.f32 %v2414_v61, %v4999_v60 }
 0x334   : > { %v2488_v57 = vpop.permute.xlu1 %2487  ;;  %v5203_v53 = vmax.f32 %v2411_v42, %v4918_v32 }
 0x335   : > { %v2467_v0 = vpop.permute.xlu0 %2466  ;;  %v5220_v32 = vmax.f32 %v2413_v38, %v4939_v52 }
 0x336   : > { %v2473_v51 = vsel %vm930_vm3, %v5165_v11, %v2467_v0 }
 0x337   : > { %5624 = vst [vmem:[#allocation11_spill] sm:$0xff] %v5220_v32  ;;  %v2483_v29 = vadd.f32 %v2473_v51, %v2433_v2 }
 0x338   : > { %v2492_v44 = vpop.permute.xlu1 %2491 }
 0x339   : > { %v5178_v36 = vpop.permute.xlu0 %2470 }
 0x33a   : > { %v2474_v37 = vsel %vm930_vm3, %v5172_v41, %v5178_v36  ;;  %v2486_v2 = vadd.f32 %v5178_v36, %v2436_v48 }
 0x33c   : > { %v2496_v33 = vpop.permute.xlu1 %2495 }
 0x33d   : > { %v5188_v28 = vpop.permute.xlu0 %2489 }
 0x33e   : > { %v5192_v31 = vsel %vm930_vm3, %v2488_v57, %v5188_v28  ;;  %v5626_v36 = vmax.f32 %v5182_v24, %v5188_v28 }
 0x340   : > { %v2517_v57 = vpop.permute.xlu1 %2516 }
 0x341   : > { %v5206_v19 = vpop.permute.xlu0 %2493  ;;  %v2526_v39 = vadd.f32 %v2517_v57, %v5170_v8  ;;  %v2525_v55 = vadd.f32 %v2517_v57, %v5174_v4 }
 0x342   : > { %v5210_v47 = vsel %vm930_vm3, %v2492_v44, %v5206_v19 }
 0x344   : > { %v2521_v5 = vpop.permute.xlu1 %2520 }
 0x345   : > { %v5222_v49 = vpop.permute.xlu0 %2497 }
 0x346   : > { %v5226_v50 = vsel %vm930_vm3, %v2496_v33, %v5222_v49 }
 0x347   : > { %5625 = vst [vmem:[#allocation21_spill] sm:$0xff] %v5226_v50  ;;  %v2484_v50 = vadd.f32 %v2467_v0, %v2434_v13  ;;  %v2435_v13 = vadd.f32 %v2387_v63, %v4893_v43 }
 0x348   : > { %v2555_v18 = vpop.permute.xlu1 %2554 }
 0x349   : > { %v2519_v26 = vpop.permute.xlu0 %2518  ;;  %v2574_v16 = vadd.f32 %v2555_v18, %v2526_v39  ;;  %v2485_v4 = vadd.f32 %v2474_v37, %v2435_v13 }
 0x34a   : > { %v2528_v11 = vadd.f32 %v2519_v26, %v2484_v50  ;;  %v2527_v21 = vadd.f32 %v2519_v26, %v2483_v29 }
 0x34b   : > { %v2529_v50 = vadd.f32 %v2521_v5, %v2485_v4 }
 0x34c   : > { %v2559_v61 = vpop.permute.xlu1 %2558 }
 0x34d   : > { %v2553_v60 = vpop.permute.xlu0 %2552  ;;  %v2576_v51 = vadd.f32 %v2559_v61, %v2528_v11 }
 0x34e   : > { %v2564_v25 = vsel %vm930_vm3, %v2553_v60, %v2555_v18  ;;  %v2530_v60 = vadd.f32 %v2521_v5, %v2486_v2 }
 0x34f   : > { %v2573_v54 = vadd.f32 %v2564_v25, %v2525_v55 }
 0x350   : > { %v2563_v38 = vpop.permute.xlu1 %2562 }
 0x351   : > { %v2557_v52 = vpop.permute.xlu0 %2556  ;;  %v2578_v43 = vadd.f32 %v2563_v38, %v2530_v60 }
 0x352   : > { %v2565_v22 = vsel %vm930_vm3, %v2557_v52, %v2559_v61 }
 0x353   : > { %v2575_v0 = vadd.f32 %v2565_v22, %v2527_v21 }
 0x354   : > { %v5232_v34 = vpop.permute.xlu1 %2537 }
 0x355   : > { %v2561_v12 = vpop.permute.xlu0 %2560 }
 0x356   : > { %v2566_v41 = vsel %vm930_vm3, %v2561_v12, %v2563_v38 }
 0x357   : > { %v2577_v26 = vadd.f32 %v2566_v41, %v2529_v50 }
 0x358   : > { %v2584_v33 = vpop.permute.xlu1 %2583 }
 0x359   : > { %v2536_v59 = vpop.permute.xlu0 %2535 }
 0x35a   : > { %v2545_v61 = vmax.f32 %v5626_v36, %v2536_v59 }
 0x35c   : > { %v5236_v46 = vpop.permute.xlu1 %2587 }
 0x35d   : > { %v5234_v27 = vpop.permute.xlu0 %2539 }
 0x360   : > { %v5240_v30 = vpop.permute.xlu1 %2591 }
 0x361   : > { %v5238_v44 = vpop.permute.xlu0 %2585 }
 0x362   : > { %v2595_v12 = vsel %vm930_vm3, %v2584_v33, %v5238_v44  ;;  %v2605_v33 = vmax.f32 %v2545_v61, %v5238_v44 }
 0x364   : > { %v2616_v15 = vpop.permute.xlu1 %2615 }
 0x365   : > { %v5242_v42 = vpop.permute.xlu0 %2589  ;;  %v2625_v1 = vadd.f32 %v2616_v15, %v2574_v16  ;;  %v2624_v57 = vadd.f32 %v2616_v15, %v2573_v54 }
 0x367   : > { %v2662_v29 = vadd.f32 %v5076_v6, %v2625_v1  ;;  %v2661_v25 = vadd.f32 %v2624_v57, %v5038_v45  ;;  %v5627_v6 = vmax.f32 %v5186_v40, %v5192_v31  ;;  %v5628_v45 = vmax.f32 %v5203_v53, %v5210_v47  ;;  %v5631_v57 = vld [vmem:[#allocation34_spill] sm:$0xff] }
 0x368   : > { %v2620_v35 = vpop.permute.xlu1 %2619  ;;  %v5630_v1 = vmax.f32 %v5217_v56, %v5222_v49  ;;  %v5632_v56 = vld [vmem:[#allocation11_spill] sm:$0xff]  ;;  %v5633_v49 = vld [vmem:[#allocation21_spill] sm:$0xff] }
 0x369   : > { %v5244_v23 = vpop.permute.xlu0 %2593  ;;  %v2629_v48 = vadd.f32 %v2620_v35, %v2578_v43  ;;  %v2544_v38 = vmax.f32 %v5627_v6, %v2536_v59  ;;  %v2546_v28 = vmax.f32 %v5628_v45, %v5232_v34  ;;  %v5634_v41 = vmax.f32 %v5632_v56, %v5633_v49 }
 0x36b   : > { %v2666_v47 = vadd.f32 %v5081_v7, %v2629_v48 }
 0x36c   : > { %v5250_v14 = vpop.permute.xlu1 %2637 }
 0x36d   : > { %v2618_v10 = vpop.permute.xlu0 %2617 }
 0x36e   : > { %v2627_v18 = vadd.f32 %v2618_v10, %v2576_v51  ;;  %v2626_v52 = vadd.f32 %v2618_v10, %v2575_v0 }
 0x370   : > { %v2685_v32 = vpop.permute.xlu1 %2684  ;;  %v2664_v10 = vadd.f32 %v5090_v62, %v2627_v18  ;;  %v2663_v55 = vadd.f32 %v2626_v52, %v5058_v20  ;;  %v5629_v62 = vmax.f32 %v5200_v9, %v5206_v19  ;;  %v2596_v20 = vsel %vm930_vm3, %v5236_v46, %v5242_v42  ;;  %v5635_v52 = vld [vmem:[#allocation23_spill] sm:$0xff] }
 0x371   : > { %v2636_v3 = vpop.permute.xlu0 %2635  ;;  %v2606_v7 = vmax.f32 %v2546_v28, %v2596_v20  ;;  %v2548_v18 = vmax.f32 %v5634_v41, %v5234_v27  ;;  %v5639_v28 = vld [vmem:[#allocation12_spill] sm:$0xff] }
 0x372   : > { %v2547_v59 = vmax.f32 %v5629_v62, %v5232_v34  ;;  %v2645_v31 = vmax.f32 %v2605_v33, %v2636_v3 }
 0x373   : > { %v2646_v50 = vmax.f32 %v2606_v7, %v5250_v14 }
 0x374   : > { %v2689_v17 = vpop.permute.xlu1 %2688  ;;  %v2607_v34 = vmax.f32 %v2547_v59, %v5242_v42  ;;  %v2597_v42 = vsel %vm930_vm3, %v5240_v30, %v5244_v23  ;;  %v2679_v60 = vmax.f32 %v2645_v31, %v5631_v57  ;;  %v1836_v57 = vld [vmem:[#allocation3 + $0x2c] sm:$0xff] }
 0x375   : > { %v5269_v8 = vpop.permute.xlu0 %2639  ;;  %v2608_v61 = vmax.f32 %v2548_v18, %v2597_v42  ;;  %v1842_v18 = vld [vmem:[#allocation5 + $0x2e] sm:$0xff] }
 0x378   : > { %v2693_v15 = vpop.permute.xlu1 %2692 }
 0x379   : > { %v2687_v39 = vpop.permute.xlu0 %2686 }
 0x37a   : > { %v2696_v63 = vsel %vm930_vm3, %v2685_v32, %v2687_v39  ;;  %v2706_v5 = vadd.f32 %v2687_v39, %v2662_v29  ;;  %v2628_v32 = vadd.f32 %v2620_v35, %v2577_v26  ;;  %v2604_v35 = vmax.f32 %v2544_v38, %v2595_v12  ;;  %v5636_v12 = vld [vmem:[#allocation28_spill] sm:$0xff]  ;;  %v5638_v38 = vld [vmem:[#allocation35_spill] sm:$0xff] }
 0x37b   : > { %v2705_v37 = vadd.f32 %v2696_v63, %v2661_v25 }
 0x37c   : > { %v2783_v22 = vrot.slane %v2706_v5, 7  ;;  %v2665_v44 = vadd.f32 %v2628_v32, %v5044_v58  ;;  %v2644_v13 = vmax.f32 %v2604_v35, %v2636_v3  ;;  %v2712_v2 = vpop.permute.xlu1 %2711  ;;  %v2647_v3 = vmax.f32 %v2607_v34, %v5250_v14  ;;  %v5637_v5 = vld [vmem:[#allocation26_spill] sm:$0xff] }
 0x37d   : > { %v2691_v24 = vpop.permute.xlu0 %2690  ;;  %v2780_v21 = vrot.slane %v2705_v37, 7 }
 0x37e   : > { %v2697_v11 = vsel %vm930_vm3, %v2689_v17, %v2691_v24  ;;  %v2708_v16 = vadd.f32 %v2691_v24, %v2664_v10  ;;  %v2549_v17 = vmax.f32 %v5630_v1, %v5234_v27  ;;  %v2678_v39 = vmax.f32 %v2644_v13, %v5635_v52  ;;  %v2350_v52 = vld [vmem:[#allocation4 + $0x37] sm:$0xff] }
 0x37f   : > { %v2707_v40 = vadd.f32 %v2697_v11, %v2663_v55  ;;  %v2681_v48 = vmax.f32 %v2647_v3, %v5636_v12  ;;  %v2648_v10 = vmax.f32 %v2608_v61, %v5269_v8  ;;  %v5640_v11 = vld [vmem:[#allocation19_spill] sm:$0xff]  ;;  %v5647_v61 = vld [vmem:[#allocation32_spill] sm:$0xff]  ;;  %v3077_v12 = vld [vmem:[%s5388_s3 + $0x8] sm:$0xff] }
 0x380   : > { %v2784_v53 = vrot.slane %v2708_v16, 7  ;;  %v2609_v30 = vmax.f32 %v2549_v17, %v5244_v23  ;;  %v2716_v25 = vpop.permute.xlu1 %2715  ;;  %v2680_v23 = vmax.f32 %v2646_v50, %v5637_v5  ;;  %v5641_v16 = vld [vmem:[#allocation33_spill] sm:$0xff] }
 0x381   : > { %v2781_v54 = vrot.slane %v2707_v40, 7  ;;  %v2695_v51 = vpop.permute.xlu0 %2694  ;;  %v2348_v50 = vld [vmem:[#allocation3 + $0x36] sm:$0xff] }
 0x382   : > { %v2698_v9 = vsel %vm930_vm3, %v2693_v15, %v2695_v51  ;;  %v2710_v19 = vadd.f32 %v2695_v51, %v2666_v47  ;;  %v2785_v46 = vsel %vm840_vm1, %v2783_v22, %v2784_v53  ;;  %v2649_v14 = vmax.f32 %v2609_v30, %v5269_v8  ;;  %v5642_v8 = vld [vmem:[#allocation15_spill] sm:$0xff]  ;;  %v5644_v51 = vld [vmem:[#allocation22_spill] sm:$0xff] }
 0x383   : > { %v2709_v4 = vadd.f32 %v2698_v9, %v2665_v44  ;;  %2792 = vrot.lane.b32.xlu1 %v2785_v46, %s3108_s28  ;;  %v2782_v58 = vsel %vm840_vm1, %v2780_v21, %v2781_v54  ;;  %v2682_v59 = vmax.f32 %v2648_v10, %v5642_v8 }
 0x384   : > { %v2788_v0 = vrot.slane %v2710_v19, 7  ;;  %2790 = vrot.lane.b32.xlu0 %v2782_v58, %s3108_s28  ;;  %v2683_v62 = vmax.f32 %v2649_v14, %v5641_v16  ;;  %v2720_v35 = vpop.permute.xlu1 %2719 }
 0x385   : > { %v2786_v43 = vrot.slane %v2709_v4, 7  ;;  %v2714_v29 = vpop.permute.xlu0 %2713 }
 0x386   : > { %v2723_v63 = vsel %vm930_vm3, %v2712_v2, %v2714_v29  ;;  %v2733_v26 = vmax.f32 %v2679_v60, %v2714_v29  ;;  %v2789_v36 = vsel %vm840_vm1, %v2784_v53, %v2788_v0  ;;  %v1838_v60 = vld [vmem:[#allocation4 + $0x2d] sm:$0xff] }
 0x387   : > { %v2732_v15 = vmax.f32 %v2678_v39, %v2723_v63  ;;  %2796 = vrot.lane.b32.xlu1 %v2789_v36, %s3108_s28  ;;  %v2787_v27 = vsel %vm840_vm1, %v2781_v54, %v2786_v43  ;;  %v5643_v54 = vld [vmem:[#allocation14_spill] sm:$0xff]  ;;  %v1840_v41 = vadd.f32 %v1838_v60, %v1836_v57  ;;  %v5645_v29 = vld [vmem:[#allocation20_spill] sm:$0xff] }
 0x388   : > { %2794 = vrot.lane.b32.xlu0 %v2787_v27, %s3108_s28  ;;  %v2807_v32 = vmul.f32 %v2733_v26, %v5638_v38  ;;  %v2301_v4 = vpop.permute.xlu1 %2300  ;;  %v2352_v26 = vadd.f32 %v2350_v52, %v2348_v50  ;;  %v5646_v36 = vld [vmem:[#allocation10_spill] sm:$0xff] }
 0x389   : > { %v2718_v6 = vpop.permute.xlu0 %2717  ;;  %v2806_v24 = vmul.f32 %v2732_v15, %v5638_v38  ;;  %v2303_v30 = vsel %vm930_vm3, %v5645_v29, %v2301_v4  ;;  %v1844_v63 = vadd.f32 %v1842_v18, %v1840_v41  ;;  %v2349_v15 = vld [vmem:[#allocation3 + $0x3e] sm:$0xff]  ;;  %v2351_v27 = vld [vmem:[#allocation4 + $0x3f] sm:$0xff] }
 0x38a   : > { %v2724_v55 = vsel %vm930_vm3, %v2716_v25, %v2718_v6  ;;  %v2735_v37 = vmax.f32 %v2681_v48, %v2718_v6  ;;  %v2821_v31 = vrot.slane %v2807_v32, 7  ;;  %v2273_v25 = vsel %vm930_vm3, %v5647_v61, %v5646_v36 }
 0x38b   : > { %v2734_v45 = vmax.f32 %v2680_v23, %v2724_v55  ;;  %2334 = vrot.lane.b32.xlu1 %v5639_v28, %s3108_s28  ;;  %v2818_v44 = vrot.slane %v2806_v24, 7  ;;  %v2307_v48 = vmul.f32 %v3077_v12, %v2303_v30  ;;  %v2277_v6 = vadd.f32 %v2273_v25, %v1844_v63 }
 0x38c   : > { %v2809_v33 = vmul.f32 %v2735_v37, %v5638_v38  ;;  %2332 = vrot.lane.b32.xlu0 %v5640_v11, %s3108_s28  ;;  %v2763_v58 = vpop.permute.xlu1 %2762  ;;  %v2353_v55 = vadd.f32 %v2351_v27, %v2349_v15  ;;  %v5649_v37 = vld [vmem:[#allocation24_spill] sm:$0xff] }
 0x38d   : > { %v2808_v20 = vmul.f32 %v2734_v45, %v5638_v38  ;;  %v2722_v40 = vpop.permute.xlu0 %2721 }
 0x38e   : > { %v2822_v22 = vrot.slane %v2809_v33, 7  ;;  %v2725_v53 = vsel %vm930_vm3, %v2720_v35, %v2722_v40  ;;  %v2737_v47 = vmax.f32 %v2683_v62, %v2722_v40  ;;  %v5650_v33 = vld [vmem:[#allocation30_spill] sm:$0xff]  ;;  %v2309_v62 = vadd.f32 %v2307_v48, %v2277_v6 }
 0x38f   : > { %v2819_v13 = vrot.slane %v2808_v20, 7  ;;  %v2736_v21 = vmax.f32 %v2682_v59, %v2725_v53  ;;  %2338 = vrot.lane.b32.xlu1 %v5643_v54, %s3108_s28  ;;  %v5651_v20 = vld [vmem:[#allocation9_spill] sm:$0xff] }
 0x390   : > { %v2811_v2 = vmul.f32 %v2737_v47, %v5638_v38  ;;  %2336 = vrot.lane.b32.xlu0 %v5644_v51, %s3108_s28  ;;  %v2823_v34 = vsel %vm840_vm1, %v2821_v31, %v2822_v22  ;;  %v2767_v3 = vpop.permute.xlu1 %2766  ;;  %v2357_v40 = vadd.f32 %v2353_v55, %v5651_v20 }
 0x391   : > { %v2810_v9 = vmul.f32 %v2736_v21, %v5638_v38  ;;  %v2820_v19 = vsel %vm840_vm1, %v2818_v44, %v2819_v13  ;;  %v2761_v42 = vpop.permute.xlu0 %2760  ;;  %v5648_v38 = vld [vmem:[#allocation16_spill] sm:$0xff] }
 0x392   : > { %v2826_v46 = vrot.slane %v2811_v2, 7  ;;  %v2356_v32 = vadd.f32 %v2352_v26, %v5648_v38  ;;  %v2768_v45 = vsel %vm930_vm3, %v2761_v42, %v2763_v58 }
 0x393   : > { %v2824_v1 = vrot.slane %v2810_v9, 7  ;;  %2830 = vrot.lane.b32.xlu1 %v2823_v34, %s3108_s28 }
 0x394   : > { %2828 = vrot.lane.b32.xlu0 %v2820_v19, %s3108_s28  ;;  %v2827_v17 = vsel %vm840_vm1, %v2822_v22, %v2826_v46  ;;  %v2772_v35 = vadd.f32 %v2768_v45, %v2356_v32 }
 0x395   : > { %v2825_v7 = vsel %vm840_vm1, %v2819_v13, %v2824_v1  ;;  %v2765_v0 = vpop.permute.xlu0 %2764 }
 0x396   : > { %v2769_v22 = vsel %vm930_vm3, %v2765_v0, %v2767_v3 }
 0x397   : > { %2834 = vrot.lane.b32.xlu1 %v2827_v17, %s3108_s28  ;;  %v2773_v54 = vadd.f32 %v2769_v22, %v2357_v40 }
 0x398   : > { %2832 = vrot.lane.b32.xlu0 %v2825_v7, %s3108_s28 }
 0x3f5   : > { %v2793_v56 = vpop.permute.xlu1 %2792 }
 0x3f6   : > { %v2791_v49 = vpop.permute.xlu0 %2790 }
 0x3f7   : > { %v2798_v23 = vsel %vm930_vm3, %v2791_v49, %v2793_v56 }
 0x3f8   : > { %v2802_v11 = vmul.f32 %v5650_v33, %v2798_v23 }
 0x3f9   : > { %v2797_v39 = vpop.permute.xlu1 %2796 }
 0x3fa   : > { %v2795_v43 = vpop.permute.xlu0 %2794  ;;  %v2804_v13 = vadd.f32 %v2802_v11, %v2772_v35 }
 0x3fb   : > { %v2799_v8 = vsel %vm930_vm3, %v2795_v43, %v2797_v39 }
 0x3fc   : > { %v2803_v47 = vmul.f32 %v3077_v12, %v2799_v8 }
 0x3fd   : > { %v2335_v14 = vpop.permute.xlu1 %2334 }
 0x3fe   : > { %v2333_v5 = vpop.permute.xlu0 %2332  ;;  %v2805_v9 = vadd.f32 %v2803_v47, %v2773_v54 }
 0x3ff   : > { %v2340_v10 = vsel %vm930_vm3, %v2333_v5, %v2335_v14 }
 0x400   : > { %v2344_v24 = vadd.f32 %v2340_v10, %v5649_v37 }
 0x401   : > { %v2339_v28 = vpop.permute.xlu1 %2338 }
 0x402   : > { %2346 = vst [vmem:[%s4225_s16 + $0x20] sm:$0xff] %v2344_v24  ;;  %v2337_v16 = vpop.permute.xlu0 %2336 }
 0x403   : > { %v2341_v59 = vsel %vm930_vm3, %v2337_v16, %v2339_v28 }
 0x404   : > { %v2345_v31 = vadd.f32 %v2341_v59, %v2309_v62 }
 0x405   : > { %v2831_v53 = vpop.permute.xlu1 %2830 }
 0x406   : > { %2347 = vst [vmem:[%s4225_s16 + $0x28] sm:$0xff] %v2345_v31  ;;  %v2829_v44 = vpop.permute.xlu0 %2828 }
 0x407   : > { %v2836_v21 = vsel %vm930_vm3, %v2829_v44, %v2831_v53 }
 0x408   : > { %v2840_v2 = vadd.f32 %v2836_v21, %v2804_v13 }
 0x409   : > { %v2835_v51 = vpop.permute.xlu1 %2834 }
 0x40a   : > { %2842 = vst [vmem:[%s4225_s16 + $0x30] sm:$0xff] %v2840_v2  ;;  %v2833_v34 = vpop.permute.xlu0 %2832 }
 0x40b   : > { %v2837_v19 = vsel %vm930_vm3, %v2833_v34, %v2835_v51 }
 0x40c   : > { %v2841_v46 = vadd.f32 %v2837_v19, %v2805_v9 }
 0x40e   : > { %2843 = vst [vmem:[%s4225_s16 + $0x38] sm:$0xff] %v2841_v46 }
 0x40f PF: > { %s16_s18 = sadd.s32 1, %s3103_s18  }
 0x410   : > { %p13_p1 = scmp.ge.s32.totalorder %s16_s18, 4  }
 0x412   :  { %15 = sbr.rel (!%p13_p1) target bundleno = 1 (0x1), region = 77 }
 0x419   :  { %2865 = vsyncpa [#allocation7], 1 }
 0x41a   :  { %2867 = vsyncpa [#allocation7 + $0x1], 1 }

// kernel: _mixed_op_impl.1
= control target key start
LH: loop header
LB: loop body
LE: loop exit
PB: predicated region body
PF: predicated region fallthrough
CT: control target
= control target key end

     0   :  { %10 = vsyncpa [#allocation7], 0  ;;  %s3139_s18 = smov 0   ;;  %s5385_s0 = inlined_call_operand.vmem [shape: f32[2], index: 0, kind: input, shape index: {}]   ;;  %s5386_s1 = inlined_call_operand.vmem [shape: f32[2,72,144], index: 1, kind: input, shape index: {}]   ;;  %s5387_s2 = inlined_call_operand.vmem [shape: f32[72,144], index: 2, kind: input, shape index: {}]   ;;  %s5388_s3 = inlined_call_operand.vmem [shape: f32[16,128], index: 3, kind: input, shape index: {}]   ;;  %s5389_s4 = inlined_call_operand.vmem [shape: bf16[3,144,128], index: 4, kind: input, shape index: {}]   ;;  %s5390_s5 = inlined_call_operand.vmem [shape: f32[2,64,128], index: 5, kind: output, shape index: {}]  }
   0x1 LB: > { %s3145_s19 = sadd.s32 4294967295, %s3103_s18   ;;  %p2913_p0 = scmp.ge.s32.totalorder %s3103_s18, 1  ;;  %s3103_s18 = sphi %s3139_s18, %s16_s18  }
   0x2   : > { %p157_p1 = scmp.lt.s32.totalorder %s3103_s18, 3  ;;  %s170_s22 = sshll.u32 %s5385_s0, 4  ;;  %s171_s22 = int_to_ptr.vmem [resolvable:$true] %s170_s22 }
   0x3   : > { %p3030_p3 = scmp.eq.s32.totalorder %s3145_s19, 0  ;;  %s3078_s24 = scalar_lea.vmem %s171_s22, 16 }
   0x4   : > { %p3152_p2 = pnand %p2913_p0, %p157_p1  ;;  %p3079_p6 = scmp.ne.s32.totalorder %s171_s22, %s3078_s24 }
   0x5   : > { %p3086_p10 = scmp.lt.s32.totalorder %s171_s22, %s171_s22  ;;  %p3087_p11 = scmp.lt.s32.totalorder %s3078_s24, %s3078_s24 }
   0x6   : > { %p3026_p4 = pneg %p3152_p2 }
   0x7   : > { %p3088_p12 = por %p3087_p11, %p3086_p10 }
   0x8   : > { %p3027_p5 = pnand %p3030_p3, %p3026_p4 }
   0xa   : > { %p3080_p7 = pneg %p3027_p5 }
   0xc   : > { %p3081_p8 = pnand %p3080_p7, %p3079_p6 }
   0xe   : > { %p3082_p9 = pneg %p3081_p8 }
  0x10   : > { %p3089_p13 = pnand %p3088_p12, %p3082_p9 }
  0x12   : > { %3092 = shalt.err (!%p3089_p13)
}
  0x13   : > { %s3105_s25 = smov [#allocation6]   ;;  %200 = sbr.rel (%p3152_p2) target bundleno = 1039 (0x40f), region = 40 }
  0x14   : > { %3029 = dma.vmem_to_smem (!%p3027_p5), %s171_s22, 16, %s3105_s25, [#allocation7]  }
  0x1a   : > { %3098 = dma.done.wait (%p3030_p3), [#allocation7], 16  }
  0x1b   : > { %3100 = vsyncadd (%p3030_p3), [#allocation7], 4294967280 }
  0x1c   : > { %206 = sfence }
  0x1d   : > { %v3044_v0 = vld [vmem:[%s5389_s4] sm:$0xff]   ;;  %v3106_v1 = vmov 0   ;;  %p229_p0 = scmp.lt.s32.totalorder %s3145_s19, 1  ;;  %v3045_v2 = vld [vmem:[%s5389_s4 + $0x8] sm:$0xff]   ;;  %v3046_v3 = vld [vmem:[%s5389_s4 + $0x10] sm:$0xff]   ;;  %vm340_vm0 = vcmask 130048  }
  0x1e   : > { %356 = vmatprep.subr.bf16.mxu0 %v3106_v1  ;;  %510 = vmatprep.subr.bf16.mxu1 %v3106_v1  ;;  %v763_v4 = vld [vmem:[%s5387_s2] sm:$0xff]  ;;  %v765_v5 = vld [vmem:[%s5387_s2 + $0x10] sm:$0xff]  ;;  %v3047_v13 = vld [vmem:[%s5389_s4 + $0x18] sm:$0xff]   ;;  %s3107_s21 = smov 8   ;;  %vm840_vm1 = vcmask 1040384   ;;  %s3108_s28 = smov 120  }
  0x1f   : > { %357 = vmatpush1.bf16.msra.mxu0 %v3044_v0  ;;  %s5653_s19 = smov (!%p229_p0, %s3145_s19), 1  ;;  %v764_v15 = vld [vmem:[%s5387_s2 + $0x8] sm:$0xff]  ;;  %v766_v20 = vld [vmem:[%s5387_s2 + $0x18] sm:$0xff]  ;;  %v3048_v23 = vld [vmem:[%s5389_s4 + $0x20] sm:$0xff]   ;;  %vm1073_vm2 = vcmask 1046528   ;;  %s817_s15 = sld [smem:[#allocation6]] }
  0x20   : > { %358 = vmatprep.subr.bf16.mxu0 %v3106_v1  ;;  %s3021_s30 = smul.u32 144, %s5653_s19  ;;  %v3053_v22 = vld [vmem:[%s5389_s4 + $0x48] sm:$0xff]   ;;  %v3055_v26 = vld [vmem:[%s5389_s4 + $0x50] sm:$0xff]   ;;  %v3057_v28 = vld [vmem:[%s5389_s4 + $0x58] sm:$0xff]   ;;  %s2999_s23 = sld [smem:[#allocation6 + $0x1]]  ;;  %vm930_vm3 = vcmask 982016  }
  0x21   : > { %511 = vmatpush1.bf16.msra.mxu1 %v3053_v22  ;;  %v3049_v27 = vld [vmem:[%s5389_s4 + $0x28] sm:$0xff]   ;;  %v3050_v30 = vld [vmem:[%s5389_s4 + $0x30] sm:$0xff]   ;;  %v767_v32 = vld [vmem:[%s5387_s2 + $0x20] sm:$0xff]  ;;  %vm1740_vm4 = vcmask 1044480   ;;  %s3002_s13 = sshll.u32 %s5653_s19, 6  ;;  %vm2253_vm5 = vcmask 1042432  }
  0x22   : > { %s3190_s12 = scalar_lea.vmem %s5386_s1, %s3021_s30  ;;  %512 = vmatprep.subr.bf16.mxu1 %v3106_v1  ;;  %v3059_v34 = vld [vmem:[%s5389_s4 + $0x60] sm:$0xff]   ;;  %v3051_v36 = vld [vmem:[%s5389_s4 + $0x38] sm:$0xff]   ;;  %v3061_v39 = vld [vmem:[%s5389_s4 + $0x68] sm:$0xff]   ;;  %s4225_s16 = scalar_lea.vmem %s5390_s5, %s3002_s13 }
  0x23   : > { %359 = vmatpush1.bf16.msra.mxu0 %v3045_v2  ;;  %v3197_v6 = vld [vmem:[%s3190_s12] sm:$0xff]  ;;  %v3200_v7 = vld [vmem:[%s3190_s12 + $0x10] sm:$0xff]  ;;  %v881_v8 = vld [vmem:[%s3190_s12 + $0x8] sm:$0xff] }
  0x24   : > { %360 = vmatprep.subr.bf16.mxu0 %v3106_v1  ;;  %v3204_v9 = vrot.slane %v3197_v6, 7  ;;  %v3207_v10 = vrot.slane %v3200_v7, 7  ;;  %v3210_v11 = vld [vmem:[%s3190_s12 + $0x18] sm:$0xff]  ;;  %v781_v12 = vadd.f32 %v3197_v6, %v763_v4  ;;  %v3217_v14 = vadd.f32 %v3200_v7, %v765_v5  ;;  %v244_v29 = vld [vmem:[%s3190_s12 + $0x20] sm:$0xff]  ;;  %v245_v42 = vld [vmem:[%s3190_s12 + $0x28] sm:$0xff] }
  0x25   : > { %v3223_v16 = vpack.c.bf16 %v3210_v11, %v881_v8  ;;  %v3229_v17 = vrot.slane %v881_v8, 7  ;;  %v782_v18 = vadd.f32 %v881_v8, %v764_v15  ;;  %v3233_v19 = vrot.slane %v3210_v11, 7  ;;  %513 = vmatpush1.bf16.msra.mxu1 %v3055_v26  ;;  %v3052_v41 = vld [vmem:[%s5389_s4 + $0x40] sm:$0xff]   ;;  %v3327_v43 = vld [vmem:[%s3190_s12 + $0x38] sm:$0xff]  ;;  %v3063_v46 = vld [vmem:[%s5389_s4 + $0x70] sm:$0xff]  }
  0x26   : > { %844 = vrot.lane.b32.xlu0 %v3204_v9, %s3107_s21  ;;  %848 = vrot.lane.b32.xlu1 %v3207_v10, %s3107_s21  ;;  %799 = vst [vmem:[#allocation2] sm:$0xff] %v781_v12  ;;  %v784_v21 = vadd.f32 %v3210_v11, %v766_v20  ;;  %v3263_v25 = vsel %vm840_vm1, %v3204_v9, %v3207_v10  ;;  %v3290_v31 = vrot.slane %v781_v12, 7  ;;  %v3297_v33 = vrot.slane %v3217_v14, 7  ;;  %v3350_v48 = vld [vmem:[%s5389_s4 + $0x90] sm:$0xff]   ;;  %v3371_v52 = vld [vmem:[%s5389_s4 + $0x98] sm:$0xff]  }
  0x27   : > { %361 = vmatpush1.bf16.msra.mxu0 %v3046_v3  ;;  %2930 = vmatprep.mubr.msk.bf16.mxu0 %vm340_vm0, %v3223_v16  ;;  %800 = vst.msk [vmem:[#allocation2 + $0x8] sm:$0xff] %vm340_vm0, %v782_v18  ;;  %v3258_v24 = vsel %vm840_vm1, %v3229_v17, %v3233_v19  ;;  %v785_v35 = vadd.f32 %v767_v32, %v244_v29  ;;  %v3366_v51 = vld [vmem:[%s3190_s12 + $0x30] sm:$0xff]  ;;  %v3065_v53 = vld [vmem:[%s5389_s4 + $0x78] sm:$0xff]   ;;  %v3378_v54 = vld [vmem:[%s3190_s12 + $0x48] sm:$0xff] }
  0x28   : > { %362 = vmatprep.subr.bf16.mxu0 %v3106_v1  ;;  %2962 = vmatprep.mubr.msk.bf16.mxu1 %vm340_vm0, %v3223_v16  ;;  %802 = vst.msk [vmem:[#allocation2 + $0x18] sm:$0xff] %vm340_vm0, %v784_v21  ;;  %v3313_v38 = vsel %vm840_vm1, %v3290_v31, %v3297_v33  ;;  %v3344_v47 = vpack.c.bf16 %v3200_v7, %v3197_v6  ;;  %5474 = vst [vmem:[#allocation9_spill] sm:$0xff] %v3366_v51  ;;  %v251_v55 = vld [vmem:[%s3190_s12 + $0x58] sm:$0xff]  ;;  %v3067_v56 = vld [vmem:[%s5389_s4 + $0x80] sm:$0xff]  }
  0x29   : > { %514 = vmatprep.subr.bf16.mxu1 %v3106_v1  ;;  %803 = vst [vmem:[#allocation2 + $0x20] sm:$0xff] %v785_v35  ;;  %v3353_v49 = vpack.c.bf16 %v3327_v43, %v245_v42  ;;  %v768_v57 = vld [vmem:[%s5387_s2 + $0x28] sm:$0xff]  ;;  %v3397_v58 = vpack.c.bf16 %v3366_v51, %v244_v29  ;;  %v3404_v60 = vld [vmem:[%s5389_s4 + $0xa0] sm:$0xff]   ;;  %v3407_v61 = vpack.c.bf16 %v251_v55, %v3378_v54  ;;  %v250_v2 = vld [vmem:[%s3190_s12 + $0x50] sm:$0xff] }
  0x2a   : > { %918 = vrot.lane.b32.xlu0 %v3204_v9, %s3108_s28  ;;  %920 = vrot.lane.b32.xlu1 %v3229_v17, %s3108_s28  ;;  %v786_v59 = vadd.f32 %v768_v57, %v245_v42  ;;  %v3415_v62 = vld [vmem:[%s3190_s12] sm:$0xfe]  ;;  %v3069_v63 = vld [vmem:[%s5389_s4 + $0x88] sm:$0xff]  }
  0x2b   : > { %363 = vmatpush1.bf16.msra.mxu0 %v3047_v13  ;;  %515 = vmatpush1.bf16.msra.mxu1 %v3057_v28  ;;  %v248_v0 = vld [vmem:[%s3190_s12 + $0x40] sm:$0xff]  ;;  %v3431_v3 = vld [vmem:[%s5389_s4 + $0xa8] sm:$0xff]   ;;  %v255_v5 = vld [vmem:[%s3190_s12 + $0x78] sm:$0xff] }
  0x2c   : > { %364 = vmatprep.subr.bf16.mxu0 %v3106_v1  ;;  %516 = vmatprep.subr.bf16.mxu1 %v3106_v1  ;;  %804 = vst.msk [vmem:[#allocation2 + $0x28] sm:$0xff] %vm340_vm0, %v786_v59  ;;  %v253_v4 = vld [vmem:[%s3190_s12 + $0x68] sm:$0xff]  ;;  %v3442_v8 = vld [vmem:[%s3190_s12 + $0x20] sm:$0x1]  ;;  %v3445_v12 = vpack.c.bf16 %v250_v2, %v248_v0  ;;  %v3452_v13 = vld [vmem:[%s5389_s4 + $0xb0] sm:$0xff]  }
  0x2d   : > { %v3439_v6 = vld [vmem:[#allocation2] sm:$0xfe]  ;;  %v3454_v15 = vpack.c.bf16 %v255_v5, %v253_v4  ;;  %v3478_v26 = vld [vmem:[%s5389_s4 + $0xb8] sm:$0xff]   ;;  %v3486_v28 = vld [vmem:[%s3190_s12 + $0x8] sm:$0xfe] }
  0x2e   : > { %924 = vrot.lane.b32.xlu1 %v3258_v24, %s3108_s28  ;;  %846 = vrot.lane.b32.xlu0 %v3263_v25, %s3107_s21  ;;  %v899_v37 = vld [vmem:[#allocation2 + $0x8] sm:$0xff]  ;;  %v771_v18 = vld [vmem:[%s5387_s2 + $0x40] sm:$0xff]  ;;  %v3541_v42 = vld [vmem:[%s5389_s4 + $0xd0] sm:$0xff]  }
  0x2f   : > { %365 = vmatpush1.bf16.msra.mxu0 %v3048_v23  ;;  %517 = vmatpush1.bf16.msra.mxu1 %v3059_v34  ;;  %v3319_v40 = vld [vmem:[#allocation2 + $0x18] sm:$0xff]  ;;  %v3333_v44 = vrot.slane %v899_v37, 7  ;;  %v789_v21 = vadd.f32 %v771_v18, %v248_v0  ;;  %v252_v22 = vld [vmem:[%s3190_s12 + $0x60] sm:$0xff]  ;;  %v254_v23 = vld [vmem:[%s3190_s12 + $0x70] sm:$0xff] }
  0x30   : > { %366 = vmatprep.subr.bf16.mxu0 %v3106_v1  ;;  %518 = vmatprep.subr.bf16.mxu1 %v3106_v1  ;;  %v3337_v45 = vrot.slane %v3319_v40, 7  ;;  %v3463_v20 = vld [vmem:[#allocation2 + $0x20] sm:$0x1]  ;;  %v3490_v29 = vpack.c.bf16 %v254_v23, %v252_v22  ;;  %v769_v34 = vld [vmem:[%s5387_s2 + $0x30] sm:$0xff]  ;;  %v3523_v37 = vld [vmem:[%s5389_s4 + $0xc8] sm:$0xff]   ;;  %v1144_v18 = vrot.slane %v3319_v40, 1 }
  0x31   : > { %807 = vst [vmem:[#allocation2 + $0x40] sm:$0xff] %v789_v21  ;;  %v3511_v35 = vadd.f32 %v769_v34, %v3366_v51  ;;  %v1094_v57 = vld [vmem:[#allocation2] sm:$0xfc]  ;;  %v1119_v5 = vld [vmem:[%s3190_s12 + $0x28] sm:$0x3] }
  0x32   : > { %928 = vrot.lane.b32.xlu1 %v3233_v19, %s3108_s28  ;;  %922 = vrot.lane.b32.xlu0 %v3263_v25, %s3108_s28  ;;  %v3362_v50 = vsel %vm840_vm1, %v3333_v44, %v3337_v45  ;;  %v772_v22 = vld [vmem:[%s5387_s2 + $0x48] sm:$0xff] }
  0x33   : > { %367 = vmatpush1.bf16.msra.mxu0 %v3049_v27  ;;  %519 = vmatpush1.bf16.msra.mxu1 %v3061_v39  ;;  %v257_v27 = vld [vmem:[%s3190_s12 + $0x88] sm:$0xff]  ;;  %5475 = vst [vmem:[#allocation10_spill] sm:$0xff] %v3511_v35 }
  0x34   : > { %368 = vmatprep.subr.bf16.mxu0 %v3106_v1  ;;  %520 = vmatprep.subr.bf16.mxu1 %v3106_v1  ;;  %v3499_v32 = vpack.c.bf16 %v257_v27, %v257_v27  ;;  %v3530_v39 = vld [vmem:[%s3190_s12 + $0x28] sm:$0x1]  ;;  %v790_v27 = vadd.f32 %v772_v22, %v3378_v54  ;;  %v1370_v22 = vrot.slane %v3511_v35, 7 }
  0x35   : > { %v1140_v21 = vld [vmem:[#allocation2 + $0x28] sm:$0x3] }
  0x36   : > { %926 = vrot.lane.b32.xlu0 %v3207_v10, %s3108_s28  ;;  %866 = vrot.lane.b32.xlu1 %v3290_v31, %s3107_s21  ;;  %808 = vst.msk [vmem:[#allocation2 + $0x48] sm:$0xff] %vm340_vm0, %v790_v27 }
  0x37   : > { %369 = vmatpush1.bf16.msra.mxu0 %v3050_v30  ;;  %521 = vmatpush1.bf16.msra.mxu1 %v3063_v46  ;;  %v3497_v30 = vld [vmem:[%s5389_s4 + $0xc0] sm:$0xff]   ;;  %v1038_v46 = vld [vmem:[#allocation2 + $0x8] sm:$0xfe] }
  0x38   : > { %370 = vmatprep.subr.bf16.mxu0 %v3106_v1  ;;  %522 = vmatprep.subr.bf16.mxu1 %v3106_v1 }
  0x3a   : > { %870 = vrot.lane.b32.xlu1 %v3297_v33, %s3107_s21  ;;  %868 = vrot.lane.b32.xlu0 %v3313_v38, %s3107_s21 }
  0x3b   : > { %371 = vmatpush1.bf16.msra.mxu0 %v3051_v36  ;;  %523 = vmatpush1.bf16.msra.mxu1 %v3065_v53  ;;  %v256_v36 = vld [vmem:[%s3190_s12 + $0x80] sm:$0xff]  ;;  %v1075_v53 = vrot.slane %v3200_v7, 1 }
  0x3c   : > { %372 = vmatprep.subr.bf16.mxu0 %v3106_v1  ;;  %524 = vmatprep.subr.bf16.mxu1 %v3106_v1 }
  0x3e   : > { %948 = vrot.lane.b32.xlu1 %v3333_v44, %s3108_s28  ;;  %946 = vrot.lane.b32.xlu0 %v3290_v31, %s3108_s28 }
  0x3f   : > { %373 = vmatpush1.bf16.msra.mxu0 %v3052_v41  ;;  %525 = vmatpush1.bf16.msra.mxu1 %v3067_v56  ;;  %v3534_v41 = vpack.c.bf16 %v256_v36, %v256_v36 }
  0x40   : > { %664 = vmatprep.subr.bf16.mxu0 %v3106_v1  ;;  %526 = vmatprep.subr.bf16.mxu1 %v3106_v1 }
  0x42   : > { %389 = vmatmul.mubr.bf16.vlgmr.msra.gmra.mrb[0].mxu0 %v3344_v47  ;;  %952 = vrot.lane.b32.xlu1 %v3362_v50, %s3108_s28 }
  0x43   : > { %665 = vmatpush1.bf16.msra.mxu0 %v3350_v48  ;;  %2931 = vmatprep.mubr.msk.bf16.mxu0 %vm340_vm0, %v3353_v49 }
  0x44   : > { %950 = vrot.lane.b32.xlu0 %v3313_v38, %s3108_s28  ;;  %666 = vmatprep.subr.bf16.mxu0 %v3106_v1 }
  0x45   : > { %527 = vmatpush1.bf16.msra.mxu1 %v3069_v63  ;;  %v1099_v63 = vrot.slane %v3217_v14, 1 }
  0x46   : > { %956 = vrot.lane.b32.xlu1 %v3337_v45, %s3108_s28  ;;  %3003 = vmatprep.subr.bf16.mxu1 %v3106_v1 }
  0x47   : > { %667 = vmatpush1.bf16.msra.mxu0 %v3371_v52 }
  0x48   : > { %954 = vrot.lane.b32.xlu0 %v3297_v33, %s3108_s28  ;;  %668 = vmatprep.subr.bf16.mxu0 %v3106_v1 }
  0x49   : > { %543 = vmatmul.mubr.bf16.vlgmr.msra.gmra.mrb[0].mxu1 %v3344_v47 }
  0x4a   : > { %397 = vmatmul.mubr.bf16.gmra.mrb[4].mxu0 %v3397_v58  ;;  %977 = vrot.lane.b32.xlu1 %v3200_v7, %s3107_s21 }
  0x4b   : > { %669 = vmatpush1.bf16.msra.mxu0 %v3404_v60  ;;  %2932 = vmatprep.mubr.msk.bf16.mxu0 %vm340_vm0, %v3407_v61 }
  0x4c   : > { %975 = vrot.lane.b32.xlu0 %v3415_v62, %s3107_s21  ;;  %670 = vmatprep.subr.bf16.mxu0 %v3106_v1 }
  0x4d   : > { %2963 = vmatprep.mubr.msk.bf16.mxu1 %vm340_vm0, %v3353_v49  ;;  %3012 = vmatpush1.bf16.msra.mxu1 %v3350_v48  ;;  %v1070_v48 = vld [vmem:[%s3190_s12 + $0x20] sm:$0x3] }
  0x4e   : > { %994 = vrot.lane.b32.xlu1 %v3439_v6, %s3107_s21  ;;  %3004 = vmatprep.subr.bf16.mxu1 %v3106_v1  ;;  %v3569_v55 = vrot.slane %v1070_v48, 1 }
  0x4f   : > { %671 = vmatpush1.bf16.msra.mxu0 %v3431_v3 }
  0x50   : > { %979 = vrot.lane.b32.xlu0 %v3442_v8, %s3107_s21  ;;  %672 = vmatprep.subr.bf16.mxu0 %v3106_v1  ;;  %5476 = vst [vmem:[#allocation11_spill] sm:$0xff] %v3569_v55  ;;  %v3582_v59 = vsel %vm1073_vm2, %v1075_v53, %v3569_v55 }
  0x51   : > { %551 = vmatmul.mubr.bf16.gmra.mrb[4].mxu1 %v3397_v58 }
  0x52   : > { %405 = vmatmul.mubr.bf16.gmra.mrb[8].mxu0 %v3445_v12  ;;  %998 = vrot.lane.b32.xlu1 %v3463_v20, %s3107_s21 }
  0x53   : > { %673 = vmatpush1.bf16.msra.mxu0 %v3452_v13  ;;  %2933 = vmatprep.mubr.msk.bf16.mxu0 %vm340_vm0, %v3454_v15 }
  0x54   : > { %996 = vrot.lane.b32.xlu0 %v3217_v14, %s3107_s21  ;;  %674 = vmatprep.subr.bf16.mxu0 %v3106_v1 }
  0x55   : > { %2964 = vmatprep.mubr.msk.bf16.mxu1 %vm340_vm0, %v3407_v61  ;;  %3013 = vmatpush1.bf16.msra.mxu1 %v3371_v52  ;;  %v1069_v52 = vld [vmem:[%s3190_s12] sm:$0xfc] }
  0x56   : > { %1013 = vrot.lane.b32.xlu1 %v3486_v28, %s3108_s28  ;;  %3005 = vmatprep.subr.bf16.mxu1 %v3106_v1  ;;  %v1074_v56 = vrot.slane %v1069_v52, 1 }
  0x57   : > { %675 = vmatpush1.bf16.msra.mxu0 %v3478_v26 }
  0x58   : > { %1011 = vrot.lane.b32.xlu0 %v3415_v62, %s3108_s28  ;;  %676 = vmatprep.subr.bf16.mxu0 %v3106_v1 }
  0x59   : > { %559 = vmatmul.mubr.bf16.gmra.mrb[8].mxu1 %v3445_v12 }
  0x5a   : > { %413 = vmatmul.mubr.bf16.gmra.mrb[12].mxu0 %v3490_v29  ;;  %1017 = vrot.lane.b32.xlu1 %v3210_v11, %s3108_s28 }
  0x5b   : > { %677 = vmatpush1.bf16.msra.mxu0 %v3497_v30  ;;  %2934 = vmatprep.mubr.msk.bf16.mxu0 %vm340_vm0, %v3499_v32 }
  0x5c   : > { %1015 = vrot.lane.b32.xlu0 %v3200_v7, %s3108_s28  ;;  %678 = vmatprep.subr.bf16.mxu0 %v3106_v1 }
  0x5d   : > { %3014 = vmatpush1.bf16.msra.mxu1 %v3404_v60  ;;  %2965 = vmatprep.mubr.msk.bf16.mxu1 %vm340_vm0, %v3454_v15  ;;  %v1098_v60 = vrot.slane %v1094_v57, 1  ;;  %v1338_v57 = vld [vmem:[%s3190_s12 + $0x20] sm:$0xfc] }
  0x5e   : > { %1021 = vrot.lane.b32.xlu1 %v3530_v39, %s3108_s28  ;;  %3006 = vmatprep.subr.bf16.mxu1 %v3106_v1 }
  0x5f   : > { %679 = vmatpush1.bf16.msra.mxu0 %v3523_v37  ;;  %v3597_v0 = vsel %vm1073_vm2, %v1098_v60, %v1099_v63 }
  0x60   : > { %1019 = vrot.lane.b32.xlu0 %v3442_v8, %s3108_s28  ;;  %680 = vmatprep.subr.bf16.mxu0 %v3106_v1  ;;  %5477 = vst [vmem:[#allocation12_spill] sm:$0xff] %v3597_v0 }
  0x61   : > { %3015 = vmatpush1.bf16.msra.mxu1 %v3431_v3 }
  0x62   : > { %421 = vmatmul.mubr.bf16.gmra.mrb[16].mxu0 %v3534_v41  ;;  %1044 = vrot.lane.b32.xlu1 %v1038_v46, %s3108_s28 }
  0x63   : > { %681 = vmatpush1.bf16.msra.mxu0 %v3541_v42  ;;  %2994 = vmatprep.mubr.msk.bf16.mxu0 %vm340_vm0, %v3223_v16  ;;  %v1039_v16 = vld [vmem:[#allocation2 + $0x28] sm:$0x1] }
  0x64   : > { %1042 = vrot.lane.b32.xlu0 %v3439_v6, %s3108_s28  ;;  %3007 = vmatprep.subr.bf16.mxu1 %v3106_v1  ;;  %v3629_v6 = vrot.slane %v1119_v5, 1  ;;  %v1363_v5 = vld [vmem:[#allocation2 + $0x20] sm:$0xfc] }
  0x65   : > { %567 = vmatmul.mubr.bf16.gmra.mrb[12].mxu1 %v3490_v29 }
  0x66   : > { %1048 = vrot.lane.b32.xlu1 %v3319_v40, %s3108_s28  ;;  %3016 = vmatpush1.bf16.msra.mxu1 %v3452_v13  ;;  %5480 = vst [vmem:[#allocation15_spill] sm:$0xff] %v3629_v6  ;;  %v1139_v13 = vld [vmem:[#allocation2 + $0x8] sm:$0xfc]  ;;  %v3666_v40 = vstv %s817_s15 }
  0x67   : > { %3008 = vmatprep.subr.bf16.mxu1 %v3106_v1  ;;  %2966 = vmatprep.mubr.msk.bf16.mxu1 %vm340_vm0, %v3499_v32  ;;  %5483 = vst [vmem:[#allocation18_spill] sm:$0xff] %v3666_v40  ;;  %v1215_v54 = vmul.f32 %v3666_v40, %v3415_v62  ;;  %v1217_v34 = vmul.f32 %v3666_v40, %v3200_v7 }
  0x68   : > { %1046 = vrot.lane.b32.xlu0 %v3217_v14, %s3108_s28  ;;  %v1118_v14 = vld [vmem:[%s3190_s12 + $0x8] sm:$0xfc]  ;;  %v1220_v46 = vmul.f32 %v3666_v40, %v3530_v39  ;;  %v1219_v48 = vmul.f32 %v3666_v40, %v3442_v8 }
  0x69   : > { %v1122_v4 = vrot.slane %v1118_v14, 1  ;;  %v1344_v14 = vrot.slane %v3366_v51, 7 }
  0x6a   : > { %697 = vmatmul.mubr.bf16.vlgmr.msra.gmra.mrb[20].mxu0 %v3344_v47  ;;  %1052 = vrot.lane.b32.xlu1 %v1039_v16, %s3108_s28  ;;  %v3585_v47 = vsel %vm1073_vm2, %v1074_v56, %v1075_v53  ;;  %v1235_v53 = vrot.slane %v1220_v46, 1  ;;  %v1233_v56 = vrot.slane %v1219_v48, 1  ;;  %v1395_v46 = vrot.slane %v3327_v43, 7 }
  0x6b   : > { %2995 = vmatprep.mubr.msk.bf16.mxu0 %vm340_vm0, %v3353_v49  ;;  %v1095_v49 = vld [vmem:[#allocation2 + $0x20] sm:$0x3]  ;;  %3017 = vmatpush1.bf16.msra.mxu1 %v3478_v26  ;;  %v3664_v26 = vrot.slane %v1140_v21, 1 }
  0x6c   : > { %1050 = vrot.lane.b32.xlu0 %v3463_v20, %s3108_s28  ;;  %3009 = vmatprep.subr.bf16.mxu1 %v3106_v1  ;;  %v3599_v2 = vrot.slane %v1095_v49, 1  ;;  %v3706_v49 = vrot.slane %v1338_v57, 7 }
  0x6d   : > { %575 = vmatmul.mubr.bf16.gmra.mrb[16].mxu1 %v3534_v41  ;;  %5482 = vst [vmem:[#allocation17_spill] sm:$0xff] %v3664_v26 }
  0x6e   : > { %1081 = vrot.lane.b32.xlu1 %v3582_v59, %s3107_s21  ;;  %5478 = vst [vmem:[#allocation13_spill] sm:$0xff] %v3599_v2  ;;  %v3614_v3 = vsel %vm1073_vm2, %v1099_v63, %v3599_v2  ;;  %2997 = vmatprep.mubr.msk.bf16.mxu1 %vm340_vm0, %v3454_v15  ;;  %v1143_v15 = vrot.slane %v1139_v13, 1  ;;  %5485 = vst [vmem:[#allocation20_spill] sm:$0xff] %v3706_v49 }
  0x6f   : > { %3018 = vmatpush1.bf16.msra.mxu1 %v3497_v30  ;;  %5479 = vst [vmem:[#allocation14_spill] sm:$0xff] %v3614_v3  ;;  %v1218_v30 = vmul.f32 %v3666_v40, %v3210_v11 }
  0x70   : > { %1079 = vrot.lane.b32.xlu0 %v3585_v47, %s3107_s21  ;;  %3010 = vmatprep.subr.bf16.mxu1 %v3106_v1  ;;  %v3662_v23 = vsel %vm1073_vm2, %v1143_v15, %v1144_v18 }
  0x71   : > { %5481 = vst [vmem:[#allocation16_spill] sm:$0xff] %v3662_v23 }
  0x72   : > { %705 = vmatmul.mubr.bf16.gmra.mrb[24].mxu0 %v3397_v58  ;;  %1103 = vrot.lane.b32.xlu1 %v3597_v0, %s3107_s21  ;;  %v1123_v58 = vrot.slane %v3210_v11, 1 }
  0x73   : > { %2996 = vmatprep.mubr.msk.bf16.mxu0 %vm340_vm0, %v3407_v61  ;;  %3019 = vmatpush1.bf16.msra.mxu1 %v3523_v37  ;;  %v1231_v37 = vrot.slane %v1218_v30, 1 }
  0x74   : > { %1083 = vrot.lane.b32.xlu0 %v3569_v55, %s3107_s21  ;;  %3011 = vmatprep.subr.bf16.mxu1 %v3106_v1  ;;  %v3627_v61 = vsel %vm1073_vm2, %v1122_v4, %v1123_v58  ;;  %v3639_v1 = vsel %vm1073_vm2, %v1123_v58, %v3629_v6  ;;  %v1339_v4 = vld [vmem:[%s3190_s12 + $0x40] sm:$0x3]  ;;  %v3714_v58 = vsel %vm840_vm1, %v3706_v49, %v1344_v14 }
  0x75   : > { %v1236_v60 = vsel %vm1073_vm2, %v1231_v37, %v1235_v53  ;;  %5486 = vst [vmem:[#allocation21_spill] sm:$0xff] %v3714_v58  ;;  %v1346_v13 = vrot.slane %v1339_v4, 7 }
  0x76   : > { %1107 = vrot.lane.b32.xlu1 %v3599_v2, %s3107_s21 }
  0x77   : > { %3020 = vmatpush1.bf16.msra.mxu1 %v3541_v42  ;;  %v1228_v42 = vrot.slane %v1217_v34, 1  ;;  %v3725_v21 = vsel %vm840_vm1, %v1344_v14, %v1346_v13 }
  0x78   : > { %1105 = vrot.lane.b32.xlu0 %v3614_v3, %s3107_s21  ;;  %5488 = vst [vmem:[#allocation23_spill] sm:$0xff] %v3725_v21 }
  0x79   : > { %v1234_v63 = vsel %vm1073_vm2, %v1228_v42, %v1233_v56 }
  0x7a   : > { %713 = vmatmul.mubr.bf16.gmra.mrb[28].mxu0 %v3445_v12  ;;  %1162 = vrot.lane.b32.xlu1 %v3627_v61, %s3108_s28  ;;  %v770_v12 = vld [vmem:[%s5387_s2 + $0x38] sm:$0xff] }
  0x7b   : > { %721 = vmatmul.mubr.bf16.vlgmr.msra.gmra.mrb[20].mxu1 %v3490_v29  ;;  %v788_v20 = vadd.f32 %v770_v12, %v3327_v43  ;;  %v1216_v29 = vmul.f32 %v3666_v40, %v3486_v28 }
  0x7c   : > { %1160 = vrot.lane.b32.xlu0 %v3585_v47, %s3108_s28  ;;  %2998 = vmatprep.mubr.msk.bf16.mxu1 %vm340_vm0, %v3499_v32  ;;  %v3681_v32 = vsel %vm1073_vm2, %v1144_v18, %v3664_v26  ;;  %v1365_v18 = vld [vmem:[#allocation2 + $0x40] sm:$0x3] }
  0x7d   : > { %806 = vst.msk [vmem:[#allocation2 + $0x38] sm:$0xff] %vm340_vm0, %v788_v20  ;;  %5484 = vst [vmem:[#allocation19_spill] sm:$0xff] %v3681_v32  ;;  %v1230_v36 = vrot.slane %v1216_v29, 1  ;;  %v3722_v20 = vrot.slane %v1363_v5, 7  ;;  %v1372_v27 = vrot.slane %v1365_v18, 7 }
  0x7e   : > { %1166 = vrot.lane.b32.xlu1 %v3639_v1, %s3108_s28 }
  0x7f   : > { %v1232_v52 = vsel %vm1073_vm2, %v1230_v36, %v1231_v37  ;;  %5487 = vst [vmem:[#allocation22_spill] sm:$0xff] %v3722_v20  ;;  %v3741_v34 = vsel %vm840_vm1, %v3722_v20, %v1370_v22  ;;  %v1389_v36 = vld [vmem:[%s3190_s12 + $0x28] sm:$0xfc] }
  0x80   : > { %1164 = vrot.lane.b32.xlu0 %v3582_v59, %s3108_s28  ;;  %5490 = vst [vmem:[#allocation25_spill] sm:$0xff] %v3741_v34 }
  0x82   : > { %1170 = vrot.lane.b32.xlu1 %v3629_v6, %s3108_s28 }
  0x83   : > { %729 = vmatmul.mubr.bf16.gmra.mrb[24].mxu1 %v3534_v41  ;;  %v1227_v41 = vrot.slane %v1215_v54, 1  ;;  %v3737_v54 = vsel %vm840_vm1, %v1370_v22, %v1372_v27 }
  0x84   : > { %1168 = vrot.lane.b32.xlu0 %v3569_v55, %s3108_s28  ;;  %5489 = vst [vmem:[#allocation24_spill] sm:$0xff] %v3737_v54 }
  0x85   : > { %v1229_v16 = vsel %vm1073_vm2, %v1227_v41, %v1228_v42  ;;  %v3750_v42 = vrot.slane %v1389_v36, 7 }
  0x86   : > { %1189 = vrot.lane.b32.xlu1 %v3662_v23, %s3108_s28 }
  0x87   : > { %5491 = vst [vmem:[#allocation26_spill] sm:$0xff] %v3750_v42  ;;  %v3762_v53 = vsel %vm840_vm1, %v3750_v42, %v1395_v46 }
  0x88   : > { %1187 = vrot.lane.b32.xlu0 %v3597_v0, %s3108_s28  ;;  %5492 = vst [vmem:[#allocation27_spill] sm:$0xff] %v3762_v53 }
  0x8a   : > { %1193 = vrot.lane.b32.xlu1 %v3681_v32, %s3108_s28 }
  0x8c   : > { %1191 = vrot.lane.b32.xlu0 %v3614_v3, %s3108_s28 }
  0x8e   : > { %1197 = vrot.lane.b32.xlu1 %v3664_v26, %s3108_s28 }
  0x90   : > { %1195 = vrot.lane.b32.xlu0 %v3599_v2, %s3108_s28 }
  0x92   : > { %1239 = vrot.lane.b32.xlu1 %v1232_v52, %s3108_s28 }
  0x94   : > { %1237 = vrot.lane.b32.xlu0 %v1229_v16, %s3108_s28  ;;  %v1390_v16 = vld [vmem:[%s3190_s12 + $0x48] sm:$0x3] }
  0x95   : > { %v1397_v56 = vrot.slane %v1390_v16, 7 }
  0x96   : > { %1243 = vrot.lane.b32.xlu1 %v1236_v60, %s3108_s28 }
  0x97   : > { %v3771_v43 = vsel %vm840_vm1, %v1395_v46, %v1397_v56 }
  0x98   : > { %1241 = vrot.lane.b32.xlu0 %v1234_v63, %s3108_s28  ;;  %v845_v12 = vpop.permute.xlu0 %844  ;;  %v3716_v15 = vpop.permute.xlu1 %848  ;;  %5493 = vst [vmem:[#allocation28_spill] sm:$0xff] %v3771_v43 }
  0x99   : > { %v853_v26 = vadd.f32 %v845_v12, %v3415_v62  ;;  %v857_v6 = vadd.f32 %v3716_v15, %v3442_v8 }
  0x9a   : > { %1350 = vrot.lane.b32.xlu1 %v3714_v58, %s3107_s21 }
  0x9b   : > { %v893_v55 = vadd.f32 %v853_v26, %v3204_v9  ;;  %v3837_v26 = vstv %s2999_s23 }
  0x9c   : > { %1348 = vrot.lane.b32.xlu0 %v3706_v49, %s3107_s21  ;;  %v3728_v29 = vpop.permute.xlu0 %918  ;;  %v3730_v30 = vpop.permute.xlu1 %920  ;;  %5500 = vst [vmem:[#allocation35_spill] sm:$0xff] %v3837_v26 }
  0x9e   : > { %1374 = vrot.lane.b32.xlu1 %v3722_v20, %s3107_s21  ;;  %v854_v20 = vadd.f32 %v845_v12, %v3486_v28  ;;  %v931_v12 = vsel %vm930_vm3, %v3728_v29, %v3730_v30 }
  0xa0   : > { %1352 = vrot.lane.b32.xlu0 %v3725_v21, %s3107_s21  ;;  %v3744_v37 = vpop.permute.xlu1 %924  ;;  %v847_v41 = vpop.permute.xlu0 %846 }
  0xa1   : > { %v855_v3 = vadd.f32 %v847_v41, %v3200_v7  ;;  %v856_v32 = vadd.f32 %v847_v41, %v3210_v11 }
  0xa2   : > { %1378 = vrot.lane.b32.xlu1 %v3737_v54, %s3107_s21 }
  0xa3   : > { %v896_v41 = vadd.f32 %v3258_v24, %v856_v32 }
  0xa4   : > { %1376 = vrot.lane.b32.xlu0 %v3741_v34, %s3107_s21  ;;  %v3753_v48 = vpop.permute.xlu1 %928  ;;  %v923_v52 = vpop.permute.xlu0 %922 }
  0xa5   : > { %v932_v9 = vsel %vm930_vm3, %v923_v52, %v3744_v37  ;;  %v943_v52 = vadd.f32 %v3744_v37, %v896_v41 }
  0xa6   : > { %1436 = vrot.lane.b32.xlu1 %v3750_v42, %s3108_s28 }
  0xa8   : > { %1434 = vrot.lane.b32.xlu0 %v3706_v49, %s3108_s28  ;;  %v927_v57 = vpop.permute.xlu0 %926  ;;  %v3764_v60 = vpop.permute.xlu1 %866 }
  0xa9   : > { %v876_v24 = vmax.f32 %v3486_v28, %v3764_v60 }
  0xaa   : > { %1440 = vrot.lane.b32.xlu1 %v3762_v53, %s3108_s28 }
  0xac   : > { %1438 = vrot.lane.b32.xlu0 %v3714_v58, %s3108_s28  ;;  %v3773_v63 = vpop.permute.xlu1 %870  ;;  %v3775_v14 = vpop.permute.xlu0 %868 }
  0xad   : > { %v880_v29 = vmax.f32 %v3530_v39, %v3773_v63 }
  0xae   : > { %1444 = vrot.lane.b32.xlu1 %v3771_v43, %s3108_s28 }
  0xb0   : > { %1442 = vrot.lane.b32.xlu0 %v3725_v21, %s3108_s28  ;;  %v3781_v4 = vpop.permute.xlu1 %948  ;;  %v3783_v5 = vpop.permute.xlu0 %946 }
  0xb4   : > { %v3785_v13 = vpop.permute.xlu1 %952 }
  0xb6   : > { %v3787_v18 = vpop.permute.xlu0 %950 }
  0xb8   : > { %v3789_v22 = vpop.permute.xlu1 %956 }
  0xba   : > { %v3791_v27 = vpop.permute.xlu0 %954 }
  0xbc   : > { %v3793_v36 = vpop.permute.xlu1 %977 }
  0xbd   : > { %v987_v37 = vadd.f32 %v3793_v36, %v943_v52 }
  0xbe   : > { %v976_v46 = vpop.permute.xlu0 %975 }
  0xc0   : > { %v3795_v16 = vpop.permute.xlu1 %994 }
  0xc2   : > { %v3797_v56 = vpop.permute.xlu0 %979 }
  0xc4   : > { %v3799_v21 = vpop.permute.xlu1 %998 }
  0xc5   : > { %5494 = vst [vmem:[#allocation29_spill] sm:$0xff] %v3799_v21  ;;  %v858_v21 = vadd.f32 %v3716_v15, %v3530_v39  ;;  %v875_v15 = vmax.f32 %v3415_v62, %v3764_v60  ;;  %v877_v62 = vmax.f32 %v3200_v7, %v3775_v14  ;;  %v958_v7 = vsel %vm930_vm3, %v3783_v5, %v3781_v4 }
  0xc6   : > { %v3801_v43 = vpop.permute.xlu0 %996 }
  0xc7   : > { %5495 = vst [vmem:[#allocation30_spill] sm:$0xff] %v3801_v43  ;;  %v898_v43 = vadd.f32 %v3233_v19, %v858_v21 }
  0xc8   : > { %v1014_v58 = vpop.permute.xlu1 %1013 }
  0xc9   : > { %v945_v32 = vadd.f32 %v3753_v48, %v898_v43 }
  0xca   : > { %v1012_v53 = vpop.permute.xlu0 %1011 }
  0xcc   : > { %v1018_v49 = vpop.permute.xlu1 %1017 }
  0xce   : > { %v1016_v42 = vpop.permute.xlu0 %1015  ;;  %v5501_v52 = vld [vmem:[#allocation30_spill] sm:$0xff] }
  0xcf   : > { %v1024_v60 = vsel %vm930_vm3, %v1016_v42, %v1018_v49  ;;  %v1035_v42 = vadd.f32 %v1018_v49, %v987_v37 }
  0xd0   : > { %v3803_v40 = vpop.permute.xlu1 %1021 }
  0xd2   : > { %v3805_v35 = vpop.permute.xlu0 %1019 }
  0xd4   : > { %v3807_v51 = vpop.permute.xlu1 %1044 }
  0xd6   : > { %v3809_v54 = vpop.permute.xlu0 %1042 }
  0xd8   : > { %v3811_v34 = vpop.permute.xlu1 %1048 }
  0xd9   : > { %5496 = vst [vmem:[#allocation31_spill] sm:$0xff] %v3811_v34 }
  0xda   : > { %v3813_v2 = vpop.permute.xlu0 %1046 }
  0xdb   : > { %5497 = vst [vmem:[#allocation32_spill] sm:$0xff] %v3813_v2  ;;  %v894_v2 = vadd.f32 %v3229_v17, %v854_v20  ;;  %v933_v17 = vsel %vm930_vm3, %v927_v57, %v3753_v48  ;;  %v897_v20 = vadd.f32 %v857_v6, %v3207_v10  ;;  %v913_v10 = vmax.f32 %v876_v24, %v3333_v44 }
  0xdc   : > { %v3819_v0 = vpop.permute.xlu1 %1052 }
  0xdd   : > { %5498 = vst [vmem:[#allocation33_spill] sm:$0xff] %v3819_v0  ;;  %v895_v0 = vadd.f32 %v855_v3, %v3263_v25  ;;  %v878_v25 = vmax.f32 %v3210_v11, %v3775_v14  ;;  %v940_v3 = vadd.f32 %v931_v12, %v893_v55  ;;  %v941_v19 = vadd.f32 %v3730_v30, %v894_v2 }
  0xde   : > { %v3821_v23 = vpop.permute.xlu0 %1050  ;;  %v944_v11 = vadd.f32 %v933_v17, %v897_v20  ;;  %v879_v55 = vmax.f32 %v3442_v8, %v3773_v63  ;;  %v1023_v30 = vsel %vm930_vm3, %v1012_v53, %v1014_v58  ;;  %v914_v8 = vmax.f32 %v877_v62, %v3313_v38 }
  0xdf   : > { %5499 = vst [vmem:[#allocation34_spill] sm:$0xff] %v3821_v23  ;;  %v942_v21 = vadd.f32 %v932_v9, %v895_v0  ;;  %v985_v2 = vadd.f32 %v976_v46, %v941_v19  ;;  %v912_v0 = vmax.f32 %v875_v15, %v3290_v31  ;;  %v915_v39 = vmax.f32 %v878_v25, %v3362_v50 }
  0xe0   : > { %v1082_v23 = vpop.permute.xlu1 %1081  ;;  %v984_v6 = vadd.f32 %v976_v46, %v940_v3  ;;  %v3870_v53 = vmax.f32 %v880_v29, %v3337_v45  ;;  %v959_v63 = vsel %vm930_vm3, %v3787_v18, %v3785_v13  ;;  %v968_v38 = vmax.f32 %v913_v10, %v3781_v4  ;;  %v5502_v10 = vld [vmem:[#allocation31_spill] sm:$0xff] }
  0xe1   : > { %v1033_v48 = vadd.f32 %v1014_v58, %v985_v2  ;;  %v986_v44 = vadd.f32 %v3793_v36, %v942_v21  ;;  %v3881_v58 = vmax.f32 %v879_v55, %v3297_v33  ;;  %v967_v45 = vmax.f32 %v912_v0, %v958_v7 }
  0xe2   : > { %v1080_v34 = vpop.permute.xlu0 %1079  ;;  %v1032_v31 = vadd.f32 %v1023_v30, %v984_v6  ;;  %v960_v36 = vsel %vm930_vm3, %v3791_v27, %v3789_v22  ;;  %v989_v12 = vadd.f32 %v3797_v56, %v945_v32  ;;  %v1025_v18 = vsel %vm930_vm3, %v3805_v35, %v3803_v40  ;;  %v5504_v6 = vld [vmem:[#allocation15_spill] sm:$0xff] }
  0xe3   : > { %v1089_v14 = vadd.f32 %v1080_v34, %v1033_v48  ;;  %v1034_v5 = vadd.f32 %v1024_v60, %v986_v44  ;;  %v1091_v41 = vadd.f32 %v1082_v23, %v1035_v42  ;;  %v970_v33 = vmax.f32 %v915_v39, %v3785_v13 }
  0xe4   : > { %v3855_v28 = vpop.permute.xlu1 %1103  ;;  %v1088_v46 = vadd.f32 %v1080_v34, %v1032_v31  ;;  %v969_v49 = vmax.f32 %v914_v8, %v959_v63  ;;  %v988_v9 = vadd.f32 %v3797_v56, %v944_v11  ;;  %v972_v34 = vmax.f32 %v3870_v53, %v3789_v22  ;;  %v5505_v8 = vld [vmem:[#allocation11_spill] sm:$0xff] }
  0xe5   : > { %v1090_v4 = vadd.f32 %v1082_v23, %v1034_v5  ;;  %v1037_v27 = vadd.f32 %v3803_v40, %v989_v12  ;;  %v1134_v24 = vadd.f32 %v3627_v61, %v1089_v14  ;;  %v971_v35 = vmax.f32 %v3881_v58, %v960_v36  ;;  %v5506_v14 = vld [vmem:[#allocation29_spill] sm:$0xff] }
  0xe6   : > { %v1084_v57 = vpop.permute.xlu0 %1083  ;;  %v1004_v3 = vmax.f32 %v968_v38, %v3795_v16  ;;  %v1036_v13 = vadd.f32 %v1025_v18, %v988_v9  ;;  %v1133_v19 = vadd.f32 %v1088_v46, %v3585_v47  ;;  %v1054_v23 = vsel %vm930_vm3, %v3809_v54, %v3807_v51  ;;  %v5507_v46 = vld [vmem:[#allocation33_spill] sm:$0xff]  ;;  %v5508_v36 = vld [vmem:[#allocation34_spill] sm:$0xff] }
  0xe7   : > { %v1093_v56 = vadd.f32 %v1084_v57, %v1037_v27  ;;  %v1136_v22 = vadd.f32 %v3639_v1, %v1091_v41  ;;  %v1003_v40 = vmax.f32 %v967_v45, %v3795_v16  ;;  %v1135_v29 = vadd.f32 %v1090_v4, %v3582_v59  ;;  %v5503_v1 = vld [vmem:[#allocation32_spill] sm:$0xff]  ;;  %v1411_v9 = vld [vmem:[#allocation2 + $0x28] sm:$0xfc] }
  0xe8   : > { %v3873_v43 = vpop.permute.xlu1 %1107  ;;  %v1092_v61 = vadd.f32 %v1084_v57, %v1036_v13  ;;  %v1005_v11 = vmax.f32 %v969_v49, %v5501_v52  ;;  %v1064_v47 = vmax.f32 %v1004_v3, %v3807_v51  ;;  %v1006_v54 = vmax.f32 %v970_v33, %v5501_v52  ;;  %v5509_v33 = vld [vmem:[#allocation16_spill] sm:$0xff] }
  0xe9   : > { %v1063_v30 = vmax.f32 %v1003_v40, %v1054_v23  ;;  %v1055_v16 = vsel %vm930_vm3, %v5503_v1, %v5502_v10  ;;  %v1138_v7 = vadd.f32 %v5504_v6, %v1093_v56  ;;  %v1008_v38 = vmax.f32 %v972_v34, %v5506_v14  ;;  %v5510_v27 = vld [vmem:[#allocation12_spill] sm:$0xff]  ;;  %v5511_v40 = vld [vmem:[#allocation19_spill] sm:$0xff] }
  0xea   : > { %v3875_v50 = vpop.permute.xlu0 %1105  ;;  %v1113_v0 = vmax.f32 %v1064_v47, %v3855_v28  ;;  %v1137_v53 = vadd.f32 %v1092_v61, %v5505_v8  ;;  %v1066_v31 = vmax.f32 %v1006_v54, %v5502_v10  ;;  %v1065_v45 = vmax.f32 %v1005_v11, %v1055_v16  ;;  %v5513_v10 = vld [vmem:[#allocation22_spill] sm:$0xff] }
  0xeb   : > { %v1112_v37 = vmax.f32 %v1063_v30, %v3855_v28  ;;  %v1056_v12 = vsel %vm930_vm3, %v5508_v36, %v5507_v46  ;;  %v1007_v4 = vmax.f32 %v971_v35, %v5506_v14  ;;  %v1068_v3 = vmax.f32 %v1008_v38, %v5507_v46 }
  0xec   : > { %v1163_v17 = vpop.permute.xlu1 %1162  ;;  %v1115_v18 = vmax.f32 %v1066_v31, %v3875_v50  ;;  %v1155_v49 = vmax.f32 %v1113_v0, %v5509_v33  ;;  %v5515_v0 = vld [vmem:[#allocation13_spill] sm:$0xff]  ;;  %v3986_v33 = vld [vmem:[%s3190_s12 + $0x20] sm:$0xf8] }
  0xed   : > { %v1182_v32 = vadd.f32 %v1163_v17, %v1134_v24  ;;  %v1154_v24 = vmax.f32 %v1112_v37, %v5510_v27  ;;  %v1067_v56 = vmax.f32 %v1007_v4, %v1056_v12  ;;  %v5516_v12 = vld [vmem:[#allocation25_spill] sm:$0xff] }
  0xee   : > { %v1161_v15 = vpop.permute.xlu0 %1160  ;;  %v1157_v61 = vmax.f32 %v1115_v18, %v5511_v40  ;;  %v4013_v40 = vld [vmem:[%s3190_s12 + $0x38] sm:$0xff] }
  0xef   : > { %v1172_v25 = vsel %vm930_vm3, %v1161_v15, %v1163_v17  ;;  %v1260_v39 = vrot.slane %v1182_v32, 1  ;;  %v1114_v17 = vmax.f32 %v1065_v45, %v3875_v50  ;;  %v1117_v50 = vmax.f32 %v1068_v3, %v3873_v43  ;;  %v1413_v45 = vld [vmem:[#allocation2 + $0x48] sm:$0x3] }
  0xf0   : > { %v1181_v20 = vadd.f32 %v1172_v25, %v1133_v19  ;;  %v1167_v21 = vpop.permute.xlu1 %1166  ;;  %v1420_v36 = vrot.slane %v1413_v45, 7  ;;  %v1632_v45 = vld [vmem:[%s3190_s12 + $0x28] sm:$0xf0] }
  0xf1   : > { %v1184_v55 = vadd.f32 %v1167_v21, %v1136_v22  ;;  %v3938_v22 = vrot.slane %v1411_v9, 7  ;;  %v5518_v9 = vld [vmem:[#allocation9_spill] sm:$0xff] }
  0xf2   : > { %v1165_v62 = vpop.permute.xlu0 %1164  ;;  %v1257_v51 = vrot.slane %v1181_v20, 1  ;;  %v1116_v20 = vmax.f32 %v1067_v56, %v3873_v43  ;;  %v5514_v43 = vld [vmem:[#allocation17_spill] sm:$0xff] }
  0xf3   : > { %v1173_v2 = vsel %vm930_vm3, %v1165_v62, %v1167_v21  ;;  %v1261_v59 = vrot.slane %v1184_v55, 1  ;;  %v1159_v1 = vmax.f32 %v1117_v50, %v5514_v43  ;;  %v1585_v43 = vld [vmem:[%s3190_s12 + $0x40] sm:$0xf] }
  0xf4   : > { %v1183_v57 = vadd.f32 %v1173_v2, %v1135_v29  ;;  %v1171_v60 = vpop.permute.xlu1 %1170  ;;  %v5512_v29 = vld [vmem:[#allocation14_spill] sm:$0xff] }
  0xf5   : > { %v1186_v63 = vadd.f32 %v1171_v60, %v1138_v7  ;;  %v1262_v42 = vsel %vm1073_vm2, %v1260_v39, %v1261_v59  ;;  %v1156_v62 = vmax.f32 %v1114_v17, %v5512_v29  ;;  %v1158_v39 = vmax.f32 %v1116_v20, %v5515_v0  ;;  %v1505_v17 = vld [vmem:[#allocation2 + $0x20] sm:$0xf8]  ;;  %v4035_v0 = vld [vmem:[%s3190_s12 + $0x30] sm:$0xff] }
  0xf6   : > { %v1258_v48 = vrot.slane %v1183_v57, 1  ;;  %v1169_v44 = vpop.permute.xlu0 %1168  ;;  %1269 = vrot.lane.b32.xlu1 %v1262_v42, %s3108_s28 }
  0xf7   : > { %v1174_v58 = vsel %vm930_vm3, %v1169_v44, %v1171_v60  ;;  %v1265_v41 = vrot.slane %v1186_v63, 1 }
  0xf8   : > { %v1185_v5 = vadd.f32 %v1174_v58, %v1137_v53  ;;  %v1259_v28 = vsel %vm1073_vm2, %v1257_v51, %v1258_v48  ;;  %v1190_v34 = vpop.permute.xlu1 %1189  ;;  %v3957_v53 = vld [vmem:[#allocation2 + $0x38] sm:$0xff] }
  0xf9   : > { %1267 = vrot.lane.b32.xlu0 %v1259_v28, %s3108_s28  ;;  %v1209_v13 = vmax.f32 %v1155_v49, %v1190_v34  ;;  %v1266_v23 = vsel %vm1073_vm2, %v1261_v59, %v1265_v41  ;;  %v1418_v14 = vrot.slane %v3957_v53, 7  ;;  %v5517_v41 = vld [vmem:[#allocation24_spill] sm:$0xff] }
  0xfa   : > { %v1263_v15 = vrot.slane %v1185_v5, 1  ;;  %v1188_v25 = vpop.permute.xlu0 %1187  ;;  %1273 = vrot.lane.b32.xlu1 %v1266_v23, %s3108_s28 }
  0xfb   : > { %v1199_v19 = vsel %vm930_vm3, %v1188_v25, %v1190_v34  ;;  %v1285_v11 = vmul.f32 %v3837_v26, %v1209_v13  ;;  %v3972_v46 = vsel %vm840_vm1, %v3938_v22, %v1418_v14  ;;  %v3979_v18 = vsel %vm840_vm1, %v1418_v14, %v1420_v36  ;;  %v3997_v34 = vld [vmem:[%s3190_s12 + $0x40] sm:$0x7]  ;;  %v5519_v13 = vld [vmem:[#allocation10_spill] sm:$0xff] }
  0xfc   : > { %v1208_v32 = vmax.f32 %v1154_v24, %v1199_v19  ;;  %v1264_v35 = vsel %vm1073_vm2, %v1258_v48, %v1263_v15  ;;  %v1194_v21 = vpop.permute.xlu1 %1193  ;;  %v1506_v24 = vld [vmem:[#allocation2 + $0x40] sm:$0x7]  ;;  %v4006_v19 = vld [vmem:[%s3190_s12 + $0x28] sm:$0xf8] }
  0xfd   : > { %1271 = vrot.lane.b32.xlu0 %v1264_v35, %s3108_s28  ;;  %v1211_v47 = vmax.f32 %v1157_v61, %v1194_v21  ;;  %v1299_v6 = vrot.slane %v1285_v11, 1  ;;  %v1553_v11 = vld [vmem:[#allocation2 + $0x28] sm:$0xf8] }
  0xfe   : > { %v1192_v52 = vpop.permute.xlu0 %1191  ;;  %v1284_v2 = vmul.f32 %v3837_v26, %v1208_v32  ;;  %1463 = vrot.lane.b32.xlu1 %v3938_v22, %s3108_s28 }
  0xff   : > { %v1200_v55 = vsel %vm930_vm3, %v1192_v52, %v1194_v21  ;;  %v1287_v30 = vmul.f32 %v3837_v26, %v1211_v47  ;;  %v4020_v21 = vld [vmem:[%s3190_s12 + $0x48] sm:$0x7] }
 0x100   : > { %v1210_v54 = vmax.f32 %v1156_v62, %v1200_v55  ;;  %v1198_v57 = vpop.permute.xlu1 %1197  ;;  %v1296_v48 = vrot.slane %v1284_v2, 1 }
 0x101   : > { %1461 = vrot.lane.b32.xlu0 %v5513_v10, %s3108_s28  ;;  %v1300_v7 = vrot.slane %v1287_v30, 1  ;;  %v1213_v37 = vmax.f32 %v1159_v1, %v1198_v57 }
 0x102   : > { %v1286_v16 = vmul.f32 %v3837_v26, %v1210_v54  ;;  %v1196_v59 = vpop.permute.xlu0 %1195 }
 0x103   : > { %v1201_v51 = vsel %vm930_vm3, %v1196_v59, %v1198_v57  ;;  %v1289_v44 = vmul.f32 %v3837_v26, %v1213_v37  ;;  %v1301_v31 = vsel %vm1073_vm2, %v1299_v6, %v1300_v7  ;;  %v1554_v57 = vld [vmem:[#allocation2 + $0x48] sm:$0x7]  ;;  %v4038_v59 = vrot.slane %v1585_v43, 1  ;;  %v5527_v43 = vld [vmem:[#allocation18_spill] sm:$0xff] }
 0x104   : > { %v1297_v60 = vrot.slane %v1286_v16, 1  ;;  %v1212_v8 = vmax.f32 %v1158_v39, %v1201_v51  ;;  %1308 = vrot.lane.b32.xlu1 %v1301_v31, %s3108_s28  ;;  %v1584_v16 = vld [vmem:[%s3190_s12 + $0x20] sm:$0xf0]  ;;  %v1589_v39 = vrot.slane %v4035_v0, 1  ;;  %v4057_v14 = vpop.permute.xlu1 %1239 }
 0x105   : > { %v1304_v42 = vrot.slane %v1289_v44, 1  ;;  %5520 = vst [vmem:[#allocation30_spill] sm:$0xff] %v4038_v59  ;;  %v1588_v6 = vrot.slane %v1584_v16, 1 }
 0x106   : > { %v1288_v63 = vmul.f32 %v3837_v26, %v1212_v8  ;;  %v1298_v58 = vsel %vm1073_vm2, %v1296_v48, %v1297_v60  ;;  %v4044_v48 = vsel %vm1073_vm2, %v1589_v39, %v4038_v59  ;;  %v1613_v8 = vrot.slane %v5519_v13, 1 }
 0x107   : > { %1306 = vrot.lane.b32.xlu0 %v1298_v58, %s3108_s28  ;;  %v1305_v5 = vsel %vm1073_vm2, %v1300_v7, %v1304_v42  ;;  %v1608_v7 = vld [vmem:[#allocation2 + $0x20] sm:$0xf0]  ;;  %v4048_v31 = vsel %vm1073_vm2, %v1588_v6, %v1589_v39  ;;  %v1609_v58 = vld [vmem:[#allocation2 + $0x40] sm:$0xf] }
 0x108   : > { %v1302_v38 = vrot.slane %v1288_v63, 1  ;;  %1312 = vrot.lane.b32.xlu1 %v1305_v5, %s3108_s28  ;;  %v4062_v5 = vpop.permute.xlu0 %1237 }
 0x10a   : > { %v1303_v28 = vsel %vm1073_vm2, %v1297_v60, %v1302_v38  ;;  %v1612_v60 = vrot.slane %v1608_v7, 1  ;;  %v4059_v38 = vrot.slane %v1609_v58, 1  ;;  %v1728_v7 = vmul.f32 %v3986_v33, %v5527_v43 }
 0x10b   : > { %1310 = vrot.lane.b32.xlu0 %v1303_v28, %s3108_s28 }
 0x10c   : > { %1467 = vrot.lane.b32.xlu1 %v3972_v46, %s3108_s28  ;;  %v4055_v42 = vsel %vm1073_vm2, %v1612_v60, %v1613_v8  ;;  %5522 = vst [vmem:[#allocation32_spill] sm:$0xff] %v4059_v38  ;;  %v1733_v60 = vmul.f32 %v4020_v21, %v5527_v43 }
 0x10d   : > { %5521 = vst [vmem:[#allocation31_spill] sm:$0xff] %v4055_v42 }
 0x10f   : > { %1465 = vrot.lane.b32.xlu0 %v5516_v12, %s3108_s28 }
 0x110   : > { %1471 = vrot.lane.b32.xlu1 %v3979_v18, %s3108_s28 }
 0x113   : > { %1469 = vrot.lane.b32.xlu0 %v5517_v41, %s3108_s28 }
 0x114   : > { %1492 = vrot.lane.b32.xlu1 %v5518_v9, %s3107_s21 }
 0x115   : > { %v3988_v49 = vpop.f32.mrb[0].mxu0 }
 0x116   : > { %v392_v4 = vpop.f32.mrb[1].mxu0 }
 0x117   : > { %1490 = vrot.lane.b32.xlu0 %v3986_v33, %s3107_s21  ;;  %v3994_v15 = vpop.f32.mrb[2].mxu0  ;;  %v1636_v4 = vrot.slane %v1632_v45, 1  ;;  %v1732_v45 = vmul.f32 %v3997_v34, %v5527_v43 }
 0x118   : > { %v395_v27 = vpop.f32.mrb[3].mxu0  ;;  %1509 = vrot.lane.b32.xlu1 %v1505_v17, %s3107_s21 }
 0x119   : > { %v4071_v27 = vsel %vm1073_vm2, %v1613_v8, %v4059_v38 }
 0x11a   : > { %5523 = vst [vmem:[#allocation15_spill] sm:$0xff] %v4071_v27 }
 0x11b   : > { %1494 = vrot.lane.b32.xlu0 %v3997_v34, %s3107_s21 }
 0x11c   : > { %1513 = vrot.lane.b32.xlu1 %v1506_v24, %s3107_s21  ;;  %v544_v32 = vpop.f32.mrb[0].mxu1 }
 0x11d   : > { %v398_v25 = vpop.f32.mrb[4].mxu0  ;;  %582 = vst [vmem:[#allocation4] sm:$0xff] %v544_v32  ;;  %v546_v50 = vpop.f32.mrb[1].mxu1 }
 0x11e   : > { %430 = vst [vmem:[#allocation3 + $0x10] sm:$0xff] %v398_v25  ;;  %v400_v3 = vpop.f32.mrb[5].mxu0  ;;  %v547_v20 = vpop.f32.mrb[2].mxu1  ;;  %v1633_v25 = vld [vmem:[%s3190_s12 + $0x48] sm:$0xf] }
 0x11f   : > { %1511 = vrot.lane.b32.xlu0 %v5519_v13, %s3107_s21  ;;  %v401_v23 = vpop.f32.mrb[6].mxu0  ;;  %583 = vst [vmem:[#allocation4 + $0x8] sm:$0xff] %v547_v20  ;;  %v549_v62 = vpop.f32.mrb[3].mxu1  ;;  %v1653_v20 = vld [vmem:[#allocation2 + $0x28] sm:$0xf0] }
 0x120   : > { %431 = vst [vmem:[#allocation3 + $0x18] sm:$0xff] %v401_v23  ;;  %v403_v56 = vpop.f32.mrb[7].mxu0  ;;  %1528 = vrot.lane.b32.xlu1 %v4006_v19, %s3108_s28  ;;  %v4076_v3 = vpop.permute.xlu1 %1243  ;;  %v1657_v62 = vrot.slane %v1653_v20, 1 }
 0x121   : > { %v4085_v56 = vrot.slane %v1633_v25, 1 }
 0x123   : > { %1526 = vrot.lane.b32.xlu0 %v3986_v33, %s3108_s28  ;;  %5524 = vst [vmem:[#allocation11_spill] sm:$0xff] %v4085_v56 }
 0x124   : > { %1532 = vrot.lane.b32.xlu1 %v4013_v40, %s3108_s28  ;;  %v552_v47 = vpop.f32.mrb[4].mxu1 }
 0x125   : > { %v406_v35 = vpop.f32.mrb[8].mxu0  ;;  %584 = vst [vmem:[#allocation4 + $0x10] sm:$0xff] %v552_v47  ;;  %v554_v2 = vpop.f32.mrb[5].mxu1 }
 0x126   : > { %432 = vst [vmem:[#allocation3 + $0x20] sm:$0xff] %v406_v35  ;;  %v408_v61 = vpop.f32.mrb[9].mxu0 }
 0x127   : > { %1530 = vrot.lane.b32.xlu0 %v5518_v9, %s3108_s28  ;;  %v409_v29 = vpop.f32.mrb[10].mxu0  ;;  %v4095_v61 = vpop.permute.xlu1 %1350 }
 0x128   : > { %433 = vst [vmem:[#allocation3 + $0x28] sm:$0xff] %v409_v29  ;;  %v411_v52 = vpop.f32.mrb[11].mxu0  ;;  %1536 = vrot.lane.b32.xlu1 %v4020_v21, %s3108_s28 }
 0x129   : > { %v1658_v52 = vrot.slane %v3957_v53, 1 }
 0x12b   : > { %1534 = vrot.lane.b32.xlu0 %v3997_v34, %s3108_s28  ;;  %v4104_v47 = vpop.permute.xlu1 %1374  ;;  %v4113_v2 = vsel %vm1073_vm2, %v1657_v62, %v1658_v52 }
 0x12c   : > { %1559 = vrot.lane.b32.xlu1 %v1553_v11, %s3108_s28  ;;  %v1654_v11 = vld [vmem:[#allocation2 + $0x48] sm:$0xf]  ;;  %5525 = vst [vmem:[#allocation29_spill] sm:$0xff] %v4113_v2 }
 0x12d   : > { %v414_v55 = vpop.f32.mrb[12].mxu0 }
 0x12e   : > { %434 = vst [vmem:[#allocation3 + $0x30] sm:$0xff] %v414_v55  ;;  %v416_v54 = vpop.f32.mrb[13].mxu0 }
 0x12f   : > { %1557 = vrot.lane.b32.xlu0 %v1505_v17, %s3108_s28  ;;  %v417_v30 = vpop.f32.mrb[14].mxu0  ;;  %v1637_v17 = vrot.slane %v4013_v40, 1  ;;  %v4115_v54 = vrot.slane %v1654_v11, 1  ;;  %v4133_v6 = vpop.permute.xlu1 %1378 }
 0x130   : > { %435 = vst [vmem:[#allocation3 + $0x38] sm:$0xff] %v417_v30  ;;  %v419_v1 = vpop.f32.mrb[15].mxu0  ;;  %1563 = vrot.lane.b32.xlu1 %v3957_v53, %s3108_s28  ;;  %v757_v53 = vld [vmem:[%s3190_s12 + $0x60] sm:$0xff] }
 0x131   : > { %v4083_v23 = vsel %vm1073_vm2, %v1636_v4, %v1637_v17  ;;  %v4093_v50 = vsel %vm1073_vm2, %v1637_v17, %v4085_v56  ;;  %5526 = vst [vmem:[#allocation33_spill] sm:$0xff] %v4115_v54  ;;  %v775_v30 = vld [vmem:[%s5387_s2 + $0x60] sm:$0xff]  ;;  %v1729_v1 = vmul.f32 %v4006_v19, %v5527_v43  ;;  %v4129_v16 = vsel %vm1073_vm2, %v1658_v52, %v4115_v54 }
 0x132   : > { %5528 = vst [vmem:[#allocation34_spill] sm:$0xff] %v4129_v16  ;;  %v793_v39 = vadd.f32 %v775_v30, %v757_v53  ;;  %v4181_v30 = vld [vmem:[%s3190_s12 + $0x58] sm:$0xff] }
 0x133   : > { %1561 = vrot.lane.b32.xlu0 %v5519_v13, %s3108_s28  ;;  %v4080_v13 = vpop.permute.xlu0 %1241  ;;  %v1744_v8 = vrot.slane %v1729_v1, 3  ;;  %5531 = vst [vmem:[#allocation19_spill] sm:$0xff] %v4181_v30  ;;  %v774_v1 = vld [vmem:[%s5387_s2 + $0x58] sm:$0xff] }
 0x134   : > { %1567 = vrot.lane.b32.xlu1 %v1554_v57, %s3108_s28  ;;  %v1731_v57 = vmul.f32 %v4013_v40, %v5527_v43  ;;  %811 = vst [vmem:[#allocation2 + $0x60] sm:$0xff] %v793_v39  ;;  %v792_v39 = vadd.f32 %v4181_v30, %v774_v1  ;;  %v1245_v1 = vsel %vm930_vm3, %v4062_v5, %v4057_v14  ;;  %v555_v30 = vpop.f32.mrb[6].mxu1 }
 0x135   : > { %v422_v37 = vpop.f32.mrb[16].mxu0  ;;  %v1246_v14 = vsel %vm930_vm3, %v4080_v13, %v4076_v3  ;;  %585 = vst [vmem:[#allocation4 + $0x18] sm:$0xff] %v555_v30  ;;  %v1388_v30 = vmax.f32 %v4020_v21, %v4133_v6 }
 0x136   : > { %436 = vst [vmem:[#allocation3 + $0x40] sm:$0xff] %v422_v37  ;;  %v424_v51 = vpop.f32.mrb[17].mxu0  ;;  %v1730_v37 = vmul.f32 %v4035_v0, %v5527_v43  ;;  %810 = vst.msk [vmem:[#allocation2 + $0x58] sm:$0xff] %vm340_vm0, %v792_v39 }
 0x137   : > { %1565 = vrot.lane.b32.xlu0 %v1506_v24, %s3108_s28  ;;  %v425_v44 = vpop.f32.mrb[18].mxu0  ;;  %v4097_v29 = vpop.permute.xlu0 %1348 }
 0x138   : > { %v426_v63 = vpop.f32.mrb[19].mxu0  ;;  %1595 = vrot.lane.b32.xlu1 %v4044_v48, %s3107_s21  ;;  %v1745_v44 = vrot.slane %v1731_v57, 3  ;;  %v1742_v58 = vrot.slane %v1730_v37, 3  ;;  %v758_v37 = vld [vmem:[%s3190_s12 + $0x68] sm:$0xff] }
 0x139   : > { %v1741_v63 = vrot.slane %v1728_v7, 3 }
 0x13a   : > { %v1746_v17 = vsel %vm1740_vm4, %v1744_v8, %v1745_v44 }
 0x13b   : > { %1593 = vrot.lane.b32.xlu0 %v4048_v31, %s3107_s21  ;;  %v4108_v55 = vpop.permute.xlu0 %1352 }
 0x13c   : > { %1617 = vrot.lane.b32.xlu1 %v4055_v42, %s3107_s21 }
 0x13d   : > { %v698_v28 = vpop.f32.mrb[20].mxu0 }
 0x13e   : > { %736 = vst [vmem:[#allocation5] sm:$0xff] %v698_v28  ;;  %v700_v36 = vpop.f32.mrb[21].mxu0  ;;  %v4149_v28 = vpop.permute.xlu1 %1436 }
 0x13f   : > { %1597 = vrot.lane.b32.xlu0 %v4038_v59, %s3107_s21  ;;  %v701_v9 = vpop.f32.mrb[22].mxu0  ;;  %v4139_v51 = vpop.permute.xlu0 %1376  ;;  %v4154_v36 = vld [vmem:[%s3190_s12 + $0x50] sm:$0xff] }
 0x140   : > { %737 = vst [vmem:[#allocation5 + $0x8] sm:$0xff] %v701_v9  ;;  %v703_v24 = vpop.f32.mrb[23].mxu0  ;;  %1621 = vrot.lane.b32.xlu1 %v4059_v38, %s3107_s21  ;;  %5529 = vst [vmem:[#allocation16_spill] sm:$0xff] %v4154_v36  ;;  %v773_v9 = vld [vmem:[%s5387_s2 + $0x50] sm:$0xff] }
 0x141   : > { %v1749_v24 = vrot.slane %v1733_v60, 3  ;;  %v4165_v25 = vadd.f32 %v4154_v36, %v773_v9  ;;  %v776_v60 = vld [vmem:[%s5387_s2 + $0x68] sm:$0xff]  ;;  %v1357_v36 = vadd.f32 %v4097_v29, %v3986_v33 }
 0x142   : > { %v4171_v62 = vpop.permute.xlu1 %1440 }
 0x143   : > { %1619 = vrot.lane.b32.xlu0 %v4071_v27, %s3107_s21  ;;  %v4159_v4 = vpop.permute.xlu0 %1434  ;;  %5530 = vst [vmem:[#allocation12_spill] sm:$0xff] %v4165_v25  ;;  %v1750_v20 = vsel %vm1740_vm4, %v1745_v44, %v1749_v24  ;;  %v794_v44 = vadd.f32 %v776_v60, %v758_v37  ;;  %v824_v24 = vld [vmem:[#allocation4 + $0x9] sm:$0xff]  ;;  %v1360_v25 = vadd.f32 %v4013_v40, %v4095_v61 }
 0x144   : > { %1676 = vrot.lane.b32.xlu1 %v4083_v23, %s3108_s28 }
 0x145   : > { %v706_v32 = vpop.f32.mrb[24].mxu0  ;;  %812 = vst.msk [vmem:[#allocation2 + $0x68] sm:$0xff] %vm340_vm0, %v794_v44  ;;  %v4214_v44 = vld [vmem:[%s5388_s3 + $0x8] sm:$0xff] }
 0x146   : > { %738 = vst [vmem:[#allocation5 + $0x10] sm:$0xff] %v706_v32  ;;  %v708_v35 = vpop.f32.mrb[25].mxu0  ;;  %v1743_v32 = vsel %vm1740_vm4, %v1741_v63, %v1742_v58  ;;  %v4178_v53 = vpop.permute.xlu1 %1444  ;;  %v823_v63 = vld [vmem:[#allocation4 + $0x1] sm:$0xff]  ;;  %5533 = vst [vmem:[#allocation22_spill] sm:$0xff] %v4214_v44 }
 0x147   : > { %1674 = vrot.lane.b32.xlu0 %v4048_v31, %s3108_s28  ;;  %v1747_v35 = vrot.slane %v1732_v45, 3  ;;  %v4174_v11 = vpop.permute.xlu0 %1438  ;;  %v825_v9 = vadd.f32 %v823_v63, %v3988_v49  ;;  %v709_v26 = vpop.f32.mrb[26].mxu0 }
 0x148   : > { %1680 = vrot.lane.b32.xlu1 %v4093_v50, %s3108_s28  ;;  %739 = vst [vmem:[#allocation5 + $0x18] sm:$0xff] %v709_v26 }
 0x149   : > { %v1748_v52 = vsel %vm1740_vm4, %v1742_v58, %v1747_v35 }
 0x14b   : > { %1678 = vrot.lane.b32.xlu0 %v4044_v48, %s3108_s28  ;;  %v4186_v57 = vpop.permute.xlu0 %1442 }
 0x14c   : > { %1684 = vrot.lane.b32.xlu1 %v4085_v56, %s3108_s28 }
 0x14d   : > { %v828_v37 = vld [vmem:[#allocation5 + $0xa] sm:$0xff] }
 0x14f   : > { %1682 = vrot.lane.b32.xlu0 %v4038_v59, %s3108_s28  ;;  %v711_v59 = vpop.f32.mrb[27].mxu0 }
 0x150   : > { %1703 = vrot.lane.b32.xlu1 %v4113_v2, %s3108_s28  ;;  %v5538_v2 = vld [vmem:[#allocation26_spill] sm:$0xff] }
 0x153   : > { %1701 = vrot.lane.b32.xlu0 %v4055_v42, %s3108_s28  ;;  %v1362_v42 = vadd.f32 %v4108_v55, %v4020_v21  ;;  %v5541_v21 = vld [vmem:[#allocation21_spill] sm:$0xff] }
 0x154   : > { %1707 = vrot.lane.b32.xlu1 %v4129_v16, %s3108_s28  ;;  %v1361_v16 = vadd.f32 %v4108_v55, %v3997_v34 }
 0x157   : > { %1705 = vrot.lane.b32.xlu0 %v4071_v27, %s3108_s28  ;;  %v1359_v27 = vadd.f32 %v4035_v0, %v4095_v61  ;;  %v1387_v61 = vmax.f32 %v3997_v34, %v4133_v6  ;;  %v1446_v34 = vsel %vm930_vm3, %v4159_v4, %v4149_v28  ;;  %v714_v6 = vpop.f32.mrb[28].mxu0  ;;  %v1433_v4 = vmax.f32 %v1388_v30, %v3979_v18 }
 0x158   : > { %1711 = vrot.lane.b32.xlu1 %v4115_v54, %s3108_s28  ;;  %v557_v54 = vpop.f32.mrb[7].mxu1  ;;  %740 = vst [vmem:[#allocation5 + $0x20] sm:$0xff] %v714_v6 }
 0x159   : > { %v1384_v54 = vmax.f32 %v4006_v19, %v4104_v47  ;;  %v560_v56 = vpop.f32.mrb[8].mxu1 }
 0x15a   : > { %586 = vst [vmem:[#allocation4 + $0x20] sm:$0xff] %v560_v56  ;;  %v562_v59 = vpop.f32.mrb[9].mxu1  ;;  %v1447_v56 = vsel %vm930_vm3, %v4174_v11, %v4171_v62 }
 0x15b   : > { %1709 = vrot.lane.b32.xlu0 %v4059_v38, %s3108_s28 }
 0x15c   : > { %1753 = vrot.lane.b32.xlu1 %v1746_v17, %s3108_s28  ;;  %v827_v17 = vld [vmem:[#allocation5 + $0x2] sm:$0xff] }
 0x15f   : > { %1751 = vrot.lane.b32.xlu0 %v1743_v32, %s3108_s28  ;;  %v4199_v32 = vld [vmem:[%s5388_s3] sm:$0xff] }
 0x160   : > { %1757 = vrot.lane.b32.xlu1 %v1750_v20, %s3108_s28  ;;  %5532 = vst [vmem:[#allocation14_spill] sm:$0xff] %v4199_v32  ;;  %v829_v20 = vadd.f32 %v827_v17, %v825_v9 }
 0x163   : > { %1755 = vrot.lane.b32.xlu0 %v1748_v52, %s3108_s28  ;;  %v826_v52 = vadd.f32 %v824_v24, %v3994_v15  ;;  %v1249_v15 = vadd.f32 %v1245_v1, %v829_v20 }
 0x168   : > { %v1270_v7 = vpop.permute.xlu1 %1269 }
 0x16b   : > { %v1268_v8 = vpop.permute.xlu0 %1267 }
 0x16c   : > { %v1274_v58 = vpop.permute.xlu1 %1273  ;;  %v1275_v35 = vsel %vm930_vm3, %v1268_v8, %v1270_v7  ;;  %v830_v8 = vadd.f32 %v828_v37, %v826_v52 }
 0x16d   : > { %v1279_v49 = vmul.f32 %v1275_v35, %v4199_v32  ;;  %v1358_v32 = vadd.f32 %v4097_v29, %v4006_v19  ;;  %v1383_v29 = vmax.f32 %v3986_v33, %v4104_v47  ;;  %v1385_v33 = vmax.f32 %v4035_v0, %v4139_v51 }
 0x16e   : > { %v1250_v24 = vadd.f32 %v1246_v14, %v830_v8  ;;  %v1386_v19 = vmax.f32 %v4013_v40, %v4139_v51  ;;  %v1407_v47 = vadd.f32 %v1359_v27, %v5541_v21  ;;  %v1429_v40 = vmax.f32 %v1384_v54, %v3938_v22 }
 0x16f   : > { %v1272_v45 = vpop.permute.xlu0 %1271  ;;  %v1281_v17 = vadd.f32 %v1279_v49, %v1249_v15  ;;  %v1428_v51 = vmax.f32 %v1383_v29, %v5513_v10  ;;  %v4314_v27 = vmax.f32 %v1387_v61, %v5517_v41  ;;  %v1430_v18 = vmax.f32 %v1385_v33, %v5516_v12 }
 0x170   : > { %v4206_v39 = vpop.permute.xlu1 %1463  ;;  %v1276_v7 = vsel %vm930_vm3, %v1272_v45, %v1274_v58  ;;  %v1457_v22 = vadd.f32 %v1447_v56, %v1407_v47  ;;  %v1431_v10 = vmax.f32 %v1386_v19, %v3972_v46 }
 0x171   : > { %v1280_v63 = vmul.f32 %v1276_v7, %v4214_v44 }
 0x173   : > { %v4209_v60 = vpop.permute.xlu0 %1461  ;;  %v1282_v3 = vadd.f32 %v1280_v63, %v1250_v24 }
 0x174   : > { %v1473_v29 = vsel %vm930_vm3, %v4209_v60, %v4206_v39 }
 0x175   : > { %v1482_v33 = vmax.f32 %v1428_v51, %v1473_v29 }
 0x176   : > { %v1309_v5 = vpop.permute.xlu1 %1308 }
 0x179   : > { %v1307_v9 = vpop.permute.xlu0 %1306 }
 0x17a   : > { %v1314_v58 = vsel %vm930_vm3, %v1307_v9, %v1309_v5  ;;  %v1313_v35 = vpop.permute.xlu1 %1312 }
 0x17b   : > { %v1318_v45 = vadd.f32 %v1314_v58, %v1281_v17 }
 0x17d   : > { %1320 = vst [vmem:[%s4225_s16] sm:$0xff] %v1318_v45  ;;  %v1311_v20 = vpop.permute.xlu0 %1310 }
 0x17e   : > { %v1315_v13 = vsel %vm930_vm3, %v1311_v20, %v1313_v35  ;;  %v4230_v1 = vpop.permute.xlu1 %1467 }
 0x17f   : > { %v1319_v52 = vadd.f32 %v1315_v13, %v1282_v3 }
 0x181   : > { %1321 = vst [vmem:[%s4225_s16 + $0x8] sm:$0xff] %v1319_v52  ;;  %v4233_v37 = vpop.permute.xlu0 %1465 }
 0x182   : > { %v4235_v49 = vpop.permute.xlu1 %1471  ;;  %v1474_v46 = vsel %vm930_vm3, %v4233_v37, %v4230_v1 }
 0x183   : > { %v1484_v47 = vmax.f32 %v1430_v18, %v1474_v46  ;;  %v1487_v6 = vmax.f32 %v1433_v4, %v4235_v49 }
 0x185   : > { %v4237_v7 = vpop.permute.xlu0 %1469 }
 0x186   : > { %v4239_v15 = vpop.permute.xlu1 %1492  ;;  %v1475_v37 = vsel %vm930_vm3, %v4237_v7, %v4235_v49 }
 0x187   : > { %v1501_v60 = vadd.f32 %v4239_v15, %v1457_v22  ;;  %v1486_v56 = vmax.f32 %v4314_v27, %v1475_v37 }
 0x189   : > { %v4241_v5 = vpop.permute.xlu0 %1490 }
 0x18a   : > { %v4243_v8 = vpop.permute.xlu1 %1509 }
 0x18d   : > { %v4245_v14 = vpop.permute.xlu0 %1494 }
 0x18e   : > { %v4247_v63 = vpop.permute.xlu1 %1513 }
 0x191   : > { %v4249_v9 = vpop.permute.xlu0 %1511 }
 0x192   : > { %v4251_v17 = vpop.permute.xlu1 %1528 }
 0x195   : > { %v1527_v58 = vpop.permute.xlu0 %1526 }
 0x196   : > { %v4253_v45 = vpop.permute.xlu1 %1532  ;;  %v1538_v41 = vsel %vm930_vm3, %v1527_v58, %v4251_v17 }
 0x199   : > { %v4255_v24 = vpop.permute.xlu0 %1530 }
 0x19a   : > { %v4257_v35 = vpop.permute.xlu1 %1536  ;;  %v1539_v12 = vsel %vm930_vm3, %v4255_v24, %v4253_v45 }
 0x19b   : > { %v1549_v24 = vadd.f32 %v1539_v12, %v1501_v60 }
 0x19d   : > { %v4259_v20 = vpop.permute.xlu0 %1534 }
 0x19e   : > { %v4261_v3 = vpop.permute.xlu1 %1559 }
 0x1a1   : > { %v4263_v13 = vpop.permute.xlu0 %1557 }
 0x1a2   : > { %v4265_v52 = vpop.permute.xlu1 %1563 }
 0x1a3   : > { %5534 = vst [vmem:[#allocation17_spill] sm:$0xff] %v4265_v52  ;;  %v5540_v52 = vld [vmem:[#allocation27_spill] sm:$0xff] }
 0x1a5   : > { %v4267_v44 = vpop.permute.xlu0 %1561 }
 0x1a6   : > { %5535 = vst [vmem:[#allocation13_spill] sm:$0xff] %v4267_v44  ;;  %v4271_v43 = vpop.permute.xlu1 %1567  ;;  %v5539_v44 = vld [vmem:[#allocation20_spill] sm:$0xff] }
 0x1a7   : > { %5536 = vst [vmem:[#allocation25_spill] sm:$0xff] %v4271_v43  ;;  %v1406_v43 = vadd.f32 %v5538_v2, %v1358_v32  ;;  %v1405_v55 = vadd.f32 %v1357_v36, %v5539_v44  ;;  %v1408_v2 = vadd.f32 %v5540_v52, %v1360_v25  ;;  %v5542_v25 = vld [vmem:[#allocation28_spill] sm:$0xff]  ;;  %v5543_v44 = vld [vmem:[#allocation23_spill] sm:$0xff]  ;;  %v716_v52 = vpop.f32.mrb[29].mxu0 }
 0x1a8   : > { %v1410_v32 = vadd.f32 %v5542_v25, %v1362_v42  ;;  %v1409_v0 = vadd.f32 %v1361_v16, %v5543_v44  ;;  %v1448_v42 = vsel %vm930_vm3, %v4186_v57, %v4178_v53 }
 0x1a9   : > { %v4277_v38 = vpop.permute.xlu0 %1565  ;;  %v1456_v36 = vadd.f32 %v4149_v28, %v1406_v43  ;;  %v1455_v28 = vadd.f32 %v1446_v34, %v1405_v55  ;;  %v1458_v11 = vadd.f32 %v4171_v62, %v1408_v2 }
 0x1aa   : > { %5537 = vst [vmem:[#allocation24_spill] sm:$0xff] %v4277_v38  ;;  %v1596_v38 = vpop.permute.xlu1 %1595  ;;  %v1460_v61 = vadd.f32 %v4178_v53, %v1410_v32  ;;  %v1459_v30 = vadd.f32 %v1448_v42, %v1409_v0  ;;  %v1483_v53 = vmax.f32 %v1429_v40, %v4206_v39  ;;  %v5544_v22 = vld [vmem:[#allocation17_spill] sm:$0xff] }
 0x1ab   : > { %v1500_v16 = vadd.f32 %v4241_v5, %v1456_v36  ;;  %v1502_v62 = vadd.f32 %v4239_v15, %v1458_v11  ;;  %v1499_v54 = vadd.f32 %v4241_v5, %v1455_v28  ;;  %v1540_v15 = vsel %vm930_vm3, %v4259_v20, %v4257_v35 }
 0x1ac   : > { %v1504_v19 = vadd.f32 %v4245_v14, %v1460_v61  ;;  %v1503_v39 = vadd.f32 %v4245_v14, %v1459_v30  ;;  %v1604_v25 = vadd.f32 %v1596_v38, %v1549_v24  ;;  %v1519_v20 = vmax.f32 %v1483_v53, %v4243_v8  ;;  %v5547_v61 = vld [vmem:[#allocation30_spill] sm:$0xff] }
 0x1ad   : > { %v1594_v26 = vpop.permute.xlu0 %1593  ;;  %v1548_v57 = vadd.f32 %v4251_v17, %v1500_v16  ;;  %v1547_v55 = vadd.f32 %v1538_v41, %v1499_v54  ;;  %v1550_v5 = vadd.f32 %v4253_v45, %v1502_v62  ;;  %v1485_v45 = vmax.f32 %v1431_v10, %v4230_v1  ;;  %v5546_v41 = vld [vmem:[#allocation11_spill] sm:$0xff] }
 0x1ae   : > { %v4316_v43 = vpop.permute.xlu1 %1617  ;;  %v1552_v7 = vadd.f32 %v4257_v35, %v1504_v19  ;;  %v1551_v0 = vadd.f32 %v1540_v15, %v1503_v39  ;;  %v1569_v1 = vsel %vm930_vm3, %v4263_v13, %v4261_v3  ;;  %v1579_v35 = vmax.f32 %v1519_v20, %v4261_v3  ;;  %v5548_v53 = vld [vmem:[#allocation25_spill] sm:$0xff]  ;;  %v5551_v39 = vld [vmem:[#allocation31_spill] sm:$0xff] }
 0x1af   : > { %v1603_v2 = vadd.f32 %v1594_v26, %v1548_v57  ;;  %v1605_v34 = vadd.f32 %v1596_v38, %v1550_v5  ;;  %v1602_v21 = vadd.f32 %v1594_v26, %v1547_v55  ;;  %v1518_v38 = vmax.f32 %v1482_v33, %v4243_v8  ;;  %v5550_v19 = vld [vmem:[#allocation29_spill] sm:$0xff] }
 0x1b0   : > { %v1521_v27 = vmax.f32 %v1485_v45, %v4249_v9  ;;  %v1649_v11 = vadd.f32 %v1604_v25, %v4044_v48  ;;  %v1627_v8 = vmax.f32 %v1579_v35, %v4316_v43  ;;  %v1520_v62 = vmax.f32 %v1484_v47, %v4249_v9  ;;  %v5554_v35 = vld [vmem:[#allocation15_spill] sm:$0xff] }
 0x1b1   : > { %v1598_v59 = vpop.permute.xlu0 %1597  ;;  %v1648_v32 = vadd.f32 %v4083_v23, %v1603_v2  ;;  %v1647_v52 = vadd.f32 %v1602_v21, %v4048_v31  ;;  %v1650_v40 = vadd.f32 %v4093_v50, %v1605_v34  ;;  %v1523_v23 = vmax.f32 %v1487_v6, %v4247_v63  ;;  %v5545_v31 = vld [vmem:[#allocation13_spill] sm:$0xff]  ;;  %v5549_v33 = vld [vmem:[#allocation24_spill] sm:$0xff] }
 0x1b2   : > { %v4340_v58 = vpop.permute.xlu1 %1621  ;;  %v1607_v26 = vadd.f32 %v1598_v59, %v1552_v7  ;;  %v1606_v51 = vadd.f32 %v1598_v59, %v1551_v0  ;;  %v1578_v16 = vmax.f32 %v1518_v38, %v1569_v1  ;;  %v1570_v50 = vsel %vm930_vm3, %v5545_v31, %v5544_v22 }
 0x1b3   : > { %v1581_v54 = vmax.f32 %v1521_v27, %v5544_v22  ;;  %v1580_v2 = vmax.f32 %v1520_v62, %v1570_v50  ;;  %v1571_v37 = vsel %vm930_vm3, %v5549_v33, %v5548_v53  ;;  %v1522_v45 = vmax.f32 %v1486_v56, %v4247_v63  ;;  %v5556_v22 = vld [vmem:[#allocation32_spill] sm:$0xff] }
 0x1b4   : > { %v1652_v29 = vadd.f32 %v5546_v41, %v1607_v26  ;;  %v1626_v48 = vmax.f32 %v1578_v16, %v4316_v43  ;;  %v1651_v30 = vadd.f32 %v1606_v51, %v5547_v61  ;;  %v1669_v43 = vmax.f32 %v1627_v8, %v5550_v19  ;;  %v1878_v19 = vld [vmem:[#allocation2 + $0x60] sm:$0xf] }
 0x1b5   : > { %v4344_v17 = vpop.permute.xlu0 %1619  ;;  %v1583_v47 = vmax.f32 %v1523_v23, %v5548_v53  ;;  %v1582_v0 = vmax.f32 %v1522_v45, %v1571_v37  ;;  %v1852_v53 = vld [vmem:[%s3190_s12 + $0x60] sm:$0xf] }
 0x1b6   : > { %v1677_v36 = vpop.permute.xlu1 %1676  ;;  %v1629_v24 = vmax.f32 %v1581_v54, %v4344_v17  ;;  %v1628_v7 = vmax.f32 %v1580_v2, %v4344_v17 }
 0x1b7   : > { %v1696_v14 = vadd.f32 %v1677_v36, %v1648_v32  ;;  %v1631_v63 = vmax.f32 %v1583_v47, %v4340_v58 }
 0x1b8   : > { %v1670_v51 = vmax.f32 %v1628_v7, %v5554_v35  ;;  %v5559_v7 = vld [vmem:[#allocation19_spill] sm:$0xff]  ;;  %v4513_v35 = vld [vmem:[%s3190_s12 + $0x60] sm:$0x1f] }
 0x1b9   : > { %v1675_v44 = vpop.permute.xlu0 %1674  ;;  %v1774_v18 = vrot.slane %v1696_v14, 3 }
 0x1ba   : > { %v1686_v49 = vsel %vm930_vm3, %v1675_v44, %v1677_v36  ;;  %v1681_v4 = vpop.permute.xlu1 %1680  ;;  %v1668_v36 = vmax.f32 %v1626_v48, %v5551_v39 }
 0x1bb   : > { %v1695_v28 = vadd.f32 %v1686_v49, %v1647_v52  ;;  %v1698_v13 = vadd.f32 %v1681_v4, %v1650_v40  ;;  %v5552_v49 = vld [vmem:[#allocation34_spill] sm:$0xff]  ;;  %v1630_v52 = vmax.f32 %v1582_v0, %v4340_v58  ;;  %v5553_v40 = vld [vmem:[#allocation35_spill] sm:$0xff] }
 0x1bc   : > { %v1671_v26 = vmax.f32 %v1629_v24, %v5552_v49 }
 0x1bd   : > { %v1679_v42 = vpop.permute.xlu0 %1678  ;;  %v1775_v3 = vrot.slane %v1698_v13, 3  ;;  %v1771_v46 = vrot.slane %v1695_v28, 3  ;;  %v1672_v31 = vmax.f32 %v1630_v52, %v5556_v22  ;;  %v2121_v22 = vld [vmem:[#allocation2 + $0x40] sm:$0xc0] }
 0x1be   : > { %v1687_v10 = vsel %vm930_vm3, %v1679_v42, %v1681_v4  ;;  %v1685_v57 = vpop.permute.xlu1 %1684  ;;  %v5555_v42 = vld [vmem:[#allocation33_spill] sm:$0xff] }
 0x1bf   : > { %v1697_v59 = vadd.f32 %v1687_v10, %v1649_v11  ;;  %v1700_v60 = vadd.f32 %v1685_v57, %v1652_v29  ;;  %v1776_v5 = vsel %vm1740_vm4, %v1774_v18, %v1775_v3  ;;  %v1673_v16 = vmax.f32 %v1631_v63, %v5555_v42  ;;  %v4477_v63 = vld [vmem:[#allocation2 + $0x58] sm:$0xff]  ;;  %v2067_v42 = vld [vmem:[#allocation2 + $0x68] sm:$0x1f] }
 0x1c0   : > { %1783 = vrot.lane.b32.xlu1 %v1776_v5, %s3108_s28  ;;  %v1931_v49 = vrot.slane %v4477_v63, 7 }
 0x1c1   : > { %v1772_v12 = vrot.slane %v1697_v59, 3  ;;  %v1683_v55 = vpop.permute.xlu0 %1682  ;;  %v1779_v15 = vrot.slane %v1700_v60, 3  ;;  %v1851_v59 = vld [vmem:[%s3190_s12 + $0x40] sm:$0xf0] }
 0x1c2   : > { %v1688_v9 = vsel %vm930_vm3, %v1683_v55, %v1685_v57  ;;  %v1704_v6 = vpop.permute.xlu1 %1703  ;;  %v4417_v61 = vrot.slane %v1851_v59, 7  ;;  %v5557_v60 = vld [vmem:[#allocation16_spill] sm:$0xff] }
 0x1c3   : > { %v1699_v34 = vadd.f32 %v1688_v9, %v1651_v30  ;;  %v1773_v21 = vsel %vm1740_vm4, %v1771_v46, %v1772_v12  ;;  %v1723_v32 = vmax.f32 %v1669_v43, %v1704_v6  ;;  %v1780_v20 = vsel %vm1740_vm4, %v1775_v3, %v1779_v15  ;;  %v1876_v9 = vld [vmem:[#allocation2 + $0x40] sm:$0xf0] }
 0x1c4   : > { %1781 = vrot.lane.b32.xlu0 %v1773_v21, %s3108_s28  ;;  %1787 = vrot.lane.b32.xlu1 %v1780_v20, %s3108_s28  ;;  %v1857_v55 = vrot.slane %v5557_v60, 7  ;;  %v1859_v43 = vrot.slane %v1852_v53, 7  ;;  %v4434_v24 = vrot.slane %v1876_v9, 7  ;;  %v5558_v15 = vld [vmem:[#allocation12_spill] sm:$0xff]  ;;  %v1885_v21 = vrot.slane %v1878_v19, 7  ;;  %v4604_v9 = vld [vmem:[%s3190_s12 + $0x70] sm:$0xff] }
 0x1c5   : > { %v1777_v25 = vrot.slane %v1699_v34, 3  ;;  %v1702_v44 = vpop.permute.xlu0 %1701  ;;  %v1798_v38 = vmul.f32 %v1723_v32, %v5553_v40  ;;  %v1883_v34 = vrot.slane %v5558_v15, 7  ;;  %v1903_v32 = vld [vmem:[%s3190_s12 + $0x68] sm:$0xf]  ;;  %v779_v53 = vld [vmem:[%s5387_s2 + $0x80] sm:$0xff]  ;;  %v777_v19 = vld [vmem:[%s5387_s2 + $0x70] sm:$0xff] }
 0x1c6   : > { %v1713_v1 = vsel %vm930_vm3, %v1702_v44, %v1704_v6  ;;  %v1708_v17 = vpop.permute.xlu1 %1707  ;;  %v4429_v37 = vsel %vm840_vm1, %v4417_v61, %v1857_v55  ;;  %v4440_v45 = vsel %vm840_vm1, %v1857_v55, %v1859_v43  ;;  %v1902_v6 = vld [vmem:[%s3190_s12 + $0x48] sm:$0xf0]  ;;  %v1910_v20 = vrot.slane %v1903_v32, 7 }
 0x1c7   : > { %v1722_v56 = vmax.f32 %v1668_v36, %v1713_v1  ;;  %v1778_v14 = vsel %vm1740_vm4, %v1772_v12, %v1777_v25  ;;  %v1725_v23 = vmax.f32 %v1671_v26, %v1708_v17  ;;  %v1812_v50 = vrot.slane %v1798_v38, 3  ;;  %v1924_v1 = vld [vmem:[#allocation2 + $0x48] sm:$0xf0]  ;;  %v1926_v26 = vld [vmem:[#allocation2 + $0x68] sm:$0xf] }
 0x1c8   : > { %1785 = vrot.lane.b32.xlu0 %v1778_v14, %s3108_s28  ;;  %v4445_v47 = vsel %vm840_vm1, %v1883_v34, %v1885_v21  ;;  %v4452_v39 = vsel %vm840_vm1, %v4434_v24, %v1883_v34  ;;  %v4456_v36 = vrot.slane %v1902_v6, 7  ;;  %v1908_v25 = vrot.slane %v5559_v7, 7  ;;  %v4506_v38 = vld [vmem:[%s3190_s12 + $0x40] sm:$0xe0]  ;;  %v2167_v32 = vld [vmem:[#allocation2 + $0x68] sm:$0x3f] }
 0x1c9   : > { %v1706_v4 = vpop.permute.xlu0 %1705  ;;  %v1797_v27 = vmul.f32 %v1722_v56, %v5553_v40  ;;  %v1800_v13 = vmul.f32 %v1725_v23, %v5553_v40  ;;  %v4481_v56 = vrot.slane %v1924_v1, 7  ;;  %v1933_v52 = vrot.slane %v1926_v26, 7  ;;  %v2018_v23 = vld [vmem:[#allocation2 + $0x40] sm:$0xe0]  ;;  %v1324_v26 = vld [vmem:[#allocation4 + $0x13] sm:$0xff] }
 0x1ca   : > { %v1714_v28 = vsel %vm930_vm3, %v1706_v4, %v1708_v17  ;;  %v1712_v58 = vpop.permute.xlu1 %1711  ;;  %v4466_v44 = vsel %vm840_vm1, %v4456_v36, %v1908_v25  ;;  %v4473_v0 = vsel %vm840_vm1, %v1908_v25, %v1910_v20  ;;  %v4520_v4 = vld [vmem:[%s3190_s12 + $0x48] sm:$0xe0]  ;;  %v2171_v21 = vrot.slane %v4477_v63, 1 }
 0x1cb   : > { %v1724_v11 = vmax.f32 %v1670_v51, %v1714_v28  ;;  %v1813_v8 = vrot.slane %v1800_v13, 3  ;;  %v1727_v18 = vmax.f32 %v1673_v16, %v1712_v58  ;;  %v1809_v41 = vrot.slane %v1797_v27, 3  ;;  %v2019_v51 = vld [vmem:[#allocation2 + $0x60] sm:$0x1f]  ;;  %v4531_v27 = vld [vmem:[%s3190_s12 + $0x68] sm:$0x1f] }
 0x1cc   : > { %v4490_v14 = vsel %vm840_vm1, %v4481_v56, %v1931_v49  ;;  %v4497_v17 = vsel %vm840_vm1, %v1931_v49, %v1933_v52  ;;  %v2066_v28 = vld [vmem:[#allocation2 + $0x48] sm:$0xe0]  ;;  %v2098_v13 = vld [vmem:[%s3190_s12 + $0x60] sm:$0x3f]  ;;  %v2102_v16 = vrot.slane %v5557_v60, 1  ;;  %v4626_v1 = vrot.slane %v2167_v32, 1 }
 0x1cd   : > { %v1799_v10 = vmul.f32 %v1724_v11, %v5553_v40  ;;  %v1710_v3 = vpop.permute.xlu0 %1709  ;;  %v1802_v54 = vmul.f32 %v1727_v18, %v5553_v40  ;;  %v1814_v57 = vsel %vm1740_vm4, %v1812_v50, %v1813_v8  ;;  %v2097_v11 = vld [vmem:[%s3190_s12 + $0x40] sm:$0xc0] }
 0x1ce   : > { %v1715_v29 = vsel %vm930_vm3, %v1710_v3, %v1712_v58  ;;  %1821 = vrot.lane.b32.xlu1 %v1814_v57, %s3108_s28  ;;  %v4546_v58 = vrot.slane %v2098_v13, 1  ;;  %v2122_v3 = vld [vmem:[#allocation2 + $0x60] sm:$0x3f]  ;;  %5572 = vst [vmem:[#allocation25_spill] sm:$0xff] %v4626_v1 }
 0x1cf   : > { %v1810_v62 = vrot.slane %v1799_v10, 3  ;;  %v1726_v48 = vmax.f32 %v1672_v31, %v1715_v29  ;;  %v1817_v30 = vrot.slane %v1802_v54, 3  ;;  %v2101_v31 = vrot.slane %v2097_v11, 1  ;;  %v1322_v49 = vld [vmem:[#allocation3 + $0x12] sm:$0xff] }
 0x1d0   : > { %5560 = vst [vmem:[#allocation9_spill] sm:$0xff] %v4546_v58  ;;  %v4553_v50 = vsel %vm1073_vm2, %v2102_v16, %v4546_v58  ;;  %v2126_v10 = vrot.slane %v5558_v15, 1  ;;  %v4568_v29 = vrot.slane %v2122_v3, 1  ;;  %v2150_v54 = vrot.slane %v5559_v7, 1 }
 0x1d1   : > { %v1801_v46 = vmul.f32 %v1726_v48, %v5553_v40  ;;  %v1811_v12 = vsel %vm1740_vm4, %v1809_v41, %v1810_v62  ;;  %v1818_v2 = vsel %vm1740_vm4, %v1813_v8, %v1817_v30  ;;  %5561 = vst [vmem:[#allocation10_spill] sm:$0xff] %v4553_v50  ;;  %v2125_v8 = vrot.slane %v2121_v22, 1  ;;  %v2145_v41 = vld [vmem:[%s3190_s12 + $0x48] sm:$0xc0]  ;;  %v2146_v48 = vld [vmem:[%s3190_s12 + $0x68] sm:$0x3f]  ;;  %v1752_v55 = vpop.permute.xlu0 %1751 }
 0x1d2   : > { %1819 = vrot.lane.b32.xlu0 %v1811_v12, %s3108_s28  ;;  %1825 = vrot.lane.b32.xlu1 %v1818_v2, %s3108_s28  ;;  %v4558_v18 = vsel %vm1073_vm2, %v2101_v31, %v2102_v16  ;;  %5564 = vst [vmem:[#allocation27_spill] sm:$0xff] %v4568_v29  ;;  %v4578_v57 = vsel %vm1073_vm2, %v2126_v10, %v4568_v29  ;;  %v1754_v12 = vpop.permute.xlu1 %1753  ;;  %v4596_v2 = vld [vmem:[%s3190_s12 + $0x80] sm:$0xff]  ;;  %v1323_v16 = vld [vmem:[#allocation3 + $0x1a] sm:$0xff]  ;;  %v1325_v22 = vld [vmem:[#allocation4 + $0x1b] sm:$0xff] }
 0x1d3   : > { %v1815_v5 = vrot.slane %v1801_v46, 3  ;;  %5562 = vst [vmem:[#allocation26_spill] sm:$0xff] %v4558_v18  ;;  %v4563_v59 = vsel %vm1073_vm2, %v2125_v8, %v2126_v10  ;;  %5565 = vst [vmem:[#allocation21_spill] sm:$0xff] %v4578_v57  ;;  %v4585_v46 = vrot.slane %v2146_v48, 1  ;;  %v4610_v43 = vadd.f32 %v779_v53, %v4596_v2 }
 0x1d4   : > { %5563 = vst [vmem:[#allocation20_spill] sm:$0xff] %v4563_v59  ;;  %5568 = vst [vmem:[#allocation17_spill] sm:$0xff] %v4596_v2  ;;  %v1326_v11 = vadd.f32 %v1324_v26, %v1322_v49  ;;  %v1327_v48 = vadd.f32 %v1325_v22, %v1323_v16  ;;  %v5575_v49 = vld [vmem:[#allocation14_spill] sm:$0xff]  ;;  %v563_v2 = vpop.f32.mrb[10].mxu1 }
 0x1d5   : > { %v1816_v33 = vsel %vm1740_vm4, %v1810_v62, %v1815_v5  ;;  %v2149_v62 = vrot.slane %v2145_v41, 1  ;;  %5566 = vst [vmem:[#allocation28_spill] sm:$0xff] %v4585_v46  ;;  %v4593_v5 = vsel %vm1073_vm2, %v2150_v54, %v4585_v46  ;;  %5569 = vst [vmem:[#allocation13_spill] sm:$0xff] %v4610_v43  ;;  %v1756_v25 = vpop.permute.xlu0 %1755 }
 0x1d6   : > { %1823 = vrot.lane.b32.xlu0 %v1816_v33, %s3108_s28  ;;  %1863 = vrot.lane.b32.xlu1 %v4429_v37, %s3107_s21  ;;  %5567 = vst [vmem:[#allocation23_spill] sm:$0xff] %v4593_v5  ;;  %v2166_v33 = vld [vmem:[#allocation2 + $0x48] sm:$0xc0]  ;;  %815 = vst [vmem:[#allocation2 + $0x80] sm:$0xff] %v4610_v43  ;;  %v1758_v6 = vpop.permute.xlu1 %1757 }
 0x1d7   : > { %v4583_v30 = vsel %vm1073_vm2, %v2149_v62, %v2150_v54  ;;  %v2170_v34 = vrot.slane %v2166_v33, 1  ;;  %v1760_v22 = vsel %vm930_vm3, %v1756_v25, %v1758_v6  ;;  %v780_v6 = vld [vmem:[%s5387_s2 + $0x88] sm:$0xff]  ;;  %587 = vst [vmem:[#allocation4 + $0x28] sm:$0xff] %v563_v2  ;;  %v717_v2 = vpop.f32.mrb[30].mxu0 }
 0x1d8   : > { %741 = vst [vmem:[#allocation5 + $0x28] sm:$0xff] %v717_v2 }
 0x1d9   : > { %v4624_v20 = vsel %vm1073_vm2, %v2170_v34, %v2171_v21 }
 0x1da   : > { %1861 = vrot.lane.b32.xlu0 %v4417_v61, %s3107_s21  ;;  %1887 = vrot.lane.b32.xlu1 %v4434_v24, %s3107_s21  ;;  %5571 = vst [vmem:[#allocation30_spill] sm:$0xff] %v4624_v20 }
 0x1de   : > { %1865 = vrot.lane.b32.xlu0 %v4440_v45, %s3107_s21  ;;  %1891 = vrot.lane.b32.xlu1 %v4445_v47, %s3107_s21 }
 0x1e2   : > { %1889 = vrot.lane.b32.xlu0 %v4452_v39, %s3107_s21  ;;  %1949 = vrot.lane.b32.xlu1 %v4456_v36, %s3108_s28 }
 0x1e6   : > { %1947 = vrot.lane.b32.xlu0 %v4417_v61, %s3108_s28  ;;  %1953 = vrot.lane.b32.xlu1 %v4466_v44, %s3108_s28 }
 0x1ea   : > { %1951 = vrot.lane.b32.xlu0 %v4429_v37, %s3108_s28  ;;  %1957 = vrot.lane.b32.xlu1 %v4473_v0, %s3108_s28 }
 0x1ee   : > { %1955 = vrot.lane.b32.xlu0 %v4440_v45, %s3108_s28  ;;  %1976 = vrot.lane.b32.xlu1 %v4481_v56, %s3108_s28 }
 0x1f2   : > { %1974 = vrot.lane.b32.xlu0 %v4434_v24, %s3108_s28  ;;  %1980 = vrot.lane.b32.xlu1 %v4490_v14, %s3108_s28 }
 0x1f6   : > { %1978 = vrot.lane.b32.xlu0 %v4452_v39, %s3108_s28  ;;  %1984 = vrot.lane.b32.xlu1 %v4497_v17, %s3108_s28 }
 0x1fa   : > { %1982 = vrot.lane.b32.xlu0 %v4445_v47, %s3108_s28  ;;  %2005 = vrot.lane.b32.xlu1 %v5557_v60, %s3107_s21 }
 0x1fe   : > { %2003 = vrot.lane.b32.xlu0 %v4506_v38, %s3107_s21  ;;  %2022 = vrot.lane.b32.xlu1 %v2018_v23, %s3107_s21 }
 0x202   : > { %2007 = vrot.lane.b32.xlu0 %v4513_v35, %s3107_s21  ;;  %2026 = vrot.lane.b32.xlu1 %v2019_v51, %s3107_s21 }
 0x206   : > { %2024 = vrot.lane.b32.xlu0 %v5558_v15, %s3107_s21  ;;  %2041 = vrot.lane.b32.xlu1 %v4520_v4, %s3108_s28 }
 0x20a   : > { %2039 = vrot.lane.b32.xlu0 %v4506_v38, %s3108_s28  ;;  %2045 = vrot.lane.b32.xlu1 %v5559_v7, %s3108_s28 }
 0x20e   : > { %2043 = vrot.lane.b32.xlu0 %v5557_v60, %s3108_s28  ;;  %2049 = vrot.lane.b32.xlu1 %v4531_v27, %s3108_s28 }
 0x212   : > { %2047 = vrot.lane.b32.xlu0 %v4513_v35, %s3108_s28  ;;  %2072 = vrot.lane.b32.xlu1 %v2066_v28, %s3108_s28  ;;  %v4636_v28 = vsel %vm1073_vm2, %v2171_v21, %v4626_v1 }
 0x213   : > { %5574 = vst [vmem:[#allocation24_spill] sm:$0xff] %v4636_v28 }
 0x216   : > { %2070 = vrot.lane.b32.xlu0 %v2018_v23, %s3108_s28  ;;  %2076 = vrot.lane.b32.xlu1 %v4477_v63, %s3108_s28  ;;  %v5573_v23 = vld [vmem:[#allocation18_spill] sm:$0xff] }
 0x217   : > { %v2244_v13 = vmul.f32 %v5559_v7, %v5573_v23  ;;  %v2241_v31 = vmul.f32 %v4506_v38, %v5573_v23  ;;  %v2243_v8 = vmul.f32 %v5557_v60, %v5573_v23  ;;  %v2246_v10 = vmul.f32 %v4531_v27, %v5573_v23 }
 0x218   : > { %v1759_v60 = vsel %vm930_vm3, %v1752_v55, %v1754_v12  ;;  %v2245_v32 = vmul.f32 %v4513_v35, %v5573_v23  ;;  %v778_v12 = vld [vmem:[%s5387_s2 + $0x78] sm:$0xff] }
 0x219   : > { %v2258_v62 = vrot.slane %v2244_v13, 5  ;;  %v2254_v34 = vrot.slane %v2241_v31, 5  ;;  %v2255_v21 = vrot.slane %v2243_v8, 5  ;;  %v4662_v13 = vld [vmem:[%s3190_s12 + $0x78] sm:$0xff] }
 0x21a   : > { %2074 = vrot.lane.b32.xlu0 %v5558_v15, %s3108_s28  ;;  %2080 = vrot.lane.b32.xlu1 %v2067_v42, %s3108_s28  ;;  %v4613_v15 = vadd.f32 %v4604_v9, %v777_v19  ;;  %v1328_v42 = vld [vmem:[#allocation5 + $0x14] sm:$0xff]  ;;  %v1329_v19 = vld [vmem:[#allocation5 + $0x1c] sm:$0xff]  ;;  %5576 = vst [vmem:[#allocation29_spill] sm:$0xff] %v4662_v13  ;;  %v796_v16 = vadd.f32 %v4662_v13, %v778_v12  ;;  %v2260_v8 = vrot.slane %v2245_v32, 5  ;;  %v565_v13 = vpop.f32.mrb[11].mxu1 }
 0x21b   : > { %v1330_v54 = vadd.f32 %v1328_v42, %v1326_v11  ;;  %v1331_v11 = vadd.f32 %v1329_v19, %v1327_v48  ;;  %v2256_v31 = vsel %vm2253_vm5, %v2254_v34, %v2255_v21 }
 0x21c   : > { %5570 = vst [vmem:[#allocation11_spill] sm:$0xff] %v4613_v15  ;;  %814 = vst.msk [vmem:[#allocation2 + $0x78] sm:$0xff] %vm340_vm0, %v796_v16  ;;  %v2261_v32 = vsel %vm2253_vm5, %v2255_v21, %v2260_v8 }
 0x21d   : > { %v1763_v55 = vadd.f32 %v1759_v60, %v1330_v54  ;;  %v1764_v25 = vadd.f32 %v1760_v22, %v1331_v11 }
 0x21e   : > { %2078 = vrot.lane.b32.xlu0 %v2019_v51, %s3108_s28  ;;  %2108 = vrot.lane.b32.xlu1 %v4553_v50, %s3107_s21  ;;  %v2242_v51 = vmul.f32 %v4520_v4, %v5573_v23 }
 0x220   : > { %v2257_v41 = vrot.slane %v2242_v51, 5  ;;  %v2262_v51 = vrot.slane %v2246_v10, 5  ;;  %v5577_v10 = vld [vmem:[#allocation22_spill] sm:$0xff] }
 0x222   : > { %2106 = vrot.lane.b32.xlu0 %v4558_v18, %s3107_s21  ;;  %2130 = vrot.lane.b32.xlu1 %v4563_v59, %s3107_s21  ;;  %v2263_v48 = vsel %vm2253_vm5, %v2258_v62, %v2262_v51 }
 0x226   : > { %2110 = vrot.lane.b32.xlu0 %v4546_v58, %s3107_s21  ;;  %2134 = vrot.lane.b32.xlu1 %v4568_v29, %s3107_s21 }
 0x22a   : > { %2132 = vrot.lane.b32.xlu0 %v4578_v57, %s3107_s21  ;;  %2189 = vrot.lane.b32.xlu1 %v4583_v30, %s3108_s28 }
 0x22e   : > { %2187 = vrot.lane.b32.xlu0 %v4558_v18, %s3108_s28  ;;  %2193 = vrot.lane.b32.xlu1 %v4593_v5, %s3108_s28 }
 0x232   : > { %2191 = vrot.lane.b32.xlu0 %v4553_v50, %s3108_s28  ;;  %2197 = vrot.lane.b32.xlu1 %v4585_v46, %s3108_s28  ;;  %v1784_v63 = vpop.permute.xlu1 %1783 }
 0x236   : > { %2195 = vrot.lane.b32.xlu0 %v4546_v58, %s3108_s28  ;;  %v1782_v52 = vpop.permute.xlu0 %1781  ;;  %2216 = vrot.lane.b32.xlu1 %v4624_v20, %s3108_s28  ;;  %v1788_v53 = vpop.permute.xlu1 %1787 }
 0x237   : > { %v1789_v3 = vsel %vm930_vm3, %v1782_v52, %v1784_v63  ;;  %v2259_v52 = vsel %vm2253_vm5, %v2257_v41, %v2258_v62 }
 0x238   : > { %v1793_v26 = vmul.f32 %v1789_v3, %v5575_v49 }
 0x23a   : > { %2214 = vrot.lane.b32.xlu0 %v4563_v59, %s3108_s28  ;;  %2220 = vrot.lane.b32.xlu1 %v4636_v28, %s3108_s28  ;;  %v1786_v33 = vpop.permute.xlu0 %1785 }
 0x23b   : > { %v1790_v63 = vsel %vm930_vm3, %v1786_v33, %v1788_v53  ;;  %v1795_v53 = vadd.f32 %v1793_v26, %v1763_v55  ;;  %v4678_v33 = vld [vmem:[%s3190_s12 + $0x88] sm:$0xff] }
 0x23c   : > { %v1794_v3 = vmul.f32 %v1790_v63, %v5577_v10  ;;  %5578 = vst [vmem:[#allocation31_spill] sm:$0xff] %v4678_v33  ;;  %v798_v34 = vadd.f32 %v780_v6, %v4678_v33 }
 0x23e   : > { %2218 = vrot.lane.b32.xlu0 %v4578_v57, %s3108_s28  ;;  %2224 = vrot.lane.b32.xlu1 %v4626_v1, %s3108_s28  ;;  %v1796_v26 = vadd.f32 %v1794_v3, %v1764_v25  ;;  %816 = vst.msk [vmem:[#allocation2 + $0x88] sm:$0xff] %vm340_vm0, %v798_v34  ;;  %v568_v57 = vpop.f32.mrb[12].mxu1 }
 0x23f   : > { %588 = vst [vmem:[#allocation4 + $0x30] sm:$0xff] %v568_v57  ;;  %v570_v40 = vpop.f32.mrb[13].mxu1 }
 0x240   : > { %v1822_v42 = vpop.permute.xlu1 %1821  ;;  %v571_v28 = vpop.f32.mrb[14].mxu1 }
 0x241   : > { %589 = vst [vmem:[#allocation4 + $0x38] sm:$0xff] %v571_v28  ;;  %v573_v59 = vpop.f32.mrb[15].mxu1 }
 0x242   : > { %2222 = vrot.lane.b32.xlu0 %v4568_v29, %s3108_s28  ;;  %2266 = vrot.lane.b32.xlu1 %v2259_v52, %s3108_s28  ;;  %v576_v58 = vpop.f32.mrb[16].mxu1 }
 0x243   : > { %590 = vst [vmem:[#allocation4 + $0x40] sm:$0xff] %v576_v58  ;;  %v578_v13 = vpop.f32.mrb[17].mxu1 }
 0x244   : > { %v1820_v41 = vpop.permute.xlu0 %1819  ;;  %v1826_v19 = vpop.permute.xlu1 %1825 }
 0x245   : > { %v1827_v54 = vsel %vm930_vm3, %v1820_v41, %v1822_v42  ;;  %v579_v57 = vpop.f32.mrb[18].mxu1 }
 0x246   : > { %v1831_v60 = vadd.f32 %v1827_v54, %v1795_v53  ;;  %2264 = vrot.lane.b32.xlu0 %v2256_v31, %s3108_s28  ;;  %2270 = vrot.lane.b32.xlu1 %v2263_v48, %s3108_s28  ;;  %v580_v13 = vpop.f32.mrb[19].mxu1 }
 0x247   : > { %v722_v18 = vpop.f32.mrb[20].mxu1 }
 0x248   : > { %1833 = vst [vmem:[%s4225_s16 + $0x10] sm:$0xff] %v1831_v60  ;;  %v1824_v49 = vpop.permute.xlu0 %1823  ;;  %v1864_v52 = vpop.permute.xlu1 %1863  ;;  %742 = vst [vmem:[#allocation5 + $0x30] sm:$0xff] %v722_v18 }
 0x249   : > { %v1828_v62 = vsel %vm930_vm3, %v1824_v49, %v1826_v19  ;;  %v1873_v28 = vadd.f32 %v1864_v52, %v5559_v7  ;;  %v2370_v7 = vrot.slane %v4604_v9, 7 }
 0x24a   : > { %v1832_v63 = vadd.f32 %v1828_v62, %v1796_v26  ;;  %2268 = vrot.lane.b32.xlu0 %v2261_v32, %s3108_s28 }
 0x24c   : > { %1834 = vst [vmem:[%s4225_s16 + $0x18] sm:$0xff] %v1832_v63  ;;  %v1862_v51 = vpop.permute.xlu0 %1861  ;;  %v4692_v12 = vpop.permute.xlu1 %1887 }
 0x24d   : > { %v1871_v46 = vadd.f32 %v1862_v51, %v4520_v4  ;;  %v1897_v2 = vmax.f32 %v4520_v4, %v4692_v12 }
 0x250   : > { %v4694_v55 = vpop.permute.xlu0 %1865  ;;  %v4696_v21 = vpop.permute.xlu1 %1891 }
 0x251   : > { %v1900_v59 = vmax.f32 %v4513_v35, %v4696_v21  ;;  %v1901_v58 = vmax.f32 %v4531_v27, %v4696_v21  ;;  %v1874_v21 = vadd.f32 %v4694_v55, %v4513_v35  ;;  %v1896_v35 = vmax.f32 %v4506_v38, %v4692_v12 }
 0x253   : > { %v1946_v18 = vmax.f32 %v1901_v58, %v4497_v17 }
 0x254   : > { %v4698_v11 = vpop.permute.xlu0 %1889  ;;  %v4700_v42 = vpop.permute.xlu1 %1949 }
 0x258   : > { %v4702_v16 = vpop.permute.xlu0 %1947  ;;  %v4704_v22 = vpop.permute.xlu1 %1953 }
 0x25c   : > { %v4706_v31 = vpop.permute.xlu0 %1951  ;;  %v4708_v8 = vpop.permute.xlu1 %1957 }
 0x260   : > { %v4710_v10 = vpop.permute.xlu0 %1955  ;;  %v4712_v3 = vpop.permute.xlu1 %1976 }
 0x264   : > { %v4714_v41 = vpop.permute.xlu0 %1974  ;;  %v4716_v53 = vpop.permute.xlu1 %1980 }
 0x268   : > { %v4718_v54 = vpop.permute.xlu0 %1978  ;;  %v4720_v48 = vpop.permute.xlu1 %1984 }
 0x26c   : > { %v1983_v6 = vpop.permute.xlu0 %1982  ;;  %v4722_v25 = vpop.permute.xlu1 %2005 }
 0x26d   : > { %v1988_v4 = vsel %vm930_vm3, %v1983_v6, %v4720_v48  ;;  %v3074_v6 = vld [vmem:[%s3190_s12 + $0x58] sm:$0xff] }
 0x270   : > { %v4724_v60 = vpop.permute.xlu0 %2003  ;;  %v4726_v19 = vpop.permute.xlu1 %2022 }
 0x274   : > { %v4728_v34 = vpop.permute.xlu0 %2007  ;;  %v4730_v32 = vpop.permute.xlu1 %2026 }
 0x278   : > { %v4732_v49 = vpop.permute.xlu0 %2024  ;;  %v4734_v26 = vpop.permute.xlu1 %2041 }
 0x279   : > { %5579 = vst [vmem:[#allocation34_spill] sm:$0xff] %v4732_v49  ;;  %v4759_v49 = vld [vmem:[%s3190_s12 + $0x50] sm:$0xff] }
 0x27a   : > { %v1872_v40 = vadd.f32 %v4759_v49, %v1864_v52  ;;  %v724_v52 = vpop.f32.mrb[21].mxu1 }
 0x27b   : > { %v1945_v52 = vmax.f32 %v1900_v59, %v4445_v47  ;;  %v2000_v47 = vmax.f32 %v1946_v18, %v4720_v48 }
 0x27c   : > { %v4736_v62 = vpop.permute.xlu0 %2039  ;;  %v4738_v63 = vpop.permute.xlu1 %2045 }
 0x27d   : > { %v1999_v17 = vmax.f32 %v1945_v52, %v1988_v4  ;;  %v2036_v48 = vmax.f32 %v2000_v47, %v4730_v32  ;;  %v2051_v59 = vsel %vm930_vm3, %v4736_v62, %v4734_v26 }
 0x280   : > { %v4740_v23 = vpop.permute.xlu0 %2043  ;;  %v4742_v33 = vpop.permute.xlu1 %2049 }
 0x284   : > { %v4744_v43 = vpop.permute.xlu0 %2047  ;;  %v4746_v29 = vpop.permute.xlu1 %2072 }
 0x285   : > { %5580 = vst [vmem:[#allocation15_spill] sm:$0xff] %v4746_v29 }
 0x288   : > { %v4748_v1 = vpop.permute.xlu0 %2070  ;;  %v4750_v15 = vpop.permute.xlu1 %2076 }
 0x289   : > { %5581 = vst [vmem:[#allocation33_spill] sm:$0xff] %v4748_v1  ;;  %5582 = vst [vmem:[#allocation32_spill] sm:$0xff] %v4750_v15  ;;  %v2364_v1 = vld [vmem:[%s3190_s12 + $0x60] sm:$0xc0]  ;;  %v1870_v15 = vadd.f32 %v1862_v51, %v4506_v38  ;;  %v1919_v51 = vadd.f32 %v4456_v36, %v1871_v46  ;;  %v1942_v46 = vmax.f32 %v1897_v2, %v4481_v56 }
 0x28a   : > { %v4772_v5 = vrot.slane %v2364_v1, 7  ;;  %v1921_v1 = vadd.f32 %v4466_v44, %v1873_v28  ;;  %v1959_v44 = vsel %vm930_vm3, %v4702_v16, %v4700_v42  ;;  %v1898_v38 = vmax.f32 %v4759_v49, %v4698_v11 }
 0x28b   : > { %v1918_v36 = vadd.f32 %v1870_v15, %v4417_v61  ;;  %v1922_v56 = vadd.f32 %v1874_v21, %v4440_v45  ;;  %v1986_v2 = vsel %vm930_vm3, %v4714_v41, %v4712_v3 }
 0x28c   : > { %v4752_v20 = vpop.permute.xlu0 %2074  ;;  %v4755_v50 = vpop.permute.xlu1 %2080  ;;  %v1971_v12 = vadd.f32 %v4704_v22, %v1921_v1 }
 0x28d   : > { %5583 = vst [vmem:[#allocation16_spill] sm:$0xff] %v4752_v20  ;;  %v719_v20 = vpop.f32.mrb[31].mxu0 }
 0x28e   : > { %v1875_v20 = vadd.f32 %v4694_v55, %v4531_v27  ;;  %v1969_v27 = vadd.f32 %v4700_v42, %v1919_v51  ;;  %v1899_v42 = vmax.f32 %v3074_v6, %v4698_v11  ;;  %v2096_v11 = vmax.f32 %v2036_v48, %v4755_v50 }
 0x290   : > { %v2079_v57 = vpop.permute.xlu0 %2078  ;;  %v4782_v13 = vpop.permute.xlu1 %2108  ;;  %v1923_v61 = vadd.f32 %v4473_v0, %v1875_v20  ;;  %v2013_v16 = vadd.f32 %v4724_v60, %v1969_v27 }
 0x291   : > { %v2084_v29 = vsel %vm930_vm3, %v2079_v57, %v4755_v50  ;;  %v1920_v57 = vadd.f32 %v1872_v40, %v4429_v37  ;;  %v1960_v37 = vsel %vm930_vm3, %v4706_v31, %v4704_v22  ;;  %v2035_v31 = vmax.f32 %v1999_v17, %v4730_v32 }
 0x292   : > { %v1968_v40 = vadd.f32 %v1959_v44, %v1918_v36  ;;  %v1973_v49 = vadd.f32 %v4708_v8, %v1923_v61  ;;  %v2015_v22 = vadd.f32 %v4722_v25, %v1971_v12  ;;  %v2061_v45 = vadd.f32 %v4734_v26, %v2013_v16 }
 0x293   : > { %v1970_v28 = vadd.f32 %v1960_v37, %v1920_v57  ;;  %v2095_v58 = vmax.f32 %v2035_v31, %v2084_v29  ;;  %v1961_v32 = vsel %vm930_vm3, %v4710_v10, %v4708_v8  ;;  %v2052_v26 = vsel %vm930_vm3, %v4740_v23, %v4738_v63 }
 0x294   : > { %v2107_v55 = vpop.permute.xlu0 %2106  ;;  %v4805_v15 = vpop.permute.xlu1 %2130  ;;  %v2012_v21 = vadd.f32 %v4724_v60, %v1968_v40  ;;  %v2063_v20 = vadd.f32 %v4738_v63, %v2015_v22  ;;  %v1941_v8 = vmax.f32 %v1896_v35, %v4434_v24  ;;  %v1944_v10 = vmax.f32 %v1899_v42, %v4490_v14  ;;  %v2365_v40 = vld [vmem:[%s3190_s12 + $0x80] sm:$0x3f] }
 0x295   : > { %v2116_v62 = vadd.f32 %v2107_v55, %v2061_v45  ;;  %v2014_v41 = vadd.f32 %v4722_v25, %v1970_v28  ;;  %v1972_v1 = vadd.f32 %v1961_v32, %v1922_v56  ;;  %v1943_v57 = vmax.f32 %v1898_v38, %v4452_v39  ;;  %v5584_v38 = vld [vmem:[#allocation23_spill] sm:$0xff]  ;;  %v5586_v56 = vld [vmem:[#allocation26_spill] sm:$0xff] }
 0x296   : > { %v2060_v4 = vadd.f32 %v2051_v59, %v2012_v21  ;;  %v2017_v18 = vadd.f32 %v4728_v34, %v1973_v49  ;;  %v2118_v23 = vadd.f32 %v4782_v13, %v2063_v20  ;;  %v1996_v63 = vmax.f32 %v1942_v46, %v4712_v3  ;;  %v5589_v28 = vld [vmem:[#allocation10_spill] sm:$0xff] }
 0x297   : > { %v1995_v52 = vmax.f32 %v1941_v8, %v1986_v2  ;;  %v2062_v27 = vadd.f32 %v2052_v26, %v2014_v41  ;;  %v1987_v14 = vsel %vm930_vm3, %v4718_v54, %v4716_v53  ;;  %v2053_v39 = vsel %vm930_vm3, %v4744_v43, %v4742_v33 }
 0x298   : > { %v2111_v0 = vpop.permute.xlu0 %2110  ;;  %v2135_v51 = vpop.permute.xlu1 %2134  ;;  %v2115_v36 = vadd.f32 %v2107_v55, %v2060_v4  ;;  %v2065_v25 = vadd.f32 %v4742_v33, %v2017_v18  ;;  %v2161_v35 = vadd.f32 %v4583_v30, %v2116_v62  ;;  %v1998_v44 = vmax.f32 %v1944_v10, %v4716_v53  ;;  %v5585_v33 = vld [vmem:[#allocation15_spill] sm:$0xff]  ;;  %v5591_v10 = vld [vmem:[#allocation32_spill] sm:$0xff] }
 0x299   : > { %v4830_v50 = vmax.f32 %v2095_v58, %v2135_v51  ;;  %v4832_v29 = vmax.f32 %v2096_v11, %v2135_v51  ;;  %v2032_v3 = vmax.f32 %v1996_v63, %v4726_v19  ;;  %v2016_v46 = vadd.f32 %v4728_v34, %v1972_v1  ;;  %v5587_v34 = vld [vmem:[#allocation34_spill] sm:$0xff]  ;;  %v5592_v4 = vld [vmem:[#allocation16_spill] sm:$0xff] }
 0x29a   : > { %v2117_v55 = vadd.f32 %v4782_v13, %v2062_v27  ;;  %v2120_v47 = vadd.f32 %v2111_v0, %v2065_v25  ;;  %v2163_v12 = vadd.f32 %v5584_v38, %v2118_v23  ;;  %v1997_v61 = vmax.f32 %v1943_v57, %v1987_v14  ;;  %v5588_v13 = vld [vmem:[#allocation33_spill] sm:$0xff] }
 0x29b   : > { %v2064_v43 = vadd.f32 %v2053_v39, %v2016_v46  ;;  %v2092_v30 = vmax.f32 %v2032_v3, %v5585_v33  ;;  %v2160_v53 = vadd.f32 %v2115_v36, %v5586_v56  ;;  %v2031_v42 = vmax.f32 %v1995_v52, %v4726_v19  ;;  %v5590_v19 = vld [vmem:[#allocation28_spill] sm:$0xff]  ;;  %v5593_v23 = vld [vmem:[#allocation9_spill] sm:$0xff]  ;;  %v5594_v39 = vld [vmem:[#allocation30_spill] sm:$0xff] }
 0x29c   : > { %v4837_v60 = vpop.permute.xlu0 %2132  ;;  %v2190_v24 = vpop.permute.xlu1 %2189  ;;  %v2034_v16 = vmax.f32 %v1998_v44, %v5587_v34  ;;  %v2082_v31 = vsel %vm930_vm3, %v5588_v13, %v5585_v33  ;;  %v2162_v49 = vadd.f32 %v2117_v55, %v5589_v28  ;;  %v2165_v21 = vadd.f32 %v5590_v19, %v2120_v47  ;;  %v5598_v13 = vld [vmem:[#allocation35_spill] sm:$0xff] }
 0x29d   : > { %v2209_v54 = vadd.f32 %v2190_v24, %v2161_v35  ;;  %v2140_v22 = vmax.f32 %v2092_v30, %v4805_v15  ;;  %v2119_v45 = vadd.f32 %v2111_v0, %v2064_v43  ;;  %v2033_v20 = vmax.f32 %v1997_v61, %v5587_v34  ;;  %v5596_v30 = vld [vmem:[#allocation24_spill] sm:$0xff] }
 0x29e   : > { %v2091_v51 = vmax.f32 %v2031_v42, %v2082_v31  ;;  %v2372_v8 = vrot.slane %v2365_v40, 7  ;;  %v2094_v41 = vmax.f32 %v2034_v16, %v5591_v10  ;;  %v2083_v0 = vsel %vm930_vm3, %v5592_v4, %v5591_v10  ;;  %v5599_v40 = vld [vmem:[#allocation21_spill] sm:$0xff] }
 0x29f   : > { %v2287_v58 = vrot.slane %v2209_v54, 5  ;;  %v2164_v63 = vadd.f32 %v2119_v45, %v5593_v23  ;;  %v2182_v35 = vmax.f32 %v2140_v22, %v5594_v39  ;;  %v2093_v44 = vmax.f32 %v2033_v20, %v2083_v0  ;;  %v5595_v54 = vld [vmem:[#allocation20_spill] sm:$0xff] }
 0x2a0   : > { %v2188_v37 = vpop.permute.xlu0 %2187  ;;  %v2194_v6 = vpop.permute.xlu1 %2193  ;;  %v2139_v18 = vmax.f32 %v2091_v51, %v4805_v15  ;;  %v2389_v15 = vld [vmem:[#allocation2 + $0x60] sm:$0xc0]  ;;  %v4893_v43 = vsel %vm840_vm1, %v2370_v7, %v2372_v8  ;;  %v4910_v22 = vsel %vm840_vm1, %v4772_v5, %v2370_v7 }
 0x2a1   : > { %v2199_v17 = vsel %vm930_vm3, %v2188_v37, %v2190_v24  ;;  %v2211_v48 = vadd.f32 %v2194_v6, %v2163_v12  ;;  %v2142_v24 = vmax.f32 %v2094_v41, %v4837_v60  ;;  %v2141_v38 = vmax.f32 %v2093_v44, %v4837_v60 }
 0x2a2   : > { %v2208_v59 = vadd.f32 %v2199_v17, %v2160_v53  ;;  %v2181_v17 = vmax.f32 %v2139_v18, %v5595_v54  ;;  %v4897_v53 = vrot.slane %v2389_v15, 7  ;;  %v2416_v15 = vld [vmem:[%s3190_s12 + $0x88] sm:$0x3f] }
 0x2a3   : > { %v2288_v32 = vrot.slane %v2211_v48, 5  ;;  %v2184_v56 = vmax.f32 %v2142_v24, %v5596_v30  ;;  %v2183_v28 = vmax.f32 %v2141_v38, %v5599_v40  ;;  %v2423_v54 = vrot.slane %v2416_v15, 7  ;;  %v2437_v38 = vld [vmem:[#allocation2 + $0x68] sm:$0xc0]  ;;  %v2439_v30 = vld [vmem:[#allocation2 + $0x88] sm:$0x3f] }
 0x2a4   : > { %v2192_v11 = vpop.permute.xlu0 %2191  ;;  %v2198_v62 = vpop.permute.xlu1 %2197  ;;  %v2284_v52 = vrot.slane %v2208_v59, 5  ;;  %v2531_v40 = vld [vmem:[#allocation2 + $0x60] sm:$0x80] }
 0x2a5   : > { %v2200_v2 = vsel %vm930_vm3, %v2192_v11, %v2194_v6  ;;  %v2213_v1 = vadd.f32 %v2198_v62, %v2165_v21  ;;  %v2289_v57 = vsel %vm2253_vm5, %v2287_v58, %v2288_v32  ;;  %v5597_v6 = vld [vmem:[#allocation11_spill] sm:$0xff]  ;;  %v5600_v11 = vld [vmem:[#allocation25_spill] sm:$0xff] }
 0x2a6   : > { %v2210_v26 = vadd.f32 %v2200_v2, %v2162_v49  ;;  %2296 = vrot.lane.b32.xlu1 %v2289_v57, %s3108_s28  ;;  %v2396_v42 = vrot.slane %v5597_v6, 7  ;;  %v2186_v58 = vmax.f32 %v4832_v29, %v5600_v11  ;;  %v2391_v2 = vld [vmem:[#allocation2 + $0x80] sm:$0x3f]  ;;  %v5607_v11 = vld [vmem:[#allocation17_spill] sm:$0xff] }
 0x2a7   : > { %v2292_v14 = vrot.slane %v2213_v1, 5  ;;  %v2398_v41 = vrot.slane %v2391_v2, 7  ;;  %v5047_v2 = vrot.slane %v5597_v6, 1 }
 0x2a8   : > { %v2285_v27 = vrot.slane %v2210_v26, 5  ;;  %v2196_v36 = vpop.permute.xlu0 %2195  ;;  %v2217_v46 = vpop.permute.xlu1 %2216 }
 0x2a9   : > { %v2201_v25 = vsel %vm930_vm3, %v2196_v36, %v2198_v62  ;;  %v2236_v37 = vmax.f32 %v2182_v35, %v2217_v46  ;;  %v4884_v47 = vsel %vm2253_vm5, %v2288_v32, %v2292_v14  ;;  %v4918_v32 = vsel %vm840_vm1, %v4897_v53, %v2396_v42  ;;  %v5601_v62 = vld [vmem:[#allocation27_spill] sm:$0xff]  ;;  %5608 = vst [vmem:[#allocation23_spill] sm:$0xff] %v5047_v2 }
 0x2aa   : > { %v2212_v3 = vadd.f32 %v2201_v25, %v2164_v63  ;;  %v2286_v55 = vsel %vm2253_vm5, %v2284_v52, %v2285_v27  ;;  %2374 = vrot.lane.b32.xlu1 %v4772_v5, %s3107_s21  ;;  %v2185_v8 = vmax.f32 %v4830_v50, %v5601_v62  ;;  %v4939_v52 = vsel %vm840_vm1, %v2396_v42, %v2398_v41  ;;  %v5615_v41 = vld [vmem:[#allocation18_spill] sm:$0xff] }
 0x2ab   : > { %2294 = vrot.lane.b32.xlu0 %v2286_v55, %s3108_s28  ;;  %v2311_v31 = vmul.f32 %v2236_v37, %v5598_v13  ;;  %v2446_v42 = vrot.slane %v2439_v30, 7  ;;  %v5133_v30 = vpop.f32.mrb[22].mxu1 }
 0x2ac   : > { %v2290_v12 = vrot.slane %v2212_v3, 5  ;;  %v2215_v61 = vpop.permute.xlu0 %2214  ;;  %v2221_v60 = vpop.permute.xlu1 %2220  ;;  %v5605_v3 = vld [vmem:[#allocation29_spill] sm:$0xff]  ;;  %5619 = vst [vmem:[#allocation16_spill] sm:$0xff] %v5133_v30 }
 0x2ad   : > { %v2226_v33 = vsel %vm930_vm3, %v2215_v61, %v2217_v46  ;;  %v2238_v48 = vmax.f32 %v2184_v56, %v2221_v60  ;;  %v2325_v51 = vrot.slane %v2311_v31, 5  ;;  %v2421_v46 = vrot.slane %v5605_v3, 7  ;;  %v5009_v31 = vld [vmem:[%s3190_s12 + $0x68] sm:$0x80] }
 0x2ae   : > { %v2235_v34 = vmax.f32 %v2181_v17, %v2226_v33  ;;  %v2291_v16 = vsel %vm2253_vm5, %v2285_v27, %v2290_v12  ;;  %2378 = vrot.lane.b32.xlu1 %v4893_v43, %s3107_s21  ;;  %v2415_v27 = vld [vmem:[%s3190_s12 + $0x68] sm:$0xc0]  ;;  %v2438_v12 = vld [vmem:[#allocation2 + $0x78] sm:$0xff]  ;;  %v4979_v61 = vrot.slane %v2437_v38, 7 }
 0x2af   : > { %2298 = vrot.lane.b32.xlu0 %v2291_v16, %s3108_s28  ;;  %v2313_v45 = vmul.f32 %v2238_v48, %v5598_v13  ;;  %v4953_v44 = vrot.slane %v2415_v27, 7  ;;  %v4975_v17 = vsel %vm840_vm1, %v2421_v46, %v2423_v54  ;;  %v2444_v33 = vrot.slane %v2438_v12, 7  ;;  %v5002_v16 = vld [vmem:[%s3190_s12 + $0x80] sm:$0x7f]  ;;  %v5020_v48 = vld [vmem:[%s3190_s12 + $0x88] sm:$0x7f] }
 0x2b0   : > { %v2219_v49 = vpop.permute.xlu0 %2218  ;;  %v2310_v19 = vmul.f32 %v2235_v34, %v5598_v13  ;;  %v2225_v20 = vpop.permute.xlu1 %2224  ;;  %v4992_v34 = vld [vmem:[%s3190_s12 + $0x60] sm:$0x80]  ;;  %v2740_v27 = vmul.f32 %v4604_v9, %v5615_v41 }
 0x2b1   : > { %v2227_v59 = vsel %vm930_vm3, %v2219_v49, %v2221_v60  ;;  %v2326_v26 = vrot.slane %v2313_v45, 5  ;;  %v2240_v7 = vmax.f32 %v2186_v58, %v2225_v20  ;;  %v4968_v37 = vsel %vm840_vm1, %v4953_v44, %v2421_v46  ;;  %v2579_v49 = vld [vmem:[#allocation2 + $0x68] sm:$0x80]  ;;  %v1841_v54 = vld [vmem:[#allocation5 + $0x26] sm:$0xff] }
 0x2b2   : > { %v2237_v21 = vmax.f32 %v2183_v28, %v2227_v59  ;;  %2402 = vrot.lane.b32.xlu1 %v4918_v32, %s3107_s21  ;;  %v2322_v57 = vrot.slane %v2310_v19, 5  ;;  %v4989_v56 = vsel %vm840_vm1, %v4979_v61, %v2444_v33  ;;  %v4999_v60 = vsel %vm840_vm1, %v2444_v33, %v2446_v42  ;;  %v2532_v28 = vld [vmem:[#allocation2 + $0x80] sm:$0x7f]  ;;  %v2580_v59 = vld [vmem:[#allocation2 + $0x88] sm:$0x7f] }
 0x2b3   : > { %2376 = vrot.lane.b32.xlu0 %v4910_v22, %s3107_s21  ;;  %v2315_v4 = vmul.f32 %v2240_v7, %v5598_v13  ;;  %v4931_v1 = vsel %vm2253_vm5, %v2325_v51, %v2326_v26  ;;  %v5038_v45 = vrot.slane %v4604_v9, 1  ;;  %v5044_v58 = vrot.slane %v5607_v11, 1  ;;  %v5609_v19 = vld [vmem:[#allocation13_spill] sm:$0xff] }
 0x2b4   : > { %v2312_v29 = vmul.f32 %v2237_v21, %v5598_v13  ;;  %v2223_v10 = vpop.permute.xlu0 %2222  ;;  %5602 = vst [vmem:[#allocation12_spill] sm:$0xff] %v4931_v1  ;;  %v2267_v36 = vpop.permute.xlu1 %2266  ;;  %v5050_v21 = vrot.slane %v5609_v19, 1  ;;  %v2742_v33 = vmul.f32 %v5002_v16, %v5615_v41 }
 0x2b5   : > { %v2228_v0 = vsel %vm930_vm3, %v2223_v10, %v2225_v20  ;;  %v2330_v63 = vrot.slane %v2315_v4, 5  ;;  %v5058_v20 = vsel %vm1073_vm2, %v5038_v45, %v5044_v58  ;;  %v2739_v4 = vmul.f32 %v5009_v31, %v5615_v41 }
 0x2b6   : > { %v2323_v18 = vrot.slane %v2312_v29, 5  ;;  %v2239_v23 = vmax.f32 %v2185_v8, %v2228_v0  ;;  %2460 = vrot.lane.b32.xlu1 %v4772_v5, %s3108_s28  ;;  %5610 = vst [vmem:[#allocation15_spill] sm:$0xff] %v5050_v21  ;;  %v5063_v51 = vsel %vm1073_vm2, %v5047_v2, %v5050_v21  ;;  %v2667_v8 = vld [vmem:[#allocation2 + $0x88] sm:$0xff]  ;;  %v5098_v29 = vrot.slane %v2438_v12, 1 }
 0x2b7   : > { %2400 = vrot.lane.b32.xlu0 %v4897_v53, %s3107_s21  ;;  %v4949_v39 = vsel %vm2253_vm5, %v2326_v26, %v2330_v63  ;;  %5611 = vst [vmem:[#allocation26_spill] sm:$0xff] %v5063_v51  ;;  %v5612_v26 = vld [vmem:[#allocation31_spill] sm:$0xff]  ;;  %v5102_v10 = vrot.slane %v2667_v8, 1  ;;  %v2741_v0 = vmul.f32 %v5605_v3, %v5615_v41 }
 0x2b8   : > { %v2314_v50 = vmul.f32 %v2239_v23, %v5598_v13  ;;  %v2265_v24 = vpop.permute.xlu0 %2264  ;;  %v4943_v14 = vsel %vm2253_vm5, %v2322_v57, %v2323_v18  ;;  %5604 = vst [vmem:[#allocation14_spill] sm:$0xff] %v4949_v39  ;;  %v5081_v7 = vrot.slane %v5612_v26, 1  ;;  %5613 = vst [vmem:[#allocation34_spill] sm:$0xff] %v5098_v29  ;;  %v1835_v57 = vld [vmem:[#allocation3 + $0x24] sm:$0xff]  ;;  %v5112_v23 = vpop.permute.xlu1 %2270  ;;  %v2756_v26 = vrot.slane %v2742_v33, 7 }
 0x2b9   : > { %5603 = vst [vmem:[#allocation19_spill] sm:$0xff] %v4943_v14  ;;  %v4946_v25 = vsel %vm930_vm3, %v2265_v24, %v2267_v36  ;;  %5614 = vst [vmem:[#allocation33_spill] sm:$0xff] %v5102_v10  ;;  %v5117_v63 = vsel %vm1073_vm2, %v5098_v29, %v5102_v10  ;;  %v2743_v36 = vmul.f32 %v5020_v48, %v5615_v41  ;;  %v2753_v24 = vrot.slane %v2739_v4, 7  ;;  %v3076_v39 = vld [vmem:[%s3190_s12 + $0x70] sm:$0xff] }
 0x2ba   : > { %v2328_v35 = vrot.slane %v2314_v50, 5  ;;  %2464 = vrot.lane.b32.xlu1 %v4910_v22, %s3108_s28  ;;  %5616 = vst [vmem:[#allocation10_spill] sm:$0xff] %v5112_v23  ;;  %5617 = vst [vmem:[#allocation28_spill] sm:$0xff] %v5117_v63  ;;  %v2738_v50 = vmul.f32 %v4992_v34, %v5615_v41 }
 0x2bb   : > { %2404 = vrot.lane.b32.xlu0 %v4939_v52, %s3107_s21 }
 0x2bc   : > { %v4959_v55 = vsel %vm2253_vm5, %v2323_v18, %v2328_v35  ;;  %v1837_v18 = vld [vmem:[#allocation4 + $0x25] sm:$0xff]  ;;  %v2754_v35 = vrot.slane %v2741_v0, 7  ;;  %v5127_v15 = vpop.permute.xlu0 %2268  ;;  %v2750_v38 = vrot.slane %v2738_v50, 7 }
 0x2bd   : > { %5606 = vst [vmem:[#allocation22_spill] sm:$0xff] %v4959_v55  ;;  %v1839_v46 = vadd.f32 %v1837_v18, %v1835_v57  ;;  %5618 = vst [vmem:[#allocation32_spill] sm:$0xff] %v5127_v15 }
 0x2be   : > { %2468 = vrot.lane.b32.xlu1 %v4893_v43, %s3108_s28  ;;  %v2755_v42 = vsel %vm840_vm1, %v2753_v24, %v2754_v35 }
 0x2bf   : > { %2462 = vrot.lane.b32.xlu0 %v4953_v44, %s3108_s28  ;;  %v1843_v11 = vadd.f32 %v1841_v54, %v1839_v46 }
 0x2c1   : > { %v2276_v50 = vadd.f32 %v4946_v25, %v1843_v11 }
 0x2c2   : > { %2487 = vrot.lane.b32.xlu1 %v4897_v53, %s3108_s28 }
 0x2c3   : > { %2466 = vrot.lane.b32.xlu0 %v4968_v37, %s3108_s28 }
 0x2c6   : > { %2491 = vrot.lane.b32.xlu1 %v4918_v32, %s3108_s28 }
 0x2c7   : > { %2470 = vrot.lane.b32.xlu0 %v4975_v17, %s3108_s28 }
 0x2ca   : > { %2495 = vrot.lane.b32.xlu1 %v4939_v52, %s3108_s28 }
 0x2cb   : > { %2489 = vrot.lane.b32.xlu0 %v4979_v61, %s3108_s28 }
 0x2ce   : > { %2516 = vrot.lane.b32.xlu1 %v4992_v34, %s3107_s21 }
 0x2cf   : > { %2493 = vrot.lane.b32.xlu0 %v4989_v56, %s3108_s28 }
 0x2d2   : > { %2520 = vrot.lane.b32.xlu1 %v5002_v16, %s3107_s21 }
 0x2d3   : > { %2497 = vrot.lane.b32.xlu0 %v4999_v60, %s3108_s28 }
 0x2d6   : > { %2554 = vrot.lane.b32.xlu1 %v5009_v31, %s3108_s28 }
 0x2d7   : > { %2518 = vrot.lane.b32.xlu0 %v4604_v9, %s3107_s21 }
 0x2da   : > { %2558 = vrot.lane.b32.xlu1 %v5605_v3, %s3108_s28 }
 0x2db   : > { %2552 = vrot.lane.b32.xlu0 %v4992_v34, %s3108_s28 }
 0x2de   : > { %2562 = vrot.lane.b32.xlu1 %v5020_v48, %s3108_s28 }
 0x2df   : > { %2556 = vrot.lane.b32.xlu0 %v4604_v9, %s3108_s28 }
 0x2e2   : > { %2537 = vrot.lane.b32.xlu1 %v5597_v6, %s3107_s21 }
 0x2e3   : > { %2560 = vrot.lane.b32.xlu0 %v5002_v16, %s3108_s28 }
 0x2e6   : > { %2583 = vrot.lane.b32.xlu1 %v2531_v40, %s3108_s28 }
 0x2e7   : > { %2535 = vrot.lane.b32.xlu0 %v2531_v40, %s3107_s21  ;;  %v2758_v40 = vrot.slane %v2743_v36, 7 }
 0x2e9   : > { %v2759_v4 = vsel %vm840_vm1, %v2754_v35, %v2758_v40 }
 0x2ea   : > { %2587 = vrot.lane.b32.xlu1 %v5597_v6, %s3108_s28  ;;  %v5076_v6 = vrot.slane %v5605_v3, 1 }
 0x2eb   : > { %2539 = vrot.lane.b32.xlu0 %v2532_v28, %s3107_s21 }
 0x2ec   : > { %v5090_v62 = vsel %vm1073_vm2, %v5076_v6, %v5081_v7 }
 0x2ee   : > { %2591 = vrot.lane.b32.xlu1 %v2532_v28, %s3108_s28  ;;  %v727_v28 = vpop.f32.mrb[23].mxu1 }
 0x2ef   : > { %2585 = vrot.lane.b32.xlu0 %v2579_v49, %s3108_s28 }
 0x2f2   : > { %2615 = vrot.lane.b32.xlu1 %v5038_v45, %s3107_s21 }
 0x2f3   : > { %2589 = vrot.lane.b32.xlu0 %v2438_v12, %s3108_s28  ;;  %v2751_v12 = vrot.slane %v2740_v27, 7  ;;  %v5148_v27 = vld [vmem:[%s5388_s3] sm:$0xff] }
 0x2f4   : > { %5621 = vst [vmem:[#allocation30_spill] sm:$0xff] %v5148_v27 }
 0x2f5   : > { %v2757_v24 = vsel %vm840_vm1, %v2751_v12, %v2756_v26 }
 0x2f6   : > { %2619 = vrot.lane.b32.xlu1 %v5044_v58, %s3107_s21 }
 0x2f7   : > { %2593 = vrot.lane.b32.xlu0 %v2580_v59, %s3108_s28  ;;  %v5136_v59 = vpop.f32.mrb[24].mxu1 }
 0x2f8   : > { %5620 = vst [vmem:[#allocation9_spill] sm:$0xff] %v5136_v59  ;;  %v732_v19 = vpop.f32.mrb[25].mxu1 }
 0x2f9   : > { %v733_v8 = vpop.f32.mrb[26].mxu1 }
 0x2fa   : > { %2637 = vrot.lane.b32.xlu1 %v5063_v51, %s3107_s21  ;;  %v734_v0 = vpop.f32.mrb[27].mxu1 }
 0x2fb   : > { %2617 = vrot.lane.b32.xlu0 %v5058_v20, %s3107_s21 }
 0x2fe   : > { %2684 = vrot.lane.b32.xlu1 %v5038_v45, %s3108_s28 }
 0x2ff   : > { %2635 = vrot.lane.b32.xlu0 %v5047_v2, %s3107_s21 }
 0x302   : > { %2688 = vrot.lane.b32.xlu1 %v5058_v20, %s3108_s28 }
 0x303   : > { %2639 = vrot.lane.b32.xlu0 %v5050_v21, %s3107_s21 }
 0x306   : > { %2692 = vrot.lane.b32.xlu1 %v5044_v58, %s3108_s28 }
 0x307   : > { %2686 = vrot.lane.b32.xlu0 %v5076_v6, %s3108_s28 }
 0x30a   : > { %2711 = vrot.lane.b32.xlu1 %v5047_v2, %s3108_s28 }
 0x30b   : > { %2690 = vrot.lane.b32.xlu0 %v5090_v62, %s3108_s28 }
 0x30e   : > { %2715 = vrot.lane.b32.xlu1 %v5063_v51, %s3108_s28 }
 0x30f   : > { %2694 = vrot.lane.b32.xlu0 %v5081_v7, %s3108_s28 }
 0x312   : > { %2719 = vrot.lane.b32.xlu1 %v5050_v21, %s3108_s28 }
 0x313   : > { %2713 = vrot.lane.b32.xlu0 %v5098_v29, %s3108_s28 }
 0x316   : > { %2300 = vrot.lane.b32.xlu1 %v4884_v47, %s3108_s28  ;;  %v2752_v47 = vsel %vm840_vm1, %v2750_v38, %v2751_v12 }
 0x317   : > { %2717 = vrot.lane.b32.xlu0 %v5117_v63, %s3108_s28 }
 0x318   : > { %v2297_v49 = vpop.permute.xlu1 %2296 }
 0x31a   : > { %2762 = vrot.lane.b32.xlu1 %v2755_v42, %s3108_s28 }
 0x31b   : > { %2721 = vrot.lane.b32.xlu0 %v5102_v10, %s3108_s28 }
 0x31c   : > { %v2375_v18 = vpop.permute.xlu1 %2374 }
 0x31d   : > { %v2295_v41 = vpop.permute.xlu0 %2294  ;;  %v2384_v40 = vadd.f32 %v2375_v18, %v5009_v31  ;;  %v2383_v28 = vadd.f32 %v2375_v18, %v4992_v34 }
 0x31e   : > { %v2302_v57 = vsel %vm930_vm3, %v2295_v41, %v2297_v49  ;;  %2766 = vrot.lane.b32.xlu1 %v2759_v4, %s3108_s28 }
 0x31f   : > { %v2306_v36 = vmul.f32 %v5148_v27, %v2302_v57  ;;  %2760 = vrot.lane.b32.xlu0 %v2752_v47, %s3108_s28  ;;  %v2432_v12 = vadd.f32 %v4953_v44, %v2384_v40  ;;  %v2431_v19 = vadd.f32 %v2383_v28, %v4772_v5 }
 0x320   : > { %v5158_v54 = vpop.permute.xlu1 %2378 }
 0x321   : > { %v5154_v35 = vpop.permute.xlu0 %2298  ;;  %v5156_v46 = vadd.f32 %v2306_v36, %v2276_v50  ;;  %v2388_v1 = vadd.f32 %v5158_v54, %v5020_v48  ;;  %v2387_v63 = vadd.f32 %v5158_v54, %v5002_v16 }
 0x322   : > { %5622 = vst [vmem:[#allocation20_spill] sm:$0xff] %v5154_v35 }
 0x323   : > { %5623 = vst [vmem:[#allocation24_spill] sm:$0xff] %v5156_v46  ;;  %2764 = vrot.lane.b32.xlu0 %v2757_v24, %s3108_s28 }
 0x324   : > { %v2403_v38 = vpop.permute.xlu1 %2402 }
 0x325   : > { %v5161_v25 = vpop.permute.xlu0 %2376  ;;  %v2412_v5 = vmax.f32 %v5605_v3, %v2403_v38 }
 0x326   : > { %v2386_v55 = vadd.f32 %v5161_v25, %v5605_v3  ;;  %v2385_v21 = vadd.f32 %v3076_v39, %v5161_v25 }
 0x328   : > { %v2461_v42 = vpop.permute.xlu1 %2460  ;;  %v2434_v13 = vadd.f32 %v4968_v37, %v2386_v55  ;;  %v2433_v2 = vadd.f32 %v2385_v21, %v4910_v22 }
 0x329   : > { %v2401_v33 = vpop.permute.xlu0 %2400 }
 0x32a   : > { %v2410_v18 = vmax.f32 %v5009_v31, %v2401_v33  ;;  %v2409_v50 = vmax.f32 %v4992_v34, %v2401_v33 }
 0x32c   : > { %v5165_v11 = vpop.permute.xlu1 %2464  ;;  %v5182_v24 = vmax.f32 %v2410_v18, %v4979_v61  ;;  %v5186_v40 = vmax.f32 %v2409_v50, %v4897_v53 }
 0x32d   : > { %v2405_v49 = vpop.permute.xlu0 %2404 }
 0x32e   : > { %v2414_v61 = vmax.f32 %v5020_v48, %v2405_v49  ;;  %v2436_v48 = vadd.f32 %v4975_v17, %v2388_v1 }
 0x330   : > { %v5172_v41 = vpop.permute.xlu1 %2468 }
 0x331   : > { %v2463_v47 = vpop.permute.xlu0 %2462 }
 0x332   : > { %v2472_v26 = vsel %vm930_vm3, %v2461_v42, %v2463_v47  ;;  %v5170_v8 = vadd.f32 %v2463_v47, %v2432_v12  ;;  %v2411_v42 = vmax.f32 %v4604_v9, %v2403_v38  ;;  %v5200_v9 = vmax.f32 %v2412_v5, %v4989_v56 }
 0x333   : > { %v5174_v4 = vadd.f32 %v2472_v26, %v2431_v19  ;;  %v2413_v38 = vmax.f32 %v5002_v16, %v2405_v49  ;;  %v5217_v56 = vmax.f32 %v2414_v61, %v4999_v60 }
 0x334   : > { %v2488_v57 = vpop.permute.xlu1 %2487  ;;  %v5203_v53 = vmax.f32 %v2411_v42, %v4918_v32 }
 0x335   : > { %v2467_v0 = vpop.permute.xlu0 %2466  ;;  %v5220_v32 = vmax.f32 %v2413_v38, %v4939_v52 }
 0x336   : > { %v2473_v51 = vsel %vm930_vm3, %v5165_v11, %v2467_v0 }
 0x337   : > { %5624 = vst [vmem:[#allocation11_spill] sm:$0xff] %v5220_v32  ;;  %v2483_v29 = vadd.f32 %v2473_v51, %v2433_v2 }
 0x338   : > { %v2492_v44 = vpop.permute.xlu1 %2491 }
 0x339   : > { %v5178_v36 = vpop.permute.xlu0 %2470 }
 0x33a   : > { %v2474_v37 = vsel %vm930_vm3, %v5172_v41, %v5178_v36  ;;  %v2486_v2 = vadd.f32 %v5178_v36, %v2436_v48 }
 0x33c   : > { %v2496_v33 = vpop.permute.xlu1 %2495 }
 0x33d   : > { %v5188_v28 = vpop.permute.xlu0 %2489 }
 0x33e   : > { %v5192_v31 = vsel %vm930_vm3, %v2488_v57, %v5188_v28  ;;  %v5626_v36 = vmax.f32 %v5182_v24, %v5188_v28 }
 0x340   : > { %v2517_v57 = vpop.permute.xlu1 %2516 }
 0x341   : > { %v5206_v19 = vpop.permute.xlu0 %2493  ;;  %v2526_v39 = vadd.f32 %v2517_v57, %v5170_v8  ;;  %v2525_v55 = vadd.f32 %v2517_v57, %v5174_v4 }
 0x342   : > { %v5210_v47 = vsel %vm930_vm3, %v2492_v44, %v5206_v19 }
 0x344   : > { %v2521_v5 = vpop.permute.xlu1 %2520 }
 0x345   : > { %v5222_v49 = vpop.permute.xlu0 %2497 }
 0x346   : > { %v5226_v50 = vsel %vm930_vm3, %v2496_v33, %v5222_v49 }
 0x347   : > { %5625 = vst [vmem:[#allocation21_spill] sm:$0xff] %v5226_v50  ;;  %v2484_v50 = vadd.f32 %v2467_v0, %v2434_v13  ;;  %v2435_v13 = vadd.f32 %v2387_v63, %v4893_v43 }
 0x348   : > { %v2555_v18 = vpop.permute.xlu1 %2554 }
 0x349   : > { %v2519_v26 = vpop.permute.xlu0 %2518  ;;  %v2574_v16 = vadd.f32 %v2555_v18, %v2526_v39  ;;  %v2485_v4 = vadd.f32 %v2474_v37, %v2435_v13 }
 0x34a   : > { %v2528_v11 = vadd.f32 %v2519_v26, %v2484_v50  ;;  %v2527_v21 = vadd.f32 %v2519_v26, %v2483_v29 }
 0x34b   : > { %v2529_v50 = vadd.f32 %v2521_v5, %v2485_v4 }
 0x34c   : > { %v2559_v61 = vpop.permute.xlu1 %2558 }
 0x34d   : > { %v2553_v60 = vpop.permute.xlu0 %2552  ;;  %v2576_v51 = vadd.f32 %v2559_v61, %v2528_v11 }
 0x34e   : > { %v2564_v25 = vsel %vm930_vm3, %v2553_v60, %v2555_v18  ;;  %v2530_v60 = vadd.f32 %v2521_v5, %v2486_v2 }
 0x34f   : > { %v2573_v54 = vadd.f32 %v2564_v25, %v2525_v55 }
 0x350   : > { %v2563_v38 = vpop.permute.xlu1 %2562 }
 0x351   : > { %v2557_v52 = vpop.permute.xlu0 %2556  ;;  %v2578_v43 = vadd.f32 %v2563_v38, %v2530_v60 }
 0x352   : > { %v2565_v22 = vsel %vm930_vm3, %v2557_v52, %v2559_v61 }
 0x353   : > { %v2575_v0 = vadd.f32 %v2565_v22, %v2527_v21 }
 0x354   : > { %v5232_v34 = vpop.permute.xlu1 %2537 }
 0x355   : > { %v2561_v12 = vpop.permute.xlu0 %2560 }
 0x356   : > { %v2566_v41 = vsel %vm930_vm3, %v2561_v12, %v2563_v38 }
 0x357   : > { %v2577_v26 = vadd.f32 %v2566_v41, %v2529_v50 }
 0x358   : > { %v2584_v33 = vpop.permute.xlu1 %2583 }
 0x359   : > { %v2536_v59 = vpop.permute.xlu0 %2535 }
 0x35a   : > { %v2545_v61 = vmax.f32 %v5626_v36, %v2536_v59 }
 0x35c   : > { %v5236_v46 = vpop.permute.xlu1 %2587 }
 0x35d   : > { %v5234_v27 = vpop.permute.xlu0 %2539 }
 0x360   : > { %v5240_v30 = vpop.permute.xlu1 %2591 }
 0x361   : > { %v5238_v44 = vpop.permute.xlu0 %2585 }
 0x362   : > { %v2595_v12 = vsel %vm930_vm3, %v2584_v33, %v5238_v44  ;;  %v2605_v33 = vmax.f32 %v2545_v61, %v5238_v44 }
 0x364   : > { %v2616_v15 = vpop.permute.xlu1 %2615 }
 0x365   : > { %v5242_v42 = vpop.permute.xlu0 %2589  ;;  %v2625_v1 = vadd.f32 %v2616_v15, %v2574_v16  ;;  %v2624_v57 = vadd.f32 %v2616_v15, %v2573_v54 }
 0x367   : > { %v2662_v29 = vadd.f32 %v5076_v6, %v2625_v1  ;;  %v2661_v25 = vadd.f32 %v2624_v57, %v5038_v45  ;;  %v5627_v6 = vmax.f32 %v5186_v40, %v5192_v31  ;;  %v5628_v45 = vmax.f32 %v5203_v53, %v5210_v47  ;;  %v5631_v57 = vld [vmem:[#allocation34_spill] sm:$0xff] }
 0x368   : > { %v2620_v35 = vpop.permute.xlu1 %2619  ;;  %v5630_v1 = vmax.f32 %v5217_v56, %v5222_v49  ;;  %v5632_v56 = vld [vmem:[#allocation11_spill] sm:$0xff]  ;;  %v5633_v49 = vld [vmem:[#allocation21_spill] sm:$0xff] }
 0x369   : > { %v5244_v23 = vpop.permute.xlu0 %2593  ;;  %v2629_v48 = vadd.f32 %v2620_v35, %v2578_v43  ;;  %v2544_v38 = vmax.f32 %v5627_v6, %v2536_v59  ;;  %v2546_v28 = vmax.f32 %v5628_v45, %v5232_v34  ;;  %v5634_v41 = vmax.f32 %v5632_v56, %v5633_v49 }
 0x36b   : > { %v2666_v47 = vadd.f32 %v5081_v7, %v2629_v48 }
 0x36c   : > { %v5250_v14 = vpop.permute.xlu1 %2637 }
 0x36d   : > { %v2618_v10 = vpop.permute.xlu0 %2617 }
 0x36e   : > { %v2627_v18 = vadd.f32 %v2618_v10, %v2576_v51  ;;  %v2626_v52 = vadd.f32 %v2618_v10, %v2575_v0 }
 0x370   : > { %v2685_v32 = vpop.permute.xlu1 %2684  ;;  %v2664_v10 = vadd.f32 %v5090_v62, %v2627_v18  ;;  %v2663_v55 = vadd.f32 %v2626_v52, %v5058_v20  ;;  %v5629_v62 = vmax.f32 %v5200_v9, %v5206_v19  ;;  %v2596_v20 = vsel %vm930_vm3, %v5236_v46, %v5242_v42  ;;  %v5635_v52 = vld [vmem:[#allocation23_spill] sm:$0xff] }
 0x371   : > { %v2636_v3 = vpop.permute.xlu0 %2635  ;;  %v2606_v7 = vmax.f32 %v2546_v28, %v2596_v20  ;;  %v2548_v18 = vmax.f32 %v5634_v41, %v5234_v27  ;;  %v5639_v28 = vld [vmem:[#allocation12_spill] sm:$0xff] }
 0x372   : > { %v2547_v59 = vmax.f32 %v5629_v62, %v5232_v34  ;;  %v2645_v31 = vmax.f32 %v2605_v33, %v2636_v3 }
 0x373   : > { %v2646_v50 = vmax.f32 %v2606_v7, %v5250_v14 }
 0x374   : > { %v2689_v17 = vpop.permute.xlu1 %2688  ;;  %v2607_v34 = vmax.f32 %v2547_v59, %v5242_v42  ;;  %v2597_v42 = vsel %vm930_vm3, %v5240_v30, %v5244_v23  ;;  %v2679_v60 = vmax.f32 %v2645_v31, %v5631_v57  ;;  %v1836_v57 = vld [vmem:[#allocation3 + $0x2c] sm:$0xff] }
 0x375   : > { %v5269_v8 = vpop.permute.xlu0 %2639  ;;  %v2608_v61 = vmax.f32 %v2548_v18, %v2597_v42  ;;  %v1842_v18 = vld [vmem:[#allocation5 + $0x2e] sm:$0xff] }
 0x378   : > { %v2693_v15 = vpop.permute.xlu1 %2692 }
 0x379   : > { %v2687_v39 = vpop.permute.xlu0 %2686 }
 0x37a   : > { %v2696_v63 = vsel %vm930_vm3, %v2685_v32, %v2687_v39  ;;  %v2706_v5 = vadd.f32 %v2687_v39, %v2662_v29  ;;  %v2628_v32 = vadd.f32 %v2620_v35, %v2577_v26  ;;  %v2604_v35 = vmax.f32 %v2544_v38, %v2595_v12  ;;  %v5636_v12 = vld [vmem:[#allocation28_spill] sm:$0xff]  ;;  %v5638_v38 = vld [vmem:[#allocation35_spill] sm:$0xff] }
 0x37b   : > { %v2705_v37 = vadd.f32 %v2696_v63, %v2661_v25 }
 0x37c   : > { %v2783_v22 = vrot.slane %v2706_v5, 7  ;;  %v2665_v44 = vadd.f32 %v2628_v32, %v5044_v58  ;;  %v2644_v13 = vmax.f32 %v2604_v35, %v2636_v3  ;;  %v2712_v2 = vpop.permute.xlu1 %2711  ;;  %v2647_v3 = vmax.f32 %v2607_v34, %v5250_v14  ;;  %v5637_v5 = vld [vmem:[#allocation26_spill] sm:$0xff] }
 0x37d   : > { %v2691_v24 = vpop.permute.xlu0 %2690  ;;  %v2780_v21 = vrot.slane %v2705_v37, 7 }
 0x37e   : > { %v2697_v11 = vsel %vm930_vm3, %v2689_v17, %v2691_v24  ;;  %v2708_v16 = vadd.f32 %v2691_v24, %v2664_v10  ;;  %v2549_v17 = vmax.f32 %v5630_v1, %v5234_v27  ;;  %v2678_v39 = vmax.f32 %v2644_v13, %v5635_v52  ;;  %v2350_v52 = vld [vmem:[#allocation4 + $0x37] sm:$0xff] }
 0x37f   : > { %v2707_v40 = vadd.f32 %v2697_v11, %v2663_v55  ;;  %v2681_v48 = vmax.f32 %v2647_v3, %v5636_v12  ;;  %v2648_v10 = vmax.f32 %v2608_v61, %v5269_v8  ;;  %v5640_v11 = vld [vmem:[#allocation19_spill] sm:$0xff]  ;;  %v5647_v61 = vld [vmem:[#allocation32_spill] sm:$0xff]  ;;  %v3077_v12 = vld [vmem:[%s5388_s3 + $0x8] sm:$0xff] }
 0x380   : > { %v2784_v53 = vrot.slane %v2708_v16, 7  ;;  %v2609_v30 = vmax.f32 %v2549_v17, %v5244_v23  ;;  %v2716_v25 = vpop.permute.xlu1 %2715  ;;  %v2680_v23 = vmax.f32 %v2646_v50, %v5637_v5  ;;  %v5641_v16 = vld [vmem:[#allocation33_spill] sm:$0xff] }
 0x381   : > { %v2781_v54 = vrot.slane %v2707_v40, 7  ;;  %v2695_v51 = vpop.permute.xlu0 %2694  ;;  %v2348_v50 = vld [vmem:[#allocation3 + $0x36] sm:$0xff] }
 0x382   : > { %v2698_v9 = vsel %vm930_vm3, %v2693_v15, %v2695_v51  ;;  %v2710_v19 = vadd.f32 %v2695_v51, %v2666_v47  ;;  %v2785_v46 = vsel %vm840_vm1, %v2783_v22, %v2784_v53  ;;  %v2649_v14 = vmax.f32 %v2609_v30, %v5269_v8  ;;  %v5642_v8 = vld [vmem:[#allocation15_spill] sm:$0xff]  ;;  %v5644_v51 = vld [vmem:[#allocation22_spill] sm:$0xff] }
 0x383   : > { %v2709_v4 = vadd.f32 %v2698_v9, %v2665_v44  ;;  %2792 = vrot.lane.b32.xlu1 %v2785_v46, %s3108_s28  ;;  %v2782_v58 = vsel %vm840_vm1, %v2780_v21, %v2781_v54  ;;  %v2682_v59 = vmax.f32 %v2648_v10, %v5642_v8 }
 0x384   : > { %v2788_v0 = vrot.slane %v2710_v19, 7  ;;  %2790 = vrot.lane.b32.xlu0 %v2782_v58, %s3108_s28  ;;  %v2683_v62 = vmax.f32 %v2649_v14, %v5641_v16  ;;  %v2720_v35 = vpop.permute.xlu1 %2719 }
 0x385   : > { %v2786_v43 = vrot.slane %v2709_v4, 7  ;;  %v2714_v29 = vpop.permute.xlu0 %2713 }
 0x386   : > { %v2723_v63 = vsel %vm930_vm3, %v2712_v2, %v2714_v29  ;;  %v2733_v26 = vmax.f32 %v2679_v60, %v2714_v29  ;;  %v2789_v36 = vsel %vm840_vm1, %v2784_v53, %v2788_v0  ;;  %v1838_v60 = vld [vmem:[#allocation4 + $0x2d] sm:$0xff] }
 0x387   : > { %v2732_v15 = vmax.f32 %v2678_v39, %v2723_v63  ;;  %2796 = vrot.lane.b32.xlu1 %v2789_v36, %s3108_s28  ;;  %v2787_v27 = vsel %vm840_vm1, %v2781_v54, %v2786_v43  ;;  %v5643_v54 = vld [vmem:[#allocation14_spill] sm:$0xff]  ;;  %v1840_v41 = vadd.f32 %v1838_v60, %v1836_v57  ;;  %v5645_v29 = vld [vmem:[#allocation20_spill] sm:$0xff] }
 0x388   : > { %2794 = vrot.lane.b32.xlu0 %v2787_v27, %s3108_s28  ;;  %v2807_v32 = vmul.f32 %v2733_v26, %v5638_v38  ;;  %v2301_v4 = vpop.permute.xlu1 %2300  ;;  %v2352_v26 = vadd.f32 %v2350_v52, %v2348_v50  ;;  %v5646_v36 = vld [vmem:[#allocation10_spill] sm:$0xff] }
 0x389   : > { %v2718_v6 = vpop.permute.xlu0 %2717  ;;  %v2806_v24 = vmul.f32 %v2732_v15, %v5638_v38  ;;  %v2303_v30 = vsel %vm930_vm3, %v5645_v29, %v2301_v4  ;;  %v1844_v63 = vadd.f32 %v1842_v18, %v1840_v41  ;;  %v2349_v15 = vld [vmem:[#allocation3 + $0x3e] sm:$0xff]  ;;  %v2351_v27 = vld [vmem:[#allocation4 + $0x3f] sm:$0xff] }
 0x38a   : > { %v2724_v55 = vsel %vm930_vm3, %v2716_v25, %v2718_v6  ;;  %v2735_v37 = vmax.f32 %v2681_v48, %v2718_v6  ;;  %v2821_v31 = vrot.slane %v2807_v32, 7  ;;  %v2273_v25 = vsel %vm930_vm3, %v5647_v61, %v5646_v36 }
 0x38b   : > { %v2734_v45 = vmax.f32 %v2680_v23, %v2724_v55  ;;  %2334 = vrot.lane.b32.xlu1 %v5639_v28, %s3108_s28  ;;  %v2818_v44 = vrot.slane %v2806_v24, 7  ;;  %v2307_v48 = vmul.f32 %v3077_v12, %v2303_v30  ;;  %v2277_v6 = vadd.f32 %v2273_v25, %v1844_v63 }
 0x38c   : > { %v2809_v33 = vmul.f32 %v2735_v37, %v5638_v38  ;;  %2332 = vrot.lane.b32.xlu0 %v5640_v11, %s3108_s28  ;;  %v2763_v58 = vpop.permute.xlu1 %2762  ;;  %v2353_v55 = vadd.f32 %v2351_v27, %v2349_v15  ;;  %v5649_v37 = vld [vmem:[#allocation24_spill] sm:$0xff] }
 0x38d   : > { %v2808_v20 = vmul.f32 %v2734_v45, %v5638_v38  ;;  %v2722_v40 = vpop.permute.xlu0 %2721 }
 0x38e   : > { %v2822_v22 = vrot.slane %v2809_v33, 7  ;;  %v2725_v53 = vsel %vm930_vm3, %v2720_v35, %v2722_v40  ;;  %v2737_v47 = vmax.f32 %v2683_v62, %v2722_v40  ;;  %v5650_v33 = vld [vmem:[#allocation30_spill] sm:$0xff]  ;;  %v2309_v62 = vadd.f32 %v2307_v48, %v2277_v6 }
 0x38f   : > { %v2819_v13 = vrot.slane %v2808_v20, 7  ;;  %v2736_v21 = vmax.f32 %v2682_v59, %v2725_v53  ;;  %2338 = vrot.lane.b32.xlu1 %v5643_v54, %s3108_s28  ;;  %v5651_v20 = vld [vmem:[#allocation9_spill] sm:$0xff] }
 0x390   : > { %v2811_v2 = vmul.f32 %v2737_v47, %v5638_v38  ;;  %2336 = vrot.lane.b32.xlu0 %v5644_v51, %s3108_s28  ;;  %v2823_v34 = vsel %vm840_vm1, %v2821_v31, %v2822_v22  ;;  %v2767_v3 = vpop.permute.xlu1 %2766  ;;  %v2357_v40 = vadd.f32 %v2353_v55, %v5651_v20 }
 0x391   : > { %v2810_v9 = vmul.f32 %v2736_v21, %v5638_v38  ;;  %v2820_v19 = vsel %vm840_vm1, %v2818_v44, %v2819_v13  ;;  %v2761_v42 = vpop.permute.xlu0 %2760  ;;  %v5648_v38 = vld [vmem:[#allocation16_spill] sm:$0xff] }
 0x392   : > { %v2826_v46 = vrot.slane %v2811_v2, 7  ;;  %v2356_v32 = vadd.f32 %v2352_v26, %v5648_v38  ;;  %v2768_v45 = vsel %vm930_vm3, %v2761_v42, %v2763_v58 }
 0x393   : > { %v2824_v1 = vrot.slane %v2810_v9, 7  ;;  %2830 = vrot.lane.b32.xlu1 %v2823_v34, %s3108_s28 }
 0x394   : > { %2828 = vrot.lane.b32.xlu0 %v2820_v19, %s3108_s28  ;;  %v2827_v17 = vsel %vm840_vm1, %v2822_v22, %v2826_v46  ;;  %v2772_v35 = vadd.f32 %v2768_v45, %v2356_v32 }
 0x395   : > { %v2825_v7 = vsel %vm840_vm1, %v2819_v13, %v2824_v1  ;;  %v2765_v0 = vpop.permute.xlu0 %2764 }
 0x396   : > { %v2769_v22 = vsel %vm930_vm3, %v2765_v0, %v2767_v3 }
 0x397   : > { %2834 = vrot.lane.b32.xlu1 %v2827_v17, %s3108_s28  ;;  %v2773_v54 = vadd.f32 %v2769_v22, %v2357_v40 }
 0x398   : > { %2832 = vrot.lane.b32.xlu0 %v2825_v7, %s3108_s28 }
 0x3f5   : > { %v2793_v56 = vpop.permute.xlu1 %2792 }
 0x3f6   : > { %v2791_v49 = vpop.permute.xlu0 %2790 }
 0x3f7   : > { %v2798_v23 = vsel %vm930_vm3, %v2791_v49, %v2793_v56 }
 0x3f8   : > { %v2802_v11 = vmul.f32 %v5650_v33, %v2798_v23 }
 0x3f9   : > { %v2797_v39 = vpop.permute.xlu1 %2796 }
 0x3fa   : > { %v2795_v43 = vpop.permute.xlu0 %2794  ;;  %v2804_v13 = vadd.f32 %v2802_v11, %v2772_v35 }
 0x3fb   : > { %v2799_v8 = vsel %vm930_vm3, %v2795_v43, %v2797_v39 }
 0x3fc   : > { %v2803_v47 = vmul.f32 %v3077_v12, %v2799_v8 }
 0x3fd   : > { %v2335_v14 = vpop.permute.xlu1 %2334 }
 0x3fe   : > { %v2333_v5 = vpop.permute.xlu0 %2332  ;;  %v2805_v9 = vadd.f32 %v2803_v47, %v2773_v54 }
 0x3ff   : > { %v2340_v10 = vsel %vm930_vm3, %v2333_v5, %v2335_v14 }
 0x400   : > { %v2344_v24 = vadd.f32 %v2340_v10, %v5649_v37 }
 0x401   : > { %v2339_v28 = vpop.permute.xlu1 %2338 }
 0x402   : > { %2346 = vst [vmem:[%s4225_s16 + $0x20] sm:$0xff] %v2344_v24  ;;  %v2337_v16 = vpop.permute.xlu0 %2336 }
 0x403   : > { %v2341_v59 = vsel %vm930_vm3, %v2337_v16, %v2339_v28 }
 0x404   : > { %v2345_v31 = vadd.f32 %v2341_v59, %v2309_v62 }
 0x405   : > { %v2831_v53 = vpop.permute.xlu1 %2830 }
 0x406   : > { %2347 = vst [vmem:[%s4225_s16 + $0x28] sm:$0xff] %v2345_v31  ;;  %v2829_v44 = vpop.permute.xlu0 %2828 }
 0x407   : > { %v2836_v21 = vsel %vm930_vm3, %v2829_v44, %v2831_v53 }
 0x408   : > { %v2840_v2 = vadd.f32 %v2836_v21, %v2804_v13 }
 0x409   : > { %v2835_v51 = vpop.permute.xlu1 %2834 }
 0x40a   : > { %2842 = vst [vmem:[%s4225_s16 + $0x30] sm:$0xff] %v2840_v2  ;;  %v2833_v34 = vpop.permute.xlu0 %2832 }
 0x40b   : > { %v2837_v19 = vsel %vm930_vm3, %v2833_v34, %v2835_v51 }
 0x40c   : > { %v2841_v46 = vadd.f32 %v2837_v19, %v2805_v9 }
 0x40e   : > { %2843 = vst [vmem:[%s4225_s16 + $0x38] sm:$0xff] %v2841_v46 }
 0x40f PF: > { %s16_s18 = sadd.s32 1, %s3103_s18  }
 0x410   : > { %p13_p1 = scmp.ge.s32.totalorder %s16_s18, 4  }
 0x412   :  { %15 = sbr.rel (!%p13_p1) target bundleno = 1 (0x1), region = 77 }
 0x419   :  { %2865 = vsyncpa [#allocation7], 1 }
 0x41a   :  { %2867 = vsyncpa [#allocation7 + $0x1], 1 }

</bundles_post_ra>
